<compile_context>
chip_gen: v6e
topology: v6e:2x2x1
jax: 0.10.0
libtpu: 0.0.40
codegen_flags: <defaults>
</compile_context>

<pallas_src>
import functools

import jax
import jax.numpy as jnp
from jax.experimental import pallas as pl
from jax.experimental.pallas import tpu as pltpu


# ---------------------------------------------------------------------------
# tiling helpers
# ---------------------------------------------------------------------------
def _round_up(x, m):
    return ((x + m - 1) // m) * m


_MAX_TM = 256
_MAX_TN = 256
_MAX_TK = 1152


def _choose_m(M):
    """Returns (TM, padded_M)."""
    if M <= _MAX_TM:
        Mp = _round_up(M, 8)
        return Mp, Mp
    return _MAX_TM, _round_up(M, _MAX_TM)


def _choose_n(N):
    """Returns (TN, padded_N)."""
    if N <= _MAX_TN:
        return N, N                      # full-N block is always legal
    if N % _MAX_TN == 0:
        return _MAX_TN, N
    if N % 128 == 0:
        return 128, N
    Np = _round_up(N, 128)
    return 128, Np


def _choose_k(K):
    """Returns (TK, padded_K)."""
    if K <= _MAX_TK:
        return K, K                      # single K step (27, 576, 1152)
    for tk in range(_MAX_TK, 127, -128):
        if K % tk == 0:
            return tk, K                 # e.g. K=2304 -> TK=1152
    Kp = _round_up(K, 128)
    for tk in range(_MAX_TK, 127, -128):
        if Kp % tk == 0:
            return tk, Kp
    return 128, Kp


# ---------------------------------------------------------------------------
# Pallas kernel: tiled  out = [relu]( (X @ W) * scale + bias )
# X,W in bf16, accumulate in f32 VMEM scratch across the K grid axis.
# ---------------------------------------------------------------------------
def _matmul_affine_kernel(x_ref, w_ref, s_ref, b_ref, o_ref, acc_ref, *, relu):
    @pl.when(pl.program_id(2) == 0)
    def _init():
        acc_ref[...] = jnp.zeros_like(acc_ref)

    acc_ref[...] += jnp.dot(x_ref[...], w_ref[...],
                            preferred_element_type=jnp.float32)

    @pl.when(pl.program_id(2) == pl.num_programs(2) - 1)
    def _finalize():
        out = acc_ref[...] * s_ref[...] + b_ref[...]
        if relu:
            out = jnp.maximum(out, 0.0)
        o_ref[...] = out.astype(o_ref.dtype)


def matmul_affine(x, w, scale, bias, *, relu, out_dtype=jnp.bfloat16):
    """x: [M, K], w: [K, N], scale/bias: [N] -> [M, N] in out_dtype."""
    M, K = x.shape
    K2, N = w.shape
    assert K == K2
    TM, Mp = _choose_m(M)
    TN, Np = _choose_n(N)
    TK, Kp = _choose_k(K)

    x = x.astype(jnp.bfloat16)
    w = w.astype(jnp.bfloat16)
    if (Mp, Kp) != (M, K):
        x = jnp.pad(x, ((0, Mp - M), (0, Kp - K)))
    if (Kp, Np) != (K, N):
        w = jnp.pad(w, ((0, Kp - K), (0, Np - N)))
    s2 = scale.astype(jnp.float32).reshape(1, N)
    b2 = bias.astype(jnp.float32).reshape(1, N)
    if Np != N:
        s2 = jnp.pad(s2, ((0, 0), (0, Np - N)))
        b2 = jnp.pad(b2, ((0, 0), (0, Np - N)))

    grid = (Mp // TM, Np // TN, Kp // TK)
    cost = pl.CostEstimate(
        flops=2 * Mp * Np * Kp,
        transcendentals=0,
        bytes_accessed=(Mp * Kp + Kp * Np) * 2
        + Mp * Np * jnp.dtype(out_dtype).itemsize
        + 2 * 4 * Np,
    )

    out = pl.pallas_call(
        functools.partial(_matmul_affine_kernel, relu=relu),
        out_shape=jax.ShapeDtypeStruct((Mp, Np), out_dtype),
        grid_spec=pltpu.PrefetchScalarGridSpec(
            num_scalar_prefetch=0,
            grid=grid,
            in_specs=[
                pl.BlockSpec((TM, TK), lambda i, j, k: (i, k)),
                pl.BlockSpec((TK, TN), lambda i, j, k: (k, j)),
                pl.BlockSpec((1, TN), lambda i, j, k: (0, j)),
                pl.BlockSpec((1, TN), lambda i, j, k: (0, j)),
            ],
            out_specs=pl.BlockSpec((TM, TN), lambda i, j, k: (i, j)),
            scratch_shapes=[pltpu.VMEM((TM, TN), jnp.float32)],
        ),
        compiler_params=pltpu.CompilerParams(
            dimension_semantics=("parallel", "parallel", "arbitrary"),
            vmem_limit_bytes=32 * 1024 * 1024,
        ),
        cost_estimate=cost,
    )(x, w, s2, b2)

    if (Mp, Np) != (M, N):
        out = out[:M, :N]
    return out


# ---------------------------------------------------------------------------
# im2col (XLA side, bf16) for 3x3 conv, pad=1, stride in {1, 2}
# ---------------------------------------------------------------------------
def _im2col(x_nhwc, stride):
    N, H, W, C = x_nhwc.shape
    xp = jnp.pad(x_nhwc, ((0, 0), (1, 1), (1, 1), (0, 0)))
    OH = (H + 2 - 3) // stride + 1
    OW = (W + 2 - 3) // stride + 1
    cols = [
        xp[:, dy:dy + stride * (OH - 1) + 1:stride,
              dx:dx + stride * (OW - 1) + 1:stride, :]
        for dy in range(3) for dx in range(3)
    ]
    patches = jnp.concatenate(cols, axis=-1)        # [N, OH, OW, 9*C], (dy,dx,c) order
    return patches.reshape(N * OH * OW, 9 * C), (N, OH, OW)


# ---------------------------------------------------------------------------
# Parameters (mirrors CustomCNN._initialize_weights) + inference folding
# ---------------------------------------------------------------------------
LAYER_CFG = [  # (in_channels, out_channels, stride)
    (3, 64, 1), (64, 64, 1), (64, 128, 2), (128, 128, 1),
    (128, 256, 2), (256, 256, 1), (256, 512, 2),
]
NUM_CLASSES = 10
BN_EPS = 1e-5


def init_params(key):
    params = {"convs": []}
    for (cin, cout, _stride) in LAYER_CFG:
        key, sub = jax.random.split(key)
        # kaiming_normal_, mode='fan_out', relu: std = sqrt(2 / (Cout*kh*kw))
        std = (2.0 / (cout * 3 * 3)) ** 0.5
        w = jax.random.normal(sub, (cout, cin, 3, 3), jnp.float32) * std
        params["convs"].append({
            "w": w,
            "gamma": jnp.ones((cout,), jnp.float32),
            "beta": jnp.zeros((cout,), jnp.float32),
            "running_mean": jnp.zeros((cout,), jnp.float32),
            "running_var": jnp.ones((cout,), jnp.float32),
        })
    key, sub = jax.random.split(key)
    params["fc_w"] = jax.random.normal(sub, (NUM_CLASSES, 512), jnp.float32) * 0.01
    params["fc_b"] = jnp.zeros((NUM_CLASSES,), jnp.float32)
    return params


def fold_params(params):
    """Fold BN(eval) into per-channel scale/bias; pre-reshape/cast conv weights."""
    folded = {"convs": []}
    for layer in params["convs"]:
        w = layer["w"]                                      # (Cout, Cin, 3, 3)
        cout, cin = w.shape[0], w.shape[1]
        # (Cout,Cin,kh,kw) -> (kh,kw,Cin,Cout) -> (9*Cin, Cout), bf16 once.
        w_mat = jnp.transpose(w, (2, 3, 1, 0)).reshape(9 * cin, cout)
        scale = layer["gamma"] / jnp.sqrt(layer["running_var"] + BN_EPS)
        bias = layer["beta"] - layer["running_mean"] * scale
        folded["convs"].append({
            "w_mat": w_mat.astype(jnp.bfloat16),
            "scale": scale.astype(jnp.float32),
            "bias": bias.astype(jnp.float32),
        })
    folded["fc_w"] = params["fc_w"]
    folded["fc_b"] = params["fc_b"]
    return folded


# ---------------------------------------------------------------------------
# Forward pass (eval mode)
# ---------------------------------------------------------------------------
def custom_cnn_forward(folded, x_nchw):
    x = jnp.transpose(x_nchw, (0, 2, 3, 1)).astype(jnp.bfloat16)   # NCHW -> NHWC
    for (_cin, cout, stride), layer in zip(LAYER_CFG, folded["convs"]):
        patches, (n, oh, ow) = _im2col(x, stride)
        y = matmul_affine(patches, layer["w_mat"], layer["scale"], layer["bias"],
                          relu=True, out_dtype=jnp.bfloat16)
        x = y.reshape(n, oh, ow, cout)
    # AdaptiveAvgPool2d((1,1)) + flatten
    feat = jnp.mean(x.astype(jnp.float32), axis=(1, 2))            # [N, 512] f32
    # Dropout is identity in eval mode.
    # Tiny classifier GEMM ([N,512]x[512,10]): plain JAX (not worth a kernel).
    logits = feat @ folded["fc_w"].T + folded["fc_b"]
    return logits


if __name__ == "__main__":
    key = jax.random.PRNGKey(0)
    pkey, xkey = jax.random.split(key)
    params = init_params(pkey)
    folded = fold_params(params)

    # small CIFAR-like input: batch=2, 3 channels, 16x16 spatial (NCHW)
    x = jax.random.normal(xkey, (2, 3, 16, 16), jnp.float32)

    fwd = jax.jit(custom_cnn_forward)
    out = fwd(folded, x)
    jax.block_until_ready(out)
    assert out.shape == (2, NUM_CLASSES)
    print("KERNEL_OK")
</pallas_src>

<mosaic_0001>
module attributes {stable_mosaic.version = 11 : i64} {
  func.func @_matmul_affine_kernel(%arg0: i32, %arg1: i32, %arg2: i32, %arg3: memref<256x27xbf16, #tpu.memory_space<vmem>>, %arg4: memref<27x64xbf16, #tpu.memory_space<vmem>>, %arg5: memref<1x64xf32, #tpu.memory_space<vmem>>, %arg6: memref<1x64xf32, #tpu.memory_space<vmem>>, %arg7: memref<256x64xbf16, #tpu.memory_space<vmem>>, %arg8: memref<256x64xf32, #tpu.memory_space<vmem>>) attributes {dimension_semantics = [#tpu.dimension_semantics<parallel>, #tpu.dimension_semantics<parallel>, #tpu.dimension_semantics<arbitrary>], iteration_bounds = array<i64: 2, 1, 1>, scalar_prefetch = 0 : i64, scratch_operands = 1 : i64, tpu.core_type = #tpu.core_type<tc>, window_params = [{transform_indices = @transform_0, window_bounds = array<i64: 256, 27>}, {transform_indices = @transform_1, window_bounds = array<i64: 27, 64>}, {transform_indices = @transform_2, window_bounds = array<i64: 1, 64>}, {transform_indices = @transform_3, window_bounds = array<i64: 1, 64>}, {transform_indices = @transform_4, window_bounds = array<i64: 256, 64>}]} {
    %c0_i32 = arith.constant 0 : i32
    %0 = arith.cmpi eq, %arg2, %c0_i32 : i32
    %1 = arith.extui %0 : i1 to i32
    %c0_i32_0 = arith.constant 0 : i32
    %2 = arith.cmpi ne, %1, %c0_i32_0 : i32
    scf.if %2 {
      %cst_10 = arith.constant 0.000000e+00 : f32
      %12 = vector.broadcast %cst_10 : f32 to vector<256x64xf32>
      %c0_11 = arith.constant 0 : index
      %c0_12 = arith.constant 0 : index
      %13 = vector.load %arg8[%c0_11, %c0_12] : memref<256x64xf32, #tpu.memory_space<vmem>>, vector<256x64xf32>
      tpu.vector_store %arg8[%c0_11, %c0_12], %12 {strides = array<i32>} : memref<256x64xf32, #tpu.memory_space<vmem>>, vector<256x64xf32>,
    } else {
    }
    %c0 = arith.constant 0 : index
    %c0_1 = arith.constant 0 : index
    %3 = vector.load %arg8[%c0, %c0_1] : memref<256x64xf32, #tpu.memory_space<vmem>>, vector<256x64xf32>
    %c0_2 = arith.constant 0 : index
    %c0_3 = arith.constant 0 : index
    %4 = vector.load %arg3[%c0_2, %c0_3] : memref<256x27xbf16, #tpu.memory_space<vmem>>, vector<256x27xbf16>
    %c0_4 = arith.constant 0 : index
    %c0_5 = arith.constant 0 : index
    %5 = vector.load %arg4[%c0_4, %c0_5] : memref<27x64xbf16, #tpu.memory_space<vmem>>, vector<27x64xbf16>
    %cst = arith.constant dense<0.000000e+00> : vector<256x64xf32>
    %6 = tpu.matmul %4, %5, %cst {dimension_numbers = #tpu.dot_dimension_numbers<[1], [0], [0], [1], [0, 0, 1, 1], [], []>} : vector<256x27xbf16>, vector<27x64xbf16>, vector<256x64xf32> -> vector<256x64xf32>
    %7 = arith.addf %3, %6 : vector<256x64xf32>
    %c0_6 = arith.constant 0 : index
    %c0_7 = arith.constant 0 : index
    %8 = vector.load %arg8[%c0_6, %c0_7] : memref<256x64xf32, #tpu.memory_space<vmem>>, vector<256x64xf32>
    tpu.vector_store %arg8[%c0_6, %c0_7], %7 {strides = array<i32>} : memref<256x64xf32, #tpu.memory_space<vmem>>, vector<256x64xf32>,
    %c0_i32_8 = arith.constant 0 : i32
    %9 = arith.cmpi eq, %arg2, %c0_i32_8 : i32
    %10 = arith.extui %9 : i1 to i32
    %c0_i32_9 = arith.constant 0 : i32
    %11 = arith.cmpi ne, %10, %c0_i32_9 : i32
    scf.if %11 {
      %c0_10 = arith.constant 0 : index
      %c0_11 = arith.constant 0 : index
      %12 = vector.load %arg8[%c0_10, %c0_11] : memref<256x64xf32, #tpu.memory_space<vmem>>, vector<256x64xf32>
      %c0_12 = arith.constant 0 : index
      %c0_13 = arith.constant 0 : index
      %13 = vector.load %arg5[%c0_12, %c0_13] : memref<1x64xf32, #tpu.memory_space<vmem>>, vector<1x64xf32>
      %14 = vector.broadcast %13 : vector<1x64xf32> to vector<256x64xf32>
      %15 = arith.mulf %12, %14 : vector<256x64xf32>
      %c0_14 = arith.constant 0 : index
      %c0_15 = arith.constant 0 : index
      %16 = vector.load %arg6[%c0_14, %c0_15] : memref<1x64xf32, #tpu.memory_space<vmem>>, vector<1x64xf32>
      %17 = vector.broadcast %16 : vector<1x64xf32> to vector<256x64xf32>
      %18 = arith.addf %15, %17 : vector<256x64xf32>
      %cst_16 = arith.constant 0.000000e+00 : f32
      %19 = vector.broadcast %cst_16 : f32 to vector<256x64xf32>
      %20 = arith.maximumf %18, %19 : vector<256x64xf32>
      %21 = arith.truncf %20 : vector<256x64xf32> to vector<256x64xbf16>
      %c0_17 = arith.constant 0 : index
      %c0_18 = arith.constant 0 : index
      %22 = vector.load %arg7[%c0_17, %c0_18] : memref<256x64xbf16, #tpu.memory_space<vmem>>, vector<256x64xbf16>
      tpu.vector_store %arg7[%c0_17, %c0_18], %21 {strides = array<i32>} : memref<256x64xbf16, #tpu.memory_space<vmem>>, vector<256x64xbf16>,
    } else {
    }
    return
  }
  func.func @transform_0(%arg0: i32, %arg1: i32, %arg2: i32) -> (i32, i32) {
    %c0_i32 = arith.constant 0 : i32
    return %arg0, %arg2 : i32, i32
  }
  func.func @transform_1(%arg0: i32, %arg1: i32, %arg2: i32) -> (i32, i32) {
    %c0_i32 = arith.constant 0 : i32
    return %arg2, %arg1 : i32, i32
  }
  func.func @transform_2(%arg0: i32, %arg1: i32, %arg2: i32) -> (i32, i32) {
    %c0_i32 = arith.constant 0 : i32
    %c0_i32_0 = arith.constant 0 : i32
    return %c0_i32, %arg1 : i32, i32
  }
  func.func @transform_3(%arg0: i32, %arg1: i32, %arg2: i32) -> (i32, i32) {
    %c0_i32 = arith.constant 0 : i32
    %c0_i32_0 = arith.constant 0 : i32
    return %c0_i32, %arg1 : i32, i32
  }
  func.func @transform_4(%arg0: i32, %arg1: i32, %arg2: i32) -> (i32, i32) {
    %c0_i32 = arith.constant 0 : i32
    return %arg0, %arg1 : i32, i32
  }
}

module attributes {stable_mosaic.version = 11 : i64} {
  func.func @_matmul_affine_kernel(%arg0: i32, %arg1: i32, %arg2: i32, %arg3: memref<256x576xbf16, #tpu.memory_space<vmem>>, %arg4: memref<576x64xbf16, #tpu.memory_space<vmem>>, %arg5: memref<1x64xf32, #tpu.memory_space<vmem>>, %arg6: memref<1x64xf32, #tpu.memory_space<vmem>>, %arg7: memref<256x64xbf16, #tpu.memory_space<vmem>>, %arg8: memref<256x64xf32, #tpu.memory_space<vmem>>) attributes {dimension_semantics = [#tpu.dimension_semantics<parallel>, #tpu.dimension_semantics<parallel>, #tpu.dimension_semantics<arbitrary>], iteration_bounds = array<i64: 2, 1, 1>, scalar_prefetch = 0 : i64, scratch_operands = 1 : i64, tpu.core_type = #tpu.core_type<tc>, window_params = [{transform_indices = @transform_0, window_bounds = array<i64: 256, 576>}, {transform_indices = @transform_1, window_bounds = array<i64: 576, 64>}, {transform_indices = @transform_2, window_bounds = array<i64: 1, 64>}, {transform_indices = @transform_3, window_bounds = array<i64: 1, 64>}, {transform_indices = @transform_4, window_bounds = array<i64: 256, 64>}]} {
    %c0_i32 = arith.constant 0 : i32
    %0 = arith.cmpi eq, %arg2, %c0_i32 : i32
    %1 = arith.extui %0 : i1 to i32
    %c0_i32_0 = arith.constant 0 : i32
    %2 = arith.cmpi ne, %1, %c0_i32_0 : i32
    scf.if %2 {
      %cst_10 = arith.constant 0.000000e+00 : f32
      %12 = vector.broadcast %cst_10 : f32 to vector<256x64xf32>
      %c0_11 = arith.constant 0 : index
      %c0_12 = arith.constant 0 : index
      %13 = vector.load %arg8[%c0_11, %c0_12] : memref<256x64xf32, #tpu.memory_space<vmem>>, vector<256x64xf32>
      tpu.vector_store %arg8[%c0_11, %c0_12], %12 {strides = array<i32>} : memref<256x64xf32, #tpu.memory_space<vmem>>, vector<256x64xf32>,
    } else {
    }
    %c0 = arith.constant 0 : index
    %c0_1 = arith.constant 0 : index
    %3 = vector.load %arg8[%c0, %c0_1] : memref<256x64xf32, #tpu.memory_space<vmem>>, vector<256x64xf32>
    %c0_2 = arith.constant 0 : index
    %c0_3 = arith.constant 0 : index
    %4 = vector.load %arg3[%c0_2, %c0_3] : memref<256x576xbf16, #tpu.memory_space<vmem>>, vector<256x576xbf16>
    %c0_4 = arith.constant 0 : index
    %c0_5 = arith.constant 0 : index
    %5 = vector.load %arg4[%c0_4, %c0_5] : memref<576x64xbf16, #tpu.memory_space<vmem>>, vector<576x64xbf16>
    %cst = arith.constant dense<0.000000e+00> : vector<256x64xf32>
    %6 = tpu.matmul %4, %5, %cst {dimension_numbers = #tpu.dot_dimension_numbers<[1], [0], [0], [1], [0, 0, 1, 1], [], []>} : vector<256x576xbf16>, vector<576x64xbf16>, vector<256x64xf32> -> vector<256x64xf32>
    %7 = arith.addf %3, %6 : vector<256x64xf32>
    %c0_6 = arith.constant 0 : index
    %c0_7 = arith.constant 0 : index
    %8 = vector.load %arg8[%c0_6, %c0_7] : memref<256x64xf32, #tpu.memory_space<vmem>>, vector<256x64xf32>
    tpu.vector_store %arg8[%c0_6, %c0_7], %7 {strides = array<i32>} : memref<256x64xf32, #tpu.memory_space<vmem>>, vector<256x64xf32>,
    %c0_i32_8 = arith.constant 0 : i32
    %9 = arith.cmpi eq, %arg2, %c0_i32_8 : i32
    %10 = arith.extui %9 : i1 to i32
    %c0_i32_9 = arith.constant 0 : i32
    %11 = arith.cmpi ne, %10, %c0_i32_9 : i32
    scf.if %11 {
      %c0_10 = arith.constant 0 : index
      %c0_11 = arith.constant 0 : index
      %12 = vector.load %arg8[%c0_10, %c0_11] : memref<256x64xf32, #tpu.memory_space<vmem>>, vector<256x64xf32>
      %c0_12 = arith.constant 0 : index
      %c0_13 = arith.constant 0 : index
      %13 = vector.load %arg5[%c0_12, %c0_13] : memref<1x64xf32, #tpu.memory_space<vmem>>, vector<1x64xf32>
      %14 = vector.broadcast %13 : vector<1x64xf32> to vector<256x64xf32>
      %15 = arith.mulf %12, %14 : vector<256x64xf32>
      %c0_14 = arith.constant 0 : index
      %c0_15 = arith.constant 0 : index
      %16 = vector.load %arg6[%c0_14, %c0_15] : memref<1x64xf32, #tpu.memory_space<vmem>>, vector<1x64xf32>
      %17 = vector.broadcast %16 : vector<1x64xf32> to vector<256x64xf32>
      %18 = arith.addf %15, %17 : vector<256x64xf32>
      %cst_16 = arith.constant 0.000000e+00 : f32
      %19 = vector.broadcast %cst_16 : f32 to vector<256x64xf32>
      %20 = arith.maximumf %18, %19 : vector<256x64xf32>
      %21 = arith.truncf %20 : vector<256x64xf32> to vector<256x64xbf16>
      %c0_17 = arith.constant 0 : index
      %c0_18 = arith.constant 0 : index
      %22 = vector.load %arg7[%c0_17, %c0_18] : memref<256x64xbf16, #tpu.memory_space<vmem>>, vector<256x64xbf16>
      tpu.vector_store %arg7[%c0_17, %c0_18], %21 {strides = array<i32>} : memref<256x64xbf16, #tpu.memory_space<vmem>>, vector<256x64xbf16>,
    } else {
    }
    return
  }
  func.func @transform_0(%arg0: i32, %arg1: i32, %arg2: i32) -> (i32, i32) {
    %c0_i32 = arith.constant 0 : i32
    return %arg0, %arg2 : i32, i32
  }
  func.func @transform_1(%arg0: i32, %arg1: i32, %arg2: i32) -> (i32, i32) {
    %c0_i32 = arith.constant 0 : i32
    return %arg2, %arg1 : i32, i32
  }
  func.func @transform_2(%arg0: i32, %arg1: i32, %arg2: i32) -> (i32, i32) {
    %c0_i32 = arith.constant 0 : i32
    %c0_i32_0 = arith.constant 0 : i32
    return %c0_i32, %arg1 : i32, i32
  }
  func.func @transform_3(%arg0: i32, %arg1: i32, %arg2: i32) -> (i32, i32) {
    %c0_i32 = arith.constant 0 : i32
    %c0_i32_0 = arith.constant 0 : i32
    return %c0_i32, %arg1 : i32, i32
  }
  func.func @transform_4(%arg0: i32, %arg1: i32, %arg2: i32) -> (i32, i32) {
    %c0_i32 = arith.constant 0 : i32
    return %arg0, %arg1 : i32, i32
  }
}

module attributes {stable_mosaic.version = 11 : i64} {
  func.func @_matmul_affine_kernel(%arg0: i32, %arg1: i32, %arg2: i32, %arg3: memref<128x576xbf16, #tpu.memory_space<vmem>>, %arg4: memref<576x128xbf16, #tpu.memory_space<vmem>>, %arg5: memref<1x128xf32, #tpu.memory_space<vmem>>, %arg6: memref<1x128xf32, #tpu.memory_space<vmem>>, %arg7: memref<128x128xbf16, #tpu.memory_space<vmem>>, %arg8: memref<128x128xf32, #tpu.memory_space<vmem>>) attributes {dimension_semantics = [#tpu.dimension_semantics<parallel>, #tpu.dimension_semantics<parallel>, #tpu.dimension_semantics<arbitrary>], iteration_bounds = array<i64: 1, 1, 1>, scalar_prefetch = 0 : i64, scratch_operands = 1 : i64, tpu.core_type = #tpu.core_type<tc>, window_params = [{transform_indices = @transform_0, window_bounds = array<i64: 128, 576>}, {transform_indices = @transform_1, window_bounds = array<i64: 576, 128>}, {transform_indices = @transform_2, window_bounds = array<i64: 1, 128>}, {transform_indices = @transform_3, window_bounds = array<i64: 1, 128>}, {transform_indices = @transform_4, window_bounds = array<i64: 128, 128>}]} {
    %c0_i32 = arith.constant 0 : i32
    %0 = arith.cmpi eq, %arg2, %c0_i32 : i32
    %1 = arith.extui %0 : i1 to i32
    %c0_i32_0 = arith.constant 0 : i32
    %2 = arith.cmpi ne, %1, %c0_i32_0 : i32
    scf.if %2 {
      %cst_10 = arith.constant 0.000000e+00 : f32
      %12 = vector.broadcast %cst_10 : f32 to vector<128x128xf32>
      %c0_11 = arith.constant 0 : index
      %c0_12 = arith.constant 0 : index
      %13 = vector.load %arg8[%c0_11, %c0_12] : memref<128x128xf32, #tpu.memory_space<vmem>>, vector<128x128xf32>
      tpu.vector_store %arg8[%c0_11, %c0_12], %12 {strides = array<i32>} : memref<128x128xf32, #tpu.memory_space<vmem>>, vector<128x128xf32>,
    } else {
    }
    %c0 = arith.constant 0 : index
    %c0_1 = arith.constant 0 : index
    %3 = vector.load %arg8[%c0, %c0_1] : memref<128x128xf32, #tpu.memory_space<vmem>>, vector<128x128xf32>
    %c0_2 = arith.constant 0 : index
    %c0_3 = arith.constant 0 : index
    %4 = vector.load %arg3[%c0_2, %c0_3] : memref<128x576xbf16, #tpu.memory_space<vmem>>, vector<128x576xbf16>
    %c0_4 = arith.constant 0 : index
    %c0_5 = arith.constant 0 : index
    %5 = vector.load %arg4[%c0_4, %c0_5] : memref<576x128xbf16, #tpu.memory_space<vmem>>, vector<576x128xbf16>
    %cst = arith.constant dense<0.000000e+00> : vector<128x128xf32>
    %6 = tpu.matmul %4, %5, %cst {dimension_numbers = #tpu.dot_dimension_numbers<[1], [0], [0], [1], [0, 0, 1, 1], [], []>} : vector<128x576xbf16>, vector<576x128xbf16>, vector<128x128xf32> -> vector<128x128xf32>
    %7 = arith.addf %3, %6 : vector<128x128xf32>
    %c0_6 = arith.constant 0 : index
    %c0_7 = arith.constant 0 : index
    %8 = vector.load %arg8[%c0_6, %c0_7] : memref<128x128xf32, #tpu.memory_space<vmem>>, vector<128x128xf32>
    tpu.vector_store %arg8[%c0_6, %c0_7], %7 {strides = array<i32>} : memref<128x128xf32, #tpu.memory_space<vmem>>, vector<128x128xf32>,
    %c0_i32_8 = arith.constant 0 : i32
    %9 = arith.cmpi eq, %arg2, %c0_i32_8 : i32
    %10 = arith.extui %9 : i1 to i32
    %c0_i32_9 = arith.constant 0 : i32
    %11 = arith.cmpi ne, %10, %c0_i32_9 : i32
    scf.if %11 {
      %c0_10 = arith.constant 0 : index
      %c0_11 = arith.constant 0 : index
      %12 = vector.load %arg8[%c0_10, %c0_11] : memref<128x128xf32, #tpu.memory_space<vmem>>, vector<128x128xf32>
      %c0_12 = arith.constant 0 : index
      %c0_13 = arith.constant 0 : index
      %13 = vector.load %arg5[%c0_12, %c0_13] : memref<1x128xf32, #tpu.memory_space<vmem>>, vector<1x128xf32>
      %14 = vector.broadcast %13 : vector<1x128xf32> to vector<128x128xf32>
      %15 = arith.mulf %12, %14 : vector<128x128xf32>
      %c0_14 = arith.constant 0 : index
      %c0_15 = arith.constant 0 : index
      %16 = vector.load %arg6[%c0_14, %c0_15] : memref<1x128xf32, #tpu.memory_space<vmem>>, vector<1x128xf32>
      %17 = vector.broadcast %16 : vector<1x128xf32> to vector<128x128xf32>
      %18 = arith.addf %15, %17 : vector<128x128xf32>
      %cst_16 = arith.constant 0.000000e+00 : f32
      %19 = vector.broadcast %cst_16 : f32 to vector<128x128xf32>
      %20 = arith.maximumf %18, %19 : vector<128x128xf32>
      %21 = arith.truncf %20 : vector<128x128xf32> to vector<128x128xbf16>
      %c0_17 = arith.constant 0 : index
      %c0_18 = arith.constant 0 : index
      %22 = vector.load %arg7[%c0_17, %c0_18] : memref<128x128xbf16, #tpu.memory_space<vmem>>, vector<128x128xbf16>
      tpu.vector_store %arg7[%c0_17, %c0_18], %21 {strides = array<i32>} : memref<128x128xbf16, #tpu.memory_space<vmem>>, vector<128x128xbf16>,
    } else {
    }
    return
  }
  func.func @transform_0(%arg0: i32, %arg1: i32, %arg2: i32) -> (i32, i32) {
    %c0_i32 = arith.constant 0 : i32
    return %arg0, %arg2 : i32, i32
  }
  func.func @transform_1(%arg0: i32, %arg1: i32, %arg2: i32) -> (i32, i32) {
    %c0_i32 = arith.constant 0 : i32
    return %arg2, %arg1 : i32, i32
  }
  func.func @transform_2(%arg0: i32, %arg1: i32, %arg2: i32) -> (i32, i32) {
    %c0_i32 = arith.constant 0 : i32
    %c0_i32_0 = arith.constant 0 : i32
    return %c0_i32, %arg1 : i32, i32
  }
  func.func @transform_3(%arg0: i32, %arg1: i32, %arg2: i32) -> (i32, i32) {
    %c0_i32 = arith.constant 0 : i32
    %c0_i32_0 = arith.constant 0 : i32
    return %c0_i32, %arg1 : i32, i32
  }
  func.func @transform_4(%arg0: i32, %arg1: i32, %arg2: i32) -> (i32, i32) {
    %c0_i32 = arith.constant 0 : i32
    return %arg0, %arg1 : i32, i32
  }
}

module attributes {stable_mosaic.version = 11 : i64} {
  func.func @_matmul_affine_kernel(%arg0: i32, %arg1: i32, %arg2: i32, %arg3: memref<128x1152xbf16, #tpu.memory_space<vmem>>, %arg4: memref<1152x128xbf16, #tpu.memory_space<vmem>>, %arg5: memref<1x128xf32, #tpu.memory_space<vmem>>, %arg6: memref<1x128xf32, #tpu.memory_space<vmem>>, %arg7: memref<128x128xbf16, #tpu.memory_space<vmem>>, %arg8: memref<128x128xf32, #tpu.memory_space<vmem>>) attributes {dimension_semantics = [#tpu.dimension_semantics<parallel>, #tpu.dimension_semantics<parallel>, #tpu.dimension_semantics<arbitrary>], iteration_bounds = array<i64: 1, 1, 1>, scalar_prefetch = 0 : i64, scratch_operands = 1 : i64, tpu.core_type = #tpu.core_type<tc>, window_params = [{transform_indices = @transform_0, window_bounds = array<i64: 128, 1152>}, {transform_indices = @transform_1, window_bounds = array<i64: 1152, 128>}, {transform_indices = @transform_2, window_bounds = array<i64: 1, 128>}, {transform_indices = @transform_3, window_bounds = array<i64: 1, 128>}, {transform_indices = @transform_4, window_bounds = array<i64: 128, 128>}]} {
    %c0_i32 = arith.constant 0 : i32
    %0 = arith.cmpi eq, %arg2, %c0_i32 : i32
    %1 = arith.extui %0 : i1 to i32
    %c0_i32_0 = arith.constant 0 : i32
    %2 = arith.cmpi ne, %1, %c0_i32_0 : i32
    scf.if %2 {
      %cst_10 = arith.constant 0.000000e+00 : f32
      %12 = vector.broadcast %cst_10 : f32 to vector<128x128xf32>
      %c0_11 = arith.constant 0 : index
      %c0_12 = arith.constant 0 : index
      %13 = vector.load %arg8[%c0_11, %c0_12] : memref<128x128xf32, #tpu.memory_space<vmem>>, vector<128x128xf32>
      tpu.vector_store %arg8[%c0_11, %c0_12], %12 {strides = array<i32>} : memref<128x128xf32, #tpu.memory_space<vmem>>, vector<128x128xf32>,
    } else {
    }
    %c0 = arith.constant 0 : index
    %c0_1 = arith.constant 0 : index
    %3 = vector.load %arg8[%c0, %c0_1] : memref<128x128xf32, #tpu.memory_space<vmem>>, vector<128x128xf32>
    %c0_2 = arith.constant 0 : index
    %c0_3 = arith.constant 0 : index
    %4 = vector.load %arg3[%c0_2, %c0_3] : memref<128x1152xbf16, #tpu.memory_space<vmem>>, vector<128x1152xbf16>
    %c0_4 = arith.constant 0 : index
    %c0_5 = arith.constant 0 : index
    %5 = vector.load %arg4[%c0_4, %c0_5] : memref<1152x128xbf16, #tpu.memory_space<vmem>>, vector<1152x128xbf16>
    %cst = arith.constant dense<0.000000e+00> : vector<128x128xf32>
    %6 = tpu.matmul %4, %5, %cst {dimension_numbers = #tpu.dot_dimension_numbers<[1], [0], [0], [1], [0, 0, 1, 1], [], []>} : vector<128x1152xbf16>, vector<1152x128xbf16>, vector<128x128xf32> -> vector<128x128xf32>
    %7 = arith.addf %3, %6 : vector<128x128xf32>
    %c0_6 = arith.constant 0 : index
    %c0_7 = arith.constant 0 : index
    %8 = vector.load %arg8[%c0_6, %c0_7] : memref<128x128xf32, #tpu.memory_space<vmem>>, vector<128x128xf32>
    tpu.vector_store %arg8[%c0_6, %c0_7], %7 {strides = array<i32>} : memref<128x128xf32, #tpu.memory_space<vmem>>, vector<128x128xf32>,
    %c0_i32_8 = arith.constant 0 : i32
    %9 = arith.cmpi eq, %arg2, %c0_i32_8 : i32
    %10 = arith.extui %9 : i1 to i32
    %c0_i32_9 = arith.constant 0 : i32
    %11 = arith.cmpi ne, %10, %c0_i32_9 : i32
    scf.if %11 {
      %c0_10 = arith.constant 0 : index
      %c0_11 = arith.constant 0 : index
      %12 = vector.load %arg8[%c0_10, %c0_11] : memref<128x128xf32, #tpu.memory_space<vmem>>, vector<128x128xf32>
      %c0_12 = arith.constant 0 : index
      %c0_13 = arith.constant 0 : index
      %13 = vector.load %arg5[%c0_12, %c0_13] : memref<1x128xf32, #tpu.memory_space<vmem>>, vector<1x128xf32>
      %14 = vector.broadcast %13 : vector<1x128xf32> to vector<128x128xf32>
      %15 = arith.mulf %12, %14 : vector<128x128xf32>
      %c0_14 = arith.constant 0 : index
      %c0_15 = arith.constant 0 : index
      %16 = vector.load %arg6[%c0_14, %c0_15] : memref<1x128xf32, #tpu.memory_space<vmem>>, vector<1x128xf32>
      %17 = vector.broadcast %16 : vector<1x128xf32> to vector<128x128xf32>
      %18 = arith.addf %15, %17 : vector<128x128xf32>
      %cst_16 = arith.constant 0.000000e+00 : f32
      %19 = vector.broadcast %cst_16 : f32 to vector<128x128xf32>
      %20 = arith.maximumf %18, %19 : vector<128x128xf32>
      %21 = arith.truncf %20 : vector<128x128xf32> to vector<128x128xbf16>
      %c0_17 = arith.constant 0 : index
      %c0_18 = arith.constant 0 : index
      %22 = vector.load %arg7[%c0_17, %c0_18] : memref<128x128xbf16, #tpu.memory_space<vmem>>, vector<128x128xbf16>
      tpu.vector_store %arg7[%c0_17, %c0_18], %21 {strides = array<i32>} : memref<128x128xbf16, #tpu.memory_space<vmem>>, vector<128x128xbf16>,
    } else {
    }
    return
  }
  func.func @transform_0(%arg0: i32, %arg1: i32, %arg2: i32) -> (i32, i32) {
    %c0_i32 = arith.constant 0 : i32
    return %arg0, %arg2 : i32, i32
  }
  func.func @transform_1(%arg0: i32, %arg1: i32, %arg2: i32) -> (i32, i32) {
    %c0_i32 = arith.constant 0 : i32
    return %arg2, %arg1 : i32, i32
  }
  func.func @transform_2(%arg0: i32, %arg1: i32, %arg2: i32) -> (i32, i32) {
    %c0_i32 = arith.constant 0 : i32
    %c0_i32_0 = arith.constant 0 : i32
    return %c0_i32, %arg1 : i32, i32
  }
  func.func @transform_3(%arg0: i32, %arg1: i32, %arg2: i32) -> (i32, i32) {
    %c0_i32 = arith.constant 0 : i32
    %c0_i32_0 = arith.constant 0 : i32
    return %c0_i32, %arg1 : i32, i32
  }
  func.func @transform_4(%arg0: i32, %arg1: i32, %arg2: i32) -> (i32, i32) {
    %c0_i32 = arith.constant 0 : i32
    return %arg0, %arg1 : i32, i32
  }
}

module attributes {stable_mosaic.version = 11 : i64} {
  func.func @_matmul_affine_kernel(%arg0: i32, %arg1: i32, %arg2: i32, %arg3: memref<32x1152xbf16, #tpu.memory_space<vmem>>, %arg4: memref<1152x256xbf16, #tpu.memory_space<vmem>>, %arg5: memref<1x256xf32, #tpu.memory_space<vmem>>, %arg6: memref<1x256xf32, #tpu.memory_space<vmem>>, %arg7: memref<32x256xbf16, #tpu.memory_space<vmem>>, %arg8: memref<32x256xf32, #tpu.memory_space<vmem>>) attributes {dimension_semantics = [#tpu.dimension_semantics<parallel>, #tpu.dimension_semantics<parallel>, #tpu.dimension_semantics<arbitrary>], iteration_bounds = array<i64: 1, 1, 1>, scalar_prefetch = 0 : i64, scratch_operands = 1 : i64, tpu.core_type = #tpu.core_type<tc>, window_params = [{transform_indices = @transform_0, window_bounds = array<i64: 32, 1152>}, {transform_indices = @transform_1, window_bounds = array<i64: 1152, 256>}, {transform_indices = @transform_2, window_bounds = array<i64: 1, 256>}, {transform_indices = @transform_3, window_bounds = array<i64: 1, 256>}, {transform_indices = @transform_4, window_bounds = array<i64: 32, 256>}]} {
    %c0_i32 = arith.constant 0 : i32
    %0 = arith.cmpi eq, %arg2, %c0_i32 : i32
    %1 = arith.extui %0 : i1 to i32
    %c0_i32_0 = arith.constant 0 : i32
    %2 = arith.cmpi ne, %1, %c0_i32_0 : i32
    scf.if %2 {
      %cst_10 = arith.constant 0.000000e+00 : f32
      %12 = vector.broadcast %cst_10 : f32 to vector<32x256xf32>
      %c0_11 = arith.constant 0 : index
      %c0_12 = arith.constant 0 : index
      %13 = vector.load %arg8[%c0_11, %c0_12] : memref<32x256xf32, #tpu.memory_space<vmem>>, vector<32x256xf32>
      tpu.vector_store %arg8[%c0_11, %c0_12], %12 {strides = array<i32>} : memref<32x256xf32, #tpu.memory_space<vmem>>, vector<32x256xf32>,
    } else {
    }
    %c0 = arith.constant 0 : index
    %c0_1 = arith.constant 0 : index
    %3 = vector.load %arg8[%c0, %c0_1] : memref<32x256xf32, #tpu.memory_space<vmem>>, vector<32x256xf32>
    %c0_2 = arith.constant 0 : index
    %c0_3 = arith.constant 0 : index
    %4 = vector.load %arg3[%c0_2, %c0_3] : memref<32x1152xbf16, #tpu.memory_space<vmem>>, vector<32x1152xbf16>
    %c0_4 = arith.constant 0 : index
    %c0_5 = arith.constant 0 : index
    %5 = vector.load %arg4[%c0_4, %c0_5] : memref<1152x256xbf16, #tpu.memory_space<vmem>>, vector<1152x256xbf16>
    %cst = arith.constant dense<0.000000e+00> : vector<32x256xf32>
    %6 = tpu.matmul %4, %5, %cst {dimension_numbers = #tpu.dot_dimension_numbers<[1], [0], [0], [1], [0, 0, 1, 1], [], []>} : vector<32x1152xbf16>, vector<1152x256xbf16>, vector<32x256xf32> -> vector<32x256xf32>
    %7 = arith.addf %3, %6 : vector<32x256xf32>
    %c0_6 = arith.constant 0 : index
    %c0_7 = arith.constant 0 : index
    %8 = vector.load %arg8[%c0_6, %c0_7] : memref<32x256xf32, #tpu.memory_space<vmem>>, vector<32x256xf32>
    tpu.vector_store %arg8[%c0_6, %c0_7], %7 {strides = array<i32>} : memref<32x256xf32, #tpu.memory_space<vmem>>, vector<32x256xf32>,
    %c0_i32_8 = arith.constant 0 : i32
    %9 = arith.cmpi eq, %arg2, %c0_i32_8 : i32
    %10 = arith.extui %9 : i1 to i32
    %c0_i32_9 = arith.constant 0 : i32
    %11 = arith.cmpi ne, %10, %c0_i32_9 : i32
    scf.if %11 {
      %c0_10 = arith.constant 0 : index
      %c0_11 = arith.constant 0 : index
      %12 = vector.load %arg8[%c0_10, %c0_11] : memref<32x256xf32, #tpu.memory_space<vmem>>, vector<32x256xf32>
      %c0_12 = arith.constant 0 : index
      %c0_13 = arith.constant 0 : index
      %13 = vector.load %arg5[%c0_12, %c0_13] : memref<1x256xf32, #tpu.memory_space<vmem>>, vector<1x256xf32>
      %14 = vector.broadcast %13 : vector<1x256xf32> to vector<32x256xf32>
      %15 = arith.mulf %12, %14 : vector<32x256xf32>
      %c0_14 = arith.constant 0 : index
      %c0_15 = arith.constant 0 : index
      %16 = vector.load %arg6[%c0_14, %c0_15] : memref<1x256xf32, #tpu.memory_space<vmem>>, vector<1x256xf32>
      %17 = vector.broadcast %16 : vector<1x256xf32> to vector<32x256xf32>
      %18 = arith.addf %15, %17 : vector<32x256xf32>
      %cst_16 = arith.constant 0.000000e+00 : f32
      %19 = vector.broadcast %cst_16 : f32 to vector<32x256xf32>
      %20 = arith.maximumf %18, %19 : vector<32x256xf32>
      %21 = arith.truncf %20 : vector<32x256xf32> to vector<32x256xbf16>
      %c0_17 = arith.constant 0 : index
      %c0_18 = arith.constant 0 : index
      %22 = vector.load %arg7[%c0_17, %c0_18] : memref<32x256xbf16, #tpu.memory_space<vmem>>, vector<32x256xbf16>
      tpu.vector_store %arg7[%c0_17, %c0_18], %21 {strides = array<i32>} : memref<32x256xbf16, #tpu.memory_space<vmem>>, vector<32x256xbf16>,
    } else {
    }
    return
  }
  func.func @transform_0(%arg0: i32, %arg1: i32, %arg2: i32) -> (i32, i32) {
    %c0_i32 = arith.constant 0 : i32
    return %arg0, %arg2 : i32, i32
  }
  func.func @transform_1(%arg0: i32, %arg1: i32, %arg2: i32) -> (i32, i32) {
    %c0_i32 = arith.constant 0 : i32
    return %arg2, %arg1 : i32, i32
  }
  func.func @transform_2(%arg0: i32, %arg1: i32, %arg2: i32) -> (i32, i32) {
    %c0_i32 = arith.constant 0 : i32
    %c0_i32_0 = arith.constant 0 : i32
    return %c0_i32, %arg1 : i32, i32
  }
  func.func @transform_3(%arg0: i32, %arg1: i32, %arg2: i32) -> (i32, i32) {
    %c0_i32 = arith.constant 0 : i32
    %c0_i32_0 = arith.constant 0 : i32
    return %c0_i32, %arg1 : i32, i32
  }
  func.func @transform_4(%arg0: i32, %arg1: i32, %arg2: i32) -> (i32, i32) {
    %c0_i32 = arith.constant 0 : i32
    return %arg0, %arg1 : i32, i32
  }
}

module attributes {stable_mosaic.version = 11 : i64} {
  func.func @_matmul_affine_kernel(%arg0: i32, %arg1: i32, %arg2: i32, %arg3: memref<32x1152xbf16, #tpu.memory_space<vmem>>, %arg4: memref<1152x256xbf16, #tpu.memory_space<vmem>>, %arg5: memref<1x256xf32, #tpu.memory_space<vmem>>, %arg6: memref<1x256xf32, #tpu.memory_space<vmem>>, %arg7: memref<32x256xbf16, #tpu.memory_space<vmem>>, %arg8: memref<32x256xf32, #tpu.memory_space<vmem>>) attributes {dimension_semantics = [#tpu.dimension_semantics<parallel>, #tpu.dimension_semantics<parallel>, #tpu.dimension_semantics<arbitrary>], iteration_bounds = array<i64: 1, 1, 2>, scalar_prefetch = 0 : i64, scratch_operands = 1 : i64, tpu.core_type = #tpu.core_type<tc>, window_params = [{transform_indices = @transform_0, window_bounds = array<i64: 32, 1152>}, {transform_indices = @transform_1, window_bounds = array<i64: 1152, 256>}, {transform_indices = @transform_2, window_bounds = array<i64: 1, 256>}, {transform_indices = @transform_3, window_bounds = array<i64: 1, 256>}, {transform_indices = @transform_4, window_bounds = array<i64: 32, 256>}]} {
    %c0_i32 = arith.constant 0 : i32
    %0 = arith.cmpi eq, %arg2, %c0_i32 : i32
    %1 = arith.extui %0 : i1 to i32
    %c0_i32_0 = arith.constant 0 : i32
    %2 = arith.cmpi ne, %1, %c0_i32_0 : i32
    scf.if %2 {
      %cst_9 = arith.constant 0.000000e+00 : f32
      %12 = vector.broadcast %cst_9 : f32 to vector<32x256xf32>
      %c0_10 = arith.constant 0 : index
      %c0_11 = arith.constant 0 : index
      %13 = vector.load %arg8[%c0_10, %c0_11] : memref<32x256xf32, #tpu.memory_space<vmem>>, vector<32x256xf32>
      tpu.vector_store %arg8[%c0_10, %c0_11], %12 {strides = array<i32>} : memref<32x256xf32, #tpu.memory_space<vmem>>, vector<32x256xf32>,
    } else {
    }
    %c0 = arith.constant 0 : index
    %c0_1 = arith.constant 0 : index
    %3 = vector.load %arg8[%c0, %c0_1] : memref<32x256xf32, #tpu.memory_space<vmem>>, vector<32x256xf32>
    %c0_2 = arith.constant 0 : index
    %c0_3 = arith.constant 0 : index
    %4 = vector.load %arg3[%c0_2, %c0_3] : memref<32x1152xbf16, #tpu.memory_space<vmem>>, vector<32x1152xbf16>
    %c0_4 = arith.constant 0 : index
    %c0_5 = arith.constant 0 : index
    %5 = vector.load %arg4[%c0_4, %c0_5] : memref<1152x256xbf16, #tpu.memory_space<vmem>>, vector<1152x256xbf16>
    %cst = arith.constant dense<0.000000e+00> : vector<32x256xf32>
    %6 = tpu.matmul %4, %5, %cst {dimension_numbers = #tpu.dot_dimension_numbers<[1], [0], [0], [1], [0, 0, 1, 1], [], []>} : vector<32x1152xbf16>, vector<1152x256xbf16>, vector<32x256xf32> -> vector<32x256xf32>
    %7 = arith.addf %3, %6 : vector<32x256xf32>
    %c0_6 = arith.constant 0 : index
    %c0_7 = arith.constant 0 : index
    %8 = vector.load %arg8[%c0_6, %c0_7] : memref<32x256xf32, #tpu.memory_space<vmem>>, vector<32x256xf32>
    tpu.vector_store %arg8[%c0_6, %c0_7], %7 {strides = array<i32>} : memref<32x256xf32, #tpu.memory_space<vmem>>, vector<32x256xf32>,
    %c1_i32 = arith.constant 1 : i32
    %9 = arith.cmpi eq, %arg2, %c1_i32 : i32
    %10 = arith.extui %9 : i1 to i32
    %c0_i32_8 = arith.constant 0 : i32
    %11 = arith.cmpi ne, %10, %c0_i32_8 : i32
    scf.if %11 {
      %c0_9 = arith.constant 0 : index
      %c0_10 = arith.constant 0 : index
      %12 = vector.load %arg8[%c0_9, %c0_10] : memref<32x256xf32, #tpu.memory_space<vmem>>, vector<32x256xf32>
      %c0_11 = arith.constant 0 : index
      %c0_12 = arith.constant 0 : index
      %13 = vector.load %arg5[%c0_11, %c0_12] : memref<1x256xf32, #tpu.memory_space<vmem>>, vector<1x256xf32>
      %14 = vector.broadcast %13 : vector<1x256xf32> to vector<32x256xf32>
      %15 = arith.mulf %12, %14 : vector<32x256xf32>
      %c0_13 = arith.constant 0 : index
      %c0_14 = arith.constant 0 : index
      %16 = vector.load %arg6[%c0_13, %c0_14] : memref<1x256xf32, #tpu.memory_space<vmem>>, vector<1x256xf32>
      %17 = vector.broadcast %16 : vector<1x256xf32> to vector<32x256xf32>
      %18 = arith.addf %15, %17 : vector<32x256xf32>
      %cst_15 = arith.constant 0.000000e+00 : f32
      %19 = vector.broadcast %cst_15 : f32 to vector<32x256xf32>
      %20 = arith.maximumf %18, %19 : vector<32x256xf32>
      %21 = arith.truncf %20 : vector<32x256xf32> to vector<32x256xbf16>
      %c0_16 = arith.constant 0 : index
      %c0_17 = arith.constant 0 : index
      %22 = vector.load %arg7[%c0_16, %c0_17] : memref<32x256xbf16, #tpu.memory_space<vmem>>, vector<32x256xbf16>
      tpu.vector_store %arg7[%c0_16, %c0_17], %21 {strides = array<i32>} : memref<32x256xbf16, #tpu.memory_space<vmem>>, vector<32x256xbf16>,
    } else {
    }
    return
  }
  func.func @transform_0(%arg0: i32, %arg1: i32, %arg2: i32) -> (i32, i32) {
    %c0_i32 = arith.constant 0 : i32
    return %arg0, %arg2 : i32, i32
  }
  func.func @transform_1(%arg0: i32, %arg1: i32, %arg2: i32) -> (i32, i32) {
    %c0_i32 = arith.constant 0 : i32
    return %arg2, %arg1 : i32, i32
  }
  func.func @transform_2(%arg0: i32, %arg1: i32, %arg2: i32) -> (i32, i32) {
    %c0_i32 = arith.constant 0 : i32
    %c0_i32_0 = arith.constant 0 : i32
    return %c0_i32, %arg1 : i32, i32
  }
  func.func @transform_3(%arg0: i32, %arg1: i32, %arg2: i32) -> (i32, i32) {
    %c0_i32 = arith.constant 0 : i32
    %c0_i32_0 = arith.constant 0 : i32
    return %c0_i32, %arg1 : i32, i32
  }
  func.func @transform_4(%arg0: i32, %arg1: i32, %arg2: i32) -> (i32, i32) {
    %c0_i32 = arith.constant 0 : i32
    return %arg0, %arg1 : i32, i32
  }
}

module attributes {stable_mosaic.version = 11 : i64} {
  func.func @_matmul_affine_kernel(%arg0: i32, %arg1: i32, %arg2: i32, %arg3: memref<8x1152xbf16, #tpu.memory_space<vmem>>, %arg4: memref<1152x256xbf16, #tpu.memory_space<vmem>>, %arg5: memref<1x256xf32, #tpu.memory_space<vmem>>, %arg6: memref<1x256xf32, #tpu.memory_space<vmem>>, %arg7: memref<8x256xbf16, #tpu.memory_space<vmem>>, %arg8: memref<8x256xf32, #tpu.memory_space<vmem>>) attributes {dimension_semantics = [#tpu.dimension_semantics<parallel>, #tpu.dimension_semantics<parallel>, #tpu.dimension_semantics<arbitrary>], iteration_bounds = array<i64: 1, 2, 2>, scalar_prefetch = 0 : i64, scratch_operands = 1 : i64, tpu.core_type = #tpu.core_type<tc>, window_params = [{transform_indices = @transform_0, window_bounds = array<i64: 8, 1152>}, {transform_indices = @transform_1, window_bounds = array<i64: 1152, 256>}, {transform_indices = @transform_2, window_bounds = array<i64: 1, 256>}, {transform_indices = @transform_3, window_bounds = array<i64: 1, 256>}, {transform_indices = @transform_4, window_bounds = array<i64: 8, 256>}]} {
    %c0_i32 = arith.constant 0 : i32
    %0 = arith.cmpi eq, %arg2, %c0_i32 : i32
    %1 = arith.extui %0 : i1 to i32
    %c0_i32_0 = arith.constant 0 : i32
    %2 = arith.cmpi ne, %1, %c0_i32_0 : i32
    scf.if %2 {
      %cst_9 = arith.constant 0.000000e+00 : f32
      %12 = vector.broadcast %cst_9 : f32 to vector<8x256xf32>
      %c0_10 = arith.constant 0 : index
      %c0_11 = arith.constant 0 : index
      %13 = vector.load %arg8[%c0_10, %c0_11] : memref<8x256xf32, #tpu.memory_space<vmem>>, vector<8x256xf32>
      tpu.vector_store %arg8[%c0_10, %c0_11], %12 {strides = array<i32>} : memref<8x256xf32, #tpu.memory_space<vmem>>, vector<8x256xf32>,
    } else {
    }
    %c0 = arith.constant 0 : index
    %c0_1 = arith.constant 0 : index
    %3 = vector.load %arg8[%c0, %c0_1] : memref<8x256xf32, #tpu.memory_space<vmem>>, vector<8x256xf32>
    %c0_2 = arith.constant 0 : index
    %c0_3 = arith.constant 0 : index
    %4 = vector.load %arg3[%c0_2, %c0_3] : memref<8x1152xbf16, #tpu.memory_space<vmem>>, vector<8x1152xbf16>
    %c0_4 = arith.constant 0 : index
    %c0_5 = arith.constant 0 : index
    %5 = vector.load %arg4[%c0_4, %c0_5] : memref<1152x256xbf16, #tpu.memory_space<vmem>>, vector<1152x256xbf16>
    %cst = arith.constant dense<0.000000e+00> : vector<8x256xf32>
    %6 = tpu.matmul %4, %5, %cst {dimension_numbers = #tpu.dot_dimension_numbers<[1], [0], [0], [1], [0, 0, 1, 1], [], []>} : vector<8x1152xbf16>, vector<1152x256xbf16>, vector<8x256xf32> -> vector<8x256xf32>
    %7 = arith.addf %3, %6 : vector<8x256xf32>
    %c0_6 = arith.constant 0 : index
    %c0_7 = arith.constant 0 : index
    %8 = vector.load %arg8[%c0_6, %c0_7] : memref<8x256xf32, #tpu.memory_space<vmem>>, vector<8x256xf32>
    tpu.vector_store %arg8[%c0_6, %c0_7], %7 {strides = array<i32>} : memref<8x256xf32, #tpu.memory_space<vmem>>, vector<8x256xf32>,
    %c1_i32 = arith.constant 1 : i32
    %9 = arith.cmpi eq, %arg2, %c1_i32 : i32
    %10 = arith.extui %9 : i1 to i32
    %c0_i32_8 = arith.constant 0 : i32
    %11 = arith.cmpi ne, %10, %c0_i32_8 : i32
    scf.if %11 {
      %c0_9 = arith.constant 0 : index
      %c0_10 = arith.constant 0 : index
      %12 = vector.load %arg8[%c0_9, %c0_10] : memref<8x256xf32, #tpu.memory_space<vmem>>, vector<8x256xf32>
      %c0_11 = arith.constant 0 : index
      %c0_12 = arith.constant 0 : index
      %13 = vector.load %arg5[%c0_11, %c0_12] : memref<1x256xf32, #tpu.memory_space<vmem>>, vector<1x256xf32>
      %14 = vector.broadcast %13 : vector<1x256xf32> to vector<8x256xf32>
      %15 = arith.mulf %12, %14 : vector<8x256xf32>
      %c0_13 = arith.constant 0 : index
      %c0_14 = arith.constant 0 : index
      %16 = vector.load %arg6[%c0_13, %c0_14] : memref<1x256xf32, #tpu.memory_space<vmem>>, vector<1x256xf32>
      %17 = vector.broadcast %16 : vector<1x256xf32> to vector<8x256xf32>
      %18 = arith.addf %15, %17 : vector<8x256xf32>
      %cst_15 = arith.constant 0.000000e+00 : f32
      %19 = vector.broadcast %cst_15 : f32 to vector<8x256xf32>
      %20 = arith.maximumf %18, %19 : vector<8x256xf32>
      %21 = arith.truncf %20 : vector<8x256xf32> to vector<8x256xbf16>
      %c0_16 = arith.constant 0 : index
      %c0_17 = arith.constant 0 : index
      %22 = vector.load %arg7[%c0_16, %c0_17] : memref<8x256xbf16, #tpu.memory_space<vmem>>, vector<8x256xbf16>
      tpu.vector_store %arg7[%c0_16, %c0_17], %21 {strides = array<i32>} : memref<8x256xbf16, #tpu.memory_space<vmem>>, vector<8x256xbf16>,
    } else {
    }
    return
  }
  func.func @transform_0(%arg0: i32, %arg1: i32, %arg2: i32) -> (i32, i32) {
    %c0_i32 = arith.constant 0 : i32
    return %arg0, %arg2 : i32, i32
  }
  func.func @transform_1(%arg0: i32, %arg1: i32, %arg2: i32) -> (i32, i32) {
    %c0_i32 = arith.constant 0 : i32
    return %arg2, %arg1 : i32, i32
  }
  func.func @transform_2(%arg0: i32, %arg1: i32, %arg2: i32) -> (i32, i32) {
    %c0_i32 = arith.constant 0 : i32
    %c0_i32_0 = arith.constant 0 : i32
    return %c0_i32, %arg1 : i32, i32
  }
  func.func @transform_3(%arg0: i32, %arg1: i32, %arg2: i32) -> (i32, i32) {
    %c0_i32 = arith.constant 0 : i32
    %c0_i32_0 = arith.constant 0 : i32
    return %c0_i32, %arg1 : i32, i32
  }
  func.func @transform_4(%arg0: i32, %arg1: i32, %arg2: i32) -> (i32, i32) {
    %c0_i32 = arith.constant 0 : i32
    return %arg0, %arg1 : i32, i32
  }
}

</mosaic_0001>

<bundles_post_ra>
// kernel: custom_cnn_forward.7
= control target key start
LH: loop header
LB: loop body
LE: loop exit
PB: predicated region body
PF: predicated region fallthrough
CT: control target
= control target key end

     0   :  { %9 = vsyncpa [#allocation4], 0  ;;  %s1973_s0 = inlined_call_operand.vmem [shape: bf16[512,27], index: 0, kind: input, shape index: {}]   ;;  %s1974_s1 = inlined_call_operand.hbm [shape: bf16[27,64], index: 1, kind: input, shape index: {}]   ;;  %s1975_s2 = inlined_call_operand.hbm [shape: f32[1,64], index: 2, kind: input, shape index: {}]   ;;  %s1976_s3 = inlined_call_operand.hbm [shape: f32[1,64], index: 3, kind: input, shape index: {}]   ;;  %s1977_s4 = inlined_call_operand.vmem [shape: bf16[512,64], index: 4, kind: output, shape index: {}]  }
   0x1   :  { %10 = vsyncpa [#allocation6], 0  ;;  %s1604_s15 = smov 0   ;;  %s1606_s16 = smov 0  }
   0x2   :  { %s1608_s17 = smov 0  }
   0x3 LB: > { %s1572_s18 = smov [#allocation5]   ;;  %s1210_s20 = sadd.s32 4294967295, %s1570_s17   ;;  %s1570_s17 = sphi %s1608_s17, %s16_s17   ;;  %s1566_s16 = sphi %s1606_s16, %s1984_s16   ;;  %s1562_s15 = sphi %s1604_s15, %s1983_s15  }
   0x4   : > { %s208_s19 = sshll.u32 %s1572_s18, 4  ;;  %p1212_p0 = scmp.ge.s32.totalorder %s1570_s17, 1  ;;  %s209_s19 = int_to_ptr.vmem [resolvable:$true] %s208_s19 }
   0x5   : > { %p176_p1 = scmp.lt.s32.totalorder %s1570_s17, 3  ;;  %p1622_p2 = scmp.eq.s32.totalorder %s1210_s20, 0 }
   0x6   : > { %s35_s23 = sadd.s32 1, %s1566_s16  ;;  %s1573_s26 = smov [#allocation3]  }
   0x7   : > { %p1626_p3 = pnand %p1212_p0, %p176_p1  ;;  %p1639_p6 = scmp.ge.s32.totalorder %s35_s23, 2 }
   0x8   : > { %s192_s27 = sshll.u32 %s1573_s26, 4  ;;  %s1473_s28 = scalar_lea.vmem %s209_s19, 16  ;;  %s193_s27 = int_to_ptr.vmem [resolvable:$true] %s192_s27 }
   0x9   : > { %p1397_p4 = pneg %p1626_p3  ;;  %p1474_p8 = scmp.ne.s32.totalorder %s209_s19, %s1473_s28 }
   0xa   : > { %s1480_s29 = scalar_lea.vmem %s209_s19, 32  ;;  %p1481_p11 = scmp.lt.s32.totalorder %s209_s19, %s209_s19 }
   0xb   : > { %p1635_p5 = pnand %p1622_p2, %p1397_p4  ;;  %p1482_p12 = scmp.lt.s32.totalorder %s1480_s29, %s1473_s28 }
   0xd   : > { %p1464_p7 = pneg %p1635_p5  ;;  %p1483_p13 = por %p1482_p12, %p1481_p11 }
   0xf   : > { %p1476_p9 = pnand %p1474_p8, %p1464_p7 }
  0x11   : > { %p1477_p10 = pneg %p1476_p9 }
  0x13   : > { %p1484_p0 = pnand %p1483_p13, %p1477_p10 }
  0x15   : > { %1487 = shalt.err (!%p1484_p0)
}
  0x16   : > { %1403 = dma.hbm_to_vmem [thread:$0]  (!%p1635_p5), %s1975_s2, 16, %s209_s19, [#allocation6]  }
  0x17   : > { %s1986_s23 = smov (%p1639_p6, %s35_s23), 0  ;;  %s1499_s6 = scalar_lea.vmem %s193_s27, 256 }
  0x18   : > { %p1500_p1 = scmp.ne.s32.totalorder %s193_s27, %s1499_s6  ;;  %p1507_p9 = scmp.lt.s32.totalorder %s193_s27, %s193_s27 }
  0x19   : > { %p1508_p10 = scmp.lt.s32.totalorder %s1499_s6, %s1499_s6 }
  0x1a   : > { %p1502_p4 = pnand %p1500_p1, %p1464_p7 }
  0x1b   : > { %p1509_p11 = por %p1508_p10, %p1507_p9 }
  0x1c   : > { %p1503_p8 = pneg %p1502_p4 }
  0x1e   : > { %p1510_p12 = pnand %p1509_p11, %p1503_p8 }
  0x20   : > { %1513 = shalt.err (!%p1510_p12)
}
  0x21   : > { %s1574_s7 = smov 64   ;;  %s1575_s8 = smov 4  }
  0x22   : > { %1400 = dma.hbm_to_vmem [thread:$0]  (!%p1635_p5), %s1974_s1, 256, %s193_s27, [#allocation4], %s1574_s7, %s1574_s7, %s1575_s8  }
  0x23   : > { %s1576_s11 = smov [#allocation7]  }
  0x24   : > { %s221_s12 = sshll.u32 %s1576_s11, 4  ;;  %s222_s12 = int_to_ptr.vmem [resolvable:$true] %s221_s12 }
  0x25   : > { %s1525_s13 = scalar_lea.vmem %s222_s12, 16  ;;  %s1532_s14 = scalar_lea.vmem %s222_s12, 32 }
  0x26   : > { %p1526_p6 = scmp.ne.s32.totalorder %s222_s12, %s1525_s13  ;;  %p1533_p1 = scmp.lt.s32.totalorder %s222_s12, %s222_s12 }
  0x27   : > { %p1534_p4 = scmp.lt.s32.totalorder %s1532_s14, %s1525_s13 }
  0x28   : > { %p1528_p13 = pnand %p1526_p6, %p1464_p7 }
  0x29   : > { %p1535_p8 = por %p1534_p4, %p1533_p1 }
  0x2a   : > { %p1529_p0 = pneg %p1528_p13 }
  0x2c   : > { %p1536_p9 = pnand %p1535_p8, %p1529_p0 }
  0x2e   : > { %1539 = shalt.err (!%p1536_p9)
}
  0x2f   : > { %1406 = dma.hbm_to_vmem [thread:$0]  (!%p1635_p5), %s1976_s3, 16, %s222_s12, [#allocation6]  }
  0x30   : > { %246 = sbr.rel (%p1626_p3) target bundleno = 324 (0x144), region = 36 }
  0x35   : > { %1553 = dma.done.wait (%p1622_p2), [#allocation4], 256  }
  0x36   : > { %1555 = vsyncadd (%p1622_p2), [#allocation4], 4294967040 }
  0x37   : > { %1557 = dma.done.wait (%p1622_p2), [#allocation6], 32  }
  0x38   : > { %1559 = vsyncadd (%p1622_p2), [#allocation6], 4294967264  ;;  %vm551_vm0 = vcmask 1044480   ;;  %s1221_s20 = sshll.u32 %s1562_s15, 5  ;;  %vm310_vm1 = vcmask 523264   ;;  %v1577_v0 = vmov 0.0  }
  0x39   : > { %p1686_p5 = scmp.lt.s32.totalorder %s1221_s20, 63  ;;  %313 = vst.msk [vmem:[#allocation2 + $0x10] sm:$0xff] %vm310_vm1, %v1577_v0  ;;  %311 = vst.msk [vmem:[#allocation2] sm:$0xff] %vm310_vm1, %v1577_v0  ;;  %vm552_vm2 = vcmask 1045504   ;;  %v1578_v1 = vmov 65535   ;;  %v1445_v5 = vld [vmem:[#allocation3] sm:$0xff]  }
  0x3a   : > { %312 = vst.msk [vmem:[#allocation2 + $0x8] sm:$0xff] %vm310_vm1, %v1577_v0  ;;  %314 = vst.msk [vmem:[#allocation2 + $0x18] sm:$0xff] %vm310_vm1, %v1577_v0  ;;  %v553_v2 = vsel %vm551_vm0, 4294967295, %v1578_v1  ;;  %v1444_v4 = vld [vmem:[#allocation3 + $0x8] sm:$0x3f]   ;;  %vm502_vm3 = vcmask 220160  }
  0x3b   : > { %315 = vst.msk [vmem:[#allocation2 + $0x20] sm:$0xff] %vm310_vm1, %v1577_v0  ;;  %316 = vst.msk [vmem:[#allocation2 + $0x28] sm:$0xff] %vm310_vm1, %v1577_v0  ;;  %s1988_s20 = smov (!%p1686_p5, %s1221_s20), 63  ;;  %v554_v3 = vsel %vm552_vm2, %v553_v2, 0  ;;  %v1775_v49 = vld [vmem:[#allocation5] ss:$0 sm:$0xff] }
  0x3c   : > { %317 = vst.msk [vmem:[#allocation2 + $0x30] sm:$0xff] %vm310_vm1, %v1577_v0  ;;  %318 = vst.msk [vmem:[#allocation2 + $0x38] sm:$0xff] %vm310_vm1, %v1577_v0  ;;  %s1222_s21 = sshll.u32 %s1988_s20, 2  ;;  %v556_v6 = vand.u32 %v1444_v4, %v554_v3  ;;  %v1779_v57 = vld [vmem:[#allocation7] ss:$0 sm:$0xff]  ;;  %vm1057_vm4 = vcmask 519168  }
  0x3d   : > { %319 = vst.msk [vmem:[#allocation2 + $0x40] sm:$0xff] %vm310_vm1, %v1577_v0  ;;  %320 = vst.msk [vmem:[#allocation2 + $0x48] sm:$0xff] %vm310_vm1, %v1577_v0  ;;  %s1735_s26 = scalar_lea.vmem %s1973_s0, %s1222_s21  ;;  %s1798_s28 = scalar_lea.vmem %s1977_s4, %s1222_s21 }
  0x3e   : > { %321 = vst.msk [vmem:[#allocation2 + $0x50] sm:$0xff] %vm310_vm1, %v1577_v0  ;;  %322 = vst.msk [vmem:[#allocation2 + $0x58] sm:$0xff] %vm310_vm1, %v1577_v0  ;;  %v1446_v7 = vld [vmem:[%s1735_s26] sm:$0xff]   ;;  %1345 = vmatprep.subr.bf16.mxu0 %v556_v6  ;;  %1381 = vmatprep.subr.bf16.mxu1 %v556_v6  ;;  %v1448_v9 = vld [vmem:[%s1735_s26 + $0x8] sm:$0xff]  }
  0x3f   : > { %323 = vst.msk [vmem:[#allocation2 + $0x60] sm:$0xff] %vm310_vm1, %v1577_v0  ;;  %324 = vst.msk [vmem:[#allocation2 + $0x68] sm:$0xff] %vm310_vm1, %v1577_v0  ;;  %v1447_v8 = vld [vmem:[%s1735_s26 + $0x40] sm:$0xff]   ;;  %1346 = vmatpush3.bf16.msra.mxu0 %v556_v6  ;;  %1383 = vmatpush3.bf16.msra.mxu1 %v556_v6  ;;  %v1449_v10 = vld [vmem:[%s1735_s26 + $0x48] sm:$0xff]  }
  0x40   : > { %325 = vst.msk [vmem:[#allocation2 + $0x70] sm:$0xff] %vm310_vm1, %v1577_v0  ;;  %326 = vst.msk [vmem:[#allocation2 + $0x78] sm:$0xff] %vm310_vm1, %v1577_v0  ;;  %1347 = vmatprep.subr.bf16.mxu0 %v1445_v5  ;;  %1382 = vmatprep.subr.bf16.mxu1 %v1445_v5  ;;  %v1450_v11 = vld [vmem:[%s1735_s26 + $0x10] sm:$0xff]   ;;  %v1452_v13 = vld [vmem:[%s1735_s26 + $0x18] sm:$0xff]  }
  0x41   : > { %327 = vst.msk [vmem:[#allocation2 + $0x80] sm:$0xff] %vm310_vm1, %v1577_v0  ;;  %328 = vst.msk [vmem:[#allocation2 + $0x88] sm:$0xff] %vm310_vm1, %v1577_v0  ;;  %1349 = vmatprep.mubr.msk.bf16.mxu0 %vm502_vm3, %v1446_v7  ;;  %1365 = vmatprep.mubr.msk.bf16.mxu1 %vm502_vm3, %v1447_v8  ;;  %v1451_v12 = vld [vmem:[%s1735_s26 + $0x50] sm:$0xff]   ;;  %v1453_v14 = vld [vmem:[%s1735_s26 + $0x58] sm:$0xff]  }
  0x42   : > { %329 = vst.msk [vmem:[#allocation2 + $0x90] sm:$0xff] %vm310_vm1, %v1577_v0  ;;  %330 = vst.msk [vmem:[#allocation2 + $0x98] sm:$0xff] %vm310_vm1, %v1577_v0  ;;  %v1454_v15 = vld [vmem:[%s1735_s26 + $0x20] sm:$0xff]   ;;  %v1456_v17 = vld [vmem:[%s1735_s26 + $0x28] sm:$0xff]  }
  0x43   : > { %331 = vst.msk [vmem:[#allocation2 + $0xa0] sm:$0xff] %vm310_vm1, %v1577_v0  ;;  %332 = vst.msk [vmem:[#allocation2 + $0xa8] sm:$0xff] %vm310_vm1, %v1577_v0  ;;  %1348 = vmatpush3.bf16.msra.mxu0 %v1445_v5  ;;  %1384 = vmatpush3.bf16.msra.mxu1 %v1445_v5  ;;  %v1455_v16 = vld [vmem:[%s1735_s26 + $0x60] sm:$0xff]   ;;  %v1457_v18 = vld [vmem:[%s1735_s26 + $0x68] sm:$0xff]  }
  0x44   : > { %333 = vst.msk [vmem:[#allocation2 + $0xb0] sm:$0xff] %vm310_vm1, %v1577_v0  ;;  %334 = vst.msk [vmem:[#allocation2 + $0xb8] sm:$0xff] %vm310_vm1, %v1577_v0  ;;  %v1458_v19 = vld [vmem:[%s1735_s26 + $0x30] sm:$0xff]   ;;  %v1460_v21 = vld [vmem:[%s1735_s26 + $0x38] sm:$0xff]  }
  0x45   : > { %335 = vst.msk [vmem:[#allocation2 + $0xc0] sm:$0xff] %vm310_vm1, %v1577_v0  ;;  %336 = vst.msk [vmem:[#allocation2 + $0xc8] sm:$0xff] %vm310_vm1, %v1577_v0  ;;  %v1459_v20 = vld [vmem:[%s1735_s26 + $0x70] sm:$0xff]   ;;  %v1461_v22 = vld [vmem:[%s1735_s26 + $0x78] sm:$0xff]  }
  0x46   : > { %337 = vst.msk [vmem:[#allocation2 + $0xd0] sm:$0xff] %vm310_vm1, %v1577_v0  ;;  %338 = vst.msk [vmem:[#allocation2 + $0xd8] sm:$0xff] %vm310_vm1, %v1577_v0  ;;  %1350 = vmatmul.mubr.msk.bf16.vlgmr.msra.gmra.mxu0 %vm502_vm3, %v1448_v9  ;;  %1366 = vmatmul.mubr.msk.bf16.vlgmr.msra.gmra.mxu1 %vm502_vm3, %v1449_v10  ;;  %v345_v23 = vld [vmem:[#allocation2 + $0x10] sm:$0xff]  ;;  %v343_v27 = vld [vmem:[#allocation2] sm:$0xff] }
  0x47   : > { %339 = vst.msk [vmem:[#allocation2 + $0xe0] sm:$0xff] %vm310_vm1, %v1577_v0  ;;  %340 = vst.msk [vmem:[#allocation2 + $0xe8] sm:$0xff] %vm310_vm1, %v1577_v0  ;;  %1353 = vmatprep.mubr.msk.bf16.mxu0 %vm502_vm3, %v1450_v11  ;;  %1369 = vmatprep.mubr.msk.bf16.mxu1 %vm502_vm3, %v1451_v12  ;;  %v346_v33 = vld [vmem:[#allocation2 + $0x18] sm:$0xff]  ;;  %v344_v39 = vld [vmem:[#allocation2 + $0x8] sm:$0xff] }
  0x48   : > { %341 = vst.msk [vmem:[#allocation2 + $0xf0] sm:$0xff] %vm310_vm1, %v1577_v0  ;;  %342 = vst.msk [vmem:[#allocation2 + $0xf8] sm:$0xff] %vm310_vm1, %v1577_v0  ;;  %v359_v28 = vld [vmem:[#allocation2 + $0x80] sm:$0xff]  ;;  %v360_v40 = vld [vmem:[#allocation2 + $0x88] sm:$0xff] }
  0x49   : > { %v361_v24 = vld [vmem:[#allocation2 + $0x90] sm:$0xff]  ;;  %v362_v34 = vld [vmem:[#allocation2 + $0x98] sm:$0xff]  ;;  %v347_v52 = vld [vmem:[#allocation2 + $0x20] sm:$0xff] }
  0x4a   : > { %v349_v45 = vld [vmem:[#allocation2 + $0x30] sm:$0xff]  ;;  %v363_v53 = vld [vmem:[#allocation2 + $0xa0] sm:$0xff]  ;;  %v350_v1 = vld [vmem:[#allocation2 + $0x38] sm:$0xff] }
  0x4b   : > { %v365_v46 = vld [vmem:[#allocation2 + $0xb0] sm:$0xff]  ;;  %v366_v2 = vld [vmem:[#allocation2 + $0xb8] sm:$0xff]  ;;  %v348_v11 = vld [vmem:[#allocation2 + $0x28] sm:$0xff] }
  0x4c   : > { %v364_v12 = vld [vmem:[#allocation2 + $0xa8] sm:$0xff] }
  0x4e   : > { %1354 = vmatmul.mubr.msk.bf16.gmra.mxu0 %vm502_vm3, %v1452_v13  ;;  %1370 = vmatmul.mubr.msk.bf16.gmra.mxu1 %vm502_vm3, %v1453_v14 }
  0x4f   : > { %1357 = vmatprep.mubr.msk.bf16.mxu0 %vm502_vm3, %v1454_v15  ;;  %1373 = vmatprep.mubr.msk.bf16.mxu1 %vm502_vm3, %v1455_v16 }
  0x56   : > { %1358 = vmatmul.mubr.msk.bf16.gmra.mxu0 %vm502_vm3, %v1456_v17  ;;  %1374 = vmatmul.mubr.msk.bf16.gmra.mxu1 %vm502_vm3, %v1457_v18 }
  0x57   : > { %1361 = vmatprep.mubr.msk.bf16.mxu0 %vm502_vm3, %v1458_v19  ;;  %1377 = vmatprep.mubr.msk.bf16.mxu1 %vm502_vm3, %v1459_v20 }
  0x5e   : > { %1362 = vmatmul.mubr.msk.bf16.gmra.mxu0 %vm502_vm3, %v1460_v21  ;;  %1378 = vmatmul.mubr.msk.bf16.gmra.mxu1 %vm502_vm3, %v1461_v22 }
 0x106   : > { %v1351_v25 = vpop.f32.mrf.mxu0  ;;  %v1367_v26 = vpop.f32.mrf.mxu1 }
 0x107   : > { %v721_v29 = vadd.f32 %v1351_v25, %v345_v23  ;;  %v737_v30 = vadd.f32 %v1367_v26, %v361_v24 }
 0x108   : > { %v592_v31 = vpop.f32.mrf.mxu0  ;;  %v656_v32 = vpop.f32.mrf.mxu1 }
 0x109   : > { %754 = vst.msk [vmem:[#allocation2 + $0x10] sm:$0xff] %vm310_vm1, %v721_v29  ;;  %770 = vst.msk [vmem:[#allocation2 + $0x90] sm:$0xff] %vm310_vm1, %v737_v30  ;;  %v719_v35 = vadd.f32 %v592_v31, %v343_v27  ;;  %v735_v36 = vadd.f32 %v656_v32, %v359_v28 }
 0x10a   : > { %v1352_v37 = vpop.f32.mrf.mxu0  ;;  %v1368_v38 = vpop.f32.mrf.mxu1 }
 0x10b   : > { %752 = vst.msk [vmem:[#allocation2] sm:$0xff] %vm310_vm1, %v719_v35  ;;  %768 = vst.msk [vmem:[#allocation2 + $0x80] sm:$0xff] %vm310_vm1, %v735_v36  ;;  %v722_v41 = vadd.f32 %v1352_v37, %v346_v33  ;;  %v738_v42 = vadd.f32 %v1368_v38, %v362_v34 }
 0x10c   : > { %v595_v43 = vpop.f32.mrf.mxu0  ;;  %v659_v44 = vpop.f32.mrf.mxu1 }
 0x10d   : > { %755 = vst.msk [vmem:[#allocation2 + $0x18] sm:$0xff] %vm310_vm1, %v722_v41  ;;  %771 = vst.msk [vmem:[#allocation2 + $0x98] sm:$0xff] %vm310_vm1, %v738_v42  ;;  %v720_v47 = vadd.f32 %v595_v43, %v344_v39  ;;  %v736_v48 = vadd.f32 %v659_v44, %v360_v40 }
 0x10e   : > { %v1355_v50 = vpop.f32.mrf.mxu0  ;;  %v1371_v51 = vpop.f32.mrf.mxu1 }
 0x10f   : > { %753 = vst.msk [vmem:[#allocation2 + $0x8] sm:$0xff] %vm310_vm1, %v720_v47  ;;  %769 = vst.msk [vmem:[#allocation2 + $0x88] sm:$0xff] %vm310_vm1, %v736_v48  ;;  %v725_v54 = vadd.f32 %v1355_v50, %v349_v45  ;;  %v741_v55 = vadd.f32 %v1371_v51, %v365_v46 }
 0x110   : > { %v789_v56 = vld [vmem:[#allocation2 + $0x10] sm:$0xff]  ;;  %v608_v59 = vpop.f32.mrf.mxu0  ;;  %v672_v60 = vpop.f32.mrf.mxu1 }
 0x111   : > { %v805_v58 = vld [vmem:[#allocation2 + $0x90] sm:$0xff]  ;;  %v828_v61 = vmul.f32 %v1775_v49, %v789_v56  ;;  %758 = vst.msk [vmem:[#allocation2 + $0x30] sm:$0xff] %vm310_vm1, %v725_v54  ;;  %774 = vst.msk [vmem:[#allocation2 + $0xb0] sm:$0xff] %vm310_vm1, %v741_v55  ;;  %v723_v63 = vadd.f32 %v608_v59, %v347_v52  ;;  %v739_v0 = vadd.f32 %v672_v60, %v363_v53 }
 0x112   : > { %v844_v62 = vmul.f32 %v1775_v49, %v805_v58  ;;  %v787_v3 = vld [vmem:[#allocation2] sm:$0xff]  ;;  %v1356_v5 = vpop.f32.mrf.mxu0  ;;  %v1372_v6 = vpop.f32.mrf.mxu1 }
 0x113   : > { %v803_v4 = vld [vmem:[#allocation2 + $0x80] sm:$0xff]  ;;  %v867_v7 = vadd.f32 %v1779_v57, %v828_v61  ;;  %v826_v9 = vmul.f32 %v1775_v49, %v787_v3  ;;  %756 = vst.msk [vmem:[#allocation2 + $0x20] sm:$0xff] %vm310_vm1, %v723_v63  ;;  %772 = vst.msk [vmem:[#allocation2 + $0xa0] sm:$0xff] %vm310_vm1, %v739_v0  ;;  %v726_v15 = vadd.f32 %v1356_v5, %v350_v1 }
 0x114   : > { %v883_v8 = vadd.f32 %v1779_v57, %v844_v62  ;;  %v842_v10 = vmul.f32 %v1775_v49, %v803_v4  ;;  %v790_v13 = vld [vmem:[#allocation2 + $0x18] sm:$0xff]  ;;  %v742_v16 = vadd.f32 %v1372_v6, %v366_v2  ;;  %v611_v17 = vpop.f32.mrf.mxu0  ;;  %v675_v18 = vpop.f32.mrf.mxu1 }
 0x115   : > { %v806_v14 = vld [vmem:[#allocation2 + $0x98] sm:$0xff]  ;;  %v899_v19 = vmax.f32 %v867_v7, 0.0  ;;  %v865_v21 = vadd.f32 %v1779_v57, %v826_v9  ;;  %v829_v23 = vmul.f32 %v1775_v49, %v790_v13  ;;  %759 = vst.msk [vmem:[#allocation2 + $0x38] sm:$0xff] %vm310_vm1, %v726_v15  ;;  %v724_v27 = vadd.f32 %v611_v17, %v348_v11  ;;  %v353_v13 = vld [vmem:[#allocation2 + $0x50] sm:$0xff] }
 0x116   : > { %v915_v20 = vmax.f32 %v883_v8, 0.0  ;;  %v881_v22 = vadd.f32 %v1779_v57, %v842_v10  ;;  %v845_v24 = vmul.f32 %v1775_v49, %v806_v14  ;;  %v788_v25 = vld [vmem:[#allocation2 + $0x8] sm:$0xff]  ;;  %775 = vst.msk [vmem:[#allocation2 + $0xb8] sm:$0xff] %vm310_vm1, %v742_v16  ;;  %v740_v28 = vadd.f32 %v675_v18, %v364_v12  ;;  %v1804_v29 = vpop.f32.mrf.mxu0  ;;  %v1806_v30 = vpop.f32.mrf.mxu1  ;;  %v369_v14 = vld [vmem:[#allocation2 + $0xd0] sm:$0xff] }
 0x117   : > { %v804_v26 = vld [vmem:[#allocation2 + $0x88] sm:$0xff]  ;;  %v1297_v31 = vpack.c.bf16 %v899_v19, %v899_v19  ;;  %v897_v33 = vmax.f32 %v865_v21, 0.0  ;;  %v868_v35 = vadd.f32 %v1779_v57, %v829_v23  ;;  %v827_v37 = vmul.f32 %v1775_v49, %v788_v25  ;;  %757 = vst.msk [vmem:[#allocation2 + $0x28] sm:$0xff] %vm310_vm1, %v724_v27  ;;  %v351_v23 = vld [vmem:[#allocation2 + $0x40] sm:$0xff] }
 0x118   : > { %v1313_v32 = vpack.c.bf16 %v915_v20, %v915_v20  ;;  %v913_v34 = vmax.f32 %v881_v22, 0.0  ;;  %v884_v36 = vadd.f32 %v1779_v57, %v845_v24  ;;  %v843_v38 = vmul.f32 %v1775_v49, %v804_v26  ;;  %v793_v39 = vld [vmem:[#allocation2 + $0x30] sm:$0xff]  ;;  %773 = vst.msk [vmem:[#allocation2 + $0xa8] sm:$0xff] %vm310_vm1, %v740_v28  ;;  %v1814_v41 = vpop.f32.mrf.mxu0  ;;  %v1816_v42 = vpop.f32.mrf.mxu1  ;;  %v367_v28 = vld [vmem:[#allocation2 + $0xc0] sm:$0xff] }
 0x119   : > { %v809_v40 = vld [vmem:[#allocation2 + $0xb0] sm:$0xff]  ;;  %1060 = vst.msk [vmem:[%s1798_s28 + $0x8] sm:$0xf] %vm1057_vm4, %v1297_v31  ;;  %v1295_v43 = vpack.c.bf16 %v897_v33, %v897_v33  ;;  %v832_v45 = vmul.f32 %v1775_v49, %v793_v39  ;;  %v900_v47 = vmax.f32 %v868_v35, 0.0  ;;  %v866_v50 = vadd.f32 %v1779_v57, %v827_v37  ;;  %v354_v31 = vld [vmem:[#allocation2 + $0x58] sm:$0xff]  ;;  %v352_v39 = vld [vmem:[#allocation2 + $0x48] sm:$0xff] }
 0x11a   : > { %1076 = vst.msk [vmem:[%s1798_s28 + $0x48] sm:$0xf] %vm1057_vm4, %v1313_v32  ;;  %v1311_v44 = vpack.c.bf16 %v913_v34, %v913_v34  ;;  %v848_v46 = vmul.f32 %v1775_v49, %v809_v40  ;;  %v916_v48 = vmax.f32 %v884_v36, 0.0  ;;  %v882_v51 = vadd.f32 %v1779_v57, %v843_v38  ;;  %v791_v52 = vld [vmem:[#allocation2 + $0x20] sm:$0xff]  ;;  %v1826_v54 = vpop.f32.mrf.mxu0  ;;  %v1828_v55 = vpop.f32.mrf.mxu1  ;;  %v370_v32 = vld [vmem:[#allocation2 + $0xd8] sm:$0xff] }
 0x11b   : > { %v807_v53 = vld [vmem:[#allocation2 + $0xa0] sm:$0xff]  ;;  %1058 = vst.msk [vmem:[%s1798_s28] sm:$0xf] %vm1057_vm4, %v1295_v43  ;;  %v871_v56 = vadd.f32 %v1779_v57, %v832_v45  ;;  %v830_v59 = vmul.f32 %v1775_v49, %v791_v52  ;;  %v1298_v61 = vpack.c.bf16 %v900_v47, %v900_v47  ;;  %v898_v63 = vmax.f32 %v866_v50, 0.0  ;;  %v357_v47 = vld [vmem:[#allocation2 + $0x70] sm:$0xff] }
 0x11c   : > { %1074 = vst.msk [vmem:[%s1798_s28 + $0x40] sm:$0xf] %vm1057_vm4, %v1311_v44  ;;  %v887_v58 = vadd.f32 %v1779_v57, %v848_v46  ;;  %v846_v60 = vmul.f32 %v1775_v49, %v807_v53  ;;  %v1314_v62 = vpack.c.bf16 %v916_v48, %v916_v48  ;;  %v914_v0 = vmax.f32 %v882_v51, 0.0  ;;  %v1838_v1 = vpop.f32.mrf.mxu0  ;;  %v1840_v2 = vpop.f32.mrf.mxu1  ;;  %v794_v7 = vld [vmem:[#allocation2 + $0x38] sm:$0xff]  ;;  %v368_v46 = vld [vmem:[#allocation2 + $0xc8] sm:$0xff]  ;;  %v373_v48 = vld [vmem:[#allocation2 + $0xf0] sm:$0xff] }
 0x11d   : > { %v903_v3 = vmax.f32 %v871_v56, 0.0  ;;  %v869_v5 = vadd.f32 %v1779_v57, %v830_v59  ;;  %v810_v8 = vld [vmem:[#allocation2 + $0xb8] sm:$0xff]  ;;  %1061 = vst.msk [vmem:[%s1798_s28 + $0xc] sm:$0xf] %vm1057_vm4, %v1298_v61  ;;  %v1296_v9 = vpack.c.bf16 %v898_v63, %v898_v63  ;;  %v833_v11 = vmul.f32 %v1775_v49, %v794_v7  ;;  %v355_v56 = vld [vmem:[#allocation2 + $0x60] sm:$0xff] }
 0x11e   : > { %v919_v4 = vmax.f32 %v887_v58, 0.0  ;;  %v885_v6 = vadd.f32 %v1779_v57, %v846_v60  ;;  %1077 = vst.msk [vmem:[%s1798_s28 + $0x4c] sm:$0xf] %vm1057_vm4, %v1314_v62  ;;  %v1312_v10 = vpack.c.bf16 %v914_v0, %v914_v0  ;;  %v849_v12 = vmul.f32 %v1775_v49, %v810_v8  ;;  %v1363_v15 = vpop.f32.mrf.mxu0  ;;  %v1379_v16 = vpop.f32.mrf.mxu1  ;;  %v792_v21 = vld [vmem:[#allocation2 + $0x28] sm:$0xff]  ;;  %v371_v58 = vld [vmem:[#allocation2 + $0xe0] sm:$0xff]  ;;  %v358_v59 = vld [vmem:[#allocation2 + $0x78] sm:$0xff] }
 0x11f   : > { %v1301_v17 = vpack.c.bf16 %v903_v3, %v903_v3  ;;  %v901_v19 = vmax.f32 %v869_v5, 0.0  ;;  %v808_v22 = vld [vmem:[#allocation2 + $0xa8] sm:$0xff]  ;;  %1059 = vst.msk [vmem:[%s1798_s28 + $0x4] sm:$0xf] %vm1057_vm4, %v1296_v9  ;;  %v872_v24 = vadd.f32 %v1779_v57, %v833_v11  ;;  %v831_v26 = vmul.f32 %v1775_v49, %v792_v21  ;;  %v374_v0 = vld [vmem:[#allocation2 + $0xf8] sm:$0xff] }
 0x120   : > { %v1317_v18 = vpack.c.bf16 %v919_v4, %v919_v4  ;;  %v917_v20 = vmax.f32 %v885_v6, 0.0  ;;  %1075 = vst.msk [vmem:[%s1798_s28 + $0x44] sm:$0xf] %vm1057_vm4, %v1312_v10  ;;  %v888_v25 = vadd.f32 %v1779_v57, %v849_v12  ;;  %v847_v27 = vmul.f32 %v1775_v49, %v808_v22  ;;  %v640_v33 = vpop.f32.mrf.mxu0  ;;  %v704_v34 = vpop.f32.mrf.mxu1  ;;  %v356_v3 = vld [vmem:[#allocation2 + $0x68] sm:$0xff] }
 0x121   : > { %1064 = vst.msk [vmem:[%s1798_s28 + $0x18] sm:$0xf] %vm1057_vm4, %v1301_v17  ;;  %v1299_v35 = vpack.c.bf16 %v901_v19, %v901_v19  ;;  %v729_v37 = vadd.f32 %v1804_v29, %v353_v13  ;;  %v745_v38 = vadd.f32 %v1806_v30, %v369_v14  ;;  %v904_v40 = vmax.f32 %v872_v24, 0.0  ;;  %v372_v5 = vld [vmem:[#allocation2 + $0xe8] sm:$0xff] }
 0x122   : > { %1080 = vst.msk [vmem:[%s1798_s28 + $0x58] sm:$0xf] %vm1057_vm4, %v1317_v18  ;;  %v1315_v36 = vpack.c.bf16 %v917_v20, %v917_v20  ;;  %v920_v43 = vmax.f32 %v888_v25, 0.0  ;;  %v870_v44 = vadd.f32 %v1779_v57, %v831_v26  ;;  %v886_v45 = vadd.f32 %v1779_v57, %v847_v27  ;;  %v1364_v50 = vpop.f32.mrf.mxu0  ;;  %v1380_v51 = vpop.f32.mrf.mxu1 }
 0x123   : > { %1062 = vst.msk [vmem:[%s1798_s28 + $0x10] sm:$0xf] %vm1057_vm4, %v1299_v35  ;;  %v727_v29 = vadd.f32 %v1814_v41, %v351_v23  ;;  %v743_v30 = vadd.f32 %v1816_v42, %v367_v28  ;;  %v730_v52 = vadd.f32 %v1826_v54, %v354_v31  ;;  %v746_v53 = vadd.f32 %v1828_v55, %v370_v32 }
 0x124   : > { %1078 = vst.msk [vmem:[%s1798_s28 + $0x50] sm:$0xf] %vm1057_vm4, %v1315_v36  ;;  %v1302_v60 = vpack.c.bf16 %v904_v40, %v904_v40  ;;  %v1318_v61 = vpack.c.bf16 %v920_v43, %v920_v43  ;;  %v902_v62 = vmax.f32 %v870_v44, 0.0  ;;  %v918_v63 = vmax.f32 %v886_v45, 0.0  ;;  %v643_v4 = vpop.f32.mrf.mxu0  ;;  %v707_v41 = vpop.f32.mrf.mxu1 }
 0x125   : > { %762 = vst.msk [vmem:[#allocation2 + $0x50] sm:$0xff] %vm310_vm1, %v729_v37  ;;  %778 = vst.msk [vmem:[#allocation2 + $0xd0] sm:$0xff] %vm310_vm1, %v745_v38  ;;  %v728_v42 = vadd.f32 %v1838_v1, %v352_v39  ;;  %v744_v54 = vadd.f32 %v1840_v2, %v368_v46  ;;  %v733_v55 = vadd.f32 %v1363_v15, %v357_v47 }
 0x126   : > { %760 = vst.msk [vmem:[#allocation2 + $0x40] sm:$0xff] %vm310_vm1, %v727_v29  ;;  %776 = vst.msk [vmem:[#allocation2 + $0xc0] sm:$0xff] %vm310_vm1, %v743_v30  ;;  %v749_v6 = vadd.f32 %v1379_v16, %v373_v48  ;;  %v1300_v7 = vpack.c.bf16 %v902_v62, %v902_v62  ;;  %v1316_v8 = vpack.c.bf16 %v918_v63, %v918_v63 }
 0x127   : > { %763 = vst.msk [vmem:[#allocation2 + $0x58] sm:$0xff] %vm310_vm1, %v730_v52  ;;  %779 = vst.msk [vmem:[#allocation2 + $0xd8] sm:$0xff] %vm310_vm1, %v746_v53  ;;  %v731_v9 = vadd.f32 %v640_v33, %v355_v56  ;;  %v747_v10 = vadd.f32 %v704_v34, %v371_v58  ;;  %v734_v1 = vadd.f32 %v1364_v50, %v358_v59 }
 0x128   : > { %1065 = vst.msk [vmem:[%s1798_s28 + $0x1c] sm:$0xf] %vm1057_vm4, %v1302_v60  ;;  %1081 = vst.msk [vmem:[%s1798_s28 + $0x5c] sm:$0xf] %vm1057_vm4, %v1318_v61  ;;  %v750_v2 = vadd.f32 %v1380_v51, %v374_v0  ;;  %v732_v11 = vadd.f32 %v643_v4, %v356_v3  ;;  %v748_v12 = vadd.f32 %v707_v41, %v372_v5 }
 0x129   : > { %761 = vst.msk [vmem:[#allocation2 + $0x48] sm:$0xff] %vm310_vm1, %v728_v42  ;;  %777 = vst.msk [vmem:[#allocation2 + $0xc8] sm:$0xff] %vm310_vm1, %v744_v54 }
 0x12a   : > { %766 = vst.msk [vmem:[#allocation2 + $0x70] sm:$0xff] %vm310_vm1, %v733_v55  ;;  %782 = vst.msk [vmem:[#allocation2 + $0xf0] sm:$0xff] %vm310_vm1, %v749_v6 }
 0x12b   : > { %1063 = vst.msk [vmem:[%s1798_s28 + $0x14] sm:$0xf] %vm1057_vm4, %v1300_v7  ;;  %1079 = vst.msk [vmem:[%s1798_s28 + $0x54] sm:$0xf] %vm1057_vm4, %v1316_v8 }
 0x12c   : > { %764 = vst.msk [vmem:[#allocation2 + $0x60] sm:$0xff] %vm310_vm1, %v731_v9  ;;  %780 = vst.msk [vmem:[#allocation2 + $0xe0] sm:$0xff] %vm310_vm1, %v747_v10  ;;  %v797_v13 = vld [vmem:[#allocation2 + $0x50] sm:$0xff] }
 0x12d   : > { %767 = vst.msk [vmem:[#allocation2 + $0x78] sm:$0xff] %vm310_vm1, %v734_v1  ;;  %783 = vst.msk [vmem:[#allocation2 + $0xf8] sm:$0xff] %vm310_vm1, %v750_v2  ;;  %v813_v14 = vld [vmem:[#allocation2 + $0xd0] sm:$0xff]  ;;  %v836_v15 = vmul.f32 %v1775_v49, %v797_v13  ;;  %v795_v17 = vld [vmem:[#allocation2 + $0x40] sm:$0xff] }
 0x12e   : > { %765 = vst.msk [vmem:[#allocation2 + $0x68] sm:$0xff] %vm310_vm1, %v732_v11  ;;  %781 = vst.msk [vmem:[#allocation2 + $0xe8] sm:$0xff] %vm310_vm1, %v748_v12  ;;  %v852_v16 = vmul.f32 %v1775_v49, %v813_v14  ;;  %v811_v18 = vld [vmem:[#allocation2 + $0xc0] sm:$0xff]  ;;  %v798_v19 = vld [vmem:[#allocation2 + $0x58] sm:$0xff]  ;;  %v834_v22 = vmul.f32 %v1775_v49, %v795_v17 }
 0x12f   : > { %v875_v20 = vadd.f32 %v1779_v57, %v836_v15  ;;  %v850_v23 = vmul.f32 %v1775_v49, %v811_v18  ;;  %v814_v24 = vld [vmem:[#allocation2 + $0xd8] sm:$0xff]  ;;  %v837_v25 = vmul.f32 %v1775_v49, %v798_v19 }
 0x130   : > { %v891_v21 = vadd.f32 %v1779_v57, %v852_v16  ;;  %v853_v26 = vmul.f32 %v1775_v49, %v814_v24  ;;  %v796_v27 = vld [vmem:[#allocation2 + $0x48] sm:$0xff]  ;;  %v873_v33 = vadd.f32 %v1779_v57, %v834_v22 }
 0x131   : > { %v812_v28 = vld [vmem:[#allocation2 + $0xc8] sm:$0xff]  ;;  %v907_v31 = vmax.f32 %v875_v20, 0.0  ;;  %v889_v34 = vadd.f32 %v1779_v57, %v850_v23  ;;  %v876_v35 = vadd.f32 %v1779_v57, %v837_v25  ;;  %v835_v37 = vmul.f32 %v1775_v49, %v796_v27  ;;  %v801_v39 = vld [vmem:[#allocation2 + $0x70] sm:$0xff] }
 0x132   : > { %v923_v32 = vmax.f32 %v891_v21, 0.0  ;;  %v892_v36 = vadd.f32 %v1779_v57, %v853_v26  ;;  %v851_v38 = vmul.f32 %v1775_v49, %v812_v28  ;;  %v817_v40 = vld [vmem:[#allocation2 + $0xf0] sm:$0xff]  ;;  %v905_v45 = vmax.f32 %v873_v33, 0.0 }
 0x133   : > { %v1305_v43 = vpack.c.bf16 %v907_v31, %v907_v31  ;;  %v921_v46 = vmax.f32 %v889_v34, 0.0  ;;  %v908_v47 = vmax.f32 %v876_v35, 0.0  ;;  %v874_v50 = vadd.f32 %v1779_v57, %v835_v37  ;;  %v799_v29 = vld [vmem:[#allocation2 + $0x60] sm:$0xff] }
 0x134   : > { %v1321_v44 = vpack.c.bf16 %v923_v32, %v923_v32  ;;  %v924_v48 = vmax.f32 %v892_v36, 0.0  ;;  %v890_v51 = vadd.f32 %v1779_v57, %v851_v38  ;;  %v815_v30 = vld [vmem:[#allocation2 + $0xe0] sm:$0xff]  ;;  %v1303_v52 = vpack.c.bf16 %v905_v45, %v905_v45  ;;  %v802_v59 = vld [vmem:[#allocation2 + $0x78] sm:$0xff] }
 0x135   : > { %1068 = vst.msk [vmem:[%s1798_s28 + $0x28] sm:$0xf] %vm1057_vm4, %v1305_v43  ;;  %v1319_v53 = vpack.c.bf16 %v921_v46, %v921_v46  ;;  %v840_v56 = vmul.f32 %v1775_v49, %v801_v39  ;;  %v856_v58 = vmul.f32 %v1775_v49, %v817_v40  ;;  %v818_v60 = vld [vmem:[#allocation2 + $0xf8] sm:$0xff]  ;;  %v1306_v61 = vpack.c.bf16 %v908_v47, %v908_v47  ;;  %v800_v42 = vld [vmem:[#allocation2 + $0x68] sm:$0xff] }
 0x136   : > { %1084 = vst.msk [vmem:[%s1798_s28 + $0x68] sm:$0xf] %vm1057_vm4, %v1321_v44  ;;  %v1322_v62 = vpack.c.bf16 %v924_v48, %v924_v48  ;;  %v906_v63 = vmax.f32 %v874_v50, 0.0  ;;  %v922_v0 = vmax.f32 %v890_v51, 0.0  ;;  %1066 = vst.msk [vmem:[%s1798_s28 + $0x20] sm:$0xf] %vm1057_vm4, %v1303_v52  ;;  %v838_v5 = vmul.f32 %v1775_v49, %v799_v29 }
 0x137   : > { %1082 = vst.msk [vmem:[%s1798_s28 + $0x60] sm:$0xf] %vm1057_vm4, %v1319_v53  ;;  %v879_v3 = vadd.f32 %v1779_v57, %v840_v56  ;;  %v895_v4 = vadd.f32 %v1779_v57, %v856_v58  ;;  %v854_v41 = vmul.f32 %v1775_v49, %v815_v30  ;;  %v816_v54 = vld [vmem:[#allocation2 + $0xe8] sm:$0xff]  ;;  %1069 = vst.msk [vmem:[%s1798_s28 + $0x2c] sm:$0xf] %vm1057_vm4, %v1306_v61 }
 0x138   : > { %1085 = vst.msk [vmem:[%s1798_s28 + $0x6c] sm:$0xf] %vm1057_vm4, %v1322_v62  ;;  %v1304_v55 = vpack.c.bf16 %v906_v63, %v906_v63  ;;  %v1320_v6 = vpack.c.bf16 %v922_v0, %v922_v0  ;;  %v841_v7 = vmul.f32 %v1775_v49, %v802_v59  ;;  %v857_v8 = vmul.f32 %v1775_v49, %v818_v60 }
 0x139   : > { %v911_v9 = vmax.f32 %v879_v3, 0.0  ;;  %v927_v10 = vmax.f32 %v895_v4, 0.0  ;;  %v877_v1 = vadd.f32 %v1779_v57, %v838_v5  ;;  %v893_v2 = vadd.f32 %v1779_v57, %v854_v41 }
 0x13a   : > { %1067 = vst.msk [vmem:[%s1798_s28 + $0x24] sm:$0xf] %vm1057_vm4, %v1304_v55  ;;  %1083 = vst.msk [vmem:[%s1798_s28 + $0x64] sm:$0xf] %vm1057_vm4, %v1320_v6  ;;  %v880_v11 = vadd.f32 %v1779_v57, %v841_v7  ;;  %v896_v12 = vadd.f32 %v1779_v57, %v857_v8  ;;  %v839_v13 = vmul.f32 %v1775_v49, %v800_v42 }
 0x13b   : > { %v855_v14 = vmul.f32 %v1775_v49, %v816_v54  ;;  %v1309_v15 = vpack.c.bf16 %v911_v9, %v911_v9  ;;  %v1325_v16 = vpack.c.bf16 %v927_v10, %v927_v10  ;;  %v909_v17 = vmax.f32 %v877_v1, 0.0 }
 0x13c   : > { %v925_v18 = vmax.f32 %v893_v2, 0.0  ;;  %v912_v19 = vmax.f32 %v880_v11, 0.0  ;;  %v928_v20 = vmax.f32 %v896_v12, 0.0  ;;  %v878_v21 = vadd.f32 %v1779_v57, %v839_v13 }
 0x13d   : > { %v894_v22 = vadd.f32 %v1779_v57, %v855_v14  ;;  %1072 = vst.msk [vmem:[%s1798_s28 + $0x38] sm:$0xf] %vm1057_vm4, %v1309_v15  ;;  %1088 = vst.msk [vmem:[%s1798_s28 + $0x78] sm:$0xf] %vm1057_vm4, %v1325_v16  ;;  %v1307_v49 = vpack.c.bf16 %v909_v17, %v909_v17 }
 0x13e   : > { %v1323_v23 = vpack.c.bf16 %v925_v18, %v925_v18  ;;  %v1310_v24 = vpack.c.bf16 %v912_v19, %v912_v19  ;;  %v1326_v25 = vpack.c.bf16 %v928_v20, %v928_v20  ;;  %v910_v26 = vmax.f32 %v878_v21, 0.0 }
 0x13f   : > { %v926_v27 = vmax.f32 %v894_v22, 0.0  ;;  %1070 = vst.msk [vmem:[%s1798_s28 + $0x30] sm:$0xf] %vm1057_vm4, %v1307_v49 }
 0x140   : > { %1086 = vst.msk [vmem:[%s1798_s28 + $0x70] sm:$0xf] %vm1057_vm4, %v1323_v23  ;;  %1073 = vst.msk [vmem:[%s1798_s28 + $0x3c] sm:$0xf] %vm1057_vm4, %v1310_v24  ;;  %v1308_v57 = vpack.c.bf16 %v910_v26, %v910_v26 }
 0x141   : > { %1089 = vst.msk [vmem:[%s1798_s28 + $0x7c] sm:$0xf] %vm1057_vm4, %v1326_v25  ;;  %v1324_v28 = vpack.c.bf16 %v926_v27, %v926_v27 }
 0x142   : > { %1071 = vst.msk [vmem:[%s1798_s28 + $0x34] sm:$0xf] %vm1057_vm4, %v1308_v57 }
 0x143   : > { %1087 = vst.msk [vmem:[%s1798_s28 + $0x74] sm:$0xf] %vm1057_vm4, %v1324_v28 }
 0x144 PF: > { %s16_s17 = sadd.s32 1, %s1570_s17   ;;  %s1983_s15 = smov %s1566_s16 }
 0x145   : > { %p13_p2 = scmp.ge.s32.totalorder %s16_s17, 4   ;;  %s1984_s16 = smov %s1986_s23 }
 0x147   :  { %15 = sbr.rel (!%p13_p2) target bundleno = 3 (0x3), region = 90 }
 0x14c   :  { %1118 = vsyncpa [#allocation4], 1 }
 0x14d   :  { %1120 = vsyncpa [#allocation4 + $0x1], 1 }
 0x14e   :  { %1121 = vsyncpa [#allocation6], 1 }

// kernel: custom_cnn_forward.8
= control target key start
LH: loop header
LB: loop body
LE: loop exit
PB: predicated region body
PF: predicated region fallthrough
CT: control target
= control target key end

     0   :  { %s2926_s15 = smov 0   ;;  %s2928_s16 = smov 0   ;;  %s3658_s0 = inlined_call_operand.vmem [shape: bf16[512,576], index: 0, kind: input, shape index: {}]   ;;  %s3659_s1 = inlined_call_operand.vmem [shape: bf16[576,64], index: 1, kind: input, shape index: {}]   ;;  %s3660_s2 = inlined_call_operand.vmem [shape: f32[1,64], index: 2, kind: input, shape index: {}]   ;;  %s3661_s3 = inlined_call_operand.vmem [shape: f32[1,64], index: 3, kind: input, shape index: {}]   ;;  %s3662_s4 = inlined_call_operand.vmem [shape: bf16[512,64], index: 4, kind: output, shape index: {}]  }
   0x1   :  { %s2930_s17 = smov 0  }
   0x2 LB: > { %s33_s18 = sadd.s32 1, %s2894_s16  ;;  %p2197_p0 = scmp.ge.s32.totalorder %s2898_s17, 1  ;;  %s2898_s17 = sphi %s2930_s17, %s14_s17   ;;  %s2894_s16 = sphi %s2928_s16, %s3710_s16   ;;  %s2890_s15 = sphi %s2926_s15, %s3709_s15  }
   0x3   : > { %p35_p1 = scmp.ge.s32.totalorder %s33_s18, 2  ;;  %p224_p2 = scmp.lt.s32.totalorder %s2898_s17, 3 }
   0x5   : > { %s3712_s18 = smov (%p35_p1, %s33_s18), 0  ;;  %p225_p3 = pnand %p2197_p0, %p224_p2 }
   0x7   : > { %228 = sbr.rel (%p225_p3) target bundleno = 421 (0x1a5), region = 36 }
   0xc   : > { %v2728_v0 = vld [vmem:[%s3659_s1 + $0x78] sm:$0xff]   ;;  %s2198_s21 = sshll.u32 %s2890_s15, 5  ;;  %v2730_v2 = vld [vmem:[%s3659_s1 + $0x70] sm:$0xff]   ;;  %v2732_v4 = vld [vmem:[%s3659_s1 + $0x68] sm:$0xff]   ;;  %vm313_vm0 = vcmask 523264   ;;  %vm2031_vm1 = vcmask 519168  }
   0xd   : > { %v2729_v1 = vld [vmem:[%s3659_s1 + $0x38] sm:$0xff]   ;;  %2402 = vmatprep.subr.bf16.mxu0 %v2728_v0  ;;  %2686 = vmatprep.subr.bf16.mxu1 %v2728_v0  ;;  %p274_p4 = scmp.lt.s32.totalorder %s2198_s21, 63  ;;  %v2731_v3 = vld [vmem:[%s3659_s1 + $0x30] sm:$0xff]   ;;  %v2733_v5 = vld [vmem:[%s3659_s1 + $0x28] sm:$0xff]  }
   0xe   : > { %2403 = vmatpush3.bf16.msra.mxu0 %v2729_v1  ;;  %2694 = vmatpush3.bf16.msra.mxu1 %v2729_v1  ;;  %v2734_v6 = vld [vmem:[%s3659_s1 + $0x60] sm:$0xff]   ;;  %v2736_v8 = vld [vmem:[%s3659_s1 + $0x58] sm:$0xff]   ;;  %v2738_v10 = vld [vmem:[%s3659_s1 + $0x50] sm:$0xff]  }
   0xf   : > { %2404 = vmatprep.subr.bf16.mxu0 %v2730_v2  ;;  %2687 = vmatprep.subr.bf16.mxu1 %v2730_v2  ;;  %s3714_s21 = smov (!%p274_p4, %s2198_s21), 63  ;;  %v2735_v7 = vld [vmem:[%s3659_s1 + $0x20] sm:$0xff]   ;;  %v2737_v9 = vld [vmem:[%s3659_s1 + $0x18] sm:$0xff]   ;;  %v2739_v13 = vld [vmem:[%s3659_s1 + $0x10] sm:$0xff]  }
  0x10   : > { %s2702_s8 = smul.u32 20, %s3714_s21  ;;  %v2740_v14 = vld [vmem:[%s3659_s1 + $0x48] sm:$0xff]   ;;  %v2742_v16 = vld [vmem:[%s3659_s1 + $0x40] sm:$0xff]   ;;  %v2750_v18 = vld [vmem:[%s3659_s1 + $0xf8] sm:$0xff]   ;;  %s2201_s9 = sshll.u32 %s3714_s21, 2 }
  0x11   : > { %v2741_v15 = vld [vmem:[%s3659_s1 + $0x8] sm:$0xff]   ;;  %v2743_v17 = vld [vmem:[%s3659_s1] sm:$0xff]   ;;  %v2753_v19 = vld [vmem:[%s3659_s1 + $0x118] sm:$0xff]   ;;  %s3424_s11 = scalar_lea.vmem %s3662_s4, %s2201_s9 }
  0x12   : > { %2405 = vmatpush3.bf16.msra.mxu0 %v2731_v3  ;;  %2695 = vmatpush3.bf16.msra.mxu1 %v2731_v3  ;;  %s2977_s15 = scalar_lea.vmem %s3658_s0, %s2702_s8  ;;  %v2751_v22 = vld [vmem:[%s3659_s1 + $0xb8] sm:$0xff]   ;;  %v2752_v23 = vld [vmem:[%s3659_s1 + $0xf0] sm:$0xff]   ;;  %v2761_v28 = vld [vmem:[%s3659_s1 + $0xe8] sm:$0xff]  }
  0x13   : > { %2406 = vmatprep.subr.bf16.mxu0 %v2732_v4  ;;  %2688 = vmatprep.subr.bf16.mxu1 %v2732_v4  ;;  %v2746_v11 = vld [vmem:[%s2977_s15 + $0x4] ss:$20 sps:$4 sm:$0xff]   ;;  %v2744_v20 = vld [vmem:[%s2977_s15] ss:$20 sps:$4 sm:$0xff]   ;;  %v2759_v27 = vld [vmem:[%s2977_s15 + $0x28] ss:$20 sps:$4 sm:$0xff]  }
  0x14   : > { %v2749_v12 = vld [vmem:[%s2977_s15 + $0x1e4] ss:$20 sps:$4 sm:$0xff]   ;;  %1243 = vmatprep.mubr.bf16.mxu0 %v2746_v11  ;;  %v2747_v21 = vld [vmem:[%s2977_s15 + $0x1e0] ss:$20 sps:$4 sm:$0xff]   ;;  %v2760_v29 = vld [vmem:[%s2977_s15 + $0x208] ss:$20 sps:$4 sm:$0xff]  }
  0x15   : > { %1339 = vmatprep.mubr.bf16.mxu1 %v2749_v12  ;;  %v2755_v24 = vld [vmem:[%s2977_s15 + $0x2c] ss:$20 sps:$4 sm:$0xff]   ;;  %v2754_v26 = vld [vmem:[%s3659_s1 + $0xb0] sm:$0xff]   ;;  %v2771_v37 = vld [vmem:[%s3659_s1 + $0xd8] sm:$0xff]  }
  0x16   : > { %2407 = vmatpush3.bf16.msra.mxu0 %v2733_v5  ;;  %2696 = vmatpush3.bf16.msra.mxu1 %v2733_v5  ;;  %v2757_v25 = vld [vmem:[%s2977_s15 + $0x20c] ss:$20 sps:$4 sm:$0xff]   ;;  %v2765_v32 = vld [vmem:[%s2977_s15 + $0x54] ss:$20 sps:$4 sm:$0xff]   ;;  %v2769_v36 = vld [vmem:[%s2977_s15 + $0x50] ss:$20 sps:$4 sm:$0xff]  }
  0x17   : > { %2408 = vmatprep.subr.bf16.mxu0 %v2734_v6  ;;  %2689 = vmatprep.subr.bf16.mxu1 %v2734_v6  ;;  %v2762_v30 = vld [vmem:[%s3659_s1 + $0xa8] sm:$0xff]   ;;  %v2763_v31 = vld [vmem:[%s3659_s1 + $0xe0] sm:$0xff]   ;;  %v2784_v35 = vld [vmem:[%s3659_s1 + $0x110] sm:$0xff]  }
  0x18   : > { %v2767_v33 = vld [vmem:[%s2977_s15 + $0x234] ss:$20 sps:$4 sm:$0xff]   ;;  %v2764_v34 = vld [vmem:[%s3659_s1 + $0xa0] sm:$0xff]   ;;  %v2772_v39 = vld [vmem:[%s3659_s1 + $0x98] sm:$0xff]  }
  0x19   : > { %v2770_v38 = vld [vmem:[%s2977_s15 + $0x230] ss:$20 sps:$4 sm:$0xff]   ;;  %v2779_v44 = vld [vmem:[%s2977_s15 + $0x78] ss:$20 sps:$4 sm:$0xff]   ;;  %v2788_v53 = vld [vmem:[%s2977_s15 + $0x8] ss:$20 sps:$4 sm:$0xff]  }
  0x1a   : > { %2409 = vmatpush3.bf16.msra.mxu0 %v2735_v7  ;;  %2697 = vmatpush3.bf16.msra.mxu1 %v2735_v7  ;;  %v2773_v40 = vld [vmem:[%s3659_s1 + $0xd0] sm:$0xff]   ;;  %v2780_v45 = vld [vmem:[%s2977_s15 + $0x258] ss:$20 sps:$4 sm:$0xff]   ;;  %v2783_v49 = vld [vmem:[%s3659_s1 + $0xc0] sm:$0xff]  }
  0x1b   : > { %2410 = vmatprep.subr.bf16.mxu0 %v2736_v8  ;;  %2690 = vmatprep.subr.bf16.mxu1 %v2736_v8  ;;  %v2775_v41 = vld [vmem:[%s2977_s15 + $0x7c] ss:$20 sps:$4 sm:$0xff]   ;;  %v2781_v46 = vld [vmem:[%s3659_s1 + $0xc8] sm:$0xff]   ;;  %v2786_v50 = vld [vmem:[%s2977_s15 + $0xa4] ss:$20 sps:$4 sm:$0xff]  }
  0x1c   : > { %v2777_v42 = vld [vmem:[%s2977_s15 + $0x25c] ss:$20 sps:$4 sm:$0xff]   ;;  %v2804_v47 = vld [vmem:[%s3659_s1 + $0x108] sm:$0xff]   ;;  %v2785_v52 = vld [vmem:[%s3659_s1 + $0x80] sm:$0xff]  }
  0x1d   : > { %v2774_v43 = vld [vmem:[%s3659_s1 + $0x90] sm:$0xff]   ;;  %v2782_v48 = vld [vmem:[%s3659_s1 + $0x88] sm:$0xff]   ;;  %v2823_v56 = vld [vmem:[%s3659_s1 + $0x100] sm:$0xff]  }
  0x1e   : > { %2411 = vmatpush3.bf16.msra.mxu0 %v2737_v9  ;;  %2698 = vmatpush3.bf16.msra.mxu1 %v2737_v9  ;;  %v2790_v51 = vld [vmem:[%s2977_s15 + $0xc] ss:$20 sps:$4 sm:$0xff]   ;;  %v2794_v57 = vld [vmem:[%s2977_s15 + $0x34] ss:$20 sps:$4 sm:$0xff]   ;;  %v2797_v59 = vld [vmem:[%s2977_s15 + $0x30] ss:$20 sps:$4 sm:$0xff]  }
  0x1f   : > { %2412 = vmatprep.subr.bf16.mxu0 %v2738_v10  ;;  %2691 = vmatprep.subr.bf16.mxu1 %v2738_v10  ;;  %v2791_v54 = vld [vmem:[%s2977_s15 + $0xa0] ss:$20 sps:$4 sm:$0xff]   ;;  %v2796_v58 = vld [vmem:[%s2977_s15 + $0xc8] ss:$20 sps:$4 sm:$0xff]   ;;  %v2802_v62 = vld [vmem:[%s2977_s15 + $0xf0] ss:$20 sps:$4 sm:$0xff]  }
  0x20   : > { %v2792_v55 = vld [vmem:[%s2977_s15 + $0xcc] ss:$20 sps:$4 sm:$0xff]   ;;  %v2798_v60 = vld [vmem:[%s2977_s15 + $0xf4] ss:$20 sps:$4 sm:$0xff]   ;;  %v2800_v61 = vld [vmem:[%s2977_s15 + $0x5c] ss:$20 sps:$4 sm:$0xff]  }
  0x21   : > { %v2803_v63 = vld [vmem:[%s2977_s15 + $0x58] ss:$20 sps:$4 sm:$0xff]   ;;  %v2805_v0 = vld [vmem:[%s2977_s15 + $0x11c] ss:$20 sps:$4 sm:$0xff]   ;;  %v2810_v3 = vld [vmem:[%s2977_s15 + $0x80] ss:$20 sps:$4 sm:$0xff]  }
  0x22   : > { %2413 = vmatpush3.bf16.msra.mxu0 %v2739_v13  ;;  %2699 = vmatpush3.bf16.msra.mxu1 %v2739_v13  ;;  %v2807_v1 = vld [vmem:[%s2977_s15 + $0x84] ss:$20 sps:$4 sm:$0xff]   ;;  %v2813_v5 = vld [vmem:[%s2977_s15 + $0xac] ss:$20 sps:$4 sm:$0xff]   ;;  %v2816_v7 = vld [vmem:[%s2977_s15 + $0xa8] ss:$20 sps:$4 sm:$0xff]  }
  0x23   : > { %2414 = vmatprep.subr.bf16.mxu0 %v2740_v14  ;;  %2692 = vmatprep.subr.bf16.mxu1 %v2740_v14  ;;  %v2809_v2 = vld [vmem:[%s2977_s15 + $0x118] ss:$20 sps:$4 sm:$0xff]   ;;  %v2815_v6 = vld [vmem:[%s2977_s15 + $0x140] ss:$20 sps:$4 sm:$0xff]   ;;  %v2821_v10 = vld [vmem:[%s2977_s15 + $0x168] ss:$20 sps:$4 sm:$0xff]  }
  0x24   : > { %v2811_v4 = vld [vmem:[%s2977_s15 + $0x144] ss:$20 sps:$4 sm:$0xff]   ;;  %v2817_v8 = vld [vmem:[%s2977_s15 + $0x16c] ss:$20 sps:$4 sm:$0xff]   ;;  %v2819_v9 = vld [vmem:[%s2977_s15 + $0xd4] ss:$20 sps:$4 sm:$0xff]  }
  0x25   : > { %v2822_v11 = vld [vmem:[%s2977_s15 + $0xd0] ss:$20 sps:$4 sm:$0xff]   ;;  %v2824_v12 = vld [vmem:[%s2977_s15 + $0x194] ss:$20 sps:$4 sm:$0xff]  }
  0x26   : > { %2415 = vmatpush3.bf16.msra.mxu0 %v2741_v15  ;;  %2700 = vmatpush3.bf16.msra.mxu1 %v2741_v15  ;;  %v2826_v13 = vld [vmem:[%s2977_s15 + $0xfc] ss:$20 sps:$4 sm:$0xff]   ;;  %v2829_v15 = vld [vmem:[%s2977_s15 + $0xf8] ss:$20 sps:$4 sm:$0xff]  }
  0x27   : > { %2416 = vmatprep.subr.bf16.mxu0 %v2742_v16  ;;  %2693 = vmatprep.subr.bf16.mxu1 %v2742_v16  ;;  %v2828_v14 = vld [vmem:[%s2977_s15 + $0x190] ss:$20 sps:$4 sm:$0xff]  }
  0x28   : > { %v2830_v16 = vld [vmem:[%s2977_s15 + $0x1bc] ss:$20 sps:$4 sm:$0xff]  }
  0x2a   : > { %2417 = vmatpush3.bf16.msra.mxu0 %v2743_v17  ;;  %2701 = vmatpush3.bf16.msra.mxu1 %v2743_v17  ;;  %v2832_v17 = vld [vmem:[%s2977_s15 + $0x124] ss:$20 sps:$4 sm:$0xff]  }
  0x2b   : > { %2514 = vmatprep.subr.bf16.mxu1 %v2750_v18  ;;  %2646 = vmatprep.subr.bf16.mxu0 %v2753_v19  ;;  %v2834_v18 = vld [vmem:[%s2977_s15 + $0x1b8] ss:$20 sps:$4 sm:$0xff]  }
  0x2d   : > { %1244 = vmatmul.mubr.bf16.vlgmr.msra.gmra.mxu0 %v2744_v20  ;;  %1340 = vmatmul.mubr.bf16.vlgmr.msra.gmra.mxu1 %v2747_v21  ;;  %v2836_v20 = vld [vmem:[%s2977_s15 + $0x14c] ss:$20 sps:$4 sm:$0xff]   ;;  %v2838_v21 = vld [vmem:[%s2977_s15 + $0x10] ss:$20 sps:$4 sm:$0xff]  }
  0x2e   : > { %2515 = vmatpush3.bf16.msra.mxu1 %v2751_v22  ;;  %2647 = vmatpush3.bf16.msra.mxu0 %v2753_v19  ;;  %v2835_v19 = vld [vmem:[%s2977_s15 + $0x120] ss:$20 sps:$4 sm:$0xff]   ;;  %v2839_v22 = vld [vmem:[%s2977_s15 + $0x148] ss:$20 sps:$4 sm:$0xff]  }
  0x2f   : > { %2516 = vmatprep.subr.bf16.mxu1 %v2752_v23  ;;  %1251 = vmatprep.mubr.bf16.mxu0 %v2755_v24  ;;  %v2840_v23 = vld [vmem:[%s2977_s15 + $0x38] ss:$20 sps:$4 sm:$0xff]   ;;  %v2841_v24 = vld [vmem:[%s2977_s15 + $0x174] ss:$20 sps:$4 sm:$0xff]  }
  0x30   : > { %1347 = vmatprep.mubr.bf16.mxu1 %v2757_v25  ;;  %2648 = vmatprep.subr.bf16.mxu0 %v2784_v35  ;;  %v2843_v25 = vld [vmem:[%s2977_s15 + $0x60] ss:$20 sps:$4 sm:$0xff]  }
  0x32   : > { %2517 = vmatpush3.bf16.msra.mxu1 %v2754_v26  ;;  %2649 = vmatpush3.bf16.msra.mxu0 %v2784_v35  ;;  %v2844_v26 = vld [vmem:[%s2977_s15 + $0x170] ss:$20 sps:$4 sm:$0xff]   ;;  %v2855_v35 = vld [vmem:[%s2977_s15 + $0x128] ss:$20 sps:$4 sm:$0xff]  }
  0x33   : > { %2518 = vmatprep.subr.bf16.mxu1 %v2761_v28  ;;  %2650 = vmatprep.subr.bf16.mxu0 %v2804_v47  ;;  %v2846_v28 = vld [vmem:[%s2977_s15 + $0x19c] ss:$20 sps:$4 sm:$0xff]  }
  0x35   : > { %1252 = vmatmul.mubr.bf16.gmra.mxu0 %v2759_v27  ;;  %1348 = vmatmul.mubr.bf16.gmra.mxu1 %v2760_v29  ;;  %v2845_v27 = vld [vmem:[%s2977_s15 + $0x88] ss:$20 sps:$4 sm:$0xff]   ;;  %v2848_v29 = vld [vmem:[%s2977_s15 + $0xb0] ss:$20 sps:$4 sm:$0xff]  }
  0x36   : > { %2519 = vmatpush3.bf16.msra.mxu1 %v2762_v30  ;;  %1259 = vmatprep.mubr.bf16.mxu0 %v2765_v32  ;;  %v2849_v30 = vld [vmem:[%s2977_s15 + $0x198] ss:$20 sps:$4 sm:$0xff]  }
  0x37   : > { %2520 = vmatprep.subr.bf16.mxu1 %v2763_v31  ;;  %1355 = vmatprep.mubr.bf16.mxu1 %v2767_v33  ;;  %v2850_v31 = vld [vmem:[%s2977_s15 + $0xd8] ss:$20 sps:$4 sm:$0xff]   ;;  %v2853_v33 = vld [vmem:[%s2977_s15 + $0x100] ss:$20 sps:$4 sm:$0xff]  }
  0x38   : > { %2651 = vmatpush3.bf16.msra.mxu0 %v2804_v47  ;;  %v2851_v32 = vld [vmem:[%s2977_s15 + $0x1c4] ss:$20 sps:$4 sm:$0xff]  }
  0x39   : > { %2652 = vmatprep.subr.bf16.mxu0 %v2823_v56  ;;  %v2870_v47 = vld [vmem:[%s2977_s15 + $0x218] ss:$20 sps:$4 sm:$0xff]  }
  0x3a   : > { %2521 = vmatpush3.bf16.msra.mxu1 %v2764_v34  ;;  %v2854_v34 = vld [vmem:[%s2977_s15 + $0x1c0] ss:$20 sps:$4 sm:$0xff]  }
  0x3b   : > { %2522 = vmatprep.subr.bf16.mxu1 %v2771_v37  ;;  %v2858_v37 = vld [vmem:[%s2977_s15 + $0x150] ss:$20 sps:$4 sm:$0xff]  }
  0x3c   : > { %2653 = vmatpush3.bf16.msra.mxu0 %v2823_v56 }
  0x3d   : > { %1260 = vmatmul.mubr.bf16.gmra.mxu0 %v2769_v36  ;;  %1356 = vmatmul.mubr.bf16.gmra.mxu1 %v2770_v38  ;;  %v2856_v36 = vld [vmem:[%s2977_s15 + $0x1ec] ss:$20 sps:$4 sm:$0xff]   ;;  %v2859_v38 = vld [vmem:[%s2977_s15 + $0x1e8] ss:$20 sps:$4 sm:$0xff]  }
  0x3e   : > { %2523 = vmatpush3.bf16.msra.mxu1 %v2772_v39  ;;  %1267 = vmatprep.mubr.bf16.mxu0 %v2775_v41  ;;  %v2860_v39 = vld [vmem:[%s2977_s15 + $0x178] ss:$20 sps:$4 sm:$0xff]   ;;  %v2863_v41 = vld [vmem:[%s2977_s15 + $0x1a0] ss:$20 sps:$4 sm:$0xff]  }
  0x3f   : > { %2524 = vmatprep.subr.bf16.mxu1 %v2773_v40  ;;  %1363 = vmatprep.mubr.bf16.mxu1 %v2777_v42  ;;  %v2861_v40 = vld [vmem:[%s2977_s15 + $0x214] ss:$20 sps:$4 sm:$0xff]   ;;  %v2864_v42 = vld [vmem:[%s2977_s15 + $0x210] ss:$20 sps:$4 sm:$0xff]  }
  0x42   : > { %2525 = vmatpush3.bf16.msra.mxu1 %v2774_v43  ;;  %v2865_v43 = vld [vmem:[%s2977_s15 + $0x1c8] ss:$20 sps:$4 sm:$0xff]  }
  0x43   : > { %2526 = vmatprep.subr.bf16.mxu1 %v2781_v46  ;;  %v2869_v46 = vld [vmem:[%s2977_s15 + $0x238] ss:$20 sps:$4 sm:$0xff]  }
  0x45   : > { %1268 = vmatmul.mubr.bf16.gmra.mxu0 %v2779_v44  ;;  %1364 = vmatmul.mubr.bf16.gmra.mxu1 %v2780_v45  ;;  %v2866_v44 = vld [vmem:[%s2977_s15 + $0x23c] ss:$20 sps:$4 sm:$0xff]  }
  0x46   : > { %2527 = vmatpush3.bf16.msra.mxu1 %v2782_v48  ;;  %1275 = vmatprep.mubr.bf16.mxu0 %v2786_v50  ;;  %v2868_v45 = vld [vmem:[%s2977_s15 + $0x1f0] ss:$20 sps:$4 sm:$0xff]   ;;  %v2874_v50 = vld [vmem:[%s2977_s15 + $0x260] ss:$20 sps:$4 sm:$0xff]  }
  0x47   : > { %2528 = vmatprep.subr.bf16.mxu1 %v2783_v49  ;;  %1404 = vmatprep.mubr.bf16.mxu1 %v2790_v51  ;;  %v2871_v48 = vld [vmem:[%s2977_s15 + $0x264] ss:$20 sps:$4 sm:$0xff]   ;;  %v2873_v49 = vld [vmem:[%s2977_s15 + $0x240] ss:$20 sps:$4 sm:$0xff]   ;;  %v2875_v51 = vld [vmem:[%s2977_s15 + $0x268] ss:$20 sps:$4 sm:$0xff]  }
  0x4a   : > { %2529 = vmatpush3.bf16.msra.mxu1 %v2785_v52  ;;  %v2900_v52 = vmov 0.0  }
  0x4b   : > { %316 = vst.msk [vmem:[#allocation2 + $0x10] sm:$0xff] %vm313_vm0, %v2900_v52  ;;  %314 = vst.msk [vmem:[#allocation2] sm:$0xff] %vm313_vm0, %v2900_v52 }
  0x4c   : > { %315 = vst.msk [vmem:[#allocation2 + $0x8] sm:$0xff] %vm313_vm0, %v2900_v52  ;;  %317 = vst.msk [vmem:[#allocation2 + $0x18] sm:$0xff] %vm313_vm0, %v2900_v52 }
  0x4d   : > { %1276 = vmatmul.mubr.bf16.gmra.mxu0 %v2791_v54  ;;  %1405 = vmatmul.mubr.bf16.vlgmr.msra.gmra.mxu1 %v2788_v53  ;;  %318 = vst.msk [vmem:[#allocation2 + $0x20] sm:$0xff] %vm313_vm0, %v2900_v52  ;;  %319 = vst.msk [vmem:[#allocation2 + $0x28] sm:$0xff] %vm313_vm0, %v2900_v52 }
  0x4e   : > { %1283 = vmatprep.mubr.bf16.mxu0 %v2792_v55  ;;  %1412 = vmatprep.mubr.bf16.mxu1 %v2794_v57  ;;  %320 = vst.msk [vmem:[#allocation2 + $0x30] sm:$0xff] %vm313_vm0, %v2900_v52  ;;  %321 = vst.msk [vmem:[#allocation2 + $0x38] sm:$0xff] %vm313_vm0, %v2900_v52 }
  0x4f   : > { %322 = vst.msk [vmem:[#allocation2 + $0x40] sm:$0xff] %vm313_vm0, %v2900_v52  ;;  %323 = vst.msk [vmem:[#allocation2 + $0x48] sm:$0xff] %vm313_vm0, %v2900_v52 }
  0x50   : > { %324 = vst.msk [vmem:[#allocation2 + $0x50] sm:$0xff] %vm313_vm0, %v2900_v52  ;;  %325 = vst.msk [vmem:[#allocation2 + $0x58] sm:$0xff] %vm313_vm0, %v2900_v52 }
  0x51   : > { %326 = vst.msk [vmem:[#allocation2 + $0x60] sm:$0xff] %vm313_vm0, %v2900_v52  ;;  %327 = vst.msk [vmem:[#allocation2 + $0x68] sm:$0xff] %vm313_vm0, %v2900_v52 }
  0x52   : > { %328 = vst.msk [vmem:[#allocation2 + $0x70] sm:$0xff] %vm313_vm0, %v2900_v52  ;;  %329 = vst.msk [vmem:[#allocation2 + $0x78] sm:$0xff] %vm313_vm0, %v2900_v52 }
  0x53   : > { %330 = vst.msk [vmem:[#allocation2 + $0x80] sm:$0xff] %vm313_vm0, %v2900_v52  ;;  %331 = vst.msk [vmem:[#allocation2 + $0x88] sm:$0xff] %vm313_vm0, %v2900_v52 }
  0x54   : > { %332 = vst.msk [vmem:[#allocation2 + $0x90] sm:$0xff] %vm313_vm0, %v2900_v52  ;;  %333 = vst.msk [vmem:[#allocation2 + $0x98] sm:$0xff] %vm313_vm0, %v2900_v52 }
  0x55   : > { %1284 = vmatmul.mubr.bf16.gmra.mxu0 %v2796_v58  ;;  %1413 = vmatmul.mubr.bf16.gmra.mxu1 %v2797_v59  ;;  %334 = vst.msk [vmem:[#allocation2 + $0xa0] sm:$0xff] %vm313_vm0, %v2900_v52  ;;  %335 = vst.msk [vmem:[#allocation2 + $0xa8] sm:$0xff] %vm313_vm0, %v2900_v52 }
  0x56   : > { %1291 = vmatprep.mubr.bf16.mxu0 %v2798_v60  ;;  %1420 = vmatprep.mubr.bf16.mxu1 %v2800_v61  ;;  %336 = vst.msk [vmem:[#allocation2 + $0xb0] sm:$0xff] %vm313_vm0, %v2900_v52  ;;  %337 = vst.msk [vmem:[#allocation2 + $0xb8] sm:$0xff] %vm313_vm0, %v2900_v52 }
  0x57   : > { %338 = vst.msk [vmem:[#allocation2 + $0xc0] sm:$0xff] %vm313_vm0, %v2900_v52  ;;  %339 = vst.msk [vmem:[#allocation2 + $0xc8] sm:$0xff] %vm313_vm0, %v2900_v52 }
  0x58   : > { %340 = vst.msk [vmem:[#allocation2 + $0xd0] sm:$0xff] %vm313_vm0, %v2900_v52  ;;  %341 = vst.msk [vmem:[#allocation2 + $0xd8] sm:$0xff] %vm313_vm0, %v2900_v52 }
  0x59   : > { %342 = vst.msk [vmem:[#allocation2 + $0xe0] sm:$0xff] %vm313_vm0, %v2900_v52  ;;  %343 = vst.msk [vmem:[#allocation2 + $0xe8] sm:$0xff] %vm313_vm0, %v2900_v52 }
  0x5a   : > { %344 = vst.msk [vmem:[#allocation2 + $0xf0] sm:$0xff] %vm313_vm0, %v2900_v52  ;;  %345 = vst.msk [vmem:[#allocation2 + $0xf8] sm:$0xff] %vm313_vm0, %v2900_v52 }
  0x5d   : > { %1292 = vmatmul.mubr.bf16.gmra.mxu0 %v2802_v62  ;;  %1421 = vmatmul.mubr.bf16.gmra.mxu1 %v2803_v63 }
  0x5e   : > { %1299 = vmatprep.mubr.bf16.mxu0 %v2805_v0  ;;  %1428 = vmatprep.mubr.bf16.mxu1 %v2807_v1 }
  0x65   : > { %1300 = vmatmul.mubr.bf16.gmra.mxu0 %v2809_v2  ;;  %1429 = vmatmul.mubr.bf16.gmra.mxu1 %v2810_v3 }
  0x66   : > { %1307 = vmatprep.mubr.bf16.mxu0 %v2811_v4  ;;  %1436 = vmatprep.mubr.bf16.mxu1 %v2813_v5 }
  0x6d   : > { %1308 = vmatmul.mubr.bf16.gmra.mxu0 %v2815_v6  ;;  %1437 = vmatmul.mubr.bf16.gmra.mxu1 %v2816_v7 }
  0x6e   : > { %1315 = vmatprep.mubr.bf16.mxu0 %v2817_v8  ;;  %1444 = vmatprep.mubr.bf16.mxu1 %v2819_v9 }
  0x75   : > { %1316 = vmatmul.mubr.bf16.gmra.mxu0 %v2821_v10  ;;  %1445 = vmatmul.mubr.bf16.gmra.mxu1 %v2822_v11 }
  0x76   : > { %1323 = vmatprep.mubr.bf16.mxu0 %v2824_v12  ;;  %1452 = vmatprep.mubr.bf16.mxu1 %v2826_v13 }
  0x7d   : > { %1324 = vmatmul.mubr.bf16.gmra.mxu0 %v2828_v14  ;;  %1453 = vmatmul.mubr.bf16.gmra.mxu1 %v2829_v15 }
  0x7e   : > { %1331 = vmatprep.mubr.bf16.mxu0 %v2830_v16  ;;  %1460 = vmatprep.mubr.bf16.mxu1 %v2832_v17 }
  0x85   : > { %1332 = vmatmul.mubr.bf16.gmra.mxu0 %v2834_v18  ;;  %1461 = vmatmul.mubr.bf16.gmra.mxu1 %v2835_v19 }
  0x86   : > { %1468 = vmatprep.mubr.bf16.mxu1 %v2836_v20  ;;  %2654 = vmatprep.mubr.msk.bf16.mxu0 %vm313_vm0, %v2838_v21 }
  0x8d   : > { %1469 = vmatmul.mubr.bf16.gmra.mxu1 %v2839_v22  ;;  %2655 = vmatmul.mubr.msk.bf16.vlgmr.msra.gmra.mxu0 %vm313_vm0, %v2840_v23 }
  0x8e   : > { %1476 = vmatprep.mubr.bf16.mxu1 %v2841_v24  ;;  %2658 = vmatprep.mubr.msk.bf16.mxu0 %vm313_vm0, %v2843_v25 }
  0x95   : > { %1477 = vmatmul.mubr.bf16.gmra.mxu1 %v2844_v26  ;;  %2659 = vmatmul.mubr.msk.bf16.gmra.mxu0 %vm313_vm0, %v2845_v27 }
  0x96   : > { %1484 = vmatprep.mubr.bf16.mxu1 %v2846_v28  ;;  %2662 = vmatprep.mubr.msk.bf16.mxu0 %vm313_vm0, %v2848_v29 }
  0x9d   : > { %1485 = vmatmul.mubr.bf16.gmra.mxu1 %v2849_v30  ;;  %2663 = vmatmul.mubr.msk.bf16.gmra.mxu0 %vm313_vm0, %v2850_v31 }
  0x9e   : > { %1492 = vmatprep.mubr.bf16.mxu1 %v2851_v32  ;;  %2666 = vmatprep.mubr.msk.bf16.mxu0 %vm313_vm0, %v2853_v33 }
  0xa5   : > { %1493 = vmatmul.mubr.bf16.gmra.mxu1 %v2854_v34  ;;  %2667 = vmatmul.mubr.msk.bf16.gmra.mxu0 %vm313_vm0, %v2855_v35 }
  0xa6   : > { %1500 = vmatprep.mubr.bf16.mxu1 %v2856_v36  ;;  %2670 = vmatprep.mubr.msk.bf16.mxu0 %vm313_vm0, %v2858_v37 }
  0xad   : > { %1501 = vmatmul.mubr.bf16.gmra.mxu1 %v2859_v38  ;;  %2671 = vmatmul.mubr.msk.bf16.gmra.mxu0 %vm313_vm0, %v2860_v39 }
  0xae   : > { %1508 = vmatprep.mubr.bf16.mxu1 %v2861_v40  ;;  %2674 = vmatprep.mubr.msk.bf16.mxu0 %vm313_vm0, %v2863_v41 }
  0xb5   : > { %1509 = vmatmul.mubr.bf16.gmra.mxu1 %v2864_v42  ;;  %2675 = vmatmul.mubr.msk.bf16.gmra.mxu0 %vm313_vm0, %v2865_v43 }
  0xb6   : > { %1516 = vmatprep.mubr.bf16.mxu1 %v2866_v44  ;;  %2678 = vmatprep.mubr.msk.bf16.mxu0 %vm313_vm0, %v2868_v45 }
  0xbd   : > { %1517 = vmatmul.mubr.bf16.gmra.mxu1 %v2869_v46  ;;  %2679 = vmatmul.mubr.msk.bf16.gmra.mxu0 %vm313_vm0, %v2870_v47 }
  0xbe   : > { %1524 = vmatprep.mubr.bf16.mxu1 %v2871_v48  ;;  %2682 = vmatprep.mubr.msk.bf16.mxu0 %vm313_vm0, %v2873_v49 }
  0xc5   : > { %1525 = vmatmul.mubr.bf16.gmra.mxu1 %v2874_v50  ;;  %2683 = vmatmul.mubr.msk.bf16.gmra.mxu0 %vm313_vm0, %v2875_v51 }
  0xed   : > { %v2418_v53 = vpop.f32.mrf.mxu0  ;;  %v2490_v54 = vpop.f32.mrf.mxu1 }
  0xef   : > { %v2419_v55 = vpop.f32.mrf.mxu0  ;;  %v2491_v56 = vpop.f32.mrf.mxu1 }
  0xf0   : > { %v3188_v57 = vadd.f32 %v2419_v55, %v2418_v53  ;;  %v3190_v58 = vadd.f32 %v2491_v56, %v2490_v54 }
  0xf1   : > { %v2421_v59 = vpop.f32.mrf.mxu0  ;;  %v2493_v60 = vpop.f32.mrf.mxu1 }
  0xf2   : > { %3663 = vst [vmem:[#allocation3_spill] sm:$0xff] %v3190_v58 }
  0xf3   : > { %v2422_v61 = vpop.f32.mrf.mxu0  ;;  %v2494_v62 = vpop.f32.mrf.mxu1 }
  0xf4   : > { %v3192_v63 = vadd.f32 %v2422_v61, %v2421_v59  ;;  %v3194_v0 = vadd.f32 %v2494_v62, %v2493_v60 }
  0xf5   : > { %v2424_v1 = vpop.f32.mrf.mxu0  ;;  %v2496_v2 = vpop.f32.mrf.mxu1 }
  0xf6   : > { %3664 = vst [vmem:[#allocation4_spill] sm:$0xff] %v3194_v0 }
  0xf7   : > { %v2425_v3 = vpop.f32.mrf.mxu0  ;;  %v2497_v4 = vpop.f32.mrf.mxu1 }
  0xf8   : > { %v3196_v5 = vadd.f32 %v2425_v3, %v2424_v1  ;;  %v3198_v6 = vadd.f32 %v2497_v4, %v2496_v2 }
  0xf9   : > { %v2427_v7 = vpop.f32.mrf.mxu0  ;;  %v2499_v8 = vpop.f32.mrf.mxu1 }
  0xfa   : > { %3665 = vst [vmem:[#allocation5_spill] sm:$0xff] %v3198_v6 }
  0xfb   : > { %v2428_v9 = vpop.f32.mrf.mxu0  ;;  %v2500_v10 = vpop.f32.mrf.mxu1 }
  0xfc   : > { %v3200_v11 = vadd.f32 %v2428_v9, %v2427_v7  ;;  %v3202_v12 = vadd.f32 %v2500_v10, %v2499_v8 }
  0xfd   : > { %v2430_v13 = vpop.f32.mrf.mxu0  ;;  %v2502_v14 = vpop.f32.mrf.mxu1 }
  0xfe   : > { %3666 = vst [vmem:[#allocation6_spill] sm:$0xff] %v3202_v12 }
  0xff   : > { %v2431_v15 = vpop.f32.mrf.mxu0  ;;  %v2503_v16 = vpop.f32.mrf.mxu1 }
 0x100   : > { %v3204_v17 = vadd.f32 %v2431_v15, %v2430_v13  ;;  %v3206_v18 = vadd.f32 %v2503_v16, %v2502_v14 }
 0x101   : > { %v2433_v19 = vpop.f32.mrf.mxu0  ;;  %v2505_v20 = vpop.f32.mrf.mxu1 }
 0x102   : > { %3667 = vst [vmem:[#allocation7_spill] sm:$0xff] %v3206_v18 }
 0x103   : > { %v2434_v21 = vpop.f32.mrf.mxu0  ;;  %v2506_v22 = vpop.f32.mrf.mxu1 }
 0x104   : > { %v3208_v23 = vadd.f32 %v2434_v21, %v2433_v19  ;;  %v3210_v24 = vadd.f32 %v2506_v22, %v2505_v20 }
 0x105   : > { %v2436_v25 = vpop.f32.mrf.mxu0  ;;  %v2508_v26 = vpop.f32.mrf.mxu1 }
 0x106   : > { %3668 = vst [vmem:[#allocation8_spill] sm:$0xff] %v3210_v24 }
 0x107   : > { %v2437_v27 = vpop.f32.mrf.mxu0  ;;  %v2509_v28 = vpop.f32.mrf.mxu1 }
 0x108   : > { %v3212_v29 = vadd.f32 %v2437_v27, %v2436_v25  ;;  %v3214_v30 = vadd.f32 %v2509_v28, %v2508_v26 }
 0x109   : > { %v2439_v31 = vpop.f32.mrf.mxu0  ;;  %v2511_v32 = vpop.f32.mrf.mxu1 }
 0x10a   : > { %3669 = vst [vmem:[#allocation9_spill] sm:$0xff] %v3214_v30 }
 0x10b   : > { %v2440_v33 = vpop.f32.mrf.mxu0  ;;  %v2512_v34 = vpop.f32.mrf.mxu1 }
 0x10c   : > { %v3216_v35 = vadd.f32 %v2440_v33, %v2439_v31  ;;  %v3218_v36 = vadd.f32 %v2512_v34, %v2511_v32 }
 0x10d   : > { %v2442_v37 = vpop.f32.mrf.mxu0  ;;  %v3220_v38 = vpop.f32.mrf.mxu1 }
 0x10e   : > { %3670 = vst [vmem:[#allocation10_spill] sm:$0xff] %v3218_v36 }
 0x10f   : > { %v2443_v39 = vpop.f32.mrf.mxu0  ;;  %v3222_v40 = vpop.f32.mrf.mxu1 }
 0x110   : > { %v3224_v41 = vadd.f32 %v2443_v39, %v2442_v37 }
 0x111   : > { %v2445_v42 = vpop.f32.mrf.mxu0  ;;  %v3226_v43 = vpop.f32.mrf.mxu1 }
 0x113   : > { %v2446_v44 = vpop.f32.mrf.mxu0  ;;  %v3228_v45 = vpop.f32.mrf.mxu1 }
 0x114   : > { %v3230_v46 = vadd.f32 %v2446_v44, %v2445_v42 }
 0x115   : > { %v2448_v47 = vpop.f32.mrf.mxu0  ;;  %v2536_v48 = vpop.f32.mrf.mxu1 }
 0x117   : > { %v2449_v49 = vpop.f32.mrf.mxu0  ;;  %v2537_v50 = vpop.f32.mrf.mxu1 }
 0x118   : > { %v3232_v51 = vadd.f32 %v2449_v49, %v2448_v47  ;;  %v2538_v58 = vadd.f32 %v2537_v50, %v2536_v48  ;;  %v2535_v48 = vadd.f32 %v3228_v45, %v3226_v43  ;;  %v347_v45 = vld [vmem:[#allocation2 + $0x8] sm:$0xff] }
 0x119   : > { %v2451_v52 = vpop.f32.mrf.mxu0  ;;  %v2539_v53 = vpop.f32.mrf.mxu1 }
 0x11b   : > { %v2452_v54 = vpop.f32.mrf.mxu0  ;;  %v2540_v55 = vpop.f32.mrf.mxu1 }
 0x11c   : > { %v3234_v56 = vadd.f32 %v2452_v54, %v2451_v52 }
 0x11d   : > { %v2454_v59 = vpop.f32.mrf.mxu0  ;;  %v3236_v60 = vpop.f32.mrf.mxu1 }
 0x11f   : > { %v2455_v61 = vpop.f32.mrf.mxu0  ;;  %v3238_v62 = vpop.f32.mrf.mxu1 }
 0x120   : > { %v3240_v1 = vadd.f32 %v2455_v61, %v2454_v59 }
 0x121   : > { %v2457_v2 = vpop.f32.mrf.mxu0  ;;  %v3242_v3 = vpop.f32.mrf.mxu1 }
 0x122   : > { %3671 = vst [vmem:[#allocation11_spill] sm:$0xff] %v3240_v1 }
 0x123   : > { %v2458_v4 = vpop.f32.mrf.mxu0  ;;  %v3244_v7 = vpop.f32.mrf.mxu1 }
 0x124   : > { %v3246_v8 = vadd.f32 %v2458_v4, %v2457_v2 }
 0x125   : > { %v3248_v9 = vpop.f32.mrf.mxu0  ;;  %v2548_v10 = vpop.f32.mrf.mxu1 }
 0x126   : > { %3672 = vst [vmem:[#allocation12_spill] sm:$0xff] %v3246_v8 }
 0x127   : > { %v3250_v13 = vpop.f32.mrf.mxu0  ;;  %v2549_v14 = vpop.f32.mrf.mxu1 }
 0x129   : > { %v3252_v15 = vpop.f32.mrf.mxu0  ;;  %v3254_v16 = vpop.f32.mrf.mxu1 }
 0x12b   : > { %v3256_v19 = vpop.f32.mrf.mxu0  ;;  %v2552_v20 = vpop.f32.mrf.mxu1 }
 0x12d   : > { %v3258_v21 = vpop.f32.mrf.mxu0  ;;  %v3260_v22 = vpop.f32.mrf.mxu1 }
 0x12f   : > { %v3262_v25 = vpop.f32.mrf.mxu0  ;;  %v3264_v26 = vpop.f32.mrf.mxu1 }
 0x131   : > { %v3266_v27 = vpop.f32.mrf.mxu0  ;;  %v3268_v28 = vpop.f32.mrf.mxu1 }
 0x133   : > { %v3270_v31 = vpop.f32.mrf.mxu0  ;;  %v3272_v32 = vpop.f32.mrf.mxu1 }
 0x135   : > { %v3274_v33 = vpop.f32.mrf.mxu0  ;;  %v3276_v34 = vpop.f32.mrf.mxu1 }
 0x137   : > { %v3278_v37 = vpop.f32.mrf.mxu0  ;;  %v3280_v39 = vpop.f32.mrf.mxu1 }
 0x139   : > { %v3282_v42 = vpop.f32.mrf.mxu0  ;;  %v3284_v44 = vpop.f32.mrf.mxu1 }
 0x13b   : > { %v3286_v47 = vpop.f32.mrf.mxu0  ;;  %v3288_v49 = vpop.f32.mrf.mxu1 }
 0x13d   : > { %v3290_v52 = vpop.f32.mrf.mxu0  ;;  %v3292_v54 = vpop.f32.mrf.mxu1 }
 0x13f   : > { %v3294_v59 = vpop.f32.mrf.mxu0  ;;  %v3296_v61 = vpop.f32.mrf.mxu1 }
 0x141   : > { %v3298_v2 = vpop.f32.mrf.mxu0  ;;  %v3300_v4 = vpop.f32.mrf.mxu1 }
 0x142   : > { %3673 = vst [vmem:[#allocation13_spill] sm:$0xff] %v3298_v2  ;;  %3674 = vst [vmem:[#allocation14_spill] sm:$0xff] %v3300_v4  ;;  %v2532_v2 = vadd.f32 %v3222_v40, %v3220_v38  ;;  %v346_v38 = vld [vmem:[#allocation2] sm:$0xff] }
 0x143   : > { %v3302_v36 = vpop.f32.mrf.mxu0  ;;  %v3304_v24 = vpop.f32.mrf.mxu1 }
 0x144   : > { %3675 = vst [vmem:[#allocation15_spill] sm:$0xff] %v3302_v36  ;;  %3676 = vst [vmem:[#allocation16_spill] sm:$0xff] %v3304_v24  ;;  %v2541_v24 = vadd.f32 %v2540_v55, %v2539_v53 }
 0x145   : > { %v3306_v30 = vpop.f32.mrf.mxu0  ;;  %v3308_v18 = vpop.f32.mrf.mxu1 }
 0x146   : > { %3677 = vst [vmem:[#allocation17_spill] sm:$0xff] %v3306_v30  ;;  %3678 = vst [vmem:[#allocation18_spill] sm:$0xff] %v3308_v18  ;;  %v1415_v30 = vadd.f32 %v2538_v58, %v3196_v5  ;;  %v1418_v53 = vadd.f32 %v2541_v24, %v3200_v11  ;;  %v349_v5 = vld [vmem:[#allocation2 + $0x18] sm:$0xff] }
 0x147   : > { %v3310_v0 = vpop.f32.mrf.mxu0  ;;  %v3312_v12 = vpop.f32.mrf.mxu1 }
 0x148   : > { %3679 = vst [vmem:[#allocation19_spill] sm:$0xff] %v3310_v0  ;;  %3680 = vst [vmem:[#allocation20_spill] sm:$0xff] %v3312_v12  ;;  %v348_v0 = vld [vmem:[#allocation2 + $0x10] sm:$0xff] }
 0x149   : > { %v3314_v6 = vpop.f32.mrf.mxu0  ;;  %v3316_v8 = vpop.f32.mrf.mxu1 }
 0x14a   : > { %3681 = vst [vmem:[#allocation21_spill] sm:$0xff] %v3314_v6  ;;  %3682 = vst [vmem:[#allocation22_spill] sm:$0xff] %v3316_v8  ;;  %v1407_v6 = vadd.f32 %v2532_v2, %v3188_v57 }
 0x14b   : > { %v3320_v4 = vpop.f32.mrf.mxu0  ;;  %v3322_v36 = vpop.f32.mrf.mxu1 }
 0x14c   : > { %3683 = vst [vmem:[#allocation23_spill] sm:$0xff] %v3320_v4  ;;  %3684 = vst [vmem:[#allocation24_spill] sm:$0xff] %v3322_v36  ;;  %v2550_v4 = vadd.f32 %v2549_v14, %v2548_v10 }
 0x14d   : > { %v3325_v1 = vpop.f32.mrf.mxu1  ;;  %v2656_v18 = vpop.f32.mrf.mxu0 }
 0x14e   : > { %3685 = vst [vmem:[#allocation25_spill] sm:$0xff] %v3325_v1  ;;  %v1576_v50 = vadd.f32 %v2656_v18, %v1415_v30  ;;  %v2544_v1 = vadd.f32 %v3238_v62, %v3236_v60  ;;  %v1410_v30 = vadd.f32 %v2535_v48, %v3192_v63  ;;  %v1431_v10 = vadd.f32 %v2550_v4, %v3212_v29  ;;  %v3355_v29 = vld [vmem:[%s3660_s2] ss:$0 sm:$0xff] }
 0x14f   : > { %v3330_v8 = vpop.f32.mrf.mxu1  ;;  %v1567_v40 = vpop.f32.mrf.mxu0  ;;  %v2547_v60 = vadd.f32 %v3244_v7, %v3242_v3  ;;  %v350_v3 = vld [vmem:[#allocation2 + $0x20] sm:$0xff]  ;;  %v2562_v4 = vadd.f32 %v3280_v39, %v3276_v34  ;;  %v353_v39 = vld [vmem:[#allocation2 + $0x38] sm:$0xff] }
 0x150   : > { %v1696_v12 = vadd.f32 %v1576_v50, %v348_v0  ;;  %v1568_v36 = vadd.f32 %v1567_v40, %v1407_v6  ;;  %v2553_v6 = vadd.f32 %v2552_v20, %v3254_v16  ;;  %v1423_v2 = vadd.f32 %v2544_v1, %v3204_v17 }
 0x151   : > { %v3333_v58 = vpop.f32.mrf.mxu1  ;;  %v2657_v55 = vpop.f32.mrf.mxu0  ;;  %v2556_v16 = vadd.f32 %v3264_v26, %v3260_v22  ;;  %v3365_v1 = vadd.f32 %v3250_v13, %v3248_v9  ;;  %v2559_v22 = vadd.f32 %v3272_v32, %v3268_v28  ;;  %v3379_v9 = vadd.f32 %v3256_v19, %v3252_v15 }
 0x152   : > { %1728 = vst.msk [vmem:[#allocation2 + $0x10] sm:$0xff] %vm313_vm0, %v1696_v12  ;;  %v1694_v18 = vadd.f32 %v1568_v36, %v346_v38  ;;  %v1579_v57 = vadd.f32 %v2657_v55, %v1418_v53  ;;  %v352_v36 = vld [vmem:[#allocation2 + $0x30] sm:$0xff]  ;;  %v1434_v17 = vadd.f32 %v2553_v6, %v3216_v35  ;;  %v3372_v38 = vld [vmem:[%s3661_s3] ss:$0 sm:$0xff]  ;;  %v1426_v35 = vadd.f32 %v2547_v60, %v3208_v23 }
 0x153   : > { %v3339_v43 = vpop.f32.mrf.mxu1  ;;  %v1570_v0 = vpop.f32.mrf.mxu0  ;;  %v3385_v53 = vadd.f32 %v3262_v25, %v3258_v21  ;;  %v2565_v23 = vadd.f32 %v3288_v49, %v3284_v44  ;;  %v351_v25 = vld [vmem:[#allocation2 + $0x28] sm:$0xff]  ;;  %v2568_v44 = vadd.f32 %v3296_v61, %v3292_v54  ;;  %v1442_v6 = vadd.f32 %v2559_v22, %v3230_v46 }
 0x154   : > { %1726 = vst.msk [vmem:[#allocation2] sm:$0xff] %vm313_vm0, %v1694_v18  ;;  %v1697_v11 = vadd.f32 %v1579_v57, %v349_v5  ;;  %v1571_v24 = vadd.f32 %v1570_v0, %v1410_v30  ;;  %v3389_v5 = vadd.f32 %v3270_v31, %v3266_v27  ;;  %v1439_v18 = vadd.f32 %v2556_v16, %v3224_v41 }
 0x155   : > { %v3346_v12 = vpop.f32.mrf.mxu1  ;;  %v2660_v62 = vpop.f32.mrf.mxu0  ;;  %v1447_v27 = vadd.f32 %v2562_v4, %v3232_v51  ;;  %v3403_v31 = vadd.f32 %v3278_v37, %v3274_v33  ;;  %v356_v51 = vld [vmem:[#allocation2 + $0x50] sm:$0xff]  ;;  %v3415_v37 = vadd.f32 %v3286_v47, %v3282_v42  ;;  %v3419_v54 = vadd.f32 %v3294_v59, %v3290_v52  ;;  %v354_v59 = vld [vmem:[#allocation2 + $0x40] sm:$0xff] }
 0x156   : > { %1729 = vst.msk [vmem:[#allocation2 + $0x18] sm:$0xff] %vm313_vm0, %v1697_v11  ;;  %v1695_v63 = vadd.f32 %v1571_v24, %v347_v45  ;;  %v1592_v14 = vadd.f32 %v2660_v62, %v1431_v10  ;;  %v1450_v62 = vadd.f32 %v2565_v23, %v3234_v56  ;;  %v3691_v23 = vld [vmem:[#allocation22_spill] sm:$0xff] }
 0x157   : > { %v3357_v20 = vpop.f32.mrf.mxu1  ;;  %v1583_v7 = vpop.f32.mrf.mxu0 }
 0x158   : > { %1727 = vst.msk [vmem:[#allocation2 + $0x8] sm:$0xff] %vm313_vm0, %v1695_v63  ;;  %v1700_v48 = vadd.f32 %v1592_v14, %v352_v36  ;;  %v1584_v50 = vadd.f32 %v1583_v7, %v1423_v2  ;;  %v3686_v14 = vld [vmem:[#allocation18_spill] sm:$0xff]  ;;  %v3687_v2 = vld [vmem:[#allocation20_spill] sm:$0xff] }
 0x159   : > { %v1763_v26 = vld [vmem:[#allocation2 + $0x10] sm:$0xff]  ;;  %v3374_v34 = vpop.f32.mrf.mxu1  ;;  %v2661_v40 = vpop.f32.mrf.mxu0  ;;  %v2574_v16 = vadd.f32 %v3687_v2, %v3686_v14  ;;  %v2586_v14 = vadd.f32 %v3357_v20, %v3346_v12  ;;  %v3697_v20 = vld [vmem:[#allocation19_spill] sm:$0xff] }
 0x15a   : > { %v1802_v13 = vmul.f32 %v3355_v29, %v1763_v26  ;;  %1732 = vst.msk [vmem:[#allocation2 + $0x30] sm:$0xff] %vm313_vm0, %v1700_v48  ;;  %v1698_v28 = vadd.f32 %v1584_v50, %v350_v3  ;;  %v1595_v32 = vadd.f32 %v2661_v40, %v1434_v17  ;;  %v3688_v17 = vld [vmem:[#allocation11_spill] sm:$0xff]  ;;  %v3696_v12 = vld [vmem:[#allocation17_spill] sm:$0xff] }
 0x15b   : > { %v1761_v55 = vld [vmem:[#allocation2] sm:$0xff]  ;;  %v3393_v15 = vpop.f32.mrf.mxu1  ;;  %v1586_v19 = vpop.f32.mrf.mxu0  ;;  %v1455_v56 = vadd.f32 %v2568_v44, %v3688_v17 }
 0x15c   : > { %v1841_v57 = vadd.f32 %v3372_v38, %v1802_v13  ;;  %v1800_v30 = vmul.f32 %v3355_v29, %v1761_v55  ;;  %1730 = vst.msk [vmem:[#allocation2 + $0x20] sm:$0xff] %vm313_vm0, %v1698_v28  ;;  %v1701_v21 = vadd.f32 %v1595_v32, %v353_v39  ;;  %v1587_v41 = vadd.f32 %v1586_v19, %v1426_v35  ;;  %v357_v35 = vld [vmem:[#allocation2 + $0x58] sm:$0xff]  ;;  %v3690_v28 = vld [vmem:[#allocation16_spill] sm:$0xff] }
 0x15d   : > { %v1764_v49 = vld [vmem:[#allocation2 + $0x18] sm:$0xff]  ;;  %v3407_v45 = vpop.f32.mrf.mxu1  ;;  %v2664_v0 = vpop.f32.mrf.mxu0  ;;  %v3692_v55 = vld [vmem:[#allocation24_spill] sm:$0xff] }
 0x15e   : > { %v1873_v11 = vmax.f32 %v1841_v57, 0.0  ;;  %v1839_v24 = vadd.f32 %v3372_v38, %v1800_v30  ;;  %v1803_v10 = vmul.f32 %v3355_v29, %v1764_v49  ;;  %1733 = vst.msk [vmem:[#allocation2 + $0x38] sm:$0xff] %vm313_vm0, %v1701_v21  ;;  %v1608_v33 = vadd.f32 %v2664_v0, %v1447_v27  ;;  %v3689_v13 = vld [vmem:[#allocation14_spill] sm:$0xff]  ;;  %v355_v0 = vld [vmem:[#allocation2 + $0x48] sm:$0xff] }
 0x15f   : > { %v1762_v46 = vld [vmem:[#allocation2 + $0x8] sm:$0xff]  ;;  %v1699_v61 = vadd.f32 %v1587_v41, %v351_v25  ;;  %v3426_v60 = vpop.f32.mrf.mxu1  ;;  %v1599_v36 = vpop.f32.mrf.mxu0  ;;  %v2571_v32 = vadd.f32 %v3690_v28, %v3689_v13  ;;  %v2577_v19 = vadd.f32 %v3692_v55, %v3691_v23  ;;  %v361_v23 = vld [vmem:[#allocation2 + $0x78] sm:$0xff] }
 0x160   : > { %v2372_v63 = vpack.c.bf16 %v1873_v11, %v1873_v11  ;;  %v1871_v42 = vmax.f32 %v1839_v24, 0.0  ;;  %v1842_v47 = vadd.f32 %v3372_v38, %v1803_v10  ;;  %v1801_v52 = vmul.f32 %v3355_v29, %v1762_v46  ;;  %v3693_v11 = vld [vmem:[#allocation13_spill] sm:$0xff]  ;;  %v3694_v24 = vld [vmem:[#allocation15_spill] sm:$0xff] }
 0x161   : > { %v1767_v3 = vld [vmem:[#allocation2 + $0x30] sm:$0xff]  ;;  %1731 = vst.msk [vmem:[#allocation2 + $0x28] sm:$0xff] %vm313_vm0, %v1699_v61  ;;  %v1704_v7 = vadd.f32 %v1608_v33, %v356_v51  ;;  %v1600_v4 = vadd.f32 %v1599_v36, %v1439_v18  ;;  %v3434_v48 = vpop.f32.mrf.mxu1  ;;  %v2665_v50 = vpop.f32.mrf.mxu0  ;;  %v3454_v10 = vadd.f32 %v3694_v24, %v3693_v11  ;;  %v1463_v36 = vadd.f32 %v2574_v16, %v3365_v1  ;;  %v3695_v1 = vld [vmem:[#allocation12_spill] sm:$0xff] }
 0x162   : > { %2034 = vst.msk [vmem:[%s3424_s11 + $0x8] sm:$0xf] %vm2031_vm1, %v2372_v63  ;;  %v2370_v22 = vpack.c.bf16 %v1871_v42, %v1871_v42  ;;  %v1874_v26 = vmax.f32 %v1842_v47, 0.0  ;;  %v1840_v39 = vadd.f32 %v3372_v38, %v1801_v52  ;;  %v1806_v40 = vmul.f32 %v3355_v29, %v1767_v3 }
 0x163   : > { %v1765_v18 = vld [vmem:[#allocation2 + $0x20] sm:$0xff]  ;;  %1736 = vst.msk [vmem:[#allocation2 + $0x50] sm:$0xff] %vm313_vm0, %v1704_v7  ;;  %v1702_v57 = vadd.f32 %v1600_v4, %v354_v59  ;;  %v1611_v30 = vadd.f32 %v2665_v50, %v1450_v62  ;;  %v3446_v21 = vpop.f32.mrf.mxu1  ;;  %v1602_v25 = vpop.f32.mrf.mxu0  ;;  %v360_v59 = vld [vmem:[#allocation2 + $0x70] sm:$0xff]  ;;  %v1458_v16 = vadd.f32 %v2571_v32, %v3695_v1  ;;  %v1479_v11 = vadd.f32 %v2586_v14, %v3403_v31 }
 0x164   : > { %2032 = vst.msk [vmem:[%s3424_s11] sm:$0xf] %vm2031_vm1, %v2370_v22  ;;  %v2373_v27 = vpack.c.bf16 %v1874_v26, %v1874_v26  ;;  %v1872_v44 = vmax.f32 %v1840_v39, 0.0  ;;  %v1845_v49 = vadd.f32 %v3372_v38, %v1806_v40  ;;  %v1804_v41 = vmul.f32 %v3355_v29, %v1765_v18  ;;  %v358_v26 = vld [vmem:[#allocation2 + $0x60] sm:$0xff]  ;;  %v3698_v18 = vld [vmem:[#allocation25_spill] sm:$0xff] }
 0x165   : > { %v1768_v51 = vld [vmem:[#allocation2 + $0x38] sm:$0xff]  ;;  %1734 = vst.msk [vmem:[#allocation2 + $0x40] sm:$0xff] %vm313_vm0, %v1702_v57  ;;  %v1705_v33 = vadd.f32 %v1611_v30, %v357_v35  ;;  %v1603_v46 = vadd.f32 %v1602_v25, %v1442_v6  ;;  %v3457_v61 = vpop.f32.mrf.mxu1  ;;  %v2668_v62 = vpop.f32.mrf.mxu0  ;;  %v1466_v39 = vadd.f32 %v2577_v19, %v3379_v9  ;;  %v3474_v40 = vadd.f32 %v3697_v20, %v3696_v12 }
 0x166   : > { %2035 = vst.msk [vmem:[%s3424_s11 + $0xc] sm:$0xf] %vm2031_vm1, %v2373_v27  ;;  %v2371_v63 = vpack.c.bf16 %v1872_v44, %v1872_v44  ;;  %v1877_v42 = vmax.f32 %v1845_v49, 0.0  ;;  %v1843_v47 = vadd.f32 %v3372_v38, %v1804_v41  ;;  %v1807_v52 = vmul.f32 %v3355_v29, %v1768_v51  ;;  %v359_v41 = vld [vmem:[#allocation2 + $0x68] sm:$0xff] }
 0x167   : > { %1737 = vst.msk [vmem:[#allocation2 + $0x58] sm:$0xff] %vm313_vm0, %v1705_v33  ;;  %v1703_v6 = vadd.f32 %v1603_v46, %v355_v0  ;;  %v1624_v2 = vadd.f32 %v2668_v62, %v1463_v36  ;;  %v2597_v3 = vpop.f32.mrf.mxu1  ;;  %v1615_v7 = vpop.f32.mrf.mxu0  ;;  %v2580_v57 = vadd.f32 %v3330_v8, %v3698_v18  ;;  %v2589_v24 = vadd.f32 %v3393_v15, %v3374_v34  ;;  %v3699_v36 = vld [vmem:[#allocation21_spill] sm:$0xff]  ;;  %v3700_v62 = vld [vmem:[#allocation23_spill] sm:$0xff] }
 0x168   : > { %2033 = vst.msk [vmem:[%s3424_s11 + $0x4] sm:$0xf] %vm2031_vm1, %v2371_v63  ;;  %v2376_v4 = vpack.c.bf16 %v1877_v42, %v1877_v42  ;;  %v1875_v50 = vmax.f32 %v1843_v47, 0.0  ;;  %v1846_v17 = vadd.f32 %v3372_v38, %v1807_v52  ;;  %v1766_v22 = vld [vmem:[#allocation2 + $0x28] sm:$0xff]  ;;  %v1616_v28 = vadd.f32 %v1615_v7, %v1455_v56 }
 0x169   : > { %v1805_v35 = vmul.f32 %v3355_v29, %v1766_v22  ;;  %1735 = vst.msk [vmem:[#allocation2 + $0x48] sm:$0xff] %vm313_vm0, %v1703_v6  ;;  %v1708_v13 = vadd.f32 %v1624_v2, %v360_v59  ;;  %v3478_v32 = vpop.f32.mrf.mxu1  ;;  %v2669_v55 = vpop.f32.mrf.mxu0  ;;  %v3494_v63 = vadd.f32 %v3700_v62, %v3699_v36  ;;  %v364_v59 = vld [vmem:[#allocation2 + $0x90] sm:$0xff]  ;;  %v2583_v34 = vadd.f32 %v3339_v43, %v3333_v58  ;;  %v362_v22 = vld [vmem:[#allocation2 + $0x80] sm:$0xff] }
 0x16a   : > { %2038 = vst.msk [vmem:[%s3424_s11 + $0x18] sm:$0xf] %vm2031_vm1, %v2376_v4  ;;  %v2374_v9 = vpack.c.bf16 %v1875_v50, %v1875_v50  ;;  %v1878_v19 = vmax.f32 %v1846_v17, 0.0  ;;  %v1771_v30 = vld [vmem:[#allocation2 + $0x50] sm:$0xff]  ;;  %v1627_v25 = vadd.f32 %v2669_v55, %v1466_v39  ;;  %v1706_v56 = vadd.f32 %v1616_v28, %v358_v26  ;;  %v365_v55 = vld [vmem:[#allocation2 + $0x98] sm:$0xff] }
 0x16b   : > { %v1844_v27 = vadd.f32 %v3372_v38, %v1805_v35  ;;  %v1810_v44 = vmul.f32 %v3355_v29, %v1771_v30  ;;  %1740 = vst.msk [vmem:[#allocation2 + $0x70] sm:$0xff] %vm313_vm0, %v1708_v13  ;;  %v2600_v49 = vpop.f32.mrf.mxu1  ;;  %v1618_v0 = vpop.f32.mrf.mxu0  ;;  %v1471_v7 = vadd.f32 %v2580_v57, %v3385_v53  ;;  %v2598_v26 = vadd.f32 %v2597_v3, %v3457_v61  ;;  %v368_v62 = vld [vmem:[#allocation2 + $0xb0] sm:$0xff] }
 0x16c   : > { %2036 = vst.msk [vmem:[%s3424_s11 + $0x10] sm:$0xf] %vm2031_vm1, %v2374_v9  ;;  %v2377_v8 = vpack.c.bf16 %v1878_v19, %v1878_v19  ;;  %v1769_v51 = vld [vmem:[#allocation2 + $0x40] sm:$0xff]  ;;  %v1709_v33 = vadd.f32 %v1627_v25, %v361_v23  ;;  %v1619_v46 = vadd.f32 %v1618_v0, %v1458_v16  ;;  %v1482_v53 = vadd.f32 %v2589_v24, %v3415_v37 }
 0x16d   : > { %v1876_v42 = vmax.f32 %v1844_v27, 0.0  ;;  %v1849_v47 = vadd.f32 %v3372_v38, %v1810_v44  ;;  %v1808_v52 = vmul.f32 %v3355_v29, %v1769_v51  ;;  %1738 = vst.msk [vmem:[#allocation2 + $0x60] sm:$0xff] %vm313_vm0, %v1706_v56  ;;  %v3499_v31 = vpop.f32.mrf.mxu1  ;;  %v2672_v14 = vpop.f32.mrf.mxu0  ;;  %v2592_v61 = vadd.f32 %v3426_v60, %v3407_v45  ;;  %v363_v56 = vld [vmem:[#allocation2 + $0x88] sm:$0xff] }
 0x16e   : > { %2039 = vst.msk [vmem:[%s3424_s11 + $0x1c] sm:$0xf] %vm2031_vm1, %v2377_v8  ;;  %v1772_v15 = vld [vmem:[#allocation2 + $0x58] sm:$0xff]  ;;  %v1707_v6 = vadd.f32 %v1619_v46, %v359_v41  ;;  %v1640_v2 = vadd.f32 %v2672_v14, %v1479_v11  ;;  %v1474_v9 = vadd.f32 %v2583_v34, %v3389_v5  ;;  %v2601_v41 = vadd.f32 %v2600_v49, %v3478_v32 }
 0x16f   : > { %1741 = vst.msk [vmem:[#allocation2 + $0x78] sm:$0xff] %vm313_vm0, %v1709_v33  ;;  %v2375_v1 = vpack.c.bf16 %v1876_v42, %v1876_v42  ;;  %v1881_v16 = vmax.f32 %v1849_v47, 0.0  ;;  %v1847_v4 = vadd.f32 %v3372_v38, %v1808_v52  ;;  %v1811_v50 = vmul.f32 %v3355_v29, %v1772_v15  ;;  %v3509_v17 = vpop.f32.mrf.mxu1  ;;  %v1631_v58 = vpop.f32.mrf.mxu0 }
 0x170   : > { %v1770_v43 = vld [vmem:[#allocation2 + $0x48] sm:$0xff]  ;;  %1739 = vst.msk [vmem:[#allocation2 + $0x68] sm:$0xff] %vm313_vm0, %v1707_v6  ;;  %v1712_v39 = vadd.f32 %v1640_v2, %v364_v59  ;;  %v1632_v12 = vadd.f32 %v1631_v58, %v1471_v7  ;;  %v1495_v5 = vadd.f32 %v2598_v26, %v3474_v40  ;;  %v1487_v40 = vadd.f32 %v2592_v61, %v3419_v54  ;;  %v366_v54 = vld [vmem:[#allocation2 + $0xa0] sm:$0xff] }
 0x171   : > { %2037 = vst.msk [vmem:[%s3424_s11 + $0x14] sm:$0xf] %vm2031_vm1, %v2375_v1  ;;  %v2380_v20 = vpack.c.bf16 %v1881_v16, %v1881_v16  ;;  %v1879_v35 = vmax.f32 %v1847_v4, 0.0  ;;  %v1850_v13 = vadd.f32 %v3372_v38, %v1811_v50  ;;  %v1809_v28 = vmul.f32 %v3355_v29, %v1770_v43  ;;  %v3518_v23 = vpop.f32.mrf.mxu1  ;;  %v2673_v18 = vpop.f32.mrf.mxu0 }
 0x172   : > { %v1775_v3 = vld [vmem:[#allocation2 + $0x70] sm:$0xff]  ;;  %1744 = vst.msk [vmem:[#allocation2 + $0x90] sm:$0xff] %vm313_vm0, %v1712_v39  ;;  %v1710_v57 = vadd.f32 %v1632_v12, %v362_v22  ;;  %v1643_v37 = vadd.f32 %v2673_v18, %v1482_v53  ;;  %v2595_v52 = vadd.f32 %v3446_v21, %v3434_v48  ;;  %v1498_v4 = vadd.f32 %v2601_v41, %v3494_v63 }
 0x173   : > { %2042 = vst.msk [vmem:[%s3424_s11 + $0x28] sm:$0xf] %vm2031_vm1, %v2380_v20  ;;  %v2378_v19 = vpack.c.bf16 %v1879_v35, %v1879_v35  ;;  %v1882_v30 = vmax.f32 %v1850_v13, 0.0  ;;  %v1848_v25 = vadd.f32 %v3372_v38, %v1809_v28  ;;  %v1814_v27 = vmul.f32 %v3355_v29, %v1775_v3  ;;  %v3528_v44 = vpop.f32.mrf.mxu1  ;;  %v1634_v45 = vpop.f32.mrf.mxu0  ;;  %v369_v20 = vld [vmem:[#allocation2 + $0xb8] sm:$0xff] }
 0x174   : > { %v1773_v60 = vld [vmem:[#allocation2 + $0x60] sm:$0xff]  ;;  %1742 = vst.msk [vmem:[#allocation2 + $0x80] sm:$0xff] %vm313_vm0, %v1710_v57  ;;  %v1713_v0 = vadd.f32 %v1643_v37, %v365_v55  ;;  %v1635_v11 = vadd.f32 %v1634_v45, %v1474_v9  ;;  %v2604_v13 = vadd.f32 %v3509_v17, %v3499_v31  ;;  %v1490_v61 = vadd.f32 %v2595_v52, %v3454_v10  ;;  %v3701_v45 = vld [vmem:[#allocation5_spill] sm:$0xff] }
 0x175   : > { %2040 = vst.msk [vmem:[%s3424_s11 + $0x20] sm:$0xf] %vm2031_vm1, %v2378_v19  ;;  %v2381_v8 = vpack.c.bf16 %v1882_v30, %v1882_v30  ;;  %v1880_v24 = vmax.f32 %v1848_v25, 0.0  ;;  %v1853_v51 = vadd.f32 %v3372_v38, %v1814_v27  ;;  %v1812_v33 = vmul.f32 %v3355_v29, %v1773_v60  ;;  %v2608_v36 = vpop.f32.mrf.mxu1  ;;  %v2676_v42 = vpop.f32.mrf.mxu0  ;;  %v367_v30 = vld [vmem:[#allocation2 + $0xa8] sm:$0xff] }
 0x176   : > { %v1776_v46 = vld [vmem:[#allocation2 + $0x78] sm:$0xff]  ;;  %1745 = vst.msk [vmem:[#allocation2 + $0x98] sm:$0xff] %vm313_vm0, %v1713_v0  ;;  %v1711_v49 = vadd.f32 %v1635_v11, %v363_v56  ;;  %v1656_v47 = vadd.f32 %v2676_v42, %v1495_v5 }
 0x177   : > { %v1815_v32 = vmul.f32 %v3355_v29, %v1776_v46  ;;  %2043 = vst.msk [vmem:[%s3424_s11 + $0x2c] sm:$0xf] %vm2031_vm1, %v2381_v8  ;;  %v2379_v59 = vpack.c.bf16 %v1880_v24, %v1880_v24  ;;  %v1885_v14 = vmax.f32 %v1853_v51, 0.0  ;;  %v1851_v34 = vadd.f32 %v3372_v38, %v1812_v33  ;;  %v1774_v15 = vld [vmem:[#allocation2 + $0x68] sm:$0xff]  ;;  %v2609_v6 = vpop.f32.mrf.mxu1  ;;  %v1647_v2 = vpop.f32.mrf.mxu0  ;;  %v372_v8 = vld [vmem:[#allocation2 + $0xd0] sm:$0xff] }
 0x178   : > { %v1813_v1 = vmul.f32 %v3355_v29, %v1774_v15  ;;  %1743 = vst.msk [vmem:[#allocation2 + $0x88] sm:$0xff] %vm313_vm0, %v1711_v49  ;;  %v1716_v16 = vadd.f32 %v1656_v47, %v368_v62  ;;  %v2610_v22 = vadd.f32 %v2609_v6, %v2608_v36  ;;  %v1648_v58 = vadd.f32 %v1647_v2, %v1487_v40  ;;  %v3702_v62 = vld [vmem:[#allocation3_spill] sm:$0xff]  ;;  %v3703_v6 = vld [vmem:[#allocation6_spill] sm:$0xff] }
 0x179   : > { %v1854_v7 = vadd.f32 %v3372_v38, %v1815_v32  ;;  %2041 = vst.msk [vmem:[%s3424_s11 + $0x24] sm:$0xf] %vm2031_vm1, %v2379_v59  ;;  %v2384_v48 = vpack.c.bf16 %v1885_v14, %v1885_v14  ;;  %v1883_v21 = vmax.f32 %v1851_v34, 0.0  ;;  %v1779_v50 = vld [vmem:[#allocation2 + $0x90] sm:$0xff]  ;;  %v2611_v43 = vpop.f32.mrf.mxu1  ;;  %v2677_v26 = vpop.f32.mrf.mxu0  ;;  %v2607_v24 = vadd.f32 %v3528_v44, %v3518_v23  ;;  %v370_v59 = vld [vmem:[#allocation2 + $0xc0] sm:$0xff] }
 0x17a   : > { %v1852_v12 = vadd.f32 %v3372_v38, %v1813_v1  ;;  %v1818_v53 = vmul.f32 %v3355_v29, %v1779_v50  ;;  %1748 = vst.msk [vmem:[#allocation2 + $0xb0] sm:$0xff] %vm313_vm0, %v1716_v16  ;;  %v1659_v35 = vadd.f32 %v2677_v26, %v1498_v4  ;;  %v1714_v55 = vadd.f32 %v1648_v58, %v366_v54  ;;  %v3704_v58 = vld [vmem:[#allocation4_spill] sm:$0xff] }
 0x17b   : > { %v1886_v39 = vmax.f32 %v1854_v7, 0.0  ;;  %2046 = vst.msk [vmem:[%s3424_s11 + $0x38] sm:$0xf] %vm2031_vm1, %v2384_v48  ;;  %v2382_v63 = vpack.c.bf16 %v1883_v21, %v1883_v21  ;;  %v1777_v28 = vld [vmem:[#allocation2 + $0x80] sm:$0xff]  ;;  %v2612_v18 = vpop.f32.mrf.mxu1  ;;  %v1650_v3 = vpop.f32.mrf.mxu0  ;;  %v1511_v10 = vadd.f32 %v2610_v22, %v3701_v45  ;;  %v1503_v42 = vadd.f32 %v2604_v13, %v3702_v62  ;;  %v373_v48 = vld [vmem:[#allocation2 + $0xd8] sm:$0xff]  ;;  %v3707_v62 = vld [vmem:[#allocation8_spill] sm:$0xff] }
 0x17c   : > { %v1884_v37 = vmax.f32 %v1852_v12, 0.0  ;;  %v1857_v9 = vadd.f32 %v3372_v38, %v1818_v53  ;;  %v1816_v19 = vmul.f32 %v3355_v29, %v1777_v28  ;;  %1746 = vst.msk [vmem:[#allocation2 + $0xa0] sm:$0xff] %vm313_vm0, %v1714_v55  ;;  %v1717_v31 = vadd.f32 %v1659_v35, %v369_v20  ;;  %v371_v35 = vld [vmem:[#allocation2 + $0xc8] sm:$0xff] }
 0x17d   : > { %v2385_v57 = vpack.c.bf16 %v1886_v39, %v1886_v39  ;;  %2044 = vst.msk [vmem:[%s3424_s11 + $0x30] sm:$0xf] %vm2031_vm1, %v2382_v63  ;;  %v1780_v25 = vld [vmem:[#allocation2 + $0x98] sm:$0xff]  ;;  %v2613_v17 = vadd.f32 %v2612_v18, %v2611_v43  ;;  %v1651_v27 = vadd.f32 %v1650_v3, %v1490_v61  ;;  %v2614_v56 = vpop.f32.mrf.mxu1  ;;  %v2680_v60 = vpop.f32.mrf.mxu0  ;;  %v1506_v43 = vadd.f32 %v2607_v24, %v3704_v58 }
 0x17e   : > { %v2383_v41 = vpack.c.bf16 %v1884_v37, %v1884_v37  ;;  %v1889_v0 = vmax.f32 %v1857_v9, 0.0  ;;  %v1855_v11 = vadd.f32 %v3372_v38, %v1816_v19  ;;  %v1819_v5 = vmul.f32 %v3355_v29, %v1780_v25  ;;  %1749 = vst.msk [vmem:[#allocation2 + $0xb8] sm:$0xff] %vm313_vm0, %v1717_v31  ;;  %v3705_v9 = vld [vmem:[#allocation7_spill] sm:$0xff] }
 0x17f   : > { %2047 = vst.msk [vmem:[%s3424_s11 + $0x3c] sm:$0xf] %vm2031_vm1, %v2385_v57  ;;  %v1778_v51 = vld [vmem:[#allocation2 + $0x88] sm:$0xff]  ;;  %v1715_v33 = vadd.f32 %v1651_v27, %v367_v30  ;;  %v1672_v46 = vadd.f32 %v2680_v60, %v1511_v10  ;;  %v2615_v36 = vpop.f32.mrf.mxu1  ;;  %v1663_v32 = vpop.f32.mrf.mxu0  ;;  %v1514_v2 = vadd.f32 %v2613_v17, %v3703_v6  ;;  %v374_v27 = vld [vmem:[#allocation2 + $0xe0] sm:$0xff] }
 0x180   : > { %2045 = vst.msk [vmem:[%s3424_s11 + $0x34] sm:$0xf] %vm2031_vm1, %v2383_v41  ;;  %v2388_v49 = vpack.c.bf16 %v1889_v0, %v1889_v0  ;;  %v1887_v47 = vmax.f32 %v1855_v11, 0.0  ;;  %v1858_v40 = vadd.f32 %v3372_v38, %v1819_v5  ;;  %v1817_v52 = vmul.f32 %v3355_v29, %v1778_v51 }
 0x181   : > { %v1783_v23 = vld [vmem:[#allocation2 + $0xb0] sm:$0xff]  ;;  %1747 = vst.msk [vmem:[#allocation2 + $0xa8] sm:$0xff] %vm313_vm0, %v1715_v33  ;;  %v1720_v44 = vadd.f32 %v1672_v46, %v372_v8  ;;  %v2616_v14 = vadd.f32 %v2615_v36, %v2614_v56  ;;  %v1664_v34 = vadd.f32 %v1663_v32, %v1503_v42  ;;  %v2617_v15 = vpop.f32.mrf.mxu1  ;;  %v2681_v7 = vpop.f32.mrf.mxu0 }
 0x182   : > { %2050 = vst.msk [vmem:[%s3424_s11 + $0x48] sm:$0xf] %vm2031_vm1, %v2388_v49  ;;  %v2386_v1 = vpack.c.bf16 %v1887_v47, %v1887_v47  ;;  %v1890_v16 = vmax.f32 %v1858_v40, 0.0  ;;  %v1856_v54 = vadd.f32 %v3372_v38, %v1817_v52  ;;  %v1822_v4 = vmul.f32 %v3355_v29, %v1783_v23  ;;  %v3706_v33 = vld [vmem:[#allocation9_spill] sm:$0xff]  ;;  %v375_v23 = vld [vmem:[#allocation2 + $0xe8] sm:$0xff] }
 0x183   : > { %1752 = vst.msk [vmem:[#allocation2 + $0xd0] sm:$0xff] %vm313_vm0, %v1720_v44  ;;  %v1718_v21 = vadd.f32 %v1664_v34, %v370_v59  ;;  %v1675_v50 = vadd.f32 %v2681_v7, %v1514_v2  ;;  %v2618_v22 = vpop.f32.mrf.mxu1  ;;  %v1666_v26 = vpop.f32.mrf.mxu0  ;;  %v1781_v20 = vld [vmem:[#allocation2 + $0xa0] sm:$0xff]  ;;  %v1519_v19 = vadd.f32 %v2616_v14, %v3705_v9  ;;  %v376_v52 = vld [vmem:[#allocation2 + $0xf0] sm:$0xff] }
 0x184   : > { %2048 = vst.msk [vmem:[%s3424_s11 + $0x40] sm:$0xf] %vm2031_vm1, %v2386_v1  ;;  %v2389_v39 = vpack.c.bf16 %v1890_v16, %v1890_v16  ;;  %v1888_v12 = vmax.f32 %v1856_v54, 0.0  ;;  %v1861_v53 = vadd.f32 %v3372_v38, %v1822_v4  ;;  %v1820_v63 = vmul.f32 %v3355_v29, %v1781_v20 }
 0x185   : > { %1750 = vst.msk [vmem:[#allocation2 + $0xc0] sm:$0xff] %vm313_vm0, %v1718_v21  ;;  %v1721_v13 = vadd.f32 %v1675_v50, %v373_v48  ;;  %v1667_v28 = vadd.f32 %v1666_v26, %v1506_v43  ;;  %v2620_v55 = vpop.f32.mrf.mxu1  ;;  %v2684_v18 = vpop.f32.mrf.mxu0  ;;  %v1784_v57 = vld [vmem:[#allocation2 + $0xb8] sm:$0xff]  ;;  %v2619_v37 = vadd.f32 %v2618_v22, %v2617_v15 }
 0x186   : > { %2051 = vst.msk [vmem:[%s3424_s11 + $0x4c] sm:$0xf] %vm2031_vm1, %v2389_v39  ;;  %v2387_v61 = vpack.c.bf16 %v1888_v12, %v1888_v12  ;;  %v1893_v3 = vmax.f32 %v1861_v53, 0.0  ;;  %v1859_v30 = vadd.f32 %v3372_v38, %v1820_v63  ;;  %v1823_v25 = vmul.f32 %v3355_v29, %v1784_v57  ;;  %v3708_v48 = vld [vmem:[#allocation10_spill] sm:$0xff] }
 0x187   : > { %1753 = vst.msk [vmem:[#allocation2 + $0xd8] sm:$0xff] %vm313_vm0, %v1721_v13  ;;  %v1719_v31 = vadd.f32 %v1667_v28, %v371_v35  ;;  %v2621_v17 = vpop.f32.mrf.mxu1  ;;  %v1679_v56 = vpop.f32.mrf.mxu0  ;;  %v1522_v42 = vadd.f32 %v2619_v37, %v3707_v62  ;;  %v377_v39 = vld [vmem:[#allocation2 + $0xf8] sm:$0xff] }
 0x188   : > { %2049 = vst.msk [vmem:[%s3424_s11 + $0x44] sm:$0xf] %vm2031_vm1, %v2387_v61  ;;  %v2392_v45 = vpack.c.bf16 %v1893_v3, %v1893_v3  ;;  %v1782_v10 = vld [vmem:[#allocation2 + $0xa8] sm:$0xff]  ;;  %v2622_v60 = vadd.f32 %v2621_v17, %v2620_v55  ;;  %v1680_v41 = vadd.f32 %v1679_v56, %v1519_v19  ;;  %v1891_v0 = vmax.f32 %v1859_v30, 0.0 }
 0x189   : > { %v1862_v11 = vadd.f32 %v3372_v38, %v1823_v25  ;;  %v1821_v5 = vmul.f32 %v3355_v29, %v1782_v10  ;;  %1751 = vst.msk [vmem:[#allocation2 + $0xc8] sm:$0xff] %vm313_vm0, %v1719_v31  ;;  %v2623_v8 = vpop.f32.mrf.mxu1  ;;  %v2685_v24 = vpop.f32.mrf.mxu0 }
 0x18a   : > { %2054 = vst.msk [vmem:[%s3424_s11 + $0x58] sm:$0xf] %vm2031_vm1, %v2392_v45  ;;  %v1787_v51 = vld [vmem:[#allocation2 + $0xd0] sm:$0xff]  ;;  %v1527_v46 = vadd.f32 %v2622_v60, %v3706_v33  ;;  %v1722_v36 = vadd.f32 %v1680_v41, %v374_v27  ;;  %v2390_v32 = vpack.c.bf16 %v1891_v0, %v1891_v0 }
 0x18b   : > { %v1894_v49 = vmax.f32 %v1862_v11, 0.0  ;;  %v1860_v47 = vadd.f32 %v3372_v38, %v1821_v5  ;;  %v1826_v40 = vmul.f32 %v3355_v29, %v1787_v51  ;;  %v2624_v59 = vpop.f32.mrf.mxu1  ;;  %v1682_v44 = vpop.f32.mrf.mxu0 }
 0x18c   : > { %v1785_v14 = vld [vmem:[#allocation2 + $0xc0] sm:$0xff]  ;;  %v1688_v34 = vadd.f32 %v2684_v18, %v1527_v46  ;;  %1754 = vst.msk [vmem:[#allocation2 + $0xe0] sm:$0xff] %vm313_vm0, %v1722_v36  ;;  %v2625_v15 = vadd.f32 %v2624_v59, %v2623_v8  ;;  %v1683_v6 = vadd.f32 %v1682_v44, %v1522_v42 }
 0x18d   : > { %2052 = vst.msk [vmem:[%s3424_s11 + $0x50] sm:$0xf] %vm2031_vm1, %v2390_v32  ;;  %v2393_v2 = vpack.c.bf16 %v1894_v49, %v1894_v49  ;;  %v1892_v7 = vmax.f32 %v1860_v47, 0.0  ;;  %v1865_v1 = vadd.f32 %v3372_v38, %v1826_v40  ;;  %v1824_v16 = vmul.f32 %v3355_v29, %v1785_v14 }
 0x18e   : > { %v1788_v54 = vld [vmem:[#allocation2 + $0xd8] sm:$0xff]  ;;  %v1724_v4 = vadd.f32 %v1688_v34, %v376_v52  ;;  %v1530_v21 = vadd.f32 %v2625_v15, %v3708_v48  ;;  %v1723_v50 = vadd.f32 %v1683_v6, %v375_v23 }
 0x18f   : > { %2055 = vst.msk [vmem:[%s3424_s11 + $0x5c] sm:$0xf] %vm2031_vm1, %v2393_v2  ;;  %v2391_v22 = vpack.c.bf16 %v1892_v7, %v1892_v7  ;;  %v1897_v58 = vmax.f32 %v1865_v1, 0.0  ;;  %v1863_v43 = vadd.f32 %v3372_v38, %v1824_v16  ;;  %v1827_v26 = vmul.f32 %v3355_v29, %v1788_v54 }
 0x190   : > { %v1786_v12 = vld [vmem:[#allocation2 + $0xc8] sm:$0xff]  ;;  %1756 = vst.msk [vmem:[#allocation2 + $0xf0] sm:$0xff] %vm313_vm0, %v1724_v4  ;;  %v1691_v53 = vadd.f32 %v2685_v24, %v1530_v21  ;;  %1755 = vst.msk [vmem:[#allocation2 + $0xe8] sm:$0xff] %vm313_vm0, %v1723_v50 }
 0x191   : > { %2053 = vst.msk [vmem:[%s3424_s11 + $0x54] sm:$0xf] %vm2031_vm1, %v2391_v22  ;;  %v2396_v20 = vpack.c.bf16 %v1897_v58, %v1897_v58  ;;  %v1895_v35 = vmax.f32 %v1863_v43, 0.0  ;;  %v1866_v63 = vadd.f32 %v3372_v38, %v1827_v26  ;;  %v1825_v13 = vmul.f32 %v3355_v29, %v1786_v12 }
 0x192   : > { %v1725_v28 = vadd.f32 %v1691_v53, %v377_v39 }
 0x193   : > { %2058 = vst.msk [vmem:[%s3424_s11 + $0x68] sm:$0xf] %vm2031_vm1, %v2396_v20  ;;  %v2394_v55 = vpack.c.bf16 %v1895_v35, %v1895_v35  ;;  %v1898_v18 = vmax.f32 %v1866_v63, 0.0  ;;  %v1864_v61 = vadd.f32 %v3372_v38, %v1825_v13  ;;  %v1789_v3 = vld [vmem:[#allocation2 + $0xe0] sm:$0xff] }
 0x194   : > { %v1828_v57 = vmul.f32 %v3355_v29, %v1789_v3  ;;  %1757 = vst.msk [vmem:[#allocation2 + $0xf8] sm:$0xff] %vm313_vm0, %v1725_v28 }
 0x195   : > { %2056 = vst.msk [vmem:[%s3424_s11 + $0x60] sm:$0xf] %vm2031_vm1, %v2394_v55  ;;  %v2397_v37 = vpack.c.bf16 %v1898_v18, %v1898_v18  ;;  %v1896_v9 = vmax.f32 %v1864_v61, 0.0 }
 0x196   : > { %v1867_v19 = vadd.f32 %v3372_v38, %v1828_v57 }
 0x197   : > { %2059 = vst.msk [vmem:[%s3424_s11 + $0x6c] sm:$0xf] %vm2031_vm1, %v2397_v37  ;;  %v2395_v30 = vpack.c.bf16 %v1896_v9, %v1896_v9  ;;  %v1791_v25 = vld [vmem:[#allocation2 + $0xf0] sm:$0xff]  ;;  %v1790_v31 = vld [vmem:[#allocation2 + $0xe8] sm:$0xff] }
 0x198   : > { %v1830_v17 = vmul.f32 %v3355_v29, %v1791_v25  ;;  %v1899_v27 = vmax.f32 %v1867_v19, 0.0  ;;  %v1829_v56 = vmul.f32 %v3355_v29, %v1790_v31 }
 0x199   : > { %2057 = vst.msk [vmem:[%s3424_s11 + $0x64] sm:$0xf] %vm2031_vm1, %v2395_v30 }
 0x19a   : > { %v1869_v45 = vadd.f32 %v3372_v38, %v1830_v17  ;;  %v2398_v10 = vpack.c.bf16 %v1899_v27, %v1899_v27  ;;  %v1868_v60 = vadd.f32 %v3372_v38, %v1829_v56 }
 0x19b   : > { %v1792_v41 = vld [vmem:[#allocation2 + $0xf8] sm:$0xff] }
 0x19c   : > { %v1901_v0 = vmax.f32 %v1869_v45, 0.0  ;;  %2060 = vst.msk [vmem:[%s3424_s11 + $0x70] sm:$0xf] %vm2031_vm1, %v2398_v10  ;;  %v1831_v11 = vmul.f32 %v3355_v29, %v1792_v41  ;;  %v1900_v5 = vmax.f32 %v1868_v60, 0.0 }
 0x19e   : > { %v2400_v8 = vpack.c.bf16 %v1901_v0, %v1901_v0  ;;  %v1870_v24 = vadd.f32 %v3372_v38, %v1831_v11  ;;  %v2399_v51 = vpack.c.bf16 %v1900_v5, %v1900_v5 }
 0x1a0   : > { %2062 = vst.msk [vmem:[%s3424_s11 + $0x78] sm:$0xf] %vm2031_vm1, %v2400_v8  ;;  %v1902_v33 = vmax.f32 %v1870_v24, 0.0  ;;  %2061 = vst.msk [vmem:[%s3424_s11 + $0x74] sm:$0xf] %vm2031_vm1, %v2399_v51 }
 0x1a2   : > { %v2401_v46 = vpack.c.bf16 %v1902_v33, %v1902_v33 }
 0x1a4   : > { %2063 = vst.msk [vmem:[%s3424_s11 + $0x7c] sm:$0xf] %vm2031_vm1, %v2401_v46 }
 0x1a5 PF: > { %s14_s17 = sadd.s32 1, %s2898_s17   ;;  %s3709_s15 = smov %s2894_s16 }
 0x1a6   : > { %p11_p5 = scmp.ge.s32.totalorder %s14_s17, 4   ;;  %s3710_s16 = smov %s3712_s18 }
 0x1a8   :  { %13 = sbr.rel (!%p11_p5) target bundleno = 2 (0x2), region = 83 }

// kernel: custom_cnn_forward.9
= control target key start
LH: loop header
LB: loop body
LE: loop exit
PB: predicated region body
PF: predicated region fallthrough
CT: control target
= control target key end

     0   :  { %vm590_vm0 = vcmask 523264   ;;  %s1880_s1 = inlined_call_operand.vmem [shape: bf16[576,128], index: 1, kind: input, shape index: {}]   ;;  %s1881_s0 = inlined_call_operand.vmem [shape: bf16[128,576], index: 0, kind: input, shape index: {}]   ;;  %s1882_s2 = inlined_call_operand.vmem [shape: f32[1,128], index: 2, kind: input, shape index: {}]   ;;  %s1883_s3 = inlined_call_operand.vmem [shape: f32[1,128], index: 3, kind: input, shape index: {}]   ;;  %s1884_s4 = inlined_call_operand.vmem [shape: bf16[128,128], index: 4, kind: output, shape index: {}]  }
   0x1   :  { %v1440_v0 = vld [vmem:[%s1880_s1 + $0x78] sm:$0xff]   ;;  %v1444_v4 = vld [vmem:[%s1880_s1 + $0x70] sm:$0xff]   ;;  %v1448_v8 = vld [vmem:[%s1880_s1 + $0x68] sm:$0xff]  }
   0x2   :  { %v1441_v1 = vld [vmem:[%s1880_s1 + $0xf8] sm:$0xff]   ;;  %1268 = vmatprep.subr.bf16.mxu0 %v1440_v0  ;;  %v1445_v5 = vld [vmem:[%s1880_s1 + $0xf0] sm:$0xff]   ;;  %v1449_v9 = vld [vmem:[%s1880_s1 + $0xe8] sm:$0xff]  }
   0x3   :  { %v1442_v2 = vld [vmem:[%s1880_s1 + $0x38] sm:$0xff]   ;;  %1332 = vmatprep.subr.bf16.mxu1 %v1441_v1  ;;  %v1446_v6 = vld [vmem:[%s1880_s1 + $0x30] sm:$0xff]   ;;  %v1450_v10 = vld [vmem:[%s1880_s1 + $0x28] sm:$0xff]  }
   0x4   :  { %v1443_v3 = vld [vmem:[%s1880_s1 + $0xb8] sm:$0xff]   ;;  %1269 = vmatpush3.bf16.msra.mxu0 %v1442_v2  ;;  %v1447_v7 = vld [vmem:[%s1880_s1 + $0xb0] sm:$0xff]   ;;  %v1451_v11 = vld [vmem:[%s1880_s1 + $0xa8] sm:$0xff]  }
   0x5   :  { %1333 = vmatpush3.bf16.msra.mxu1 %v1443_v3  ;;  %1270 = vmatprep.subr.bf16.mxu0 %v1444_v4  ;;  %v1452_v12 = vld [vmem:[%s1880_s1 + $0x60] sm:$0xff]   ;;  %v1456_v16 = vld [vmem:[%s1880_s1 + $0x58] sm:$0xff]   ;;  %v1460_v20 = vld [vmem:[%s1880_s1 + $0x50] sm:$0xff]  }
   0x6   :  { %1334 = vmatprep.subr.bf16.mxu1 %v1445_v5  ;;  %v1453_v13 = vld [vmem:[%s1880_s1 + $0xe0] sm:$0xff]   ;;  %v1457_v17 = vld [vmem:[%s1880_s1 + $0xd8] sm:$0xff]   ;;  %v1461_v21 = vld [vmem:[%s1880_s1 + $0xd0] sm:$0xff]  }
   0x7   :  { %v1454_v14 = vld [vmem:[%s1880_s1 + $0x20] sm:$0xff]   ;;  %v1458_v18 = vld [vmem:[%s1880_s1 + $0x18] sm:$0xff]   ;;  %v1462_v22 = vld [vmem:[%s1880_s1 + $0x10] sm:$0xff]  }
   0x8   :  { %1271 = vmatpush3.bf16.msra.mxu0 %v1446_v6  ;;  %v1455_v15 = vld [vmem:[%s1880_s1 + $0xa0] sm:$0xff]   ;;  %v1459_v19 = vld [vmem:[%s1880_s1 + $0x98] sm:$0xff]   ;;  %v1463_v23 = vld [vmem:[%s1880_s1 + $0x90] sm:$0xff]  }
   0x9   :  { %1335 = vmatpush3.bf16.msra.mxu1 %v1447_v7  ;;  %1272 = vmatprep.subr.bf16.mxu0 %v1448_v8  ;;  %v1464_v24 = vld [vmem:[%s1880_s1 + $0x48] sm:$0xff]   ;;  %v1468_v28 = vld [vmem:[%s1880_s1 + $0x40] sm:$0xff]   ;;  %v1478_v36 = vld [vmem:[%s1880_s1 + $0x118] sm:$0xff]  }
   0xa   :  { %1336 = vmatprep.subr.bf16.mxu1 %v1449_v9  ;;  %v1465_v25 = vld [vmem:[%s1880_s1 + $0xc8] sm:$0xff]   ;;  %v1469_v29 = vld [vmem:[%s1880_s1 + $0xc0] sm:$0xff]   ;;  %v1491_v42 = vld [vmem:[%s1880_s1 + $0x110] sm:$0xff]  }
   0xb   :  { %v1466_v26 = vld [vmem:[%s1880_s1 + $0x8] sm:$0xff]   ;;  %v1470_v30 = vld [vmem:[%s1880_s1] sm:$0xff]   ;;  %v1487_v43 = vld [vmem:[%s1881_s0 + $0x5c] ss:$20 sps:$4 sm:$0xff]  }
   0xc   :  { %1273 = vmatpush3.bf16.msra.mxu0 %v1450_v10  ;;  %v1467_v27 = vld [vmem:[%s1880_s1 + $0x88] sm:$0xff]   ;;  %v1471_v31 = vld [vmem:[%s1880_s1 + $0x80] sm:$0xff]   ;;  %v1492_v47 = vld [vmem:[%s1881_s0 + $0x7c] ss:$20 sps:$4 sm:$0xff]  }
   0xd   :  { %1337 = vmatpush3.bf16.msra.mxu1 %v1451_v11  ;;  %1274 = vmatprep.subr.bf16.mxu0 %v1452_v12  ;;  %v1472_v32 = vld [vmem:[%s1881_s0] ss:$20 sps:$4 sm:$0xff]   ;;  %v1474_v33 = vld [vmem:[%s1881_s0 + $0x4] ss:$20 sps:$4 sm:$0xff]   ;;  %v1475_v34 = vld [vmem:[%s1881_s0 + $0x8] ss:$20 sps:$4 sm:$0xff]  }
   0xe   :  { %1338 = vmatprep.subr.bf16.mxu1 %v1453_v13  ;;  %v1477_v35 = vld [vmem:[%s1881_s0 + $0xc] ss:$20 sps:$4 sm:$0xff]   ;;  %647 = vmatprep.mubr.bf16.mxu0 %v1474_v33  ;;  %v1481_v38 = vld [vmem:[%s1881_s0 + $0x34] ss:$20 sps:$4 sm:$0xff]   ;;  %v1484_v40 = vld [vmem:[%s1881_s0 + $0x30] ss:$20 sps:$4 sm:$0xff]  }
   0xf   :  { %744 = vmatprep.mubr.bf16.mxu1 %v1477_v35  ;;  %v1479_v37 = vld [vmem:[%s1881_s0 + $0x2c] ss:$20 sps:$4 sm:$0xff]   ;;  %v1483_v39 = vld [vmem:[%s1881_s0 + $0x28] ss:$20 sps:$4 sm:$0xff]   ;;  %v1489_v44 = vld [vmem:[%s1881_s0 + $0x50] ss:$20 sps:$4 sm:$0xff]  }
  0x10   :  { %1275 = vmatpush3.bf16.msra.mxu0 %v1454_v14  ;;  %v1485_v41 = vld [vmem:[%s1881_s0 + $0x54] ss:$20 sps:$4 sm:$0xff]   ;;  %v1490_v45 = vld [vmem:[%s1881_s0 + $0x58] ss:$20 sps:$4 sm:$0xff]   ;;  %v1517_v49 = vld [vmem:[%s1880_s1 + $0x100] sm:$0xff]  }
  0x11   :  { %1339 = vmatpush3.bf16.msra.mxu1 %v1455_v15  ;;  %1276 = vmatprep.subr.bf16.mxu0 %v1456_v16  ;;  %v1504_v46 = vld [vmem:[%s1880_s1 + $0x108] sm:$0xff]   ;;  %v1494_v48 = vld [vmem:[%s1881_s0 + $0x84] ss:$20 sps:$4 sm:$0xff]   ;;  %v1497_v51 = vld [vmem:[%s1881_s0 + $0x80] ss:$20 sps:$4 sm:$0xff]  }
  0x12   :  { %1340 = vmatprep.subr.bf16.mxu1 %v1457_v17  ;;  %v1496_v50 = vld [vmem:[%s1881_s0 + $0x78] ss:$20 sps:$4 sm:$0xff]   ;;  %v1502_v54 = vld [vmem:[%s1881_s0 + $0xa0] ss:$20 sps:$4 sm:$0xff]   ;;  %v1503_v55 = vld [vmem:[%s1881_s0 + $0xa8] ss:$20 sps:$4 sm:$0xff]  }
  0x13   :  { %v1498_v52 = vld [vmem:[%s1881_s0 + $0xa4] ss:$20 sps:$4 sm:$0xff]   ;;  %v1500_v53 = vld [vmem:[%s1881_s0 + $0xac] ss:$20 sps:$4 sm:$0xff]   ;;  %v1507_v57 = vld [vmem:[%s1881_s0 + $0xd4] ss:$20 sps:$4 sm:$0xff]  }
  0x14   :  { %1277 = vmatpush3.bf16.msra.mxu0 %v1458_v18  ;;  %v1505_v56 = vld [vmem:[%s1881_s0 + $0xcc] ss:$20 sps:$4 sm:$0xff]   ;;  %v1509_v58 = vld [vmem:[%s1881_s0 + $0xc8] ss:$20 sps:$4 sm:$0xff]   ;;  %v1510_v59 = vld [vmem:[%s1881_s0 + $0xd0] ss:$20 sps:$4 sm:$0xff]  }
  0x15   :  { %1341 = vmatpush3.bf16.msra.mxu1 %v1459_v19  ;;  %1278 = vmatprep.subr.bf16.mxu0 %v1460_v20  ;;  %v1511_v60 = vld [vmem:[%s1881_s0 + $0xf4] ss:$20 sps:$4 sm:$0xff]   ;;  %v1513_v61 = vld [vmem:[%s1881_s0 + $0xfc] ss:$20 sps:$4 sm:$0xff]   ;;  %v1516_v63 = vld [vmem:[%s1881_s0 + $0xf8] ss:$20 sps:$4 sm:$0xff]  }
  0x16   :  { %1342 = vmatprep.subr.bf16.mxu1 %v1461_v21  ;;  %v1515_v62 = vld [vmem:[%s1881_s0 + $0xf0] ss:$20 sps:$4 sm:$0xff]   ;;  %v1522_v2 = vld [vmem:[%s1881_s0 + $0x118] ss:$20 sps:$4 sm:$0xff]   ;;  %v1523_v3 = vld [vmem:[%s1881_s0 + $0x120] ss:$20 sps:$4 sm:$0xff]  }
  0x17   :  { %v1518_v0 = vld [vmem:[%s1881_s0 + $0x11c] ss:$20 sps:$4 sm:$0xff]   ;;  %v1520_v1 = vld [vmem:[%s1881_s0 + $0x124] ss:$20 sps:$4 sm:$0xff]   ;;  %v1528_v8 = vld [vmem:[%s1881_s0 + $0x60] ss:$20 sps:$4 sm:$0xff]  }
  0x18   :  { %1279 = vmatpush3.bf16.msra.mxu0 %v1462_v22  ;;  %v1524_v4 = vld [vmem:[%s1881_s0 + $0x10] ss:$20 sps:$4 sm:$0xff]   ;;  %v1526_v6 = vld [vmem:[%s1881_s0 + $0x38] ss:$20 sps:$4 sm:$0xff]   ;;  %v1529_v9 = vld [vmem:[%s1881_s0 + $0x100] ss:$20 sps:$4 sm:$0xff]  }
  0x19   :  { %1343 = vmatpush3.bf16.msra.mxu1 %v1463_v23  ;;  %1280 = vmatprep.subr.bf16.mxu0 %v1464_v24  ;;  %v1525_v5 = vld [vmem:[%s1881_s0 + $0xb0] ss:$20 sps:$4 sm:$0xff]   ;;  %v1527_v7 = vld [vmem:[%s1881_s0 + $0xd8] ss:$20 sps:$4 sm:$0xff]   ;;  %v1530_v10 = vld [vmem:[%s1881_s0 + $0x88] ss:$20 sps:$4 sm:$0xff]  }
  0x1a   :  { %1344 = vmatprep.subr.bf16.mxu1 %v1465_v25  ;;  %v1531_v11 = vld [vmem:[%s1881_s0 + $0x128] ss:$20 sps:$4 sm:$0xff]  }
  0x1c   :  { %1281 = vmatpush3.bf16.msra.mxu0 %v1466_v26 }
  0x1d   :  { %1345 = vmatpush3.bf16.msra.mxu1 %v1467_v27  ;;  %1282 = vmatprep.subr.bf16.mxu0 %v1468_v28 }
  0x1e   :  { %1346 = vmatprep.subr.bf16.mxu1 %v1469_v29 }
  0x20   :  { %1283 = vmatpush3.bf16.msra.mxu0 %v1470_v30 }
  0x21   :  { %1347 = vmatpush3.bf16.msra.mxu1 %v1471_v31  ;;  %1408 = vmatprep.subr.bf16.mxu0 %v1478_v36 }
  0x22   :  { %1432 = vmatprep.subr.bf16.mxu1 %v1478_v36 }
  0x23   :  { %648 = vmatmul.mubr.bf16.vlgmr.msra.gmra.mxu0 %v1472_v32 }
  0x24   :  { %745 = vmatmul.mubr.bf16.vlgmr.msra.gmra.mxu1 %v1475_v34  ;;  %1409 = vmatpush3.bf16.msra.mxu0 %v1478_v36 }
  0x25   :  { %1436 = vmatpush3.bf16.msra.mxu1 %v1478_v36  ;;  %655 = vmatprep.mubr.bf16.mxu0 %v1479_v37 }
  0x26   :  { %752 = vmatprep.mubr.bf16.mxu1 %v1481_v38  ;;  %1410 = vmatprep.subr.bf16.mxu0 %v1491_v42 }
  0x27   :  { %1433 = vmatprep.subr.bf16.mxu1 %v1491_v42 }
  0x28   :  { %1411 = vmatpush3.bf16.msra.mxu0 %v1491_v42 }
  0x29   :  { %1437 = vmatpush3.bf16.msra.mxu1 %v1491_v42  ;;  %1412 = vmatprep.subr.bf16.mxu0 %v1504_v46 }
  0x2a   :  { %1434 = vmatprep.subr.bf16.mxu1 %v1504_v46 }
  0x2b   :  { %656 = vmatmul.mubr.bf16.gmra.mxu0 %v1483_v39 }
  0x2c   :  { %753 = vmatmul.mubr.bf16.gmra.mxu1 %v1484_v40  ;;  %663 = vmatprep.mubr.bf16.mxu0 %v1485_v41 }
  0x2d   :  { %760 = vmatprep.mubr.bf16.mxu1 %v1487_v43  ;;  %1413 = vmatpush3.bf16.msra.mxu0 %v1504_v46 }
  0x2e   :  { %1438 = vmatpush3.bf16.msra.mxu1 %v1504_v46  ;;  %1414 = vmatprep.subr.bf16.mxu0 %v1517_v49 }
  0x2f   :  { %1435 = vmatprep.subr.bf16.mxu1 %v1517_v49 }
  0x31   :  { %1415 = vmatpush3.bf16.msra.mxu0 %v1517_v49 }
  0x32   :  { %1439 = vmatpush3.bf16.msra.mxu1 %v1517_v49 }
  0x33   :  { %664 = vmatmul.mubr.bf16.gmra.mxu0 %v1489_v44 }
  0x34   :  { %761 = vmatmul.mubr.bf16.gmra.mxu1 %v1490_v45  ;;  %671 = vmatprep.mubr.bf16.mxu0 %v1492_v47 }
  0x35   :  { %768 = vmatprep.mubr.bf16.mxu1 %v1494_v48 }
  0x3b   :  { %672 = vmatmul.mubr.bf16.gmra.mxu0 %v1496_v50 }
  0x3c   :  { %769 = vmatmul.mubr.bf16.gmra.mxu1 %v1497_v51  ;;  %679 = vmatprep.mubr.bf16.mxu0 %v1498_v52 }
  0x3d   :  { %776 = vmatprep.mubr.bf16.mxu1 %v1500_v53 }
  0x43   :  { %680 = vmatmul.mubr.bf16.gmra.mxu0 %v1502_v54 }
  0x44   :  { %777 = vmatmul.mubr.bf16.gmra.mxu1 %v1503_v55  ;;  %687 = vmatprep.mubr.bf16.mxu0 %v1505_v56 }
  0x45   :  { %784 = vmatprep.mubr.bf16.mxu1 %v1507_v57 }
  0x4b   :  { %688 = vmatmul.mubr.bf16.gmra.mxu0 %v1509_v58 }
  0x4c   :  { %785 = vmatmul.mubr.bf16.gmra.mxu1 %v1510_v59  ;;  %695 = vmatprep.mubr.bf16.mxu0 %v1511_v60 }
  0x4d   :  { %792 = vmatprep.mubr.bf16.mxu1 %v1513_v61 }
  0x53   :  { %696 = vmatmul.mubr.bf16.gmra.mxu0 %v1515_v62 }
  0x54   :  { %793 = vmatmul.mubr.bf16.gmra.mxu1 %v1516_v63  ;;  %703 = vmatprep.mubr.bf16.mxu0 %v1518_v0 }
  0x55   :  { %800 = vmatprep.mubr.bf16.mxu1 %v1520_v1 }
  0x5b   :  { %704 = vmatmul.mubr.bf16.gmra.mxu0 %v1522_v2 }
  0x5c   :  { %801 = vmatmul.mubr.bf16.gmra.mxu1 %v1523_v3  ;;  %1416 = vmatprep.mubr.msk.bf16.mxu0 %vm590_vm0, %v1524_v4 }
  0x5d   :  { %1424 = vmatprep.mubr.msk.bf16.mxu1 %vm590_vm0, %v1525_v5 }
  0x63   :  { %1417 = vmatmul.mubr.msk.bf16.vlgmr.msra.gmra.mxu0 %vm590_vm0, %v1526_v6 }
  0x64   :  { %1425 = vmatmul.mubr.msk.bf16.vlgmr.msra.gmra.mxu1 %vm590_vm0, %v1527_v7  ;;  %1420 = vmatprep.mubr.msk.bf16.mxu0 %vm590_vm0, %v1528_v8 }
  0x65   :  { %1428 = vmatprep.mubr.msk.bf16.mxu1 %vm590_vm0, %v1529_v9 }
  0x6b   :  { %1421 = vmatmul.mubr.msk.bf16.gmra.mxu0 %vm590_vm0, %v1530_v10 }
  0x6c   :  { %1429 = vmatmul.mubr.msk.bf16.gmra.mxu1 %vm590_vm0, %v1531_v11 }
  0xe3   :  { %v1284_v12 = vpop.f32.mrf.mxu0 }
  0xe4   :  { %v1348_v13 = vpop.f32.mrf.mxu1 }
  0xe5   :  { %v1285_v14 = vpop.f32.mrf.mxu0 }
  0xe6   :  { %v1286_v15 = vadd.f32 %v1285_v14, %v1284_v12  ;;  %v1349_v16 = vpop.f32.mrf.mxu1 }
  0xe7   :  { %v1350_v17 = vadd.f32 %v1349_v16, %v1348_v13  ;;  %v1287_v18 = vpop.f32.mrf.mxu0 }
  0xe8   :  { %v1351_v19 = vpop.f32.mrf.mxu1 }
  0xe9   :  { %v1288_v20 = vpop.f32.mrf.mxu0  ;;  %v1793_v21 = vadd.f32 %v1350_v17, %v1286_v15 }
  0xea   :  { %v1352_v22 = vpop.f32.mrf.mxu1  ;;  %v1289_v8 = vadd.f32 %v1288_v20, %v1287_v18 }
  0xeb   :  { %1885 = vst [vmem:[#allocation3_spill] sm:$0xff] %v1793_v21  ;;  %v1290_v23 = vpop.f32.mrf.mxu0  ;;  %v1353_v9 = vadd.f32 %v1352_v22, %v1351_v19 }
  0xec   :  { %v1354_v24 = vpop.f32.mrf.mxu1 }
  0xed   :  { %v1291_v25 = vpop.f32.mrf.mxu0 }
  0xee   :  { %v1355_v26 = vpop.f32.mrf.mxu1  ;;  %v1292_v11 = vadd.f32 %v1291_v25, %v1290_v23 }
  0xef   :  { %v1293_v27 = vpop.f32.mrf.mxu0  ;;  %v1356_v12 = vadd.f32 %v1355_v26, %v1354_v24 }
  0xf0   :  { %v1357_v28 = vpop.f32.mrf.mxu1 }
  0xf1   :  { %v1294_v29 = vpop.f32.mrf.mxu0 }
  0xf2   :  { %v1358_v30 = vpop.f32.mrf.mxu1  ;;  %v1295_v13 = vadd.f32 %v1294_v29, %v1293_v27 }
  0xf3   :  { %v1296_v31 = vpop.f32.mrf.mxu0  ;;  %v1359_v14 = vadd.f32 %v1358_v30, %v1357_v28 }
  0xf4   :  { %v1360_v32 = vpop.f32.mrf.mxu1 }
  0xf5   :  { %v1297_v33 = vpop.f32.mrf.mxu0 }
  0xf6   :  { %v1361_v34 = vpop.f32.mrf.mxu1  ;;  %v1298_v16 = vadd.f32 %v1297_v33, %v1296_v31 }
  0xf7   :  { %v1299_v35 = vpop.f32.mrf.mxu0  ;;  %v1362_v17 = vadd.f32 %v1361_v34, %v1360_v32  ;;  %v755_v32 = vadd.f32 %v1356_v12, %v1292_v11  ;;  %v758_v34 = vadd.f32 %v1359_v14, %v1295_v13 }
  0xf8   :  { %v1363_v36 = vpop.f32.mrf.mxu1 }
  0xf9   :  { %v1300_v37 = vpop.f32.mrf.mxu0 }
  0xfa   :  { %v1364_v38 = vpop.f32.mrf.mxu1  ;;  %v1301_v21 = vadd.f32 %v1300_v37, %v1299_v35  ;;  %v750_v35 = vadd.f32 %v1353_v9, %v1289_v8  ;;  %v1806_v37 = vld [vmem:[%s1882_s2] ss:$0 sm:$0xff] }
  0xfb   :  { %v1302_v39 = vpop.f32.mrf.mxu0 }
  0xfc   :  { %v1366_v40 = vpop.f32.mrf.mxu1 }
  0xfd   :  { %v1303_v41 = vpop.f32.mrf.mxu0 }
  0xfe   :  { %v1367_v42 = vpop.f32.mrf.mxu1 }
  0xff   :  { %v1305_v43 = vpop.f32.mrf.mxu0 }
 0x100   :  { %v1369_v44 = vpop.f32.mrf.mxu1 }
 0x101   :  { %v1306_v45 = vpop.f32.mrf.mxu0 }
 0x102   :  { %v1370_v46 = vpop.f32.mrf.mxu1  ;;  %v1307_v22 = vadd.f32 %v1306_v45, %v1305_v43 }
 0x103   :  { %v1308_v47 = vpop.f32.mrf.mxu0  ;;  %v1371_v23 = vadd.f32 %v1370_v46, %v1369_v44 }
 0x104   :  { %v1372_v48 = vpop.f32.mrf.mxu1 }
 0x105   :  { %v1309_v49 = vpop.f32.mrf.mxu0  ;;  %v1810_v46 = vadd.f32 %v1371_v23, %v1307_v22 }
 0x106   :  { %v1373_v50 = vpop.f32.mrf.mxu1  ;;  %v1310_v25 = vadd.f32 %v1309_v49, %v1308_v47 }
 0x107   :  { %v1311_v51 = vpop.f32.mrf.mxu0  ;;  %v1374_v24 = vadd.f32 %v1373_v50, %v1372_v48 }
 0x108   :  { %v1375_v52 = vpop.f32.mrf.mxu1 }
 0x109   :  { %v1312_v53 = vpop.f32.mrf.mxu0  ;;  %v779_v49 = vadd.f32 %v1374_v24, %v1310_v25 }
 0x10a   :  { %v1376_v54 = vpop.f32.mrf.mxu1  ;;  %v1313_v27 = vadd.f32 %v1312_v53, %v1311_v51 }
 0x10b   :  { %v1314_v55 = vpop.f32.mrf.mxu0  ;;  %v1377_v29 = vadd.f32 %v1376_v54, %v1375_v52 }
 0x10c   :  { %v1378_v56 = vpop.f32.mrf.mxu1 }
 0x10d   :  { %v1315_v57 = vpop.f32.mrf.mxu0  ;;  %v782_v51 = vadd.f32 %v1377_v29, %v1313_v27 }
 0x10e   :  { %v1379_v58 = vpop.f32.mrf.mxu1  ;;  %v1316_v18 = vadd.f32 %v1315_v57, %v1314_v55  ;;  %v1890_v55 = vld [vmem:[#allocation3_spill] sm:$0xff] }
 0x10f   :  { %v1317_v59 = vpop.f32.mrf.mxu0  ;;  %v1380_v20 = vadd.f32 %v1379_v58, %v1378_v56 }
 0x110   :  { %v1381_v60 = vpop.f32.mrf.mxu1 }
 0x111   :  { %v1318_v61 = vpop.f32.mrf.mxu0 }
 0x112   :  { %v1382_v62 = vpop.f32.mrf.mxu1  ;;  %v1319_v28 = vadd.f32 %v1318_v61, %v1317_v59 }
 0x113   :  { %v1320_v63 = vpop.f32.mrf.mxu0  ;;  %v1383_v30 = vadd.f32 %v1382_v62, %v1381_v60 }
 0x114   :  { %v1384_v0 = vpop.f32.mrf.mxu1 }
 0x115   :  { %v1321_v1 = vpop.f32.mrf.mxu0  ;;  %v790_v50 = vadd.f32 %v1383_v30, %v1319_v28 }
 0x116   :  { %v1385_v2 = vpop.f32.mrf.mxu1 }
 0x117   :  { %v1795_v3 = vpop.f32.mrf.mxu0  ;;  %v1386_v43 = vadd.f32 %v1385_v2, %v1384_v0 }
 0x118   :  { %1886 = vst [vmem:[#allocation4_spill] sm:$0xff] %v1795_v3  ;;  %v1797_v4 = vpop.f32.mrf.mxu1  ;;  %v1365_v3 = vadd.f32 %v1364_v38, %v1363_v36  ;;  %v787_v38 = vadd.f32 %v1380_v20, %v1316_v18 }
 0x119   :  { %1887 = vst [vmem:[#allocation5_spill] sm:$0xff] %v1797_v4  ;;  %v1799_v5 = vpop.f32.mrf.mxu0 }
 0x11a   :  { %1888 = vst [vmem:[#allocation6_spill] sm:$0xff] %v1799_v5  ;;  %v1801_v6 = vpop.f32.mrf.mxu1  ;;  %v1304_v5 = vadd.f32 %v1303_v41, %v1302_v39  ;;  %v1808_v41 = vadd.f32 %v1365_v3, %v1301_v21  ;;  %v1816_v21 = vld [vmem:[%s1883_s3] ss:$0 sm:$0xff] }
 0x11b   :  { %1889 = vst [vmem:[#allocation7_spill] sm:$0xff] %v1801_v6  ;;  %v1326_v7 = vpop.f32.mrf.mxu0  ;;  %v1368_v6 = vadd.f32 %v1367_v42, %v1366_v40  ;;  %v763_v40 = vadd.f32 %v1362_v17, %v1298_v16  ;;  %v1322_v42 = vadd.f32 %v1321_v1, %v1320_v63 }
 0x11c   :  { %v1390_v10 = vpop.f32.mrf.mxu1 }
 0x11d   :  { %v1327_v15 = vpop.f32.mrf.mxu0  ;;  %v771_v39 = vadd.f32 %v1368_v6, %v1304_v5  ;;  %v795_v5 = vadd.f32 %v1386_v43, %v1322_v42 }
 0x11e   :  { %v1391_v4 = vpop.f32.mrf.mxu1  ;;  %v1328_v52 = vadd.f32 %v1327_v15, %v1326_v7 }
 0x11f   :  { %v1329_v19 = vpop.f32.mrf.mxu0  ;;  %v1392_v53 = vadd.f32 %v1391_v4, %v1390_v10  ;;  %v1891_v63 = vld [vmem:[#allocation4_spill] sm:$0xff] }
 0x120   :  { %v1393_v26 = vpop.f32.mrf.mxu1  ;;  %v1893_v6 = vld [vmem:[#allocation5_spill] sm:$0xff] }
 0x121   :  { %v1330_v31 = vpop.f32.mrf.mxu0  ;;  %v1892_v0 = vld [vmem:[#allocation6_spill] sm:$0xff]  ;;  %v803_v17 = vadd.f32 %v1392_v53, %v1328_v52 }
 0x122   :  { %v1394_v33 = vpop.f32.mrf.mxu1  ;;  %v1331_v58 = vadd.f32 %v1330_v31, %v1329_v19  ;;  %v1325_v1 = vadd.f32 %v1892_v0, %v1891_v63  ;;  %v1894_v7 = vld [vmem:[#allocation7_spill] sm:$0xff] }
 0x123   :  { %v1418_v36 = vpop.f32.mrf.mxu0  ;;  %v1395_v59 = vadd.f32 %v1394_v33, %v1393_v26  ;;  %v1389_v8 = vadd.f32 %v1894_v7, %v1893_v6 }
 0x124   :  { %v852_v44 = vadd.f32 %v1418_v36, %v755_v32  ;;  %v1426_v45 = vpop.f32.mrf.mxu1 }
 0x125   :  { %v884_v47 = vadd.f32 %v1426_v45, %v787_v38  ;;  %v843_v48 = vpop.f32.mrf.mxu0  ;;  %v806_v23 = vadd.f32 %v1395_v59, %v1331_v58 }
 0x126   :  { %v966_v54 = vmul.f32 %v1806_v37, %v852_v44  ;;  %v844_v56 = vadd.f32 %v843_v48, %v1890_v55  ;;  %v875_v57 = vpop.f32.mrf.mxu1 }
 0x127   :  { %v974_v60 = vmul.f32 %v1806_v37, %v884_v47  ;;  %v876_v61 = vadd.f32 %v875_v57, %v779_v49  ;;  %v1419_v62 = vpop.f32.mrf.mxu0 }
 0x128   :  { %v964_v2 = vmul.f32 %v1806_v37, %v844_v56  ;;  %v855_v3 = vadd.f32 %v1419_v62, %v758_v34  ;;  %v1427_v4 = vpop.f32.mrf.mxu1  ;;  %v989_v9 = vadd.f32 %v1816_v21, %v966_v54 }
 0x129   :  { %v972_v10 = vmul.f32 %v1806_v37, %v876_v61  ;;  %v887_v11 = vadd.f32 %v1427_v4, %v790_v50  ;;  %v846_v12 = vpop.f32.mrf.mxu0  ;;  %v997_v13 = vadd.f32 %v1816_v21, %v974_v60  ;;  %v798_v60 = vadd.f32 %v1389_v8, %v1325_v1 }
 0x12a   :  { %v967_v14 = vmul.f32 %v1806_v37, %v855_v3  ;;  %v847_v15 = vadd.f32 %v846_v12, %v750_v35  ;;  %v878_v16 = vpop.f32.mrf.mxu1  ;;  %v987_v18 = vadd.f32 %v1816_v21, %v964_v2  ;;  %v1005_v28 = vmax.f32 %v989_v9, 0.0 }
 0x12b   :  { %v975_v20 = vmul.f32 %v1806_v37, %v887_v11  ;;  %v879_v19 = vadd.f32 %v878_v16, %v782_v51  ;;  %v1422_v22 = vpop.f32.mrf.mxu0  ;;  %v995_v25 = vadd.f32 %v1816_v21, %v972_v10  ;;  %v1013_v34 = vmax.f32 %v997_v13, 0.0 }
 0x12c   :  { %v990_v24 = vadd.f32 %v1816_v21, %v967_v14  ;;  %v965_v26 = vmul.f32 %v1806_v37, %v847_v15  ;;  %v868_v27 = vadd.f32 %v1422_v22, %v771_v39  ;;  %v1430_v29 = vpop.f32.mrf.mxu1  ;;  %v1003_v43 = vmax.f32 %v987_v18, 0.0 }
 0x12d   :  { %v998_v30 = vadd.f32 %v1816_v21, %v975_v20  ;;  %v973_v31 = vmul.f32 %v1806_v37, %v879_v19  ;;  %v900_v33 = vadd.f32 %v1430_v29, %v803_v17  ;;  %v859_v32 = vpop.f32.mrf.mxu0  ;;  %v1011_v48 = vmax.f32 %v995_v25, 0.0 }
 0x12e   :  { %v1006_v35 = vmax.f32 %v990_v24, 0.0  ;;  %v988_v36 = vadd.f32 %v1816_v21, %v965_v26  ;;  %v860_v38 = vadd.f32 %v859_v32, %v763_v40  ;;  %v891_v42 = vpop.f32.mrf.mxu1  ;;  %v970_v51 = vmul.f32 %v1806_v37, %v868_v27 }
 0x12f   :  { %v1014_v44 = vmax.f32 %v998_v30, 0.0  ;;  %v996_v45 = vadd.f32 %v1816_v21, %v973_v31  ;;  %v892_v47 = vadd.f32 %v891_v42, %v795_v5  ;;  %v1423_v39 = vpop.f32.mrf.mxu0  ;;  %v978_v55 = vmul.f32 %v1806_v37, %v900_v33 }
 0x130   :  { %v1229_v49 = vpack.c.bf16 %v1006_v35, %v1005_v28  ;;  %v1004_v50 = vmax.f32 %v988_v36, 0.0  ;;  %v1431_v52 = vpop.f32.mrf.mxu1  ;;  %v968_v56 = vmul.f32 %v1806_v37, %v860_v38  ;;  %v871_v59 = vadd.f32 %v1423_v39, %v1810_v46 }
 0x131   :  { %v1249_v53 = vpack.c.bf16 %v1014_v44, %v1013_v34  ;;  %v1012_v54 = vmax.f32 %v996_v45, 0.0  ;;  %v862_v40 = vpop.f32.mrf.mxu0  ;;  %v976_v58 = vmul.f32 %v1806_v37, %v892_v47  ;;  %v903_v63 = vadd.f32 %v1431_v52, %v806_v23 }
 0x132   :  { %1261 = vst [vmem:[%s1884_s4 + $0x8] sm:$0xff] %v1229_v49   ;;  %v1224_v57 = vpack.c.bf16 %v1004_v50, %v1003_v43  ;;  %v894_v61 = vpop.f32.mrf.mxu1  ;;  %v993_v0 = vadd.f32 %v1816_v21, %v970_v51  ;;  %v971_v2 = vmul.f32 %v1806_v37, %v871_v59  ;;  %v863_v3 = vadd.f32 %v862_v40, %v1808_v41 }
 0x133   :  { %1265 = vst [vmem:[%s1884_s4 + $0x28] sm:$0xff] %v1249_v53   ;;  %v1244_v62 = vpack.c.bf16 %v1012_v54, %v1011_v48  ;;  %v895_v4 = vadd.f32 %v894_v61, %v798_v60  ;;  %v1001_v46 = vadd.f32 %v1816_v21, %v978_v55  ;;  %v991_v1 = vadd.f32 %v1816_v21, %v968_v56 }
 0x134   :  { %1225 = vst [vmem:[%s1884_s4] sm:$0xff] %v1224_v57   ;;  %v979_v5 = vmul.f32 %v1806_v37, %v903_v63  ;;  %v999_v6 = vadd.f32 %v1816_v21, %v976_v58  ;;  %v994_v7 = vadd.f32 %v1816_v21, %v971_v2  ;;  %v969_v8 = vmul.f32 %v1806_v37, %v863_v3 }
 0x135   :  { %1264 = vst [vmem:[%s1884_s4 + $0x20] sm:$0xff] %v1244_v62   ;;  %v977_v9 = vmul.f32 %v1806_v37, %v895_v4  ;;  %v1009_v10 = vmax.f32 %v993_v0, 0.0  ;;  %v1017_v14 = vmax.f32 %v1001_v46, 0.0  ;;  %v1007_v15 = vmax.f32 %v991_v1, 0.0 }
 0x136   :  { %v1002_v41 = vadd.f32 %v1816_v21, %v979_v5  ;;  %v1010_v11 = vmax.f32 %v994_v7, 0.0  ;;  %v992_v12 = vadd.f32 %v1816_v21, %v969_v8  ;;  %v1015_v17 = vmax.f32 %v999_v6, 0.0 }
 0x137   :  { %v1000_v13 = vadd.f32 %v1816_v21, %v977_v9 }
 0x138   :  { %v1018_v16 = vmax.f32 %v1002_v41, 0.0  ;;  %v1239_v18 = vpack.c.bf16 %v1010_v11, %v1009_v10  ;;  %v1008_v20 = vmax.f32 %v992_v12, 0.0 }
 0x139   :  { %v1016_v19 = vmax.f32 %v1000_v13, 0.0 }
 0x13a   :  { %v1259_v22 = vpack.c.bf16 %v1018_v16, %v1017_v14  ;;  %1263 = vst [vmem:[%s1884_s4 + $0x18] sm:$0xff] %v1239_v18   ;;  %v1234_v37 = vpack.c.bf16 %v1008_v20, %v1007_v15 }
 0x13b   :  { %v1254_v23 = vpack.c.bf16 %v1016_v19, %v1015_v17 }
 0x13c   :  { %1267 = vst [vmem:[%s1884_s4 + $0x38] sm:$0xff] %v1259_v22   ;;  %1262 = vst [vmem:[%s1884_s4 + $0x10] sm:$0xff] %v1234_v37  }
 0x13d   :  { %1266 = vst [vmem:[%s1884_s4 + $0x30] sm:$0xff] %v1254_v23  }

// kernel: custom_cnn_forward.10
= control target key start
LH: loop header
LB: loop body
LE: loop exit
PB: predicated region body
PF: predicated region fallthrough
CT: control target
= control target key end

     0   :  { %s3094_s1 = inlined_call_operand.vmem [shape: bf16[1152,128], index: 1, kind: input, shape index: {}]   ;;  %s3095_s0 = inlined_call_operand.vmem [shape: bf16[128,1152], index: 0, kind: input, shape index: {}]   ;;  %s3096_s2 = inlined_call_operand.vmem [shape: f32[1,128], index: 2, kind: input, shape index: {}]   ;;  %s3097_s3 = inlined_call_operand.vmem [shape: f32[1,128], index: 3, kind: input, shape index: {}]   ;;  %s3098_s4 = inlined_call_operand.vmem [shape: bf16[128,128], index: 4, kind: output, shape index: {}]  }
   0x1   :  { %v2305_v0 = vld [vmem:[%s3094_s1 + $0x78] sm:$0xff]   ;;  %v2309_v4 = vld [vmem:[%s3094_s1 + $0x70] sm:$0xff]   ;;  %v2313_v8 = vld [vmem:[%s3094_s1 + $0x68] sm:$0xff]  }
   0x2   :  { %v2306_v1 = vld [vmem:[%s3094_s1 + $0xf8] sm:$0xff]   ;;  %1985 = vmatprep.subr.bf16.mxu0 %v2305_v0  ;;  %v2310_v5 = vld [vmem:[%s3094_s1 + $0xf0] sm:$0xff]   ;;  %v2314_v9 = vld [vmem:[%s3094_s1 + $0xe8] sm:$0xff]  }
   0x3   :  { %v2307_v2 = vld [vmem:[%s3094_s1 + $0x38] sm:$0xff]   ;;  %2049 = vmatprep.subr.bf16.mxu1 %v2306_v1  ;;  %v2311_v6 = vld [vmem:[%s3094_s1 + $0x30] sm:$0xff]   ;;  %v2315_v10 = vld [vmem:[%s3094_s1 + $0x28] sm:$0xff]  }
   0x4   :  { %v2308_v3 = vld [vmem:[%s3094_s1 + $0xb8] sm:$0xff]   ;;  %1986 = vmatpush3.bf16.msra.mxu0 %v2307_v2  ;;  %v2312_v7 = vld [vmem:[%s3094_s1 + $0xb0] sm:$0xff]   ;;  %v2316_v11 = vld [vmem:[%s3094_s1 + $0xa8] sm:$0xff]  }
   0x5   :  { %2050 = vmatpush3.bf16.msra.mxu1 %v2308_v3  ;;  %1987 = vmatprep.subr.bf16.mxu0 %v2309_v4  ;;  %v2317_v12 = vld [vmem:[%s3094_s1 + $0x60] sm:$0xff]   ;;  %v2321_v16 = vld [vmem:[%s3094_s1 + $0x58] sm:$0xff]   ;;  %v2325_v20 = vld [vmem:[%s3094_s1 + $0x50] sm:$0xff]  }
   0x6   :  { %2051 = vmatprep.subr.bf16.mxu1 %v2310_v5  ;;  %v2318_v13 = vld [vmem:[%s3094_s1 + $0xe0] sm:$0xff]   ;;  %v2322_v17 = vld [vmem:[%s3094_s1 + $0xd8] sm:$0xff]   ;;  %v2326_v21 = vld [vmem:[%s3094_s1 + $0xd0] sm:$0xff]  }
   0x7   :  { %v2319_v14 = vld [vmem:[%s3094_s1 + $0x20] sm:$0xff]   ;;  %v2323_v18 = vld [vmem:[%s3094_s1 + $0x18] sm:$0xff]   ;;  %v2327_v22 = vld [vmem:[%s3094_s1 + $0x10] sm:$0xff]  }
   0x8   :  { %1988 = vmatpush3.bf16.msra.mxu0 %v2311_v6  ;;  %v2320_v15 = vld [vmem:[%s3094_s1 + $0xa0] sm:$0xff]   ;;  %v2324_v19 = vld [vmem:[%s3094_s1 + $0x98] sm:$0xff]   ;;  %v2328_v23 = vld [vmem:[%s3094_s1 + $0x90] sm:$0xff]  }
   0x9   :  { %2052 = vmatpush3.bf16.msra.mxu1 %v2312_v7  ;;  %1989 = vmatprep.subr.bf16.mxu0 %v2313_v8  ;;  %v2329_v24 = vld [vmem:[%s3094_s1 + $0x48] sm:$0xff]   ;;  %v2333_v28 = vld [vmem:[%s3094_s1 + $0x40] sm:$0xff]   ;;  %v2343_v36 = vld [vmem:[%s3094_s1 + $0x178] sm:$0xff]  }
   0xa   :  { %2053 = vmatprep.subr.bf16.mxu1 %v2314_v9  ;;  %v2330_v25 = vld [vmem:[%s3094_s1 + $0xc8] sm:$0xff]   ;;  %v2334_v29 = vld [vmem:[%s3094_s1 + $0xc0] sm:$0xff]   ;;  %v2344_v37 = vld [vmem:[%s3094_s1 + $0x1f8] sm:$0xff]  }
   0xb   :  { %v2331_v26 = vld [vmem:[%s3094_s1 + $0x8] sm:$0xff]   ;;  %v2335_v30 = vld [vmem:[%s3094_s1] sm:$0xff]   ;;  %v2345_v38 = vld [vmem:[%s3094_s1 + $0x138] sm:$0xff]  }
   0xc   :  { %1990 = vmatpush3.bf16.msra.mxu0 %v2315_v10  ;;  %v2332_v27 = vld [vmem:[%s3094_s1 + $0x88] sm:$0xff]   ;;  %v2336_v31 = vld [vmem:[%s3094_s1 + $0x80] sm:$0xff]   ;;  %v2346_v39 = vld [vmem:[%s3094_s1 + $0x1b8] sm:$0xff]  }
   0xd   :  { %2054 = vmatpush3.bf16.msra.mxu1 %v2316_v11  ;;  %1991 = vmatprep.subr.bf16.mxu0 %v2317_v12  ;;  %v2337_v32 = vld [vmem:[%s3095_s0] ss:$36 sps:$4 sm:$0xff]   ;;  %v2340_v34 = vld [vmem:[%s3095_s0 + $0x8] ss:$36 sps:$4 sm:$0xff]   ;;  %v2349_v41 = vld [vmem:[%s3095_s0 + $0x54] ss:$36 sps:$4 sm:$0xff]  }
   0xe   :  { %2055 = vmatprep.subr.bf16.mxu1 %v2318_v13  ;;  %v2339_v33 = vld [vmem:[%s3095_s0 + $0x4] ss:$36 sps:$4 sm:$0xff]   ;;  %v2342_v35 = vld [vmem:[%s3095_s0 + $0xc] ss:$36 sps:$4 sm:$0xff]   ;;  %v2357_v48 = vld [vmem:[%s3095_s0 + $0x94] ss:$36 sps:$4 sm:$0xff]  }
   0xf   :  { %1110 = vmatprep.mubr.bf16.mxu0 %v2339_v33  ;;  %1207 = vmatprep.mubr.bf16.mxu1 %v2342_v35  ;;  %v2347_v40 = vld [vmem:[%s3095_s0 + $0x4c] ss:$36 sps:$4 sm:$0xff]   ;;  %v2359_v49 = vld [vmem:[%s3095_s0 + $0x9c] ss:$36 sps:$4 sm:$0xff]   ;;  %v2369_v57 = vld [vmem:[%s3095_s0 + $0xe4] ss:$36 sps:$4 sm:$0xff]  }
  0x10   :  { %1992 = vmatpush3.bf16.msra.mxu0 %v2319_v14  ;;  %v2351_v42 = vld [vmem:[%s3095_s0 + $0x48] ss:$36 sps:$4 sm:$0xff]   ;;  %v2352_v43 = vld [vmem:[%s3095_s0 + $0x50] ss:$36 sps:$4 sm:$0xff]   ;;  %v2362_v51 = vld [vmem:[%s3095_s0 + $0x98] ss:$36 sps:$4 sm:$0xff]  }
  0x11   :  { %2056 = vmatpush3.bf16.msra.mxu1 %v2320_v15  ;;  %1993 = vmatprep.subr.bf16.mxu0 %v2321_v16  ;;  %v2353_v44 = vld [vmem:[%s3094_s1 + $0x170] sm:$0xff]   ;;  %v2363_v52 = vld [vmem:[%s3094_s1 + $0x168] sm:$0xff]   ;;  %v2367_v56 = vld [vmem:[%s3095_s0 + $0xdc] ss:$36 sps:$4 sm:$0xff]  }
  0x12   :  { %2057 = vmatprep.subr.bf16.mxu1 %v2322_v17  ;;  %v2354_v45 = vld [vmem:[%s3094_s1 + $0x1f0] sm:$0xff]   ;;  %v2364_v53 = vld [vmem:[%s3094_s1 + $0x1e8] sm:$0xff]   ;;  %v2371_v58 = vld [vmem:[%s3095_s0 + $0xd8] ss:$36 sps:$4 sm:$0xff]  }
  0x13   :  { %v2355_v46 = vld [vmem:[%s3094_s1 + $0x130] sm:$0xff]   ;;  %v2365_v54 = vld [vmem:[%s3094_s1 + $0x128] sm:$0xff]   ;;  %v2372_v59 = vld [vmem:[%s3095_s0 + $0xe0] ss:$36 sps:$4 sm:$0xff]  }
  0x14   :  { %1994 = vmatpush3.bf16.msra.mxu0 %v2323_v18  ;;  %v2356_v47 = vld [vmem:[%s3094_s1 + $0x1b0] sm:$0xff]   ;;  %v2366_v55 = vld [vmem:[%s3094_s1 + $0x1a8] sm:$0xff]   ;;  %v2373_v60 = vld [vmem:[%s3094_s1 + $0x160] sm:$0xff]  }
  0x15   :  { %2058 = vmatpush3.bf16.msra.mxu1 %v2324_v19  ;;  %1995 = vmatprep.subr.bf16.mxu0 %v2325_v20  ;;  %v2361_v50 = vld [vmem:[%s3095_s0 + $0x90] ss:$36 sps:$4 sm:$0xff]   ;;  %v2374_v61 = vld [vmem:[%s3094_s1 + $0x1e0] sm:$0xff]   ;;  %v2383_v3 = vld [vmem:[%s3094_s1 + $0x158] sm:$0xff]  }
  0x16   :  { %2059 = vmatprep.subr.bf16.mxu1 %v2326_v21  ;;  %v2375_v62 = vld [vmem:[%s3094_s1 + $0x120] sm:$0xff]   ;;  %v2379_v1 = vld [vmem:[%s3095_s0 + $0x12c] ss:$36 sps:$4 sm:$0xff]   ;;  %v2384_v5 = vld [vmem:[%s3094_s1 + $0x1d8] sm:$0xff]  }
  0x17   :  { %v2376_v63 = vld [vmem:[%s3094_s1 + $0x1a0] sm:$0xff]   ;;  %v2382_v4 = vld [vmem:[%s3095_s0 + $0x128] ss:$36 sps:$4 sm:$0xff]   ;;  %v2385_v6 = vld [vmem:[%s3094_s1 + $0x118] sm:$0xff]  }
  0x18   :  { %1996 = vmatpush3.bf16.msra.mxu0 %v2327_v22  ;;  %v2377_v0 = vld [vmem:[%s3095_s0 + $0x124] ss:$36 sps:$4 sm:$0xff]   ;;  %v2386_v7 = vld [vmem:[%s3094_s1 + $0x198] sm:$0xff]   ;;  %v2387_v8 = vld [vmem:[%s3095_s0 + $0x16c] ss:$36 sps:$4 sm:$0xff]  }
  0x19   :  { %2060 = vmatpush3.bf16.msra.mxu1 %v2328_v23  ;;  %1997 = vmatprep.subr.bf16.mxu0 %v2329_v24  ;;  %v2381_v2 = vld [vmem:[%s3095_s0 + $0x120] ss:$36 sps:$4 sm:$0xff]   ;;  %v2389_v9 = vld [vmem:[%s3095_s0 + $0x174] ss:$36 sps:$4 sm:$0xff]   ;;  %v2391_v12 = vld [vmem:[%s3095_s0 + $0x168] ss:$36 sps:$4 sm:$0xff]  }
  0x1a   :  { %2061 = vmatprep.subr.bf16.mxu1 %v2330_v25  ;;  %v2393_v10 = vld [vmem:[%s3094_s1 + $0x150] sm:$0xff]   ;;  %v2399_v17 = vld [vmem:[%s3095_s0 + $0x1bc] ss:$36 sps:$4 sm:$0xff]   ;;  %v2403_v18 = vld [vmem:[%s3094_s1 + $0x148] sm:$0xff]  }
  0x1b   :  { %v2394_v11 = vld [vmem:[%s3094_s1 + $0x1d0] sm:$0xff]   ;;  %v2404_v19 = vld [vmem:[%s3094_s1 + $0x1c8] sm:$0xff]   ;;  %v2402_v23 = vld [vmem:[%s3095_s0 + $0x1b8] ss:$36 sps:$4 sm:$0xff]  }
  0x1c   :  { %1998 = vmatpush3.bf16.msra.mxu0 %v2331_v26  ;;  %v2395_v13 = vld [vmem:[%s3094_s1 + $0x110] sm:$0xff]   ;;  %v2405_v20 = vld [vmem:[%s3094_s1 + $0x108] sm:$0xff]   ;;  %v2407_v24 = vld [vmem:[%s3095_s0 + $0x1fc] ss:$36 sps:$4 sm:$0xff]  }
  0x1d   :  { %2062 = vmatpush3.bf16.msra.mxu1 %v2332_v27  ;;  %1999 = vmatprep.subr.bf16.mxu0 %v2333_v28  ;;  %v2396_v14 = vld [vmem:[%s3094_s1 + $0x190] sm:$0xff]   ;;  %v2406_v21 = vld [vmem:[%s3094_s1 + $0x188] sm:$0xff]   ;;  %v2413_v26 = vld [vmem:[%s3094_s1 + $0x140] sm:$0xff]  }
  0x1e   :  { %2063 = vmatprep.subr.bf16.mxu1 %v2334_v29  ;;  %v2392_v15 = vld [vmem:[%s3095_s0 + $0x170] ss:$36 sps:$4 sm:$0xff]   ;;  %v2409_v25 = vld [vmem:[%s3095_s0 + $0x204] ss:$36 sps:$4 sm:$0xff]  }
  0x1f   :  { %v2397_v16 = vld [vmem:[%s3095_s0 + $0x1b4] ss:$36 sps:$4 sm:$0xff]   ;;  %v2414_v27 = vld [vmem:[%s3094_s1 + $0x1c0] sm:$0xff]  }
  0x20   :  { %2000 = vmatpush3.bf16.msra.mxu0 %v2335_v30  ;;  %v2401_v22 = vld [vmem:[%s3095_s0 + $0x1b0] ss:$36 sps:$4 sm:$0xff]   ;;  %v2415_v28 = vld [vmem:[%s3094_s1 + $0x100] sm:$0xff]   ;;  %v2411_v30 = vld [vmem:[%s3095_s0 + $0x1f8] ss:$36 sps:$4 sm:$0xff]  }
  0x21   :  { %2064 = vmatpush3.bf16.msra.mxu1 %v2336_v31  ;;  %2113 = vmatprep.subr.bf16.mxu0 %v2343_v36  ;;  %v2416_v29 = vld [vmem:[%s3094_s1 + $0x180] sm:$0xff]   ;;  %v2419_v33 = vld [vmem:[%s3095_s0 + $0x14] ss:$36 sps:$4 sm:$0xff]  }
  0x22   :  { %2177 = vmatprep.subr.bf16.mxu1 %v2344_v37  ;;  %v2412_v31 = vld [vmem:[%s3095_s0 + $0x200] ss:$36 sps:$4 sm:$0xff]   ;;  %v2417_v35 = vld [vmem:[%s3095_s0 + $0x10] ss:$36 sps:$4 sm:$0xff]   ;;  %v2420_v36 = vld [vmem:[%s3095_s0 + $0x18] ss:$36 sps:$4 sm:$0xff]  }
  0x23   :  { %1111 = vmatmul.mubr.bf16.vlgmr.msra.gmra.mxu0 %v2337_v32  ;;  %v2423_v32 = vld [vmem:[%s3094_s1 + $0x238] sm:$0xff]  }
  0x24   :  { %1208 = vmatmul.mubr.bf16.vlgmr.msra.gmra.mxu1 %v2340_v34  ;;  %2114 = vmatpush3.bf16.msra.mxu0 %v2345_v38  ;;  %v2422_v34 = vld [vmem:[%s3095_s0 + $0x1c] ss:$36 sps:$4 sm:$0xff]   ;;  %v2426_v38 = vld [vmem:[%s3095_s0 + $0x64] ss:$36 sps:$4 sm:$0xff]  }
  0x25   :  { %2178 = vmatpush3.bf16.msra.mxu1 %v2346_v39  ;;  %1118 = vmatprep.mubr.bf16.mxu0 %v2347_v40  ;;  %v2424_v37 = vld [vmem:[%s3095_s0 + $0x5c] ss:$36 sps:$4 sm:$0xff]   ;;  %v2430_v39 = vld [vmem:[%s3094_s1 + $0x230] sm:$0xff]   ;;  %v2437_v40 = vld [vmem:[%s3094_s1 + $0x228] sm:$0xff]  }
  0x26   :  { %1215 = vmatprep.mubr.bf16.mxu1 %v2349_v41  ;;  %2115 = vmatprep.subr.bf16.mxu0 %v2353_v44  ;;  %v2428_v41 = vld [vmem:[%s3095_s0 + $0x58] ss:$36 sps:$4 sm:$0xff]   ;;  %v2433_v44 = vld [vmem:[%s3095_s0 + $0xac] ss:$36 sps:$4 sm:$0xff]  }
  0x27   :  { %2179 = vmatprep.subr.bf16.mxu1 %v2354_v45  ;;  %v2444_v45 = vld [vmem:[%s3094_s1 + $0x220] sm:$0xff]  }
  0x28   :  { %2116 = vmatpush3.bf16.msra.mxu0 %v2355_v46  ;;  %v2451_v46 = vld [vmem:[%s3094_s1 + $0x218] sm:$0xff]  }
  0x29   :  { %2180 = vmatpush3.bf16.msra.mxu1 %v2356_v47  ;;  %2117 = vmatprep.subr.bf16.mxu0 %v2363_v52  ;;  %v2435_v47 = vld [vmem:[%s3095_s0 + $0xa0] ss:$36 sps:$4 sm:$0xff]   ;;  %v2442_v52 = vld [vmem:[%s3095_s0 + $0xe8] ss:$36 sps:$4 sm:$0xff]  }
  0x2a   :  { %2181 = vmatprep.subr.bf16.mxu1 %v2364_v53  ;;  %v2465_v53 = vld [vmem:[%s3094_s1 + $0x208] sm:$0xff]  }
  0x2b   :  { %1119 = vmatmul.mubr.bf16.gmra.mxu0 %v2351_v42  ;;  %v2429_v42 = vld [vmem:[%s3095_s0 + $0x60] ss:$36 sps:$4 sm:$0xff]  }
  0x2c   :  { %1216 = vmatmul.mubr.bf16.gmra.mxu1 %v2352_v43  ;;  %1126 = vmatprep.mubr.bf16.mxu0 %v2357_v48  ;;  %v2431_v43 = vld [vmem:[%s3095_s0 + $0xa4] ss:$36 sps:$4 sm:$0xff]  }
  0x2d   :  { %1223 = vmatprep.mubr.bf16.mxu1 %v2359_v49  ;;  %2118 = vmatpush3.bf16.msra.mxu0 %v2365_v54  ;;  %v2436_v48 = vld [vmem:[%s3095_s0 + $0xa8] ss:$36 sps:$4 sm:$0xff]   ;;  %v2443_v54 = vld [vmem:[%s3095_s0 + $0xf0] ss:$36 sps:$4 sm:$0xff]  }
  0x2e   :  { %2182 = vmatpush3.bf16.msra.mxu1 %v2366_v55  ;;  %2119 = vmatprep.subr.bf16.mxu0 %v2373_v60  ;;  %v2438_v49 = vld [vmem:[%s3095_s0 + $0xec] ss:$36 sps:$4 sm:$0xff]   ;;  %v2445_v55 = vld [vmem:[%s3095_s0 + $0x134] ss:$36 sps:$4 sm:$0xff]   ;;  %v2452_v60 = vld [vmem:[%s3095_s0 + $0x17c] ss:$36 sps:$4 sm:$0xff]  }
  0x2f   :  { %2183 = vmatprep.subr.bf16.mxu1 %v2374_v61  ;;  %v2454_v61 = vld [vmem:[%s3095_s0 + $0x184] ss:$36 sps:$4 sm:$0xff]  }
  0x31   :  { %2120 = vmatpush3.bf16.msra.mxu0 %v2375_v62  ;;  %v2456_v62 = vld [vmem:[%s3095_s0 + $0x178] ss:$36 sps:$4 sm:$0xff]  }
  0x32   :  { %2184 = vmatpush3.bf16.msra.mxu1 %v2376_v63  ;;  %2121 = vmatprep.subr.bf16.mxu0 %v2383_v3  ;;  %v2457_v63 = vld [vmem:[%s3095_s0 + $0x180] ss:$36 sps:$4 sm:$0xff]   ;;  %v2464_v3 = vld [vmem:[%s3095_s0 + $0x1c8] ss:$36 sps:$4 sm:$0xff]  }
  0x33   :  { %1127 = vmatmul.mubr.bf16.gmra.mxu0 %v2361_v50  ;;  %2185 = vmatprep.subr.bf16.mxu1 %v2384_v5  ;;  %v2440_v50 = vld [vmem:[%s3095_s0 + $0xf4] ss:$36 sps:$4 sm:$0xff]  }
  0x34   :  { %1224 = vmatmul.mubr.bf16.gmra.mxu1 %v2362_v51  ;;  %1134 = vmatprep.mubr.bf16.mxu0 %v2367_v56  ;;  %v2458_v51 = vld [vmem:[%s3094_s1 + $0x210] sm:$0xff]   ;;  %v2447_v56 = vld [vmem:[%s3095_s0 + $0x13c] ss:$36 sps:$4 sm:$0xff]  }
  0x35   :  { %1231 = vmatprep.mubr.bf16.mxu1 %v2369_v57  ;;  %2122 = vmatpush3.bf16.msra.mxu0 %v2385_v6  ;;  %v2472_v57 = vld [vmem:[%s3094_s1 + $0x200] sm:$0xff]   ;;  %v2468_v5 = vld [vmem:[%s3095_s0 + $0x214] ss:$36 sps:$4 sm:$0xff]   ;;  %v2470_v6 = vld [vmem:[%s3095_s0 + $0x208] ss:$36 sps:$4 sm:$0xff]  }
  0x36   :  { %2186 = vmatpush3.bf16.msra.mxu1 %v2386_v7  ;;  %2123 = vmatprep.subr.bf16.mxu0 %v2393_v10  ;;  %v2471_v7 = vld [vmem:[%s3095_s0 + $0x210] ss:$36 sps:$4 sm:$0xff]   ;;  %v2475_v10 = vld [vmem:[%s3095_s0 + $0x68] ss:$36 sps:$4 sm:$0xff]  }
  0x37   :  { %2187 = vmatprep.subr.bf16.mxu1 %v2394_v11  ;;  %v2476_v11 = vld [vmem:[%s3095_s0 + $0x188] ss:$36 sps:$4 sm:$0xff]  }
  0x39   :  { %2124 = vmatpush3.bf16.msra.mxu0 %v2395_v13  ;;  %v2478_v13 = vld [vmem:[%s3095_s0 + $0x1d0] ss:$36 sps:$4 sm:$0xff]  }
  0x3a   :  { %2188 = vmatpush3.bf16.msra.mxu1 %v2396_v14  ;;  %2125 = vmatprep.subr.bf16.mxu0 %v2403_v18  ;;  %v2479_v14 = vld [vmem:[%s3095_s0 + $0xf8] ss:$36 sps:$4 sm:$0xff]  }
  0x3b   :  { %1135 = vmatmul.mubr.bf16.gmra.mxu0 %v2371_v58  ;;  %2189 = vmatprep.subr.bf16.mxu1 %v2404_v19  ;;  %v2449_v58 = vld [vmem:[%s3095_s0 + $0x130] ss:$36 sps:$4 sm:$0xff]  }
  0x3c   :  { %1232 = vmatmul.mubr.bf16.gmra.mxu1 %v2372_v59  ;;  %1142 = vmatprep.mubr.bf16.mxu0 %v2377_v0  ;;  %v2450_v59 = vld [vmem:[%s3095_s0 + $0x138] ss:$36 sps:$4 sm:$0xff]   ;;  %v2459_v0 = vld [vmem:[%s3095_s0 + $0x1c4] ss:$36 sps:$4 sm:$0xff]  }
  0x3d   :  { %1239 = vmatprep.mubr.bf16.mxu1 %v2379_v1  ;;  %2126 = vmatpush3.bf16.msra.mxu0 %v2405_v20  ;;  %v2461_v1 = vld [vmem:[%s3095_s0 + $0x1cc] ss:$36 sps:$4 sm:$0xff]  }
  0x3e   :  { %2190 = vmatpush3.bf16.msra.mxu1 %v2406_v21  ;;  %2127 = vmatprep.subr.bf16.mxu0 %v2413_v26 }
  0x3f   :  { %2191 = vmatprep.subr.bf16.mxu1 %v2414_v27 }
  0x41   :  { %2128 = vmatpush3.bf16.msra.mxu0 %v2415_v28 }
  0x42   :  { %2192 = vmatpush3.bf16.msra.mxu1 %v2416_v29  ;;  %2257 = vmatprep.subr.bf16.mxu0 %v2423_v32 }
  0x43   :  { %1143 = vmatmul.mubr.bf16.gmra.mxu0 %v2381_v2  ;;  %2289 = vmatprep.subr.bf16.mxu1 %v2423_v32  ;;  %v2463_v2 = vld [vmem:[%s3095_s0 + $0x1c0] ss:$36 sps:$4 sm:$0xff]  }
  0x44   :  { %1240 = vmatmul.mubr.bf16.gmra.mxu1 %v2382_v4  ;;  %1150 = vmatprep.mubr.bf16.mxu0 %v2387_v8  ;;  %v2466_v4 = vld [vmem:[%s3095_s0 + $0x20c] ss:$36 sps:$4 sm:$0xff]   ;;  %v2473_v8 = vld [vmem:[%s3095_s0 + $0x20] ss:$36 sps:$4 sm:$0xff]  }
  0x45   :  { %1247 = vmatprep.mubr.bf16.mxu1 %v2389_v9  ;;  %v2474_v9 = vld [vmem:[%s3095_s0 + $0x140] ss:$36 sps:$4 sm:$0xff]  }
  0x4b   :  { %1151 = vmatmul.mubr.bf16.gmra.mxu0 %v2391_v12  ;;  %v2477_v12 = vld [vmem:[%s3095_s0 + $0xb0] ss:$36 sps:$4 sm:$0xff]  }
  0x4c   :  { %1248 = vmatmul.mubr.bf16.gmra.mxu1 %v2392_v15  ;;  %1158 = vmatprep.mubr.bf16.mxu0 %v2397_v16  ;;  %v2480_v15 = vld [vmem:[%s3095_s0 + $0x218] ss:$36 sps:$4 sm:$0xff]  }
  0x4d   :  { %1255 = vmatprep.mubr.bf16.mxu1 %v2399_v17 }
  0x53   :  { %1159 = vmatmul.mubr.bf16.gmra.mxu0 %v2401_v22 }
  0x54   :  { %1256 = vmatmul.mubr.bf16.gmra.mxu1 %v2402_v23  ;;  %1166 = vmatprep.mubr.bf16.mxu0 %v2407_v24 }
  0x55   :  { %1263 = vmatprep.mubr.bf16.mxu1 %v2409_v25 }
  0x5b   :  { %1167 = vmatmul.mubr.bf16.gmra.mxu0 %v2411_v30 }
  0x5c   :  { %1264 = vmatmul.mubr.bf16.gmra.mxu1 %v2412_v31  ;;  %1304 = vmatprep.mubr.bf16.mxu0 %v2419_v33 }
  0x5d   :  { %1401 = vmatprep.mubr.bf16.mxu1 %v2422_v34 }
  0x63   :  { %1305 = vmatmul.mubr.bf16.vlgmr.msra.gmra.mxu0 %v2417_v35 }
  0x64   :  { %1402 = vmatmul.mubr.bf16.vlgmr.msra.gmra.mxu1 %v2420_v36  ;;  %2258 = vmatpush3.bf16.msra.mxu0 %v2423_v32 }
  0x65   :  { %2297 = vmatpush3.bf16.msra.mxu1 %v2423_v32  ;;  %1312 = vmatprep.mubr.bf16.mxu0 %v2424_v37 }
  0x66   :  { %1409 = vmatprep.mubr.bf16.mxu1 %v2426_v38  ;;  %2259 = vmatprep.subr.bf16.mxu0 %v2430_v39 }
  0x67   :  { %2290 = vmatprep.subr.bf16.mxu1 %v2430_v39 }
  0x68   :  { %2260 = vmatpush3.bf16.msra.mxu0 %v2430_v39 }
  0x69   :  { %2298 = vmatpush3.bf16.msra.mxu1 %v2430_v39  ;;  %2261 = vmatprep.subr.bf16.mxu0 %v2437_v40 }
  0x6a   :  { %2291 = vmatprep.subr.bf16.mxu1 %v2437_v40 }
  0x6b   :  { %1313 = vmatmul.mubr.bf16.gmra.mxu0 %v2428_v41 }
  0x6c   :  { %1410 = vmatmul.mubr.bf16.gmra.mxu1 %v2429_v42  ;;  %1320 = vmatprep.mubr.bf16.mxu0 %v2431_v43 }
  0x6d   :  { %1417 = vmatprep.mubr.bf16.mxu1 %v2433_v44  ;;  %2262 = vmatpush3.bf16.msra.mxu0 %v2437_v40 }
  0x6e   :  { %2299 = vmatpush3.bf16.msra.mxu1 %v2437_v40  ;;  %2263 = vmatprep.subr.bf16.mxu0 %v2444_v45 }
  0x6f   :  { %2292 = vmatprep.subr.bf16.mxu1 %v2444_v45 }
  0x71   :  { %2264 = vmatpush3.bf16.msra.mxu0 %v2444_v45 }
  0x72   :  { %2300 = vmatpush3.bf16.msra.mxu1 %v2444_v45  ;;  %2265 = vmatprep.subr.bf16.mxu0 %v2451_v46 }
  0x73   :  { %1321 = vmatmul.mubr.bf16.gmra.mxu0 %v2435_v47  ;;  %2293 = vmatprep.subr.bf16.mxu1 %v2451_v46 }
  0x74   :  { %1418 = vmatmul.mubr.bf16.gmra.mxu1 %v2436_v48  ;;  %1328 = vmatprep.mubr.bf16.mxu0 %v2438_v49 }
  0x75   :  { %1425 = vmatprep.mubr.bf16.mxu1 %v2440_v50  ;;  %2266 = vmatpush3.bf16.msra.mxu0 %v2451_v46 }
  0x76   :  { %2301 = vmatpush3.bf16.msra.mxu1 %v2451_v46  ;;  %2267 = vmatprep.subr.bf16.mxu0 %v2458_v51 }
  0x77   :  { %2294 = vmatprep.subr.bf16.mxu1 %v2458_v51 }
  0x79   :  { %2268 = vmatpush3.bf16.msra.mxu0 %v2458_v51 }
  0x7a   :  { %2302 = vmatpush3.bf16.msra.mxu1 %v2458_v51  ;;  %2269 = vmatprep.subr.bf16.mxu0 %v2465_v53 }
  0x7b   :  { %1329 = vmatmul.mubr.bf16.gmra.mxu0 %v2442_v52  ;;  %2295 = vmatprep.subr.bf16.mxu1 %v2465_v53 }
  0x7c   :  { %1426 = vmatmul.mubr.bf16.gmra.mxu1 %v2443_v54  ;;  %1336 = vmatprep.mubr.bf16.mxu0 %v2445_v55 }
  0x7d   :  { %1433 = vmatprep.mubr.bf16.mxu1 %v2447_v56  ;;  %2270 = vmatpush3.bf16.msra.mxu0 %v2465_v53 }
  0x7e   :  { %2303 = vmatpush3.bf16.msra.mxu1 %v2465_v53  ;;  %2271 = vmatprep.subr.bf16.mxu0 %v2472_v57 }
  0x7f   :  { %2296 = vmatprep.subr.bf16.mxu1 %v2472_v57 }
  0x81   :  { %2272 = vmatpush3.bf16.msra.mxu0 %v2472_v57 }
  0x82   :  { %2304 = vmatpush3.bf16.msra.mxu1 %v2472_v57 }
  0x83   :  { %1337 = vmatmul.mubr.bf16.gmra.mxu0 %v2449_v58 }
  0x84   :  { %1434 = vmatmul.mubr.bf16.gmra.mxu1 %v2450_v59  ;;  %1344 = vmatprep.mubr.bf16.mxu0 %v2452_v60 }
  0x85   :  { %1441 = vmatprep.mubr.bf16.mxu1 %v2454_v61 }
  0x8b   :  { %1345 = vmatmul.mubr.bf16.gmra.mxu0 %v2456_v62 }
  0x8c   :  { %1442 = vmatmul.mubr.bf16.gmra.mxu1 %v2457_v63  ;;  %1352 = vmatprep.mubr.bf16.mxu0 %v2459_v0 }
  0x8d   :  { %1449 = vmatprep.mubr.bf16.mxu1 %v2461_v1 }
  0x93   :  { %1353 = vmatmul.mubr.bf16.gmra.mxu0 %v2463_v2 }
  0x94   :  { %1450 = vmatmul.mubr.bf16.gmra.mxu1 %v2464_v3  ;;  %1360 = vmatprep.mubr.bf16.mxu0 %v2466_v4 }
  0x95   :  { %1457 = vmatprep.mubr.bf16.mxu1 %v2468_v5 }
  0x9b   :  { %1361 = vmatmul.mubr.bf16.gmra.mxu0 %v2470_v6 }
  0x9c   :  { %1458 = vmatmul.mubr.bf16.gmra.mxu1 %v2471_v7  ;;  %2273 = vmatprep.mubr.bf16.mxu0 %v2473_v8 }
  0x9d   :  { %2281 = vmatprep.mubr.bf16.mxu1 %v2474_v9 }
  0xa3   :  { %2274 = vmatmul.mubr.bf16.vlgmr.msra.gmra.mxu0 %v2475_v10 }
  0xa4   :  { %2282 = vmatmul.mubr.bf16.vlgmr.msra.gmra.mxu1 %v2476_v11  ;;  %2277 = vmatprep.mubr.bf16.mxu0 %v2477_v12 }
  0xa5   :  { %2285 = vmatprep.mubr.bf16.mxu1 %v2478_v13 }
  0xab   :  { %2278 = vmatmul.mubr.bf16.gmra.mxu0 %v2479_v14 }
  0xac   :  { %2286 = vmatmul.mubr.bf16.gmra.mxu1 %v2480_v15 }
  0xe3   :  { %v2001_v16 = vpop.f32.mrf.mxu0 }
  0xe4   :  { %v2065_v17 = vpop.f32.mrf.mxu1 }
  0xe5   :  { %v2002_v18 = vpop.f32.mrf.mxu0 }
  0xe6   :  { %v2003_v19 = vadd.f32 %v2002_v18, %v2001_v16  ;;  %v2066_v20 = vpop.f32.mrf.mxu1 }
  0xe7   :  { %v2067_v21 = vadd.f32 %v2066_v20, %v2065_v17  ;;  %v2004_v22 = vpop.f32.mrf.mxu0 }
  0xe8   :  { %v2068_v23 = vpop.f32.mrf.mxu1 }
  0xe9   :  { %v2938_v24 = vadd.f32 %v2067_v21, %v2003_v19  ;;  %v2005_v25 = vpop.f32.mrf.mxu0 }
  0xea   :  { %v2006_v26 = vadd.f32 %v2005_v25, %v2004_v22  ;;  %v2069_v27 = vpop.f32.mrf.mxu1 }
  0xeb   :  { %v2070_v28 = vadd.f32 %v2069_v27, %v2068_v23  ;;  %v2007_v29 = vpop.f32.mrf.mxu0 }
  0xec   :  { %v2071_v30 = vpop.f32.mrf.mxu1 }
  0xed   :  { %v2940_v31 = vadd.f32 %v2070_v28, %v2006_v26  ;;  %v2008_v32 = vpop.f32.mrf.mxu0 }
  0xee   :  { %v2009_v33 = vadd.f32 %v2008_v32, %v2007_v29  ;;  %v2072_v34 = vpop.f32.mrf.mxu1 }
  0xef   :  { %v2073_v35 = vadd.f32 %v2072_v34, %v2071_v30  ;;  %v2010_v36 = vpop.f32.mrf.mxu0 }
  0xf0   :  { %v2074_v37 = vpop.f32.mrf.mxu1 }
  0xf1   :  { %v2942_v38 = vadd.f32 %v2073_v35, %v2009_v33  ;;  %v2011_v39 = vpop.f32.mrf.mxu0 }
  0xf2   :  { %v2012_v40 = vadd.f32 %v2011_v39, %v2010_v36  ;;  %v2075_v41 = vpop.f32.mrf.mxu1 }
  0xf3   :  { %v2076_v42 = vadd.f32 %v2075_v41, %v2074_v37  ;;  %v2013_v43 = vpop.f32.mrf.mxu0 }
  0xf4   :  { %v2077_v44 = vpop.f32.mrf.mxu1 }
  0xf5   :  { %v2944_v45 = vadd.f32 %v2076_v42, %v2012_v40  ;;  %v2014_v46 = vpop.f32.mrf.mxu0 }
  0xf6   :  { %v2015_v47 = vadd.f32 %v2014_v46, %v2013_v43  ;;  %v2078_v48 = vpop.f32.mrf.mxu1 }
  0xf7   :  { %v2079_v49 = vadd.f32 %v2078_v48, %v2077_v44  ;;  %v2016_v50 = vpop.f32.mrf.mxu0 }
  0xf8   :  { %v2080_v51 = vpop.f32.mrf.mxu1 }
  0xf9   :  { %v2946_v52 = vadd.f32 %v2079_v49, %v2015_v47  ;;  %v2017_v53 = vpop.f32.mrf.mxu0 }
  0xfa   :  { %v2018_v54 = vadd.f32 %v2017_v53, %v2016_v50  ;;  %v2081_v55 = vpop.f32.mrf.mxu1 }
  0xfb   :  { %v2082_v56 = vadd.f32 %v2081_v55, %v2080_v51  ;;  %v2019_v57 = vpop.f32.mrf.mxu0 }
  0xfc   :  { %v2083_v58 = vpop.f32.mrf.mxu1 }
  0xfd   :  { %v2948_v59 = vadd.f32 %v2082_v56, %v2018_v54  ;;  %v2020_v60 = vpop.f32.mrf.mxu0 }
  0xfe   :  { %v2021_v61 = vadd.f32 %v2020_v60, %v2019_v57  ;;  %v2084_v62 = vpop.f32.mrf.mxu1 }
  0xff   :  { %v2085_v63 = vadd.f32 %v2084_v62, %v2083_v58  ;;  %v2022_v0 = vpop.f32.mrf.mxu0 }
 0x100   :  { %v2086_v1 = vpop.f32.mrf.mxu1 }
 0x101   :  { %v2950_v2 = vadd.f32 %v2085_v63, %v2021_v61  ;;  %v2023_v3 = vpop.f32.mrf.mxu0 }
 0x102   :  { %v2024_v4 = vadd.f32 %v2023_v3, %v2022_v0  ;;  %v2087_v5 = vpop.f32.mrf.mxu1 }
 0x103   :  { %v2088_v6 = vadd.f32 %v2087_v5, %v2086_v1  ;;  %v2025_v7 = vpop.f32.mrf.mxu0 }
 0x104   :  { %v2089_v8 = vpop.f32.mrf.mxu1 }
 0x105   :  { %v2952_v9 = vadd.f32 %v2088_v6, %v2024_v4  ;;  %v2026_v10 = vpop.f32.mrf.mxu0 }
 0x106   :  { %v2027_v11 = vadd.f32 %v2026_v10, %v2025_v7  ;;  %v2090_v12 = vpop.f32.mrf.mxu1 }
 0x107   :  { %v2091_v13 = vadd.f32 %v2090_v12, %v2089_v8  ;;  %v2028_v14 = vpop.f32.mrf.mxu0 }
 0x108   :  { %v2092_v15 = vpop.f32.mrf.mxu1 }
 0x109   :  { %v2954_v16 = vadd.f32 %v2091_v13, %v2027_v11  ;;  %v2029_v17 = vpop.f32.mrf.mxu0 }
 0x10a   :  { %v2030_v18 = vadd.f32 %v2029_v17, %v2028_v14  ;;  %v2093_v19 = vpop.f32.mrf.mxu1 }
 0x10b   :  { %v2094_v20 = vadd.f32 %v2093_v19, %v2092_v15  ;;  %v2031_v21 = vpop.f32.mrf.mxu0 }
 0x10c   :  { %v2095_v22 = vpop.f32.mrf.mxu1 }
 0x10d   :  { %v2956_v23 = vadd.f32 %v2094_v20, %v2030_v18  ;;  %v2032_v25 = vpop.f32.mrf.mxu0 }
 0x10e   :  { %v2033_v26 = vadd.f32 %v2032_v25, %v2031_v21  ;;  %v2096_v27 = vpop.f32.mrf.mxu1 }
 0x10f   :  { %3099 = vst [vmem:[#allocation3_spill] sm:$0xff] %v2956_v23  ;;  %v2097_v28 = vadd.f32 %v2096_v27, %v2095_v22  ;;  %v2034_v29 = vpop.f32.mrf.mxu0 }
 0x110   :  { %v2098_v30 = vpop.f32.mrf.mxu1 }
 0x111   :  { %v2958_v32 = vadd.f32 %v2097_v28, %v2033_v26  ;;  %v2035_v33 = vpop.f32.mrf.mxu0 }
 0x112   :  { %v2036_v34 = vadd.f32 %v2035_v33, %v2034_v29  ;;  %v2099_v35 = vpop.f32.mrf.mxu1 }
 0x113   :  { %v2100_v36 = vadd.f32 %v2099_v35, %v2098_v30  ;;  %v2037_v37 = vpop.f32.mrf.mxu0 }
 0x114   :  { %v2101_v39 = vpop.f32.mrf.mxu1 }
 0x115   :  { %v2960_v40 = vadd.f32 %v2100_v36, %v2036_v34  ;;  %v2038_v41 = vpop.f32.mrf.mxu0 }
 0x116   :  { %v2039_v42 = vadd.f32 %v2038_v41, %v2037_v37  ;;  %v2102_v43 = vpop.f32.mrf.mxu1 }
 0x117   :  { %3100 = vst [vmem:[#allocation4_spill] sm:$0xff] %v2960_v40  ;;  %v2103_v44 = vadd.f32 %v2102_v43, %v2101_v39  ;;  %v2040_v46 = vpop.f32.mrf.mxu0 }
 0x118   :  { %v2104_v47 = vpop.f32.mrf.mxu1 }
 0x119   :  { %v2962_v48 = vadd.f32 %v2103_v44, %v2039_v42  ;;  %v2041_v49 = vpop.f32.mrf.mxu0 }
 0x11a   :  { %v2042_v50 = vadd.f32 %v2041_v49, %v2040_v46  ;;  %v2105_v51 = vpop.f32.mrf.mxu1 }
 0x11b   :  { %3101 = vst [vmem:[#allocation5_spill] sm:$0xff] %v2962_v48  ;;  %v2106_v53 = vadd.f32 %v2105_v51, %v2104_v47  ;;  %v2043_v54 = vpop.f32.mrf.mxu0 }
 0x11c   :  { %v2107_v55 = vpop.f32.mrf.mxu1 }
 0x11d   :  { %v2964_v56 = vadd.f32 %v2106_v53, %v2042_v50  ;;  %v2044_v57 = vpop.f32.mrf.mxu0 }
 0x11e   :  { %v2045_v58 = vadd.f32 %v2044_v57, %v2043_v54  ;;  %v2108_v60 = vpop.f32.mrf.mxu1 }
 0x11f   :  { %3102 = vst [vmem:[#allocation6_spill] sm:$0xff] %v2964_v56  ;;  %v2109_v61 = vadd.f32 %v2108_v60, %v2107_v55  ;;  %v2046_v62 = vpop.f32.mrf.mxu0 }
 0x120   :  { %v2110_v63 = vpop.f32.mrf.mxu1 }
 0x121   :  { %v2966_v0 = vadd.f32 %v2109_v61, %v2045_v58  ;;  %v2047_v1 = vpop.f32.mrf.mxu0 }
 0x122   :  { %v2048_v3 = vadd.f32 %v2047_v1, %v2046_v62  ;;  %v2111_v4 = vpop.f32.mrf.mxu1 }
 0x123   :  { %3103 = vst [vmem:[#allocation7_spill] sm:$0xff] %v2966_v0  ;;  %v2112_v5 = vadd.f32 %v2111_v4, %v2110_v63  ;;  %v2129_v6 = vpop.f32.mrf.mxu0 }
 0x124   :  { %v2193_v7 = vpop.f32.mrf.mxu1 }
 0x125   :  { %v2968_v8 = vadd.f32 %v2112_v5, %v2048_v3  ;;  %v2130_v10 = vpop.f32.mrf.mxu0 }
 0x126   :  { %v2131_v11 = vadd.f32 %v2130_v10, %v2129_v6  ;;  %v2194_v12 = vpop.f32.mrf.mxu1 }
 0x127   :  { %3104 = vst [vmem:[#allocation8_spill] sm:$0xff] %v2968_v8  ;;  %v2132_v13 = vpop.f32.mrf.mxu0  ;;  %v2195_v15 = vadd.f32 %v2194_v12, %v2193_v7 }
 0x128   :  { %v1307_v14 = vadd.f32 %v2131_v11, %v2938_v24  ;;  %v2196_v17 = vpop.f32.mrf.mxu1 }
 0x129   :  { %v2133_v18 = vpop.f32.mrf.mxu0 }
 0x12a   :  { %v2197_v19 = vpop.f32.mrf.mxu1  ;;  %v2971_v20 = vadd.f32 %v2195_v15, %v1307_v14  ;;  %v2134_v15 = vadd.f32 %v2133_v18, %v2132_v13 }
 0x12b   :  { %v2135_v21 = vpop.f32.mrf.mxu0 }
 0x12c   :  { %3105 = vst [vmem:[#allocation9_spill] sm:$0xff] %v2971_v20  ;;  %v2199_v22 = vpop.f32.mrf.mxu1 }
 0x12d   :  { %v2136_v25 = vpop.f32.mrf.mxu0 }
 0x12e   :  { %v2200_v26 = vpop.f32.mrf.mxu1  ;;  %v2137_v8 = vadd.f32 %v2136_v25, %v2135_v21 }
 0x12f   :  { %v2138_v27 = vpop.f32.mrf.mxu0 }
 0x130   :  { %v2202_v28 = vpop.f32.mrf.mxu1  ;;  %v1315_v23 = vadd.f32 %v2137_v8, %v2942_v38 }
 0x131   :  { %v2139_v29 = vpop.f32.mrf.mxu0 }
 0x132   :  { %v2203_v30 = vpop.f32.mrf.mxu1  ;;  %v2140_v20 = vadd.f32 %v2139_v29, %v2138_v27 }
 0x133   :  { %v2141_v33 = vpop.f32.mrf.mxu0 }
 0x134   :  { %v2205_v34 = vpop.f32.mrf.mxu1  ;;  %v1318_v13 = vadd.f32 %v2140_v20, %v2944_v45 }
 0x135   :  { %v2142_v35 = vpop.f32.mrf.mxu0 }
 0x136   :  { %v2206_v36 = vpop.f32.mrf.mxu1 }
 0x137   :  { %v2144_v37 = vpop.f32.mrf.mxu0 }
 0x138   :  { %v2208_v24 = vpop.f32.mrf.mxu1 }
 0x139   :  { %v2145_v39 = vpop.f32.mrf.mxu0 }
 0x13a   :  { %v2209_v41 = vpop.f32.mrf.mxu1  ;;  %v2146_v48 = vadd.f32 %v2145_v39, %v2144_v37  ;;  %v2204_v37 = vadd.f32 %v2203_v30, %v2202_v28 }
 0x13b   :  { %v2147_v42 = vpop.f32.mrf.mxu0  ;;  %v2210_v38 = vadd.f32 %v2209_v41, %v2208_v24 }
 0x13c   :  { %v2211_v43 = vpop.f32.mrf.mxu1  ;;  %v1326_v27 = vadd.f32 %v2146_v48, %v2948_v59 }
 0x13d   :  { %v2148_v44 = vpop.f32.mrf.mxu0 }
 0x13e   :  { %v2212_v46 = vpop.f32.mrf.mxu1  ;;  %v3003_v30 = vadd.f32 %v2210_v38, %v1326_v27 }
 0x13f   :  { %v2150_v47 = vpop.f32.mrf.mxu0  ;;  %v2213_v8 = vadd.f32 %v2212_v46, %v2211_v43  ;;  %v3114_v43 = vld [vmem:[#allocation4_spill] sm:$0xff] }
 0x140   :  { %v2973_v49 = vpop.f32.mrf.mxu1 }
 0x141   :  { %3106 = vst [vmem:[#allocation10_spill] sm:$0xff] %v2973_v49  ;;  %v2151_v50 = vpop.f32.mrf.mxu0  ;;  %v2198_v49 = vadd.f32 %v2197_v19, %v2196_v17 }
 0x142   :  { %v2975_v51 = vpop.f32.mrf.mxu1 }
 0x143   :  { %3107 = vst [vmem:[#allocation11_spill] sm:$0xff] %v2975_v51  ;;  %v2153_v53 = vpop.f32.mrf.mxu0  ;;  %v1310_v51 = vadd.f32 %v2134_v15, %v2940_v31 }
 0x144   :  { %v2977_v54 = vpop.f32.mrf.mxu1 }
 0x145   :  { %3108 = vst [vmem:[#allocation12_spill] sm:$0xff] %v2977_v54  ;;  %v2154_v55 = vpop.f32.mrf.mxu0  ;;  %v1407_v59 = vadd.f32 %v2198_v49, %v1310_v51 }
 0x146   :  { %v2979_v57 = vpop.f32.mrf.mxu1  ;;  %v2155_v31 = vadd.f32 %v2154_v55, %v2153_v53  ;;  %v3119_v55 = vld [vmem:[#allocation5_spill] sm:$0xff] }
 0x147   :  { %3109 = vst [vmem:[#allocation13_spill] sm:$0xff] %v2979_v57  ;;  %v2156_v58 = vpop.f32.mrf.mxu0 }
 0x148   :  { %v2981_v60 = vpop.f32.mrf.mxu1 }
 0x149   :  { %3110 = vst [vmem:[#allocation14_spill] sm:$0xff] %v2981_v60  ;;  %v2157_v61 = vpop.f32.mrf.mxu0  ;;  %v2143_v60 = vadd.f32 %v2142_v35, %v2141_v33  ;;  %v2152_v33 = vadd.f32 %v2151_v50, %v2150_v47 }
 0x14a   :  { %v2983_v62 = vpop.f32.mrf.mxu1  ;;  %v2158_v17 = vadd.f32 %v2157_v61, %v2156_v58  ;;  %v3116_v50 = vld [vmem:[#allocation11_spill] sm:$0xff] }
 0x14b   :  { %3111 = vst [vmem:[#allocation15_spill] sm:$0xff] %v2983_v62  ;;  %v2159_v63 = vpop.f32.mrf.mxu0  ;;  %v2149_v62 = vadd.f32 %v2148_v44, %v2147_v42  ;;  %v1323_v25 = vadd.f32 %v2143_v60, %v2946_v52  ;;  %v2207_v42 = vadd.f32 %v2206_v36, %v2205_v34  ;;  %v1415_v44 = vadd.f32 %v2204_v37, %v1318_v13  ;;  %v3113_v36 = vld [vmem:[#allocation3_spill] sm:$0xff] }
 0x14c   :  { %v2223_v1 = vpop.f32.mrf.mxu1  ;;  %v1339_v34 = vadd.f32 %v2155_v31, %v2954_v16  ;;  %v1342_v24 = vadd.f32 %v2158_v17, %v3113_v36  ;;  %v3117_v51 = vld [vmem:[#allocation12_spill] sm:$0xff]  ;;  %v3028_v31 = vld [vmem:[%s3097_s3] ss:$0 sm:$0xff] }
 0x14d   :  { %v2160_v3 = vpop.f32.mrf.mxu0  ;;  %v1331_v29 = vadd.f32 %v2149_v62, %v2950_v2  ;;  %v1334_v2 = vadd.f32 %v2152_v33, %v2952_v9  ;;  %v3001_v28 = vadd.f32 %v2207_v42, %v1323_v25 }
 0x14e   :  { %v2224_v4 = vpop.f32.mrf.mxu1  ;;  %v2161_v18 = vadd.f32 %v2160_v3, %v2159_v63  ;;  %v3118_v9 = vld [vmem:[#allocation13_spill] sm:$0xff] }
 0x14f   :  { %v2162_v5 = vpop.f32.mrf.mxu0  ;;  %v2999_v47 = vadd.f32 %v2213_v8, %v1331_v29  ;;  %v2225_v41 = vadd.f32 %v2224_v4, %v2223_v1  ;;  %v2219_v53 = vadd.f32 %v3118_v9, %v3117_v51  ;;  %v3018_v1 = vld [vmem:[%s3096_s2] ss:$0 sm:$0xff] }
 0x150   :  { %v2226_v6 = vpop.f32.mrf.mxu1  ;;  %v1347_v20 = vadd.f32 %v2161_v18, %v2958_v32  ;;  %v3120_v62 = vld [vmem:[#allocation14_spill] sm:$0xff] }
 0x151   :  { %v2163_v7 = vpop.f32.mrf.mxu0  ;;  %v1436_v27 = vadd.f32 %v2219_v53, %v1339_v34 }
 0x152   :  { %v2227_v10 = vpop.f32.mrf.mxu1  ;;  %v2164_v19 = vadd.f32 %v2163_v7, %v2162_v5  ;;  %v3121_v63 = vld [vmem:[#allocation15_spill] sm:$0xff]  ;;  %v1444_v4 = vadd.f32 %v2225_v41, %v1347_v20  ;;  %v3126_v20 = vld [vmem:[#allocation6_spill] sm:$0xff] }
 0x153   :  { %v2165_v11 = vpop.f32.mrf.mxu0  ;;  %v2222_v3 = vadd.f32 %v3121_v63, %v3120_v62  ;;  %v2228_v16 = vadd.f32 %v2227_v10, %v2226_v6  ;;  %v3123_v10 = vld [vmem:[#allocation7_spill] sm:$0xff] }
 0x154   :  { %v2985_v12 = vpop.f32.mrf.mxu1  ;;  %v1350_v32 = vadd.f32 %v2164_v19, %v3114_v43 }
 0x155   :  { %3112 = vst [vmem:[#allocation16_spill] sm:$0xff] %v2985_v12  ;;  %v2166_v14 = vpop.f32.mrf.mxu0  ;;  %v2201_v12 = vadd.f32 %v2200_v26, %v2199_v22  ;;  %v1439_v6 = vadd.f32 %v2222_v3, %v1342_v24 }
 0x156   :  { %v2230_v56 = vpop.f32.mrf.mxu1  ;;  %v2167_v22 = vadd.f32 %v2166_v14, %v2165_v11  ;;  %v1447_v29 = vadd.f32 %v2228_v16, %v1350_v32 }
 0x157   :  { %v2168_v0 = vpop.f32.mrf.mxu0  ;;  %v1412_v52 = vadd.f32 %v2201_v12, %v1315_v23  ;;  %v3115_v23 = vld [vmem:[#allocation10_spill] sm:$0xff] }
 0x158   :  { %v2987_v57 = vpop.f32.mrf.mxu1  ;;  %v2216_v49 = vadd.f32 %v3116_v50, %v3115_v23  ;;  %v1355_v58 = vadd.f32 %v2167_v22, %v3119_v55 }
 0x159   :  { %v2169_v54 = vpop.f32.mrf.mxu0 }
 0x15a   :  { %v2990_v40 = vpop.f32.mrf.mxu1  ;;  %v2170_v14 = vadd.f32 %v2169_v54, %v2168_v0  ;;  %v3021_v18 = vadd.f32 %v2216_v49, %v1334_v2 }
 0x15b   :  { %v2171_v21 = vpop.f32.mrf.mxu0  ;;  %v2234_v19 = vadd.f32 %v2990_v40, %v2987_v57 }
 0x15c   :  { %v2235_v35 = vpop.f32.mrf.mxu1  ;;  %v3122_v11 = vld [vmem:[#allocation16_spill] sm:$0xff] }
 0x15d   :  { %v2172_v39 = vpop.f32.mrf.mxu0  ;;  %v2231_v12 = vadd.f32 %v2230_v56, %v3122_v11  ;;  %v3124_v56 = vld [vmem:[#allocation9_spill] sm:$0xff] }
 0x15e   :  { %v2236_v45 = vpop.f32.mrf.mxu1  ;;  %v2173_v60 = vadd.f32 %v2172_v39, %v2171_v21  ;;  %v3125_v39 = vld [vmem:[#allocation8_spill] sm:$0xff] }
 0x15f   :  { %v2174_v26 = vpop.f32.mrf.mxu0  ;;  %v1452_v17 = vadd.f32 %v2231_v12, %v1355_v58 }
 0x160   :  { %v2238_v48 = vpop.f32.mrf.mxu1  ;;  %v1363_v33 = vadd.f32 %v2173_v60, %v3123_v10 }
 0x161   :  { %v2175_v46 = vpop.f32.mrf.mxu0 }
 0x162   :  { %v2239_v61 = vpop.f32.mrf.mxu1  ;;  %v2176_v5 = vadd.f32 %v2175_v46, %v2174_v26  ;;  %v1358_v26 = vadd.f32 %v2170_v14, %v3126_v20 }
 0x163   :  { %v2275_v7 = vpop.f32.mrf.mxu0  ;;  %v2240_v24 = vadd.f32 %v2239_v61, %v2238_v48 }
 0x164   :  { %v1509_v15 = vadd.f32 %v2275_v7, %v1412_v52  ;;  %v2283_v13 = vpop.f32.mrf.mxu1  ;;  %v1366_v42 = vadd.f32 %v2176_v5, %v3125_v39  ;;  %v2237_v52 = vadd.f32 %v2236_v45, %v2235_v35  ;;  %v1455_v39 = vadd.f32 %v2234_v19, %v1358_v26 }
 0x165   :  { %v1541_v21 = vadd.f32 %v2283_v13, %v1444_v4  ;;  %v1500_v25 = vpop.f32.mrf.mxu0 }
 0x166   :  { %v1623_v37 = vmul.f32 %v3018_v1, %v1509_v15  ;;  %v1501_v0 = vadd.f32 %v1500_v25, %v3124_v56  ;;  %v1532_v54 = vpop.f32.mrf.mxu1  ;;  %v1460_v49 = vadd.f32 %v2237_v52, %v1363_v33  ;;  %v1463_v48 = vadd.f32 %v2240_v24, %v1366_v42 }
 0x167   :  { %v1631_v38 = vmul.f32 %v3018_v1, %v1541_v21  ;;  %v1533_v8 = vadd.f32 %v1532_v54, %v1436_v27  ;;  %v2276_v22 = vpop.f32.mrf.mxu0 }
 0x168   :  { %v1621_v2 = vmul.f32 %v3018_v1, %v1501_v0  ;;  %v1512_v34 = vadd.f32 %v2276_v22, %v1415_v44  ;;  %v2284_v36 = vpop.f32.mrf.mxu1  ;;  %v1646_v41 = vadd.f32 %v3028_v31, %v1623_v37 }
 0x169   :  { %v1629_v43 = vmul.f32 %v3018_v1, %v1533_v8  ;;  %v1544_v32 = vadd.f32 %v2284_v36, %v1447_v29  ;;  %v1503_v40 = vpop.f32.mrf.mxu0  ;;  %v1654_v57 = vadd.f32 %v3028_v31, %v1631_v38 }
 0x16a   :  { %v1624_v46 = vmul.f32 %v3018_v1, %v1512_v34  ;;  %v1504_v23 = vadd.f32 %v1503_v40, %v1407_v59  ;;  %v1535_v50 = vpop.f32.mrf.mxu1  ;;  %v1644_v35 = vadd.f32 %v3028_v31, %v1621_v2  ;;  %v1662_v61 = vmax.f32 %v1646_v41, 0.0 }
 0x16b   :  { %v1632_v45 = vmul.f32 %v3018_v1, %v1544_v32  ;;  %v1536_v44 = vadd.f32 %v1535_v50, %v1439_v6  ;;  %v2279_v51 = vpop.f32.mrf.mxu0  ;;  %v1652_v9 = vadd.f32 %v3028_v31, %v1629_v43  ;;  %v1670_v16 = vmax.f32 %v1654_v57, 0.0 }
 0x16c   :  { %v1647_v53 = vadd.f32 %v3028_v31, %v1624_v46  ;;  %v1622_v55 = vmul.f32 %v3018_v1, %v1504_v23  ;;  %v1525_v58 = vadd.f32 %v2279_v51, %v2999_v47  ;;  %v2287_v60 = vpop.f32.mrf.mxu1  ;;  %v1660_v12 = vmax.f32 %v1644_v35, 0.0 }
 0x16d   :  { %v1655_v59 = vadd.f32 %v3028_v31, %v1632_v45  ;;  %v1630_v62 = vmul.f32 %v3018_v1, %v1536_v44  ;;  %v1557_v63 = vadd.f32 %v2287_v60, %v1460_v49  ;;  %v1516_v3 = vpop.f32.mrf.mxu0  ;;  %v1668_v21 = vmax.f32 %v1652_v9, 0.0 }
 0x16e   :  { %v1663_v5 = vmax.f32 %v1647_v53, 0.0  ;;  %v1645_v7 = vadd.f32 %v3028_v31, %v1622_v55  ;;  %v1517_v4 = vadd.f32 %v1516_v3, %v3001_v28  ;;  %v1548_v11 = vpop.f32.mrf.mxu1  ;;  %v1627_v29 = vmul.f32 %v3018_v1, %v1525_v58 }
 0x16f   :  { %v1671_v14 = vmax.f32 %v1655_v59, 0.0  ;;  %v1653_v15 = vadd.f32 %v3028_v31, %v1630_v62  ;;  %v1549_v47 = vadd.f32 %v1548_v11, %v1452_v17  ;;  %v2280_v13 = vpop.f32.mrf.mxu0  ;;  %v1635_v37 = vmul.f32 %v3018_v1, %v1557_v63 }
 0x170   :  { %v1946_v25 = vpack.c.bf16 %v1663_v5, %v1662_v61  ;;  %v1661_v27 = vmax.f32 %v1645_v7, 0.0  ;;  %v2288_v6 = vpop.f32.mrf.mxu1  ;;  %v1625_v56 = vmul.f32 %v3018_v1, %v1517_v4  ;;  %v1528_v17 = vadd.f32 %v2280_v13, %v3021_v18 }
 0x171   :  { %v1966_v10 = vpack.c.bf16 %v1671_v14, %v1670_v16  ;;  %v1669_v33 = vmax.f32 %v1653_v15, 0.0  ;;  %v1519_v28 = vpop.f32.mrf.mxu0  ;;  %v1633_v54 = vmul.f32 %v3018_v1, %v1549_v47  ;;  %v1560_v8 = vadd.f32 %v2288_v6, %v1463_v48 }
 0x172   :  { %1978 = vst [vmem:[%s3098_s4 + $0x8] sm:$0xff] %v1946_v25   ;;  %v1941_v0 = vpack.c.bf16 %v1661_v27, %v1660_v12  ;;  %v1551_v42 = vpop.f32.mrf.mxu1  ;;  %v1650_v22 = vadd.f32 %v3028_v31, %v1627_v29  ;;  %v1628_v20 = vmul.f32 %v3018_v1, %v1528_v17  ;;  %v1520_v52 = vadd.f32 %v1519_v28, %v3003_v30 }
 0x173   :  { %1982 = vst [vmem:[%s3098_s4 + $0x28] sm:$0xff] %v1966_v10   ;;  %v1961_v38 = vpack.c.bf16 %v1669_v33, %v1668_v21  ;;  %v1552_v2 = vadd.f32 %v1551_v42, %v1455_v39  ;;  %v1658_v18 = vadd.f32 %v3028_v31, %v1635_v37  ;;  %v1648_v19 = vadd.f32 %v3028_v31, %v1625_v56 }
 0x174   :  { %1942 = vst [vmem:[%s3098_s4] sm:$0xff] %v1941_v0   ;;  %v1636_v26 = vmul.f32 %v3018_v1, %v1560_v8  ;;  %v1656_v34 = vadd.f32 %v3028_v31, %v1633_v54  ;;  %v1651_v36 = vadd.f32 %v3028_v31, %v1628_v20  ;;  %v1626_v24 = vmul.f32 %v3018_v1, %v1520_v52 }
 0x175   :  { %1981 = vst [vmem:[%s3098_s4 + $0x20] sm:$0xff] %v1961_v38   ;;  %v1634_v41 = vmul.f32 %v3018_v1, %v1552_v2  ;;  %v1666_v43 = vmax.f32 %v1650_v22, 0.0  ;;  %v1674_v46 = vmax.f32 %v1658_v18, 0.0  ;;  %v1664_v23 = vmax.f32 %v1648_v19, 0.0 }
 0x176   :  { %v1659_v30 = vadd.f32 %v3028_v31, %v1636_v26  ;;  %v1667_v32 = vmax.f32 %v1651_v36, 0.0  ;;  %v1649_v40 = vadd.f32 %v3028_v31, %v1626_v24  ;;  %v1672_v49 = vmax.f32 %v1656_v34, 0.0 }
 0x177   :  { %v1657_v57 = vadd.f32 %v3028_v31, %v1634_v41 }
 0x178   :  { %v1675_v50 = vmax.f32 %v1659_v30, 0.0  ;;  %v1956_v35 = vpack.c.bf16 %v1667_v32, %v1666_v43  ;;  %v1665_v45 = vmax.f32 %v1649_v40, 0.0 }
 0x179   :  { %v1673_v44 = vmax.f32 %v1657_v57, 0.0 }
 0x17a   :  { %v1976_v51 = vpack.c.bf16 %v1675_v50, %v1674_v46  ;;  %1980 = vst [vmem:[%s3098_s4 + $0x18] sm:$0xff] %v1956_v35   ;;  %v1951_v1 = vpack.c.bf16 %v1665_v45, %v1664_v23 }
 0x17b   :  { %v1971_v48 = vpack.c.bf16 %v1673_v44, %v1672_v49 }
 0x17c   :  { %1984 = vst [vmem:[%s3098_s4 + $0x38] sm:$0xff] %v1976_v51   ;;  %1979 = vst [vmem:[%s3098_s4 + $0x10] sm:$0xff] %v1951_v1  }
 0x17d   :  { %1983 = vst [vmem:[%s3098_s4 + $0x30] sm:$0xff] %v1971_v48  }

// kernel: custom_cnn_forward.11
= control target key start
LH: loop header
LB: loop body
LE: loop exit
PB: predicated region body
PF: predicated region fallthrough
CT: control target
= control target key end

     0   :  { %s2345_s1 = inlined_call_operand.vmem [shape: bf16[1152,256], index: 1, kind: input, shape index: {}]   ;;  %s2346_s0 = inlined_call_operand.vmem [shape: bf16[32,1152], index: 0, kind: input, shape index: {}]   ;;  %s2347_s2 = inlined_call_operand.vmem [shape: f32[1,256], index: 2, kind: input, shape index: {}]   ;;  %s2348_s3 = inlined_call_operand.vmem [shape: f32[1,256], index: 3, kind: input, shape index: {}]   ;;  %s2349_s4 = inlined_call_operand.vmem [shape: bf16[32,256], index: 4, kind: output, shape index: {}]  }
   0x1   :  { %v1573_v0 = vld [vmem:[%s2345_s1 + $0x74] ss:$8 sps:$4 sm:$0xff]   ;;  %v1577_v2 = vld [vmem:[%s2345_s1 + $0x70] ss:$8 sps:$4 sm:$0xff]   ;;  %v1579_v4 = vld [vmem:[%s2345_s1 + $0x64] ss:$8 sps:$4 sm:$0xff]  }
   0x2   :  { %v1575_v1 = vld [vmem:[%s2345_s1 + $0x174] ss:$8 sps:$4 sm:$0xff]   ;;  %1014 = vmatprep.subr.bf16.mxu0 %v1573_v0  ;;  %v1578_v3 = vld [vmem:[%s2345_s1 + $0x170] ss:$8 sps:$4 sm:$0xff]   ;;  %v1581_v5 = vld [vmem:[%s2345_s1 + $0x164] ss:$8 sps:$4 sm:$0xff]  }
   0x3   :  { %1067 = vmatprep.subr.bf16.mxu1 %v1575_v1  ;;  %1015 = vmatpush1.bf16.msra.mxu0 %v1577_v2  ;;  %v1583_v6 = vld [vmem:[%s2345_s1 + $0x60] ss:$8 sps:$4 sm:$0xff]   ;;  %v1585_v8 = vld [vmem:[%s2345_s1 + $0x54] ss:$8 sps:$4 sm:$0xff]   ;;  %v1589_v10 = vld [vmem:[%s2345_s1 + $0x50] ss:$8 sps:$4 sm:$0xff]  }
   0x4   :  { %1068 = vmatpush1.bf16.msra.mxu1 %v1578_v3  ;;  %1016 = vmatprep.subr.bf16.mxu0 %v1579_v4  ;;  %v1584_v7 = vld [vmem:[%s2345_s1 + $0x160] ss:$8 sps:$4 sm:$0xff]   ;;  %v1587_v9 = vld [vmem:[%s2345_s1 + $0x154] ss:$8 sps:$4 sm:$0xff]   ;;  %v1590_v11 = vld [vmem:[%s2345_s1 + $0x150] ss:$8 sps:$4 sm:$0xff]  }
   0x5   :  { %1069 = vmatprep.subr.bf16.mxu1 %v1581_v5  ;;  %v1591_v12 = vld [vmem:[%s2345_s1 + $0x44] ss:$8 sps:$4 sm:$0xff]   ;;  %v1595_v14 = vld [vmem:[%s2345_s1 + $0x40] ss:$8 sps:$4 sm:$0xff]   ;;  %v1597_v16 = vld [vmem:[%s2345_s1 + $0x34] ss:$8 sps:$4 sm:$0xff]  }
   0x6   :  { %v1593_v13 = vld [vmem:[%s2345_s1 + $0x144] ss:$8 sps:$4 sm:$0xff]   ;;  %v1596_v15 = vld [vmem:[%s2345_s1 + $0x140] ss:$8 sps:$4 sm:$0xff]   ;;  %v1599_v17 = vld [vmem:[%s2345_s1 + $0x134] ss:$8 sps:$4 sm:$0xff]  }
   0x7   :  { %1017 = vmatpush1.bf16.msra.mxu0 %v1583_v6  ;;  %v1601_v18 = vld [vmem:[%s2345_s1 + $0x30] ss:$8 sps:$4 sm:$0xff]   ;;  %v1603_v20 = vld [vmem:[%s2345_s1 + $0x24] ss:$8 sps:$4 sm:$0xff]   ;;  %v1607_v22 = vld [vmem:[%s2345_s1 + $0x20] ss:$8 sps:$4 sm:$0xff]  }
   0x8   :  { %1070 = vmatpush1.bf16.msra.mxu1 %v1584_v7  ;;  %1018 = vmatprep.subr.bf16.mxu0 %v1585_v8  ;;  %v1602_v19 = vld [vmem:[%s2345_s1 + $0x130] ss:$8 sps:$4 sm:$0xff]   ;;  %v1605_v21 = vld [vmem:[%s2345_s1 + $0x124] ss:$8 sps:$4 sm:$0xff]   ;;  %v1608_v23 = vld [vmem:[%s2345_s1 + $0x120] ss:$8 sps:$4 sm:$0xff]  }
   0x9   :  { %1071 = vmatprep.subr.bf16.mxu1 %v1587_v9  ;;  %v1609_v24 = vld [vmem:[%s2345_s1 + $0x14] ss:$8 sps:$4 sm:$0xff]   ;;  %v1613_v26 = vld [vmem:[%s2345_s1 + $0x10] ss:$8 sps:$4 sm:$0xff]   ;;  %v1615_v28 = vld [vmem:[%s2345_s1 + $0x4] ss:$8 sps:$4 sm:$0xff]  }
   0xa   :  { %v1611_v25 = vld [vmem:[%s2345_s1 + $0x114] ss:$8 sps:$4 sm:$0xff]   ;;  %v1614_v27 = vld [vmem:[%s2345_s1 + $0x110] ss:$8 sps:$4 sm:$0xff]   ;;  %v1617_v29 = vld [vmem:[%s2345_s1 + $0x104] ss:$8 sps:$4 sm:$0xff]  }
   0xb   :  { %1019 = vmatpush1.bf16.msra.mxu0 %v1589_v10  ;;  %v1619_v30 = vld [vmem:[%s2345_s1] ss:$8 sps:$4 sm:$0xff]   ;;  %v1621_v32 = vld [vmem:[%s2345_s1 + $0xf4] ss:$8 sps:$4 sm:$0xff]   ;;  %v1625_v34 = vld [vmem:[%s2345_s1 + $0xf0] ss:$8 sps:$4 sm:$0xff]  }
   0xc   :  { %1072 = vmatpush1.bf16.msra.mxu1 %v1590_v11  ;;  %1020 = vmatprep.subr.bf16.mxu0 %v1591_v12  ;;  %v1620_v31 = vld [vmem:[%s2345_s1 + $0x100] ss:$8 sps:$4 sm:$0xff]   ;;  %v1623_v33 = vld [vmem:[%s2345_s1 + $0x1f4] ss:$8 sps:$4 sm:$0xff]   ;;  %v1626_v35 = vld [vmem:[%s2345_s1 + $0x1f0] ss:$8 sps:$4 sm:$0xff]  }
   0xd   :  { %1073 = vmatprep.subr.bf16.mxu1 %v1593_v13  ;;  %v1627_v36 = vld [vmem:[%s2345_s1 + $0xe4] ss:$8 sps:$4 sm:$0xff]   ;;  %v1631_v38 = vld [vmem:[%s2345_s1 + $0xe0] ss:$8 sps:$4 sm:$0xff]   ;;  %v1633_v40 = vld [vmem:[%s2345_s1 + $0xd4] ss:$8 sps:$4 sm:$0xff]  }
   0xe   :  { %v1629_v37 = vld [vmem:[%s2345_s1 + $0x1e4] ss:$8 sps:$4 sm:$0xff]   ;;  %v1632_v39 = vld [vmem:[%s2345_s1 + $0x1e0] ss:$8 sps:$4 sm:$0xff]   ;;  %v1635_v41 = vld [vmem:[%s2345_s1 + $0x1d4] ss:$8 sps:$4 sm:$0xff]  }
   0xf   :  { %1021 = vmatpush1.bf16.msra.mxu0 %v1595_v14  ;;  %v1637_v42 = vld [vmem:[%s2345_s1 + $0xd0] ss:$8 sps:$4 sm:$0xff]   ;;  %v1639_v44 = vld [vmem:[%s2345_s1 + $0xc4] ss:$8 sps:$4 sm:$0xff]   ;;  %v1643_v46 = vld [vmem:[%s2345_s1 + $0xc0] ss:$8 sps:$4 sm:$0xff]  }
  0x10   :  { %1074 = vmatpush1.bf16.msra.mxu1 %v1596_v15  ;;  %1022 = vmatprep.subr.bf16.mxu0 %v1597_v16  ;;  %v1638_v43 = vld [vmem:[%s2345_s1 + $0x1d0] ss:$8 sps:$4 sm:$0xff]   ;;  %v1641_v45 = vld [vmem:[%s2345_s1 + $0x1c4] ss:$8 sps:$4 sm:$0xff]   ;;  %v1644_v47 = vld [vmem:[%s2345_s1 + $0x1c0] ss:$8 sps:$4 sm:$0xff]  }
  0x11   :  { %1075 = vmatprep.subr.bf16.mxu1 %v1599_v17  ;;  %v1645_v48 = vld [vmem:[%s2345_s1 + $0xb4] ss:$8 sps:$4 sm:$0xff]   ;;  %v1671_v49 = vld [vmem:[%s2346_s0 + $0x4] ss:$36 sps:$4 sm:$0xff]   ;;  %v1674_v51 = vld [vmem:[%s2346_s0 + $0xc] ss:$36 sps:$4 sm:$0xff]  }
  0x12   :  { %v1647_v50 = vld [vmem:[%s2345_s1 + $0x1b4] ss:$8 sps:$4 sm:$0xff]   ;;  %1046 = vmatprep.mubr.bf16.mxu0 %v1671_v49  ;;  %v1649_v52 = vld [vmem:[%s2345_s1 + $0xb0] ss:$8 sps:$4 sm:$0xff]   ;;  %1099 = vmatprep.mubr.bf16.mxu1 %v1674_v51  ;;  %v1651_v54 = vld [vmem:[%s2345_s1 + $0xa4] ss:$8 sps:$4 sm:$0xff]  }
  0x13   :  { %1023 = vmatpush1.bf16.msra.mxu0 %v1601_v18  ;;  %v1650_v53 = vld [vmem:[%s2345_s1 + $0x1b0] ss:$8 sps:$4 sm:$0xff]   ;;  %v1653_v55 = vld [vmem:[%s2345_s1 + $0x1a4] ss:$8 sps:$4 sm:$0xff]   ;;  %v1655_v56 = vld [vmem:[%s2345_s1 + $0xa0] ss:$8 sps:$4 sm:$0xff]  }
  0x14   :  { %1076 = vmatpush1.bf16.msra.mxu1 %v1602_v19  ;;  %1024 = vmatprep.subr.bf16.mxu0 %v1603_v20  ;;  %v1656_v57 = vld [vmem:[%s2345_s1 + $0x1a0] ss:$8 sps:$4 sm:$0xff]   ;;  %v1657_v58 = vld [vmem:[%s2345_s1 + $0x94] ss:$8 sps:$4 sm:$0xff]   ;;  %v1661_v60 = vld [vmem:[%s2345_s1 + $0x90] ss:$8 sps:$4 sm:$0xff]  }
  0x15   :  { %1077 = vmatprep.subr.bf16.mxu1 %v1605_v21  ;;  %v1659_v59 = vld [vmem:[%s2345_s1 + $0x194] ss:$8 sps:$4 sm:$0xff]   ;;  %v1662_v61 = vld [vmem:[%s2345_s1 + $0x190] ss:$8 sps:$4 sm:$0xff]   ;;  %v1663_v62 = vld [vmem:[%s2345_s1 + $0x84] ss:$8 sps:$4 sm:$0xff]  }
  0x16   :  { %v1665_v63 = vld [vmem:[%s2345_s1 + $0x184] ss:$8 sps:$4 sm:$0xff]   ;;  %v1667_v0 = vld [vmem:[%s2345_s1 + $0x80] ss:$8 sps:$4 sm:$0xff]   ;;  %v1677_v2 = vld [vmem:[%s2345_s1 + $0x274] ss:$8 sps:$4 sm:$0xff]  }
  0x17   :  { %1025 = vmatpush1.bf16.msra.mxu0 %v1607_v22  ;;  %v1668_v1 = vld [vmem:[%s2345_s1 + $0x180] ss:$8 sps:$4 sm:$0xff]   ;;  %v1680_v3 = vld [vmem:[%s2345_s1 + $0x374] ss:$8 sps:$4 sm:$0xff]   ;;  %v1675_v6 = vld [vmem:[%s2345_s1 + $0x270] ss:$8 sps:$4 sm:$0xff]  }
  0x18   :  { %1078 = vmatpush1.bf16.msra.mxu1 %v1608_v23  ;;  %1026 = vmatprep.subr.bf16.mxu0 %v1609_v24  ;;  %v1669_v4 = vld [vmem:[%s2346_s0] ss:$36 sps:$4 sm:$0xff]   ;;  %v1672_v5 = vld [vmem:[%s2346_s0 + $0x8] ss:$36 sps:$4 sm:$0xff]   ;;  %v1678_v7 = vld [vmem:[%s2345_s1 + $0x370] ss:$8 sps:$4 sm:$0xff]  }
  0x19   :  { %1079 = vmatprep.subr.bf16.mxu1 %v1611_v25  ;;  %v1683_v8 = vld [vmem:[%s2345_s1 + $0x264] ss:$8 sps:$4 sm:$0xff]   ;;  %v1681_v10 = vld [vmem:[%s2345_s1 + $0x260] ss:$8 sps:$4 sm:$0xff]   ;;  %v1689_v12 = vld [vmem:[%s2345_s1 + $0x254] ss:$8 sps:$4 sm:$0xff]  }
  0x1a   :  { %v1686_v9 = vld [vmem:[%s2345_s1 + $0x364] ss:$8 sps:$4 sm:$0xff]   ;;  %v1684_v11 = vld [vmem:[%s2345_s1 + $0x360] ss:$8 sps:$4 sm:$0xff]   ;;  %v1692_v13 = vld [vmem:[%s2345_s1 + $0x354] ss:$8 sps:$4 sm:$0xff]  }
  0x1b   :  { %1027 = vmatpush1.bf16.msra.mxu0 %v1613_v26  ;;  %v1687_v14 = vld [vmem:[%s2345_s1 + $0x250] ss:$8 sps:$4 sm:$0xff]   ;;  %v1695_v16 = vld [vmem:[%s2345_s1 + $0x244] ss:$8 sps:$4 sm:$0xff]   ;;  %v1693_v18 = vld [vmem:[%s2345_s1 + $0x240] ss:$8 sps:$4 sm:$0xff]  }
  0x1c   :  { %1080 = vmatpush1.bf16.msra.mxu1 %v1614_v27  ;;  %1028 = vmatprep.subr.bf16.mxu0 %v1615_v28  ;;  %v1690_v15 = vld [vmem:[%s2345_s1 + $0x350] ss:$8 sps:$4 sm:$0xff]   ;;  %v1698_v17 = vld [vmem:[%s2345_s1 + $0x344] ss:$8 sps:$4 sm:$0xff]   ;;  %v1696_v19 = vld [vmem:[%s2345_s1 + $0x340] ss:$8 sps:$4 sm:$0xff]  }
  0x1d   :  { %1081 = vmatprep.subr.bf16.mxu1 %v1617_v29  ;;  %v1701_v20 = vld [vmem:[%s2345_s1 + $0x234] ss:$8 sps:$4 sm:$0xff]   ;;  %v1699_v22 = vld [vmem:[%s2345_s1 + $0x230] ss:$8 sps:$4 sm:$0xff]   ;;  %v1707_v24 = vld [vmem:[%s2345_s1 + $0x224] ss:$8 sps:$4 sm:$0xff]  }
  0x1e   :  { %v1704_v21 = vld [vmem:[%s2345_s1 + $0x334] ss:$8 sps:$4 sm:$0xff]   ;;  %v1702_v23 = vld [vmem:[%s2345_s1 + $0x330] ss:$8 sps:$4 sm:$0xff]   ;;  %v1710_v25 = vld [vmem:[%s2345_s1 + $0x324] ss:$8 sps:$4 sm:$0xff]  }
  0x1f   :  { %1029 = vmatpush1.bf16.msra.mxu0 %v1619_v30  ;;  %v1753_v26 = vld [vmem:[%s2346_s0 + $0x4c] ss:$36 sps:$4 sm:$0xff]   ;;  %v1755_v27 = vld [vmem:[%s2346_s0 + $0x54] ss:$36 sps:$4 sm:$0xff]   ;;  %v1705_v30 = vld [vmem:[%s2345_s1 + $0x220] ss:$8 sps:$4 sm:$0xff]  }
  0x20   :  { %1082 = vmatpush1.bf16.msra.mxu1 %v1620_v31  ;;  %1030 = vmatprep.subr.bf16.mxu0 %v1621_v32  ;;  %v1757_v28 = vld [vmem:[%s2346_s0 + $0x48] ss:$36 sps:$4 sm:$0xff]   ;;  %v1758_v29 = vld [vmem:[%s2346_s0 + $0x50] ss:$36 sps:$4 sm:$0xff]  }
  0x21   :  { %1083 = vmatprep.subr.bf16.mxu1 %v1623_v33  ;;  %v1708_v31 = vld [vmem:[%s2345_s1 + $0x320] ss:$8 sps:$4 sm:$0xff]   ;;  %v1713_v32 = vld [vmem:[%s2345_s1 + $0x214] ss:$8 sps:$4 sm:$0xff]  }
  0x22   :  { %v1716_v33 = vld [vmem:[%s2345_s1 + $0x314] ss:$8 sps:$4 sm:$0xff]   ;;  %v1732_v49 = vld [vmem:[%s2345_s1 + $0x3e0] ss:$8 sps:$4 sm:$0xff]  }
  0x23   :  { %1031 = vmatpush2.bf16.msra.mxu0 %v1625_v34  ;;  %v1711_v34 = vld [vmem:[%s2345_s1 + $0x210] ss:$8 sps:$4 sm:$0xff]   ;;  %v1740_v51 = vld [vmem:[%s2345_s1 + $0x3d4] ss:$8 sps:$4 sm:$0xff]  }
  0x24   :  { %1084 = vmatpush2.bf16.msra.mxu1 %v1626_v35  ;;  %1032 = vmatprep.subr.bf16.mxu0 %v1627_v36  ;;  %v1714_v35 = vld [vmem:[%s2345_s1 + $0x310] ss:$8 sps:$4 sm:$0xff]   ;;  %v1719_v36 = vld [vmem:[%s2345_s1 + $0x204] ss:$8 sps:$4 sm:$0xff]  }
  0x25   :  { %1085 = vmatprep.subr.bf16.mxu1 %v1629_v37  ;;  %v1722_v37 = vld [vmem:[%s2345_s1 + $0x304] ss:$8 sps:$4 sm:$0xff]  }
  0x27   :  { %1033 = vmatpush2.bf16.msra.mxu0 %v1631_v38  ;;  %v1717_v38 = vld [vmem:[%s2345_s1 + $0x200] ss:$8 sps:$4 sm:$0xff]  }
  0x28   :  { %1086 = vmatpush2.bf16.msra.mxu1 %v1632_v39  ;;  %1034 = vmatprep.subr.bf16.mxu0 %v1633_v40  ;;  %v1720_v39 = vld [vmem:[%s2345_s1 + $0x300] ss:$8 sps:$4 sm:$0xff]   ;;  %v1725_v40 = vld [vmem:[%s2345_s1 + $0x2f4] ss:$8 sps:$4 sm:$0xff]  }
  0x29   :  { %1087 = vmatprep.subr.bf16.mxu1 %v1635_v41  ;;  %v1779_v41 = vld [vmem:[%s2346_s0 + $0x14] ss:$36 sps:$4 sm:$0xff]  }
  0x2b   :  { %1035 = vmatpush2.bf16.msra.mxu0 %v1637_v42  ;;  %v1728_v42 = vld [vmem:[%s2345_s1 + $0x3f4] ss:$8 sps:$4 sm:$0xff]  }
  0x2c   :  { %1088 = vmatpush2.bf16.msra.mxu1 %v1638_v43  ;;  %1036 = vmatprep.subr.bf16.mxu0 %v1639_v44  ;;  %v1782_v43 = vld [vmem:[%s2346_s0 + $0x1c] ss:$36 sps:$4 sm:$0xff]   ;;  %v1723_v44 = vld [vmem:[%s2345_s1 + $0x2f0] ss:$8 sps:$4 sm:$0xff]  }
  0x2d   :  { %1089 = vmatprep.subr.bf16.mxu1 %v1641_v45  ;;  %v1726_v45 = vld [vmem:[%s2345_s1 + $0x3f0] ss:$8 sps:$4 sm:$0xff]  }
  0x2f   :  { %1037 = vmatpush2.bf16.msra.mxu0 %v1643_v46  ;;  %v1731_v46 = vld [vmem:[%s2345_s1 + $0x2e4] ss:$8 sps:$4 sm:$0xff]  }
  0x30   :  { %1090 = vmatpush2.bf16.msra.mxu1 %v1644_v47  ;;  %1038 = vmatprep.subr.bf16.mxu0 %v1645_v48  ;;  %v1734_v47 = vld [vmem:[%s2345_s1 + $0x3e4] ss:$8 sps:$4 sm:$0xff]   ;;  %v1729_v48 = vld [vmem:[%s2345_s1 + $0x2e0] ss:$8 sps:$4 sm:$0xff]  }
  0x31   :  { %1091 = vmatprep.subr.bf16.mxu1 %v1647_v50  ;;  %v1737_v50 = vld [vmem:[%s2345_s1 + $0x2d4] ss:$8 sps:$4 sm:$0xff]  }
  0x33   :  { %1039 = vmatpush2.bf16.msra.mxu0 %v1649_v52  ;;  %v1735_v52 = vld [vmem:[%s2345_s1 + $0x2d0] ss:$8 sps:$4 sm:$0xff]  }
  0x34   :  { %1092 = vmatpush2.bf16.msra.mxu1 %v1650_v53  ;;  %1040 = vmatprep.subr.bf16.mxu0 %v1651_v54  ;;  %v1738_v53 = vld [vmem:[%s2345_s1 + $0x3d0] ss:$8 sps:$4 sm:$0xff]   ;;  %v1743_v54 = vld [vmem:[%s2345_s1 + $0x2c4] ss:$8 sps:$4 sm:$0xff]  }
  0x35   :  { %1093 = vmatprep.subr.bf16.mxu1 %v1653_v55  ;;  %v1746_v55 = vld [vmem:[%s2345_s1 + $0x3c4] ss:$8 sps:$4 sm:$0xff]  }
  0x37   :  { %1041 = vmatpush2.bf16.msra.mxu0 %v1655_v56  ;;  %v1741_v56 = vld [vmem:[%s2345_s1 + $0x2c0] ss:$8 sps:$4 sm:$0xff]  }
  0x38   :  { %1094 = vmatpush2.bf16.msra.mxu1 %v1656_v57  ;;  %1042 = vmatprep.subr.bf16.mxu0 %v1657_v58  ;;  %v1744_v57 = vld [vmem:[%s2345_s1 + $0x3c0] ss:$8 sps:$4 sm:$0xff]   ;;  %v1749_v58 = vld [vmem:[%s2345_s1 + $0x2b4] ss:$8 sps:$4 sm:$0xff]  }
  0x39   :  { %1095 = vmatprep.subr.bf16.mxu1 %v1659_v59  ;;  %v1752_v59 = vld [vmem:[%s2345_s1 + $0x3b4] ss:$8 sps:$4 sm:$0xff]  }
  0x3b   :  { %1043 = vmatpush2.bf16.msra.mxu0 %v1661_v60  ;;  %v1747_v60 = vld [vmem:[%s2345_s1 + $0x2b0] ss:$8 sps:$4 sm:$0xff]  }
  0x3c   :  { %1096 = vmatpush2.bf16.msra.mxu1 %v1662_v61  ;;  %1044 = vmatprep.subr.bf16.mxu0 %v1663_v62  ;;  %v1750_v61 = vld [vmem:[%s2345_s1 + $0x3b0] ss:$8 sps:$4 sm:$0xff]   ;;  %v1761_v62 = vld [vmem:[%s2345_s1 + $0x2a4] ss:$8 sps:$4 sm:$0xff]  }
  0x3d   :  { %1097 = vmatprep.subr.bf16.mxu1 %v1665_v63  ;;  %v1764_v63 = vld [vmem:[%s2345_s1 + $0x3a4] ss:$8 sps:$4 sm:$0xff]  }
  0x3f   :  { %1045 = vmatpush2.bf16.msra.mxu0 %v1667_v0  ;;  %v1759_v0 = vld [vmem:[%s2345_s1 + $0x2a0] ss:$8 sps:$4 sm:$0xff]  }
  0x40   :  { %1098 = vmatpush2.bf16.msra.mxu1 %v1668_v1  ;;  %1120 = vmatprep.subr.bf16.mxu0 %v1677_v2  ;;  %v1762_v1 = vld [vmem:[%s2345_s1 + $0x3a0] ss:$8 sps:$4 sm:$0xff]   ;;  %v1767_v2 = vld [vmem:[%s2345_s1 + $0x294] ss:$8 sps:$4 sm:$0xff]  }
  0x41   :  { %1173 = vmatprep.subr.bf16.mxu1 %v1680_v3  ;;  %v1770_v3 = vld [vmem:[%s2345_s1 + $0x394] ss:$8 sps:$4 sm:$0xff]  }
  0x42   :  { %1047 = vmatmul.mubr.bf16.vlgmr.msra.gmra.mxu0 %v1669_v4  ;;  %v1765_v4 = vld [vmem:[%s2345_s1 + $0x290] ss:$8 sps:$4 sm:$0xff]  }
  0x43   :  { %1100 = vmatmul.mubr.bf16.vlgmr.msra.gmra.mxu1 %v1672_v5  ;;  %1121 = vmatpush1.bf16.msra.mxu0 %v1675_v6  ;;  %v1768_v5 = vld [vmem:[%s2345_s1 + $0x390] ss:$8 sps:$4 sm:$0xff]   ;;  %v1773_v6 = vld [vmem:[%s2345_s1 + $0x284] ss:$8 sps:$4 sm:$0xff]  }
  0x44   :  { %1174 = vmatpush1.bf16.msra.mxu1 %v1678_v7  ;;  %1122 = vmatprep.subr.bf16.mxu0 %v1683_v8  ;;  %v1776_v7 = vld [vmem:[%s2345_s1 + $0x384] ss:$8 sps:$4 sm:$0xff]   ;;  %v1771_v8 = vld [vmem:[%s2345_s1 + $0x280] ss:$8 sps:$4 sm:$0xff]  }
  0x45   :  { %1175 = vmatprep.subr.bf16.mxu1 %v1686_v9  ;;  %1056 = vmatprep.mubr.bf16.mxu0 %v1753_v26  ;;  %v1774_v9 = vld [vmem:[%s2345_s1 + $0x380] ss:$8 sps:$4 sm:$0xff]   ;;  %v1801_v26 = vld [vmem:[%s2345_s1 + $0x430] ss:$8 sps:$4 sm:$0xff]  }
  0x46   :  { %1109 = vmatprep.mubr.bf16.mxu1 %v1755_v27  ;;  %v1806_v27 = vld [vmem:[%s2345_s1 + $0x424] ss:$8 sps:$4 sm:$0xff]  }
  0x47   :  { %1123 = vmatpush1.bf16.msra.mxu0 %v1681_v10  ;;  %v1785_v10 = vld [vmem:[%s2345_s1 + $0x474] ss:$8 sps:$4 sm:$0xff]  }
  0x48   :  { %1176 = vmatpush1.bf16.msra.mxu1 %v1684_v11  ;;  %1124 = vmatprep.subr.bf16.mxu0 %v1689_v12  ;;  %v1777_v11 = vld [vmem:[%s2346_s0 + $0x10] ss:$36 sps:$4 sm:$0xff]   ;;  %v1780_v12 = vld [vmem:[%s2346_s0 + $0x18] ss:$36 sps:$4 sm:$0xff]  }
  0x49   :  { %1177 = vmatprep.subr.bf16.mxu1 %v1692_v13  ;;  %v1783_v13 = vld [vmem:[%s2345_s1 + $0x470] ss:$8 sps:$4 sm:$0xff]  }
  0x4a   :  { %1057 = vmatmul.mubr.bf16.gmra.mxu0 %v1757_v28  ;;  %v1804_v28 = vld [vmem:[%s2345_s1 + $0x420] ss:$8 sps:$4 sm:$0xff]  }
  0x4b   :  { %1125 = vmatpush1.bf16.msra.mxu0 %v1687_v14  ;;  %1110 = vmatmul.mubr.bf16.gmra.mxu1 %v1758_v29  ;;  %v1788_v14 = vld [vmem:[%s2345_s1 + $0x464] ss:$8 sps:$4 sm:$0xff]   ;;  %v1809_v29 = vld [vmem:[%s2345_s1 + $0x414] ss:$8 sps:$4 sm:$0xff]  }
  0x4c   :  { %1178 = vmatpush1.bf16.msra.mxu1 %v1690_v15  ;;  %1126 = vmatprep.subr.bf16.mxu0 %v1695_v16  ;;  %v1789_v15 = vld [vmem:[%s2346_s0 + $0x5c] ss:$36 sps:$4 sm:$0xff]   ;;  %v1795_v16 = vld [vmem:[%s2346_s0 + $0x64] ss:$36 sps:$4 sm:$0xff]  }
  0x4d   :  { %1179 = vmatprep.subr.bf16.mxu1 %v1698_v17  ;;  %1152 = vmatprep.mubr.bf16.mxu0 %v1779_v41  ;;  %v1786_v17 = vld [vmem:[%s2345_s1 + $0x460] ss:$8 sps:$4 sm:$0xff]  }
  0x4e   :  { %1205 = vmatprep.mubr.bf16.mxu1 %v1782_v43 }
  0x4f   :  { %1127 = vmatpush1.bf16.msra.mxu0 %v1693_v18  ;;  %v1794_v18 = vld [vmem:[%s2345_s1 + $0x454] ss:$8 sps:$4 sm:$0xff]  }
  0x50   :  { %1180 = vmatpush1.bf16.msra.mxu1 %v1696_v19  ;;  %1128 = vmatprep.subr.bf16.mxu0 %v1701_v20  ;;  %v1791_v19 = vld [vmem:[%s2346_s0 + $0x58] ss:$36 sps:$4 sm:$0xff]   ;;  %v1797_v20 = vld [vmem:[%s2346_s0 + $0x60] ss:$36 sps:$4 sm:$0xff]  }
  0x51   :  { %1181 = vmatprep.subr.bf16.mxu1 %v1704_v21  ;;  %v1792_v21 = vld [vmem:[%s2345_s1 + $0x450] ss:$8 sps:$4 sm:$0xff]  }
  0x53   :  { %1129 = vmatpush1.bf16.msra.mxu0 %v1699_v22  ;;  %v1800_v22 = vld [vmem:[%s2345_s1 + $0x444] ss:$8 sps:$4 sm:$0xff]  }
  0x54   :  { %1182 = vmatpush1.bf16.msra.mxu1 %v1702_v23  ;;  %1130 = vmatprep.subr.bf16.mxu0 %v1707_v24  ;;  %v1798_v23 = vld [vmem:[%s2345_s1 + $0x440] ss:$8 sps:$4 sm:$0xff]   ;;  %v1803_v24 = vld [vmem:[%s2345_s1 + $0x434] ss:$8 sps:$4 sm:$0xff]  }
  0x55   :  { %1183 = vmatprep.subr.bf16.mxu1 %v1710_v25  ;;  %v1815_v25 = vmov 0  }
  0x57   :  { %1131 = vmatpush1.bf16.msra.mxu0 %v1705_v30  ;;  %v1807_v30 = vld [vmem:[%s2345_s1 + $0x410] ss:$8 sps:$4 sm:$0xff]  }
  0x58   :  { %1184 = vmatpush1.bf16.msra.mxu1 %v1708_v31  ;;  %1132 = vmatprep.subr.bf16.mxu0 %v1713_v32  ;;  %v1812_v31 = vld [vmem:[%s2345_s1 + $0x404] ss:$8 sps:$4 sm:$0xff]   ;;  %v1810_v32 = vld [vmem:[%s2345_s1 + $0x400] ss:$8 sps:$4 sm:$0xff]  }
  0x59   :  { %1185 = vmatprep.subr.bf16.mxu1 %v1716_v33  ;;  %v1813_v33 = vld [vmem:[%s2346_s0 + $0x20] ss:$36 sps:$4 sm:$0xff]  }
  0x5b   :  { %1133 = vmatpush1.bf16.msra.mxu0 %v1711_v34  ;;  %v1814_v34 = vld [vmem:[%s2346_s0 + $0x68] ss:$36 sps:$4 sm:$0xff]  }
  0x5c   :  { %1186 = vmatpush1.bf16.msra.mxu1 %v1714_v35  ;;  %1134 = vmatprep.subr.bf16.mxu0 %v1719_v36 }
  0x5d   :  { %1187 = vmatprep.subr.bf16.mxu1 %v1722_v37 }
  0x5f   :  { %1135 = vmatpush1.bf16.msra.mxu0 %v1717_v38 }
  0x60   :  { %1188 = vmatpush1.bf16.msra.mxu1 %v1720_v39  ;;  %1136 = vmatprep.subr.bf16.mxu0 %v1725_v40 }
  0x61   :  { %1189 = vmatprep.subr.bf16.mxu1 %v1728_v42 }
  0x63   :  { %1137 = vmatpush2.bf16.msra.mxu0 %v1723_v44 }
  0x64   :  { %1190 = vmatpush2.bf16.msra.mxu1 %v1726_v45  ;;  %1138 = vmatprep.subr.bf16.mxu0 %v1731_v46 }
  0x65   :  { %1191 = vmatprep.subr.bf16.mxu1 %v1734_v47 }
  0x67   :  { %1139 = vmatpush2.bf16.msra.mxu0 %v1729_v48 }
  0x68   :  { %1192 = vmatpush2.bf16.msra.mxu1 %v1732_v49  ;;  %1140 = vmatprep.subr.bf16.mxu0 %v1737_v50 }
  0x69   :  { %1193 = vmatprep.subr.bf16.mxu1 %v1740_v51 }
  0x6b   :  { %1141 = vmatpush2.bf16.msra.mxu0 %v1735_v52 }
  0x6c   :  { %1194 = vmatpush2.bf16.msra.mxu1 %v1738_v53  ;;  %1142 = vmatprep.subr.bf16.mxu0 %v1743_v54 }
  0x6d   :  { %1195 = vmatprep.subr.bf16.mxu1 %v1746_v55 }
  0x6f   :  { %1143 = vmatpush2.bf16.msra.mxu0 %v1741_v56 }
  0x70   :  { %1196 = vmatpush2.bf16.msra.mxu1 %v1744_v57  ;;  %1144 = vmatprep.subr.bf16.mxu0 %v1749_v58 }
  0x71   :  { %1197 = vmatprep.subr.bf16.mxu1 %v1752_v59 }
  0x73   :  { %1145 = vmatpush2.bf16.msra.mxu0 %v1747_v60 }
  0x74   :  { %1198 = vmatpush2.bf16.msra.mxu1 %v1750_v61  ;;  %1146 = vmatprep.subr.bf16.mxu0 %v1761_v62  ;;  %v1308_v61 = vlaneseq }
  0x75   :  { %1199 = vmatprep.subr.bf16.mxu1 %v1764_v63 }
  0x77   :  { %1147 = vmatpush2.bf16.msra.mxu0 %v1759_v0  ;;  %v1309_v0 = vshrl.u32 %v1308_v61, 7 }
  0x78   :  { %1200 = vmatpush2.bf16.msra.mxu1 %v1762_v1  ;;  %1148 = vmatprep.subr.bf16.mxu0 %v1767_v2 }
  0x79   :  { %1201 = vmatprep.subr.bf16.mxu1 %v1770_v3 }
  0x7b   :  { %1149 = vmatpush2.bf16.msra.mxu0 %v1765_v4 }
  0x7c   :  { %1202 = vmatpush2.bf16.msra.mxu1 %v1768_v5  ;;  %1150 = vmatprep.subr.bf16.mxu0 %v1773_v6  ;;  %v1310_v5 = vsub.s32 0, %v1309_v0  ;;  %v1314_v6 = vsub.s32 1, %v1309_v0 }
  0x7d   :  { %1203 = vmatprep.subr.bf16.mxu1 %v1776_v7 }
  0x7f   :  { %1151 = vmatpush2.bf16.msra.mxu0 %v1771_v8 }
  0x80   :  { %1204 = vmatpush2.bf16.msra.mxu1 %v1774_v9  ;;  %1226 = vmatprep.subr.bf16.mxu0 %v1785_v10 }
  0x81   :  { %1556 = vmatprep.subr.bf16.mxu1 %v1785_v10 }
  0x82   :  { %1153 = vmatmul.mubr.bf16.vlgmr.msra.gmra.mxu0 %v1777_v11  ;;  %v1306_v11 = vld [vmem:[%s2347_s2] sm:$0x3] }
  0x83   :  { %1206 = vmatmul.mubr.bf16.vlgmr.msra.gmra.mxu1 %v1780_v12  ;;  %1227 = vmatpush1.bf16.msra.mxu0 %v1783_v13  ;;  %v1326_v12 = vld [vmem:[%s2348_s3] sm:$0x3] }
  0x84   :  { %1564 = vmatpush1.bf16.msra.mxu1 %v1783_v13  ;;  %1228 = vmatprep.subr.bf16.mxu0 %v1788_v14 }
  0x85   :  { %1557 = vmatprep.subr.bf16.mxu1 %v1788_v14  ;;  %1162 = vmatprep.mubr.bf16.mxu0 %v1789_v15 }
  0x86   :  { %1215 = vmatprep.mubr.bf16.mxu1 %v1795_v16 }
  0x87   :  { %1229 = vmatpush1.bf16.msra.mxu0 %v1786_v17 }
  0x88   :  { %1565 = vmatpush1.bf16.msra.mxu1 %v1786_v17  ;;  %1230 = vmatprep.subr.bf16.mxu0 %v1794_v18 }
  0x89   :  { %1558 = vmatprep.subr.bf16.mxu1 %v1794_v18 }
  0x8a   :  { %1163 = vmatmul.mubr.bf16.gmra.mxu0 %v1791_v19  ;;  %v1311_v19 = vrot.slane %v1306_v11, %v1310_v5 }
  0x8b   :  { %1216 = vmatmul.mubr.bf16.gmra.mxu1 %v1797_v20  ;;  %1231 = vmatpush1.bf16.msra.mxu0 %v1792_v21 }
  0x8c   :  { %1566 = vmatpush1.bf16.msra.mxu1 %v1792_v21  ;;  %1232 = vmatprep.subr.bf16.mxu0 %v1800_v22 }
  0x8d   :  { %1559 = vmatprep.subr.bf16.mxu1 %v1800_v22  ;;  %1258 = vmatprep.mubr.bf16.mxu0 %v1815_v25  ;;  %v1331_v22 = vrot.slane %v1326_v12, %v1310_v5 }
  0x8e   :  { %1268 = vmatprep.mubr.bf16.mxu1 %v1815_v25 }
  0x8f   :  { %1233 = vmatpush1.bf16.msra.mxu0 %v1798_v23 }
  0x90   :  { %1567 = vmatpush1.bf16.msra.mxu1 %v1798_v23  ;;  %1234 = vmatprep.subr.bf16.mxu0 %v1803_v24  ;;  %v1315_v23 = vrot.slane %v1306_v11, %v1314_v6 }
  0x91   :  { %1560 = vmatprep.subr.bf16.mxu1 %v1803_v24 }
  0x93   :  { %1235 = vmatpush1.bf16.msra.mxu0 %v1801_v26 }
  0x94   :  { %1568 = vmatpush1.bf16.msra.mxu1 %v1801_v26  ;;  %1236 = vmatprep.subr.bf16.mxu0 %v1806_v27 }
  0x95   :  { %1561 = vmatprep.subr.bf16.mxu1 %v1806_v27 }
  0x97   :  { %1237 = vmatpush1.bf16.msra.mxu0 %v1804_v28 }
  0x98   :  { %1569 = vmatpush1.bf16.msra.mxu1 %v1804_v28  ;;  %1238 = vmatprep.subr.bf16.mxu0 %v1809_v29 }
  0x99   :  { %1562 = vmatprep.subr.bf16.mxu1 %v1809_v29 }
  0x9b   :  { %1239 = vmatpush1.bf16.msra.mxu0 %v1807_v30 }
  0x9c   :  { %1570 = vmatpush1.bf16.msra.mxu1 %v1807_v30  ;;  %1240 = vmatprep.subr.bf16.mxu0 %v1812_v31 }
  0x9d   :  { %1563 = vmatprep.subr.bf16.mxu1 %v1812_v31 }
  0x9f   :  { %1241 = vmatpush1.bf16.msra.mxu0 %v1810_v32 }
  0xa0   :  { %1571 = vmatpush1.bf16.msra.mxu1 %v1810_v32 }
  0xa2   :  { %1259 = vmatmul.mubr.bf16.vlgmr.msra.gmra.mxu0 %v1813_v33 }
  0xa3   :  { %1269 = vmatmul.mubr.bf16.vlgmr.msra.gmra.mxu1 %v1814_v34 }
 0x102   :  { %v1048_v35 = vpop.f32.mrf.mxu0 }
 0x103   :  { %v1101_v36 = vpop.f32.mrf.mxu1 }
 0x104   :  { %v1050_v37 = vpop.f32.mrf.mxu0  ;;  %v1102_v1 = vadd.f32 %v1101_v36, %v1048_v35 }
 0x105   :  { %v1103_v38 = vpop.f32.mrf.mxu1 }
 0x106   :  { %v1052_v39 = vpop.f32.mrf.mxu0  ;;  %v1104_v7 = vadd.f32 %v1103_v38, %v1050_v37  ;;  %v1335_v37 = vrot.slane %v1326_v12, %v1314_v6 }
 0x107   :  { %v1105_v40 = vpop.f32.mrf.mxu1 }
 0x108   :  { %v1054_v41 = vpop.f32.mrf.mxu0  ;;  %v1106_v15 = vadd.f32 %v1105_v40, %v1052_v39 }
 0x109   :  { %v1107_v42 = vpop.f32.mrf.mxu1 }
 0x10a   :  { %v1058_v43 = vpop.f32.mrf.mxu0  ;;  %v1108_v24 = vadd.f32 %v1107_v42, %v1054_v41 }
 0x10b   :  { %v1111_v44 = vpop.f32.mrf.mxu1 }
 0x10c   :  { %v1060_v45 = vpop.f32.mrf.mxu0  ;;  %v1112_v2 = vadd.f32 %v1111_v44, %v1058_v43 }
 0x10d   :  { %v1113_v46 = vpop.f32.mrf.mxu1 }
 0x10e   :  { %v1062_v47 = vpop.f32.mrf.mxu0  ;;  %v1114_v8 = vadd.f32 %v1113_v46, %v1060_v45 }
 0x10f   :  { %v1115_v48 = vpop.f32.mrf.mxu1 }
 0x110   :  { %v1064_v49 = vpop.f32.mrf.mxu0  ;;  %v1116_v16 = vadd.f32 %v1115_v48, %v1062_v47 }
 0x111   :  { %v1117_v50 = vpop.f32.mrf.mxu1 }
 0x112   :  { %v1118_v25 = vadd.f32 %v1117_v50, %v1064_v49 }
 0x142   :  { %v1154_v51 = vpop.f32.mrf.mxu0 }
 0x143   :  { %v1207_v52 = vpop.f32.mrf.mxu1  ;;  %v1155_v9 = vadd.f32 %v1154_v51, %v1102_v1 }
 0x144   :  { %v1156_v53 = vpop.f32.mrf.mxu0 }
 0x145   :  { %v1209_v54 = vpop.f32.mrf.mxu1  ;;  %v1157_v13 = vadd.f32 %v1156_v53, %v1104_v7  ;;  %v1208_v20 = vadd.f32 %v1207_v52, %v1155_v9 }
 0x146   :  { %v1158_v55 = vpop.f32.mrf.mxu0 }
 0x147   :  { %v1211_v56 = vpop.f32.mrf.mxu1  ;;  %v1159_v26 = vadd.f32 %v1158_v55, %v1106_v15  ;;  %v1210_v30 = vadd.f32 %v1209_v54, %v1157_v13 }
 0x148   :  { %v1160_v57 = vpop.f32.mrf.mxu0 }
 0x149   :  { %v1213_v58 = vpop.f32.mrf.mxu1  ;;  %v1161_v34 = vadd.f32 %v1160_v57, %v1108_v24  ;;  %v1212_v45 = vadd.f32 %v1211_v56, %v1159_v26 }
 0x14a   :  { %v1164_v59 = vpop.f32.mrf.mxu0 }
 0x14b   :  { %v1217_v60 = vpop.f32.mrf.mxu1  ;;  %v1165_v10 = vadd.f32 %v1164_v59, %v1112_v2  ;;  %v1214_v51 = vadd.f32 %v1213_v58, %v1161_v34 }
 0x14c   :  { %v1166_v62 = vpop.f32.mrf.mxu0 }
 0x14d   :  { %v1219_v63 = vpop.f32.mrf.mxu1  ;;  %v1167_v14 = vadd.f32 %v1166_v62, %v1114_v8  ;;  %v1218_v21 = vadd.f32 %v1217_v60, %v1165_v10 }
 0x14e   :  { %v1168_v3 = vpop.f32.mrf.mxu0 }
 0x14f   :  { %v1221_v4 = vpop.f32.mrf.mxu1  ;;  %v1169_v27 = vadd.f32 %v1168_v3, %v1116_v16  ;;  %v1220_v31 = vadd.f32 %v1219_v63, %v1167_v14 }
 0x150   :  { %v1170_v17 = vpop.f32.mrf.mxu0 }
 0x151   :  { %v1223_v18 = vpop.f32.mrf.mxu1  ;;  %v1171_v35 = vadd.f32 %v1170_v17, %v1118_v25  ;;  %v1222_v41 = vadd.f32 %v1221_v4, %v1169_v27 }
 0x153   :  { %v1224_v52 = vadd.f32 %v1223_v18, %v1171_v35 }
 0x162   :  { %v1260_v28 = vpop.f32.mrf.mxu0 }
 0x163   :  { %v1270_v29 = vpop.f32.mrf.mxu1  ;;  %v1261_v32 = vadd.f32 %v1260_v28, %v1208_v20 }
 0x164   :  { %v1271_v33 = vadd.f32 %v1270_v29, %v1218_v21  ;;  %v1262_v36 = vpop.f32.mrf.mxu0 }
 0x165   :  { %v1272_v38 = vpop.f32.mrf.mxu1  ;;  %v1318_v39 = vmul.f32 %v1311_v19, %v1261_v32  ;;  %v1263_v43 = vadd.f32 %v1262_v36, %v1210_v30 }
 0x166   :  { %v1322_v40 = vmul.f32 %v1311_v19, %v1271_v33  ;;  %v1273_v44 = vadd.f32 %v1272_v38, %v1220_v31  ;;  %v1264_v42 = vpop.f32.mrf.mxu0 }
 0x167   :  { %v1274_v46 = vpop.f32.mrf.mxu1  ;;  %v1338_v47 = vadd.f32 %v1331_v22, %v1318_v39  ;;  %v1319_v49 = vmul.f32 %v1315_v23, %v1263_v43  ;;  %v1265_v53 = vadd.f32 %v1264_v42, %v1212_v45 }
 0x168   :  { %v1342_v48 = vadd.f32 %v1331_v22, %v1322_v40  ;;  %v1323_v50 = vmul.f32 %v1315_v23, %v1273_v44  ;;  %v1275_v54 = vadd.f32 %v1274_v46, %v1222_v41  ;;  %v1266_v55 = vpop.f32.mrf.mxu0 }
 0x169   :  { %v1276_v57 = vpop.f32.mrf.mxu1  ;;  %v1339_v59 = vadd.f32 %v1335_v37, %v1319_v49  ;;  %v1320_v61 = vmul.f32 %v1311_v19, %v1265_v53  ;;  %v1267_v63 = vadd.f32 %v1266_v55, %v1214_v51  ;;  %v1346_v56 = vmax.f32 %v1338_v47, 0.0 }
 0x16a   :  { %v1343_v60 = vadd.f32 %v1335_v37, %v1323_v50  ;;  %v1324_v62 = vmul.f32 %v1311_v19, %v1275_v54  ;;  %v1277_v0 = vadd.f32 %v1276_v57, %v1224_v52  ;;  %v1350_v1 = vmax.f32 %v1342_v48, 0.0 }
 0x16b   :  { %v1347_v2 = vmax.f32 %v1339_v59, 0.0  ;;  %v1340_v4 = vadd.f32 %v1331_v22, %v1320_v61  ;;  %v1321_v6 = vmul.f32 %v1315_v23, %v1267_v63 }
 0x16c   :  { %v1351_v3 = vmax.f32 %v1343_v60, 0.0  ;;  %v1344_v5 = vadd.f32 %v1331_v22, %v1324_v62  ;;  %v1325_v7 = vmul.f32 %v1315_v23, %v1277_v0 }
 0x16d   :  { %v1552_v58 = vpack.c.bf16 %v1347_v2, %v1346_v56  ;;  %v1341_v9 = vadd.f32 %v1335_v37, %v1321_v6  ;;  %v1348_v11 = vmax.f32 %v1340_v4, 0.0 }
 0x16e   :  { %v1554_v8 = vpack.c.bf16 %v1351_v3, %v1350_v1  ;;  %v1345_v10 = vadd.f32 %v1335_v37, %v1325_v7  ;;  %v1352_v12 = vmax.f32 %v1344_v5, 0.0 }
 0x16f   :  { %1378 = vst [vmem:[%s2349_s4] sm:$0xff] %v1552_v58  ;;  %v1349_v13 = vmax.f32 %v1341_v9, 0.0 }
 0x170   :  { %1380 = vst [vmem:[%s2349_s4 + $0x10] sm:$0xff] %v1554_v8  ;;  %v1353_v14 = vmax.f32 %v1345_v10, 0.0 }
 0x171   :  { %v1553_v15 = vpack.c.bf16 %v1349_v13, %v1348_v11 }
 0x172   :  { %v1555_v16 = vpack.c.bf16 %v1353_v14, %v1352_v12 }
 0x173   :  { %1379 = vst [vmem:[%s2349_s4 + $0x8] sm:$0xff] %v1553_v15 }
 0x174   :  { %1381 = vst [vmem:[%s2349_s4 + $0x18] sm:$0xff] %v1555_v16 }

// kernel: custom_cnn_forward.12
= control target key start
LH: loop header
LB: loop body
LE: loop exit
PB: predicated region body
PF: predicated region fallthrough
CT: control target
= control target key end

     0   :  { %s2454_s15 = smov 0   ;;  %s2456_s16 = smov 0   ;;  %s2749_s0 = inlined_call_operand.vmem [shape: bf16[32,2304], index: 0, kind: input, shape index: {}]   ;;  %s2750_s1 = inlined_call_operand.vmem [shape: bf16[2304,256], index: 1, kind: input, shape index: {}]   ;;  %s2751_s2 = inlined_call_operand.vmem [shape: f32[1,256], index: 2, kind: input, shape index: {}]   ;;  %s2752_s3 = inlined_call_operand.vmem [shape: f32[1,256], index: 3, kind: input, shape index: {}]   ;;  %s2753_s4 = inlined_call_operand.vmem [shape: bf16[32,256], index: 4, kind: output, shape index: {}]  }
   0x1   :  { %s2458_s17 = smov 0   ;;  %s2460_s18 = smov 0  }
   0x2   :  { %s2462_s19 = smov 0  }
   0x3 LB: > { %s26_s20 = sadd.s32 1, %s2421_s18  ;;  %p49_p1 = scmp.ne.s32.totalorder %s2413_s16, %s2409_s15  ;;  %s2425_s19 = sphi %s2462_s19, %s14_s19   ;;  %s2421_s18 = sphi %s2460_s18, %s2757_s18   ;;  %s2417_s17 = sphi %s2458_s17, %s2756_s17   ;;  %s2413_s16 = sphi %s2456_s16, %s2755_s16   ;;  %s2409_s15 = sphi %s2454_s15, %s2754_s15  }
   0x4   : > { %p27_p0 = scmp.ge.s32.totalorder %s26_s20, 2  ;;  %p50_p2 = scmp.eq.s32.totalorder %s2425_s19, 0 }
   0x5   : > { %s42_s22 = sadd.s32 1, %s2413_s16  ;;  %p1894_p5 = scmp.ge.s32.totalorder %s2425_s19, 2 }
   0x6   : > { %s2759_s20 = smov (%p27_p0, %s26_s20), 0  ;;  %p51_p3 = por %p50_p2, %p49_p1 }
   0x7   : > { %s38_s21 = ssub.s32 %s2421_s18, %s2759_s20  ;;  %199 = sbr.rel (%p1894_p5) target bundleno = 27 (0x1b), region = 24 }
   0x8   : > { %p40_p4 = scmp.eq.s32.totalorder %s38_s21, 0 }
   0xa   : > { %s2489_s23 = scalar_select %p40_p4, %s2413_s16, %s42_s22  }
   0xc   : > { %202 = sbr.rel (!%p51_p3) target bundleno = 27 (0x1b), region = 28  ;;  %s204_s24 = sand.u32 (%p51_p3), 1, %s2413_s16  }
   0xd   : > { %s2079_s25 = smul.u32 (%p51_p3), 36, %s2421_s18 }
   0xe   : > { %s2101_s26 = smul.u32 (%p51_p3), 144, %s204_s24 }
   0xf   : > { %s2497_s29 = scalar_lea.vmem (%p51_p3), %s2749_s0, %s2079_s25 }
  0x10   : > { %v227_v0 = vld [vmem:[%s2497_s29] sm:$0xff] (%p51_p3)  ;;  %v229_v1 = vld [vmem:[%s2497_s29 + $0x8] sm:$0xff] (%p51_p3)  ;;  %v231_v2 = vld [vmem:[%s2497_s29 + $0x10] sm:$0xff] (%p51_p3)  ;;  %s2502_s30 = scalar_lea.vmem (%p51_p3), [#allocation3], %s2101_s26 }
  0x11   : > { %228 = vst [vmem:[%s2502_s30] sm:$0xff] %v227_v0  ;;  %230 = vst [vmem:[%s2502_s30 + $0x8] sm:$0xff] %v229_v1  ;;  %v233_v3 = vld [vmem:[%s2497_s29 + $0x18] sm:$0xff]  ;;  %v235_v4 = vld [vmem:[%s2497_s29 + $0x48] sm:$0xff] }
  0x12   : > { %232 = vst [vmem:[%s2502_s30 + $0x10] sm:$0xff] %v231_v2  ;;  %v237_v5 = vld [vmem:[%s2497_s29 + $0x50] sm:$0xff]  ;;  %234 = vst [vmem:[%s2502_s30 + $0x18] sm:$0xff] %v233_v3  ;;  %v239_v6 = vld [vmem:[%s2497_s29 + $0x58] sm:$0xff] }
  0x13   : > { %236 = vst [vmem:[%s2502_s30 + $0x24] sm:$0xff] %v235_v4  ;;  %238 = vst [vmem:[%s2502_s30 + $0x2c] sm:$0xff] %v237_v5  ;;  %v241_v7 = vld [vmem:[%s2497_s29 + $0x60] sm:$0xff]  ;;  %v243_v8 = vld [vmem:[%s2497_s29 + $0x90] sm:$0xff] }
  0x14   : > { %240 = vst [vmem:[%s2502_s30 + $0x34] sm:$0xff] %v239_v6  ;;  %242 = vst [vmem:[%s2502_s30 + $0x3c] sm:$0xff] %v241_v7  ;;  %v245_v9 = vld [vmem:[%s2497_s29 + $0x98] sm:$0xff]  ;;  %v247_v10 = vld [vmem:[%s2497_s29 + $0xa0] sm:$0xff] }
  0x15   : > { %244 = vst [vmem:[%s2502_s30 + $0x48] sm:$0xff] %v243_v8  ;;  %v249_v11 = vld [vmem:[%s2497_s29 + $0xa8] sm:$0xff]  ;;  %246 = vst [vmem:[%s2502_s30 + $0x50] sm:$0xff] %v245_v9  ;;  %v251_v12 = vld [vmem:[%s2497_s29 + $0xd8] sm:$0xff] }
  0x16   : > { %248 = vst [vmem:[%s2502_s30 + $0x58] sm:$0xff] %v247_v10  ;;  %250 = vst [vmem:[%s2502_s30 + $0x60] sm:$0xff] %v249_v11  ;;  %v253_v13 = vld [vmem:[%s2497_s29 + $0xe0] sm:$0xff]  ;;  %v255_v14 = vld [vmem:[%s2497_s29 + $0xe8] sm:$0xff] }
  0x17   : > { %252 = vst [vmem:[%s2502_s30 + $0x6c] sm:$0xff] %v251_v12  ;;  %254 = vst [vmem:[%s2502_s30 + $0x74] sm:$0xff] %v253_v13  ;;  %v257_v15 = vld [vmem:[%s2497_s29 + $0xf0] sm:$0xff]  ;;  %v1896_v16 = vld [vmem:[%s2497_s29 + $0x20] sm:$0xf] }
  0x18   : > { %256 = vst [vmem:[%s2502_s30 + $0x7c] sm:$0xff] %v255_v14  ;;  %v1898_v17 = vld [vmem:[%s2497_s29 + $0x68] sm:$0xf]  ;;  %258 = vst [vmem:[%s2502_s30 + $0x84] sm:$0xff] %v257_v15  ;;  %v1900_v18 = vld [vmem:[%s2497_s29 + $0xb0] sm:$0xf] }
  0x19   : > { %1897 = vst [vmem:[%s2502_s30 + $0x20] sm:$0xf] %v1896_v16  ;;  %1899 = vst [vmem:[%s2502_s30 + $0x44] sm:$0xf] %v1898_v17  ;;  %v1902_v19 = vld [vmem:[%s2497_s29 + $0xf8] sm:$0xf] }
  0x1a   : > { %1901 = vst [vmem:[%s2502_s30 + $0x68] sm:$0xf] %v1900_v18  ;;  %1903 = vst [vmem:[%s2502_s30 + $0x8c] sm:$0xf] %v1902_v19 }
  0x1b PF: > { %p1904_p6 = scmp.ge.s32.totalorder %s2425_s19, 1  ;;  %p294_p7 = scmp.lt.s32.totalorder %s2425_s19, 3 }
  0x1d   : > { %p295_p8 = pnand %p1904_p6, %p294_p7 }
  0x1e   : > { %s301_s5 = sand.u32 (!%p295_p8), 1, %s2409_s15   ;;  %s351_s6 = smul.u32 (!%p295_p8), 144, %s2417_s17 }
  0x1f   : > { %298 = sbr.rel (%p295_p8) target bundleno = 430 (0x1ae), region = 58  ;;  %p1907_p10 = scmp.ne.s32.totalorder (!%p295_p8), %s2417_s17, 0 }
  0x20   : > { %s2102_s7 = smul.u32 (!%p295_p8), 144, %s301_s5  ;;  %p353_p9 = scmp.lt.s32.totalorder (!%p295_p8), %s351_s6, 287 }
  0x22   : > { %s2550_s12 = scalar_lea.vmem (!%p295_p8), [#allocation3], %s2102_s7 }
  0x24   : > { %s2761_s6 = smov (!%p353_p9, %s351_s6), 287  ;;  %389 = sbr.rel (%p1907_p10) target bundleno = 46 (0x2e), region = 66 }
  0x25   : > { %s2080_s8 = sshll.u32 %s2761_s6, 3 }
  0x26   : > { %s2548_s11 = scalar_lea.vmem %s2750_s1, %s2080_s8 }
  0x29   : > { %v2427_v20 = vmov 0.0  }
  0x2a   : > { %390 = vst [vmem:[#allocation2 + $0x30] sm:$0xff] %v2427_v20  ;;  %391 = vst [vmem:[#allocation2] sm:$0xff] %v2427_v20 }
  0x2b   : > { %392 = vst [vmem:[#allocation2 + $0x18] sm:$0xff] %v2427_v20  ;;  %393 = vst [vmem:[#allocation2 + $0x10] sm:$0xff] %v2427_v20 }
  0x2c   : > { %394 = vst [vmem:[#allocation2 + $0x8] sm:$0xff] %v2427_v20  ;;  %395 = vst [vmem:[#allocation2 + $0x20] sm:$0xff] %v2427_v20 }
  0x2d   : > { %396 = vst [vmem:[#allocation2 + $0x28] sm:$0xff] %v2427_v20  ;;  %397 = vst [vmem:[#allocation2 + $0x38] sm:$0xff] %v2427_v20 }
  0x2e PF: > { %v2145_v21 = vld [vmem:[%s2548_s11 + $0x74] ss:$8 sps:$4 sm:$0xff]   ;;  %v2149_v23 = vld [vmem:[%s2548_s11 + $0x70] ss:$8 sps:$4 sm:$0xff]   ;;  %v2151_v25 = vld [vmem:[%s2548_s11 + $0x64] ss:$8 sps:$4 sm:$0xff]  }
  0x2f   : > { %v2147_v22 = vld [vmem:[%s2548_s11 + $0x174] ss:$8 sps:$4 sm:$0xff]   ;;  %1382 = vmatprep.subr.bf16.mxu0 %v2145_v21  ;;  %v2150_v24 = vld [vmem:[%s2548_s11 + $0x170] ss:$8 sps:$4 sm:$0xff]   ;;  %v2153_v26 = vld [vmem:[%s2548_s11 + $0x164] ss:$8 sps:$4 sm:$0xff]  }
  0x30   : > { %1435 = vmatprep.subr.bf16.mxu1 %v2147_v22  ;;  %1383 = vmatpush1.bf16.msra.mxu0 %v2149_v23  ;;  %v2155_v27 = vld [vmem:[%s2548_s11 + $0x60] ss:$8 sps:$4 sm:$0xff]   ;;  %v2157_v29 = vld [vmem:[%s2548_s11 + $0x54] ss:$8 sps:$4 sm:$0xff]   ;;  %v2161_v31 = vld [vmem:[%s2548_s11 + $0x50] ss:$8 sps:$4 sm:$0xff]  }
  0x31   : > { %1436 = vmatpush1.bf16.msra.mxu1 %v2150_v24  ;;  %1384 = vmatprep.subr.bf16.mxu0 %v2151_v25  ;;  %v2156_v28 = vld [vmem:[%s2548_s11 + $0x160] ss:$8 sps:$4 sm:$0xff]   ;;  %v2159_v30 = vld [vmem:[%s2548_s11 + $0x154] ss:$8 sps:$4 sm:$0xff]   ;;  %v2162_v32 = vld [vmem:[%s2548_s11 + $0x150] ss:$8 sps:$4 sm:$0xff]  }
  0x32   : > { %1437 = vmatprep.subr.bf16.mxu1 %v2153_v26  ;;  %v2163_v33 = vld [vmem:[%s2548_s11 + $0x44] ss:$8 sps:$4 sm:$0xff]   ;;  %v2167_v35 = vld [vmem:[%s2548_s11 + $0x40] ss:$8 sps:$4 sm:$0xff]   ;;  %v2169_v37 = vld [vmem:[%s2548_s11 + $0x34] ss:$8 sps:$4 sm:$0xff]  }
  0x33   : > { %v2165_v34 = vld [vmem:[%s2548_s11 + $0x144] ss:$8 sps:$4 sm:$0xff]   ;;  %v2168_v36 = vld [vmem:[%s2548_s11 + $0x140] ss:$8 sps:$4 sm:$0xff]   ;;  %v2171_v38 = vld [vmem:[%s2548_s11 + $0x134] ss:$8 sps:$4 sm:$0xff]  }
  0x34   : > { %1385 = vmatpush1.bf16.msra.mxu0 %v2155_v27  ;;  %v2173_v39 = vld [vmem:[%s2548_s11 + $0x30] ss:$8 sps:$4 sm:$0xff]   ;;  %v2175_v41 = vld [vmem:[%s2548_s11 + $0x24] ss:$8 sps:$4 sm:$0xff]   ;;  %v2179_v43 = vld [vmem:[%s2548_s11 + $0x20] ss:$8 sps:$4 sm:$0xff]  }
  0x35   : > { %1438 = vmatpush1.bf16.msra.mxu1 %v2156_v28  ;;  %1386 = vmatprep.subr.bf16.mxu0 %v2157_v29  ;;  %v2174_v40 = vld [vmem:[%s2548_s11 + $0x130] ss:$8 sps:$4 sm:$0xff]   ;;  %v2177_v42 = vld [vmem:[%s2548_s11 + $0x124] ss:$8 sps:$4 sm:$0xff]   ;;  %v2180_v44 = vld [vmem:[%s2548_s11 + $0x120] ss:$8 sps:$4 sm:$0xff]  }
  0x36   : > { %1439 = vmatprep.subr.bf16.mxu1 %v2159_v30  ;;  %v2181_v45 = vld [vmem:[%s2548_s11 + $0x14] ss:$8 sps:$4 sm:$0xff]   ;;  %v2185_v47 = vld [vmem:[%s2548_s11 + $0x10] ss:$8 sps:$4 sm:$0xff]   ;;  %v2187_v49 = vld [vmem:[%s2548_s11 + $0x4] ss:$8 sps:$4 sm:$0xff]  }
  0x37   : > { %v2183_v46 = vld [vmem:[%s2548_s11 + $0x114] ss:$8 sps:$4 sm:$0xff]   ;;  %v2186_v48 = vld [vmem:[%s2548_s11 + $0x110] ss:$8 sps:$4 sm:$0xff]   ;;  %v2189_v50 = vld [vmem:[%s2548_s11 + $0x104] ss:$8 sps:$4 sm:$0xff]  }
  0x38   : > { %1387 = vmatpush1.bf16.msra.mxu0 %v2161_v31  ;;  %v2191_v51 = vld [vmem:[%s2548_s11] ss:$8 sps:$4 sm:$0xff]   ;;  %v2193_v53 = vld [vmem:[%s2548_s11 + $0xf4] ss:$8 sps:$4 sm:$0xff]   ;;  %v2197_v55 = vld [vmem:[%s2548_s11 + $0xf0] ss:$8 sps:$4 sm:$0xff]  }
  0x39   : > { %1440 = vmatpush1.bf16.msra.mxu1 %v2162_v32  ;;  %1388 = vmatprep.subr.bf16.mxu0 %v2163_v33  ;;  %v2192_v52 = vld [vmem:[%s2548_s11 + $0x100] ss:$8 sps:$4 sm:$0xff]   ;;  %v2195_v54 = vld [vmem:[%s2548_s11 + $0x1f4] ss:$8 sps:$4 sm:$0xff]   ;;  %v2198_v56 = vld [vmem:[%s2548_s11 + $0x1f0] ss:$8 sps:$4 sm:$0xff]  }
  0x3a   : > { %1441 = vmatprep.subr.bf16.mxu1 %v2165_v34  ;;  %v2199_v57 = vld [vmem:[%s2548_s11 + $0xe4] ss:$8 sps:$4 sm:$0xff]   ;;  %v2203_v59 = vld [vmem:[%s2548_s11 + $0xe0] ss:$8 sps:$4 sm:$0xff]   ;;  %v2205_v61 = vld [vmem:[%s2548_s11 + $0xd4] ss:$8 sps:$4 sm:$0xff]  }
  0x3b   : > { %v2201_v58 = vld [vmem:[%s2548_s11 + $0x1e4] ss:$8 sps:$4 sm:$0xff]   ;;  %v2204_v60 = vld [vmem:[%s2548_s11 + $0x1e0] ss:$8 sps:$4 sm:$0xff]   ;;  %v2207_v62 = vld [vmem:[%s2548_s11 + $0x1d4] ss:$8 sps:$4 sm:$0xff]  }
  0x3c   : > { %1389 = vmatpush1.bf16.msra.mxu0 %v2167_v35  ;;  %v2209_v63 = vld [vmem:[%s2548_s11 + $0xd0] ss:$8 sps:$4 sm:$0xff]   ;;  %v2211_v1 = vld [vmem:[%s2548_s11 + $0xc4] ss:$8 sps:$4 sm:$0xff]   ;;  %v2215_v3 = vld [vmem:[%s2548_s11 + $0xc0] ss:$8 sps:$4 sm:$0xff]  }
  0x3d   : > { %1442 = vmatpush1.bf16.msra.mxu1 %v2168_v36  ;;  %1390 = vmatprep.subr.bf16.mxu0 %v2169_v37  ;;  %v2210_v0 = vld [vmem:[%s2548_s11 + $0x1d0] ss:$8 sps:$4 sm:$0xff]   ;;  %v2213_v2 = vld [vmem:[%s2548_s11 + $0x1c4] ss:$8 sps:$4 sm:$0xff]   ;;  %v2216_v4 = vld [vmem:[%s2548_s11 + $0x1c0] ss:$8 sps:$4 sm:$0xff]  }
  0x3e   : > { %1443 = vmatprep.subr.bf16.mxu1 %v2171_v38  ;;  %v2217_v5 = vld [vmem:[%s2548_s11 + $0xb4] ss:$8 sps:$4 sm:$0xff]   ;;  %v2221_v9 = vld [vmem:[%s2548_s11 + $0xb0] ss:$8 sps:$4 sm:$0xff]   ;;  %v2223_v11 = vld [vmem:[%s2548_s11 + $0xa4] ss:$8 sps:$4 sm:$0xff]  }
  0x3f   : > { %v2243_v6 = vld [vmem:[%s2550_s12 + $0x4] ss:$36 sps:$4 sm:$0xff]   ;;  %v2246_v8 = vld [vmem:[%s2550_s12 + $0xc] ss:$36 sps:$4 sm:$0xff]   ;;  %p2070_p11 = scmp.ne.s32.totalorder %s2417_s17, 1 }
  0x40   : > { %1391 = vmatpush1.bf16.msra.mxu0 %v2173_v39  ;;  %v2219_v7 = vld [vmem:[%s2548_s11 + $0x1b4] ss:$8 sps:$4 sm:$0xff]   ;;  %1414 = vmatprep.mubr.bf16.mxu0 %v2243_v6  ;;  %v2222_v10 = vld [vmem:[%s2548_s11 + $0x1b0] ss:$8 sps:$4 sm:$0xff]   ;;  %v2225_v12 = vld [vmem:[%s2548_s11 + $0x1a4] ss:$8 sps:$4 sm:$0xff]  }
  0x41   : > { %1444 = vmatpush1.bf16.msra.mxu1 %v2174_v40  ;;  %1392 = vmatprep.subr.bf16.mxu0 %v2175_v41  ;;  %v2227_v13 = vld [vmem:[%s2548_s11 + $0xa0] ss:$8 sps:$4 sm:$0xff]   ;;  %v2229_v15 = vld [vmem:[%s2548_s11 + $0x94] ss:$8 sps:$4 sm:$0xff]   ;;  %v2233_v17 = vld [vmem:[%s2548_s11 + $0x90] ss:$8 sps:$4 sm:$0xff]  }
  0x42   : > { %1445 = vmatprep.subr.bf16.mxu1 %v2177_v42  ;;  %1467 = vmatprep.mubr.bf16.mxu1 %v2246_v8  ;;  %v2228_v14 = vld [vmem:[%s2548_s11 + $0x1a0] ss:$8 sps:$4 sm:$0xff]   ;;  %v2231_v16 = vld [vmem:[%s2548_s11 + $0x194] ss:$8 sps:$4 sm:$0xff]   ;;  %v2234_v18 = vld [vmem:[%s2548_s11 + $0x190] ss:$8 sps:$4 sm:$0xff]  }
  0x43   : > { %v2235_v19 = vld [vmem:[%s2548_s11 + $0x84] ss:$8 sps:$4 sm:$0xff]   ;;  %v2239_v21 = vld [vmem:[%s2548_s11 + $0x80] ss:$8 sps:$4 sm:$0xff]   ;;  %v2249_v23 = vld [vmem:[%s2548_s11 + $0x274] ss:$8 sps:$4 sm:$0xff]  }
  0x44   : > { %1393 = vmatpush1.bf16.msra.mxu0 %v2179_v43  ;;  %v2237_v20 = vld [vmem:[%s2548_s11 + $0x184] ss:$8 sps:$4 sm:$0xff]   ;;  %v2240_v22 = vld [vmem:[%s2548_s11 + $0x180] ss:$8 sps:$4 sm:$0xff]   ;;  %v2252_v24 = vld [vmem:[%s2548_s11 + $0x374] ss:$8 sps:$4 sm:$0xff]  }
  0x45   : > { %1446 = vmatpush1.bf16.msra.mxu1 %v2180_v44  ;;  %1394 = vmatprep.subr.bf16.mxu0 %v2181_v45  ;;  %v2241_v25 = vld [vmem:[%s2550_s12] ss:$36 sps:$4 sm:$0xff]   ;;  %v2244_v26 = vld [vmem:[%s2550_s12 + $0x8] ss:$36 sps:$4 sm:$0xff]  }
  0x46   : > { %1447 = vmatprep.subr.bf16.mxu1 %v2183_v46  ;;  %v2247_v27 = vld [vmem:[%s2548_s11 + $0x270] ss:$8 sps:$4 sm:$0xff]   ;;  %v2255_v29 = vld [vmem:[%s2548_s11 + $0x264] ss:$8 sps:$4 sm:$0xff]   ;;  %v2253_v31 = vld [vmem:[%s2548_s11 + $0x260] ss:$8 sps:$4 sm:$0xff]  }
  0x47   : > { %v2250_v28 = vld [vmem:[%s2548_s11 + $0x370] ss:$8 sps:$4 sm:$0xff]   ;;  %v2258_v30 = vld [vmem:[%s2548_s11 + $0x364] ss:$8 sps:$4 sm:$0xff]   ;;  %v2256_v32 = vld [vmem:[%s2548_s11 + $0x360] ss:$8 sps:$4 sm:$0xff]  }
  0x48   : > { %1395 = vmatpush1.bf16.msra.mxu0 %v2185_v47  ;;  %v2261_v33 = vld [vmem:[%s2548_s11 + $0x254] ss:$8 sps:$4 sm:$0xff]   ;;  %v2259_v35 = vld [vmem:[%s2548_s11 + $0x250] ss:$8 sps:$4 sm:$0xff]   ;;  %v2267_v37 = vld [vmem:[%s2548_s11 + $0x244] ss:$8 sps:$4 sm:$0xff]  }
  0x49   : > { %1448 = vmatpush1.bf16.msra.mxu1 %v2186_v48  ;;  %1396 = vmatprep.subr.bf16.mxu0 %v2187_v49  ;;  %v2264_v34 = vld [vmem:[%s2548_s11 + $0x354] ss:$8 sps:$4 sm:$0xff]   ;;  %v2262_v36 = vld [vmem:[%s2548_s11 + $0x350] ss:$8 sps:$4 sm:$0xff]   ;;  %v2270_v38 = vld [vmem:[%s2548_s11 + $0x344] ss:$8 sps:$4 sm:$0xff]  }
  0x4a   : > { %1449 = vmatprep.subr.bf16.mxu1 %v2189_v50  ;;  %v2265_v39 = vld [vmem:[%s2548_s11 + $0x240] ss:$8 sps:$4 sm:$0xff]   ;;  %v2273_v41 = vld [vmem:[%s2548_s11 + $0x234] ss:$8 sps:$4 sm:$0xff]   ;;  %v2271_v43 = vld [vmem:[%s2548_s11 + $0x230] ss:$8 sps:$4 sm:$0xff]  }
  0x4b   : > { %v2268_v40 = vld [vmem:[%s2548_s11 + $0x340] ss:$8 sps:$4 sm:$0xff]   ;;  %v2276_v42 = vld [vmem:[%s2548_s11 + $0x334] ss:$8 sps:$4 sm:$0xff]   ;;  %v2274_v44 = vld [vmem:[%s2548_s11 + $0x330] ss:$8 sps:$4 sm:$0xff]  }
  0x4c   : > { %1397 = vmatpush1.bf16.msra.mxu0 %v2191_v51  ;;  %v2279_v45 = vld [vmem:[%s2548_s11 + $0x224] ss:$8 sps:$4 sm:$0xff]   ;;  %v2277_v51 = vld [vmem:[%s2548_s11 + $0x220] ss:$8 sps:$4 sm:$0xff]   ;;  %v2312_v8 = vld [vmem:[%s2548_s11 + $0x3d4] ss:$8 sps:$4 sm:$0xff]  }
  0x4d   : > { %1450 = vmatpush1.bf16.msra.mxu1 %v2192_v52  ;;  %1398 = vmatprep.subr.bf16.mxu0 %v2193_v53  ;;  %v2282_v46 = vld [vmem:[%s2548_s11 + $0x324] ss:$8 sps:$4 sm:$0xff]   ;;  %v2280_v52 = vld [vmem:[%s2548_s11 + $0x320] ss:$8 sps:$4 sm:$0xff]   ;;  %v2285_v53 = vld [vmem:[%s2548_s11 + $0x214] ss:$8 sps:$4 sm:$0xff]  }
  0x4e   : > { %1451 = vmatprep.subr.bf16.mxu1 %v2195_v54  ;;  %v2325_v47 = vld [vmem:[%s2550_s12 + $0x4c] ss:$36 sps:$4 sm:$0xff]   ;;  %v2327_v48 = vld [vmem:[%s2550_s12 + $0x54] ss:$36 sps:$4 sm:$0xff]  }
  0x4f   : > { %v2329_v49 = vld [vmem:[%s2550_s12 + $0x48] ss:$36 sps:$4 sm:$0xff]   ;;  %v2330_v50 = vld [vmem:[%s2550_s12 + $0x50] ss:$36 sps:$4 sm:$0xff]  }
  0x50   : > { %1399 = vmatpush2.bf16.msra.mxu0 %v2197_v55  ;;  %v2288_v54 = vld [vmem:[%s2548_s11 + $0x314] ss:$8 sps:$4 sm:$0xff]   ;;  %v2283_v55 = vld [vmem:[%s2548_s11 + $0x210] ss:$8 sps:$4 sm:$0xff]   ;;  %v2304_v6 = vld [vmem:[%s2548_s11 + $0x3e0] ss:$8 sps:$4 sm:$0xff]  }
  0x51   : > { %1452 = vmatpush2.bf16.msra.mxu1 %v2198_v56  ;;  %1400 = vmatprep.subr.bf16.mxu0 %v2199_v57  ;;  %v2286_v56 = vld [vmem:[%s2548_s11 + $0x310] ss:$8 sps:$4 sm:$0xff]   ;;  %v2291_v57 = vld [vmem:[%s2548_s11 + $0x204] ss:$8 sps:$4 sm:$0xff]  }
  0x52   : > { %1453 = vmatprep.subr.bf16.mxu1 %v2201_v58  ;;  %v2294_v58 = vld [vmem:[%s2548_s11 + $0x304] ss:$8 sps:$4 sm:$0xff]  }
  0x54   : > { %1401 = vmatpush2.bf16.msra.mxu0 %v2203_v59  ;;  %v2289_v59 = vld [vmem:[%s2548_s11 + $0x200] ss:$8 sps:$4 sm:$0xff]  }
  0x55   : > { %1454 = vmatpush2.bf16.msra.mxu1 %v2204_v60  ;;  %1402 = vmatprep.subr.bf16.mxu0 %v2205_v61  ;;  %v2292_v60 = vld [vmem:[%s2548_s11 + $0x300] ss:$8 sps:$4 sm:$0xff]   ;;  %v2297_v61 = vld [vmem:[%s2548_s11 + $0x2f4] ss:$8 sps:$4 sm:$0xff]  }
  0x56   : > { %1455 = vmatprep.subr.bf16.mxu1 %v2207_v62  ;;  %v2351_v62 = vld [vmem:[%s2550_s12 + $0x14] ss:$36 sps:$4 sm:$0xff]  }
  0x58   : > { %1403 = vmatpush2.bf16.msra.mxu0 %v2209_v63  ;;  %v2300_v63 = vld [vmem:[%s2548_s11 + $0x3f4] ss:$8 sps:$4 sm:$0xff]  }
  0x59   : > { %1456 = vmatpush2.bf16.msra.mxu1 %v2210_v0  ;;  %1404 = vmatprep.subr.bf16.mxu0 %v2211_v1  ;;  %v2354_v0 = vld [vmem:[%s2550_s12 + $0x1c] ss:$36 sps:$4 sm:$0xff]  }
  0x5a   : > { %1457 = vmatprep.subr.bf16.mxu1 %v2213_v2  ;;  %v2295_v1 = vld [vmem:[%s2548_s11 + $0x2f0] ss:$8 sps:$4 sm:$0xff]  }
  0x5b   : > { %v2298_v2 = vld [vmem:[%s2548_s11 + $0x3f0] ss:$8 sps:$4 sm:$0xff]  }
  0x5c   : > { %1405 = vmatpush2.bf16.msra.mxu0 %v2215_v3  ;;  %v2303_v3 = vld [vmem:[%s2548_s11 + $0x2e4] ss:$8 sps:$4 sm:$0xff]  }
  0x5d   : > { %1458 = vmatpush2.bf16.msra.mxu1 %v2216_v4  ;;  %1406 = vmatprep.subr.bf16.mxu0 %v2217_v5  ;;  %v2306_v4 = vld [vmem:[%s2548_s11 + $0x3e4] ss:$8 sps:$4 sm:$0xff]   ;;  %v2301_v5 = vld [vmem:[%s2548_s11 + $0x2e0] ss:$8 sps:$4 sm:$0xff]  }
  0x5e   : > { %1459 = vmatprep.subr.bf16.mxu1 %v2219_v7  ;;  %v2309_v7 = vld [vmem:[%s2548_s11 + $0x2d4] ss:$8 sps:$4 sm:$0xff]  }
  0x60   : > { %1407 = vmatpush2.bf16.msra.mxu0 %v2221_v9  ;;  %v2307_v9 = vld [vmem:[%s2548_s11 + $0x2d0] ss:$8 sps:$4 sm:$0xff]  }
  0x61   : > { %1460 = vmatpush2.bf16.msra.mxu1 %v2222_v10  ;;  %1408 = vmatprep.subr.bf16.mxu0 %v2223_v11  ;;  %v2310_v10 = vld [vmem:[%s2548_s11 + $0x3d0] ss:$8 sps:$4 sm:$0xff]   ;;  %v2315_v11 = vld [vmem:[%s2548_s11 + $0x2c4] ss:$8 sps:$4 sm:$0xff]  }
  0x62   : > { %1461 = vmatprep.subr.bf16.mxu1 %v2225_v12  ;;  %v2318_v12 = vld [vmem:[%s2548_s11 + $0x3c4] ss:$8 sps:$4 sm:$0xff]  }
  0x64   : > { %1409 = vmatpush2.bf16.msra.mxu0 %v2227_v13  ;;  %v2313_v13 = vld [vmem:[%s2548_s11 + $0x2c0] ss:$8 sps:$4 sm:$0xff]  }
  0x65   : > { %1462 = vmatpush2.bf16.msra.mxu1 %v2228_v14  ;;  %1410 = vmatprep.subr.bf16.mxu0 %v2229_v15  ;;  %v2316_v14 = vld [vmem:[%s2548_s11 + $0x3c0] ss:$8 sps:$4 sm:$0xff]   ;;  %v2321_v15 = vld [vmem:[%s2548_s11 + $0x2b4] ss:$8 sps:$4 sm:$0xff]  }
  0x66   : > { %1463 = vmatprep.subr.bf16.mxu1 %v2231_v16  ;;  %v2324_v16 = vld [vmem:[%s2548_s11 + $0x3b4] ss:$8 sps:$4 sm:$0xff]  }
  0x68   : > { %1411 = vmatpush2.bf16.msra.mxu0 %v2233_v17  ;;  %v2319_v17 = vld [vmem:[%s2548_s11 + $0x2b0] ss:$8 sps:$4 sm:$0xff]  }
  0x69   : > { %1464 = vmatpush2.bf16.msra.mxu1 %v2234_v18  ;;  %1412 = vmatprep.subr.bf16.mxu0 %v2235_v19  ;;  %v2322_v18 = vld [vmem:[%s2548_s11 + $0x3b0] ss:$8 sps:$4 sm:$0xff]   ;;  %v2333_v19 = vld [vmem:[%s2548_s11 + $0x2a4] ss:$8 sps:$4 sm:$0xff]  }
  0x6a   : > { %1465 = vmatprep.subr.bf16.mxu1 %v2237_v20  ;;  %v2336_v20 = vld [vmem:[%s2548_s11 + $0x3a4] ss:$8 sps:$4 sm:$0xff]  }
  0x6c   : > { %1413 = vmatpush2.bf16.msra.mxu0 %v2239_v21  ;;  %v2331_v21 = vld [vmem:[%s2548_s11 + $0x2a0] ss:$8 sps:$4 sm:$0xff]  }
  0x6d   : > { %1466 = vmatpush2.bf16.msra.mxu1 %v2240_v22  ;;  %1488 = vmatprep.subr.bf16.mxu0 %v2249_v23  ;;  %v2334_v22 = vld [vmem:[%s2548_s11 + $0x3a0] ss:$8 sps:$4 sm:$0xff]   ;;  %v2339_v23 = vld [vmem:[%s2548_s11 + $0x294] ss:$8 sps:$4 sm:$0xff]  }
  0x6e   : > { %1541 = vmatprep.subr.bf16.mxu1 %v2252_v24  ;;  %v2342_v24 = vld [vmem:[%s2548_s11 + $0x394] ss:$8 sps:$4 sm:$0xff]  }
  0x6f   : > { %1415 = vmatmul.mubr.bf16.vlgmr.msra.gmra.mxu0 %v2241_v25  ;;  %v2337_v25 = vld [vmem:[%s2548_s11 + $0x290] ss:$8 sps:$4 sm:$0xff]  }
  0x70   : > { %1468 = vmatmul.mubr.bf16.vlgmr.msra.gmra.mxu1 %v2244_v26  ;;  %1489 = vmatpush1.bf16.msra.mxu0 %v2247_v27  ;;  %v2340_v26 = vld [vmem:[%s2548_s11 + $0x390] ss:$8 sps:$4 sm:$0xff]   ;;  %v2345_v27 = vld [vmem:[%s2548_s11 + $0x284] ss:$8 sps:$4 sm:$0xff]  }
  0x71   : > { %1542 = vmatpush1.bf16.msra.mxu1 %v2250_v28  ;;  %1490 = vmatprep.subr.bf16.mxu0 %v2255_v29  ;;  %v2348_v28 = vld [vmem:[%s2548_s11 + $0x384] ss:$8 sps:$4 sm:$0xff]   ;;  %v2343_v29 = vld [vmem:[%s2548_s11 + $0x280] ss:$8 sps:$4 sm:$0xff]  }
  0x72   : > { %1543 = vmatprep.subr.bf16.mxu1 %v2258_v30  ;;  %1424 = vmatprep.mubr.bf16.mxu0 %v2325_v47  ;;  %v2346_v30 = vld [vmem:[%s2548_s11 + $0x380] ss:$8 sps:$4 sm:$0xff]   ;;  %v2373_v47 = vld [vmem:[%s2548_s11 + $0x430] ss:$8 sps:$4 sm:$0xff]  }
  0x73   : > { %1477 = vmatprep.mubr.bf16.mxu1 %v2327_v48  ;;  %v2378_v48 = vld [vmem:[%s2548_s11 + $0x424] ss:$8 sps:$4 sm:$0xff]  }
  0x74   : > { %1491 = vmatpush1.bf16.msra.mxu0 %v2253_v31  ;;  %v2357_v31 = vld [vmem:[%s2548_s11 + $0x474] ss:$8 sps:$4 sm:$0xff]  }
  0x75   : > { %1544 = vmatpush1.bf16.msra.mxu1 %v2256_v32  ;;  %1492 = vmatprep.subr.bf16.mxu0 %v2261_v33  ;;  %v2349_v32 = vld [vmem:[%s2550_s12 + $0x10] ss:$36 sps:$4 sm:$0xff]   ;;  %v2352_v33 = vld [vmem:[%s2550_s12 + $0x18] ss:$36 sps:$4 sm:$0xff]  }
  0x76   : > { %1545 = vmatprep.subr.bf16.mxu1 %v2264_v34  ;;  %v2355_v34 = vld [vmem:[%s2548_s11 + $0x470] ss:$8 sps:$4 sm:$0xff]  }
  0x77   : > { %1425 = vmatmul.mubr.bf16.gmra.mxu0 %v2329_v49  ;;  %v2376_v49 = vld [vmem:[%s2548_s11 + $0x420] ss:$8 sps:$4 sm:$0xff]  }
  0x78   : > { %1493 = vmatpush1.bf16.msra.mxu0 %v2259_v35  ;;  %1478 = vmatmul.mubr.bf16.gmra.mxu1 %v2330_v50  ;;  %v2360_v35 = vld [vmem:[%s2548_s11 + $0x464] ss:$8 sps:$4 sm:$0xff]   ;;  %v2381_v50 = vld [vmem:[%s2548_s11 + $0x414] ss:$8 sps:$4 sm:$0xff]  }
  0x79   : > { %1546 = vmatpush1.bf16.msra.mxu1 %v2262_v36  ;;  %1494 = vmatprep.subr.bf16.mxu0 %v2267_v37  ;;  %v2361_v36 = vld [vmem:[%s2550_s12 + $0x5c] ss:$36 sps:$4 sm:$0xff]   ;;  %v2367_v37 = vld [vmem:[%s2550_s12 + $0x64] ss:$36 sps:$4 sm:$0xff]  }
  0x7a   : > { %1547 = vmatprep.subr.bf16.mxu1 %v2270_v38  ;;  %1520 = vmatprep.mubr.bf16.mxu0 %v2351_v62  ;;  %v2358_v38 = vld [vmem:[%s2548_s11 + $0x460] ss:$8 sps:$4 sm:$0xff]  }
  0x7b   : > { %1573 = vmatprep.mubr.bf16.mxu1 %v2354_v0 }
  0x7c   : > { %1495 = vmatpush1.bf16.msra.mxu0 %v2265_v39  ;;  %v2366_v39 = vld [vmem:[%s2548_s11 + $0x454] ss:$8 sps:$4 sm:$0xff]  }
  0x7d   : > { %1548 = vmatpush1.bf16.msra.mxu1 %v2268_v40  ;;  %1496 = vmatprep.subr.bf16.mxu0 %v2273_v41  ;;  %v2363_v40 = vld [vmem:[%s2550_s12 + $0x58] ss:$36 sps:$4 sm:$0xff]   ;;  %v2369_v41 = vld [vmem:[%s2550_s12 + $0x60] ss:$36 sps:$4 sm:$0xff]  }
  0x7e   : > { %1549 = vmatprep.subr.bf16.mxu1 %v2276_v42  ;;  %v2364_v42 = vld [vmem:[%s2548_s11 + $0x450] ss:$8 sps:$4 sm:$0xff]  }
  0x80   : > { %1497 = vmatpush1.bf16.msra.mxu0 %v2271_v43  ;;  %v2372_v43 = vld [vmem:[%s2548_s11 + $0x444] ss:$8 sps:$4 sm:$0xff]  }
  0x81   : > { %1550 = vmatpush1.bf16.msra.mxu1 %v2274_v44  ;;  %1498 = vmatprep.subr.bf16.mxu0 %v2279_v45  ;;  %v2370_v44 = vld [vmem:[%s2548_s11 + $0x440] ss:$8 sps:$4 sm:$0xff]   ;;  %v2375_v45 = vld [vmem:[%s2548_s11 + $0x434] ss:$8 sps:$4 sm:$0xff]  }
  0x82   : > { %1551 = vmatprep.subr.bf16.mxu1 %v2282_v46  ;;  %v2428_v46 = vmov 0  }
  0x84   : > { %1499 = vmatpush1.bf16.msra.mxu0 %v2277_v51  ;;  %v2379_v51 = vld [vmem:[%s2548_s11 + $0x410] ss:$8 sps:$4 sm:$0xff]  }
  0x85   : > { %1552 = vmatpush1.bf16.msra.mxu1 %v2280_v52  ;;  %1500 = vmatprep.subr.bf16.mxu0 %v2285_v53  ;;  %v2384_v52 = vld [vmem:[%s2548_s11 + $0x404] ss:$8 sps:$4 sm:$0xff]   ;;  %v2382_v53 = vld [vmem:[%s2548_s11 + $0x400] ss:$8 sps:$4 sm:$0xff]  }
  0x86   : > { %1553 = vmatprep.subr.bf16.mxu1 %v2288_v54  ;;  %v2385_v54 = vld [vmem:[%s2550_s12 + $0x20] ss:$36 sps:$4 sm:$0xff]  }
  0x88   : > { %1501 = vmatpush1.bf16.msra.mxu0 %v2283_v55  ;;  %v2386_v55 = vld [vmem:[%s2550_s12 + $0x68] ss:$36 sps:$4 sm:$0xff]  }
  0x89   : > { %1554 = vmatpush1.bf16.msra.mxu1 %v2286_v56  ;;  %1502 = vmatprep.subr.bf16.mxu0 %v2291_v57 }
  0x8a   : > { %1555 = vmatprep.subr.bf16.mxu1 %v2294_v58 }
  0x8c   : > { %1503 = vmatpush1.bf16.msra.mxu0 %v2289_v59 }
  0x8d   : > { %1556 = vmatpush1.bf16.msra.mxu1 %v2292_v60  ;;  %1504 = vmatprep.subr.bf16.mxu0 %v2297_v61 }
  0x8e   : > { %1557 = vmatprep.subr.bf16.mxu1 %v2300_v63 }
  0x90   : > { %1505 = vmatpush2.bf16.msra.mxu0 %v2295_v1 }
  0x91   : > { %1558 = vmatpush2.bf16.msra.mxu1 %v2298_v2  ;;  %1506 = vmatprep.subr.bf16.mxu0 %v2303_v3 }
  0x92   : > { %1559 = vmatprep.subr.bf16.mxu1 %v2306_v4 }
  0x94   : > { %1507 = vmatpush2.bf16.msra.mxu0 %v2301_v5 }
  0x95   : > { %1560 = vmatpush2.bf16.msra.mxu1 %v2304_v6  ;;  %1508 = vmatprep.subr.bf16.mxu0 %v2309_v7 }
  0x96   : > { %1561 = vmatprep.subr.bf16.mxu1 %v2312_v8 }
  0x98   : > { %1509 = vmatpush2.bf16.msra.mxu0 %v2307_v9 }
  0x99   : > { %1562 = vmatpush2.bf16.msra.mxu1 %v2310_v10  ;;  %1510 = vmatprep.subr.bf16.mxu0 %v2315_v11 }
  0x9a   : > { %1563 = vmatprep.subr.bf16.mxu1 %v2318_v12 }
  0x9c   : > { %1511 = vmatpush2.bf16.msra.mxu0 %v2313_v13 }
  0x9d   : > { %1564 = vmatpush2.bf16.msra.mxu1 %v2316_v14  ;;  %1512 = vmatprep.subr.bf16.mxu0 %v2321_v15 }
  0x9e   : > { %1565 = vmatprep.subr.bf16.mxu1 %v2324_v16 }
  0xa0   : > { %1513 = vmatpush2.bf16.msra.mxu0 %v2319_v17 }
  0xa1   : > { %1566 = vmatpush2.bf16.msra.mxu1 %v2322_v18  ;;  %1514 = vmatprep.subr.bf16.mxu0 %v2333_v19 }
  0xa2   : > { %1567 = vmatprep.subr.bf16.mxu1 %v2336_v20 }
  0xa4   : > { %1515 = vmatpush2.bf16.msra.mxu0 %v2331_v21 }
  0xa5   : > { %1568 = vmatpush2.bf16.msra.mxu1 %v2334_v22  ;;  %1516 = vmatprep.subr.bf16.mxu0 %v2339_v23 }
  0xa6   : > { %1569 = vmatprep.subr.bf16.mxu1 %v2342_v24 }
  0xa8   : > { %1517 = vmatpush2.bf16.msra.mxu0 %v2337_v25 }
  0xa9   : > { %1570 = vmatpush2.bf16.msra.mxu1 %v2340_v26  ;;  %1518 = vmatprep.subr.bf16.mxu0 %v2345_v27 }
  0xaa   : > { %1571 = vmatprep.subr.bf16.mxu1 %v2348_v28 }
  0xac   : > { %1519 = vmatpush2.bf16.msra.mxu0 %v2343_v29 }
  0xad   : > { %1572 = vmatpush2.bf16.msra.mxu1 %v2346_v30  ;;  %1594 = vmatprep.subr.bf16.mxu0 %v2357_v31 }
  0xae   : > { %2085 = vmatprep.subr.bf16.mxu1 %v2357_v31 }
  0xaf   : > { %1521 = vmatmul.mubr.bf16.vlgmr.msra.gmra.mxu0 %v2349_v32 }
  0xb0   : > { %1574 = vmatmul.mubr.bf16.vlgmr.msra.gmra.mxu1 %v2352_v33  ;;  %1595 = vmatpush1.bf16.msra.mxu0 %v2355_v34 }
  0xb1   : > { %2093 = vmatpush1.bf16.msra.mxu1 %v2355_v34  ;;  %1596 = vmatprep.subr.bf16.mxu0 %v2360_v35 }
  0xb2   : > { %2086 = vmatprep.subr.bf16.mxu1 %v2360_v35  ;;  %1530 = vmatprep.mubr.bf16.mxu0 %v2361_v36 }
  0xb3   : > { %1583 = vmatprep.mubr.bf16.mxu1 %v2367_v37 }
  0xb4   : > { %1597 = vmatpush1.bf16.msra.mxu0 %v2358_v38 }
  0xb5   : > { %2094 = vmatpush1.bf16.msra.mxu1 %v2358_v38  ;;  %1598 = vmatprep.subr.bf16.mxu0 %v2366_v39 }
  0xb6   : > { %2087 = vmatprep.subr.bf16.mxu1 %v2366_v39 }
  0xb7   : > { %1531 = vmatmul.mubr.bf16.gmra.mxu0 %v2363_v40 }
  0xb8   : > { %1584 = vmatmul.mubr.bf16.gmra.mxu1 %v2369_v41  ;;  %1599 = vmatpush1.bf16.msra.mxu0 %v2364_v42 }
  0xb9   : > { %2095 = vmatpush1.bf16.msra.mxu1 %v2364_v42  ;;  %1600 = vmatprep.subr.bf16.mxu0 %v2372_v43  ;;  %v398_v42 = vld [vmem:[#allocation2 + $0x30] sm:$0xff] }
  0xba   : > { %2088 = vmatprep.subr.bf16.mxu1 %v2372_v43  ;;  %1626 = vmatprep.mubr.bf16.mxu0 %v2428_v46 }
  0xbb   : > { %1636 = vmatprep.mubr.bf16.mxu1 %v2428_v46 }
  0xbc   : > { %1601 = vmatpush1.bf16.msra.mxu0 %v2370_v44 }
  0xbd   : > { %2096 = vmatpush1.bf16.msra.mxu1 %v2370_v44  ;;  %1602 = vmatprep.subr.bf16.mxu0 %v2375_v45  ;;  %v402_v44 = vld [vmem:[#allocation2 + $0x8] sm:$0xff] }
  0xbe   : > { %2089 = vmatprep.subr.bf16.mxu1 %v2375_v45 }
  0xc0   : > { %1603 = vmatpush1.bf16.msra.mxu0 %v2373_v47 }
  0xc1   : > { %2097 = vmatpush1.bf16.msra.mxu1 %v2373_v47  ;;  %1604 = vmatprep.subr.bf16.mxu0 %v2378_v48 }
  0xc2   : > { %2090 = vmatprep.subr.bf16.mxu1 %v2378_v48 }
  0xc4   : > { %1605 = vmatpush1.bf16.msra.mxu0 %v2376_v49 }
  0xc5   : > { %2098 = vmatpush1.bf16.msra.mxu1 %v2376_v49  ;;  %1606 = vmatprep.subr.bf16.mxu0 %v2381_v50 }
  0xc6   : > { %2091 = vmatprep.subr.bf16.mxu1 %v2381_v50 }
  0xc8   : > { %1607 = vmatpush1.bf16.msra.mxu0 %v2379_v51 }
  0xc9   : > { %2099 = vmatpush1.bf16.msra.mxu1 %v2379_v51  ;;  %1608 = vmatprep.subr.bf16.mxu0 %v2384_v52 }
  0xca   : > { %2092 = vmatprep.subr.bf16.mxu1 %v2384_v52  ;;  %v399_v52 = vld [vmem:[#allocation2] sm:$0xff] }
  0xcc   : > { %1609 = vmatpush1.bf16.msra.mxu0 %v2382_v53 }
  0xcd   : > { %2100 = vmatpush1.bf16.msra.mxu1 %v2382_v53 }
  0xcf   : > { %1627 = vmatmul.mubr.bf16.vlgmr.msra.gmra.mxu0 %v2385_v54  ;;  %v403_v54 = vld [vmem:[#allocation2 + $0x20] sm:$0xff] }
  0xd0   : > { %1637 = vmatmul.mubr.bf16.vlgmr.msra.gmra.mxu1 %v2386_v55 }
 0x12f   : > { %v1416_v56 = vpop.f32.mrf.mxu0 }
 0x130   : > { %v1469_v57 = vpop.f32.mrf.mxu1 }
 0x131   : > { %v1418_v58 = vpop.f32.mrf.mxu0  ;;  %v1470_v20 = vadd.f32 %v1469_v57, %v1416_v56 }
 0x132   : > { %v1471_v59 = vpop.f32.mrf.mxu1 }
 0x133   : > { %v1420_v60 = vpop.f32.mrf.mxu0  ;;  %v1472_v24 = vadd.f32 %v1471_v59, %v1418_v58 }
 0x134   : > { %v1473_v61 = vpop.f32.mrf.mxu1 }
 0x135   : > { %v1422_v62 = vpop.f32.mrf.mxu0  ;;  %v1474_v28 = vadd.f32 %v1473_v61, %v1420_v60 }
 0x136   : > { %v1475_v0 = vpop.f32.mrf.mxu1 }
 0x137   : > { %v1426_v63 = vpop.f32.mrf.mxu0  ;;  %v1476_v33 = vadd.f32 %v1475_v0, %v1422_v62  ;;  %v400_v62 = vld [vmem:[#allocation2 + $0x18] sm:$0xff]  ;;  %v404_v0 = vld [vmem:[#allocation2 + $0x28] sm:$0xff] }
 0x138   : > { %v1479_v1 = vpop.f32.mrf.mxu1 }
 0x139   : > { %v1428_v2 = vpop.f32.mrf.mxu0  ;;  %v1480_v21 = vadd.f32 %v1479_v1, %v1426_v63 }
 0x13a   : > { %v1481_v3 = vpop.f32.mrf.mxu1 }
 0x13b   : > { %v1430_v4 = vpop.f32.mrf.mxu0  ;;  %v1482_v25 = vadd.f32 %v1481_v3, %v1428_v2 }
 0x13c   : > { %v1483_v5 = vpop.f32.mrf.mxu1 }
 0x13d   : > { %v1432_v6 = vpop.f32.mrf.mxu0  ;;  %v1484_v29 = vadd.f32 %v1483_v5, %v1430_v4 }
 0x13e   : > { %v1485_v8 = vpop.f32.mrf.mxu1 }
 0x13f   : > { %v1486_v34 = vadd.f32 %v1485_v8, %v1432_v6  ;;  %v401_v6 = vld [vmem:[#allocation2 + $0x10] sm:$0xff]  ;;  %v405_v8 = vld [vmem:[#allocation2 + $0x38] sm:$0xff] }
 0x16f   : > { %v1522_v7 = vpop.f32.mrf.mxu0 }
 0x170   : > { %v1575_v9 = vpop.f32.mrf.mxu1  ;;  %v1523_v26 = vadd.f32 %v1522_v7, %v1470_v20 }
 0x171   : > { %v1524_v10 = vpop.f32.mrf.mxu0 }
 0x172   : > { %v1577_v11 = vpop.f32.mrf.mxu1  ;;  %v1525_v30 = vadd.f32 %v1524_v10, %v1472_v24  ;;  %v1576_v38 = vadd.f32 %v1575_v9, %v1523_v26 }
 0x173   : > { %v1526_v12 = vpop.f32.mrf.mxu0 }
 0x174   : > { %v1579_v13 = vpop.f32.mrf.mxu1  ;;  %v1527_v35 = vadd.f32 %v1526_v12, %v1474_v28  ;;  %v1578_v46 = vadd.f32 %v1577_v11, %v1525_v30 }
 0x175   : > { %v1528_v14 = vpop.f32.mrf.mxu0 }
 0x176   : > { %v1581_v15 = vpop.f32.mrf.mxu1  ;;  %v1529_v40 = vadd.f32 %v1528_v14, %v1476_v33  ;;  %v1580_v50 = vadd.f32 %v1579_v13, %v1527_v35 }
 0x177   : > { %v1532_v16 = vpop.f32.mrf.mxu0 }
 0x178   : > { %v1585_v17 = vpop.f32.mrf.mxu1  ;;  %v1533_v27 = vadd.f32 %v1532_v16, %v1480_v21  ;;  %v1582_v60 = vadd.f32 %v1581_v15, %v1529_v40 }
 0x179   : > { %v1534_v18 = vpop.f32.mrf.mxu0 }
 0x17a   : > { %v1587_v19 = vpop.f32.mrf.mxu1  ;;  %v1535_v31 = vadd.f32 %v1534_v18, %v1482_v25  ;;  %v1586_v39 = vadd.f32 %v1585_v17, %v1533_v27 }
 0x17b   : > { %v1536_v22 = vpop.f32.mrf.mxu0 }
 0x17c   : > { %v1589_v23 = vpop.f32.mrf.mxu1  ;;  %v1537_v36 = vadd.f32 %v1536_v22, %v1484_v29  ;;  %v1588_v47 = vadd.f32 %v1587_v19, %v1535_v31 }
 0x17d   : > { %v1538_v32 = vpop.f32.mrf.mxu0 }
 0x17e   : > { %v1591_v37 = vpop.f32.mrf.mxu1  ;;  %v1539_v41 = vadd.f32 %v1538_v32, %v1486_v34  ;;  %v1590_v51 = vadd.f32 %v1589_v23, %v1537_v36 }
 0x180   : > { %v1592_v61 = vadd.f32 %v1591_v37, %v1539_v41 }
 0x18f   : > { %v1628_v43 = vpop.f32.mrf.mxu0 }
 0x190   : > { %v1638_v45 = vpop.f32.mrf.mxu1  ;;  %v1629_v48 = vadd.f32 %v1628_v43, %v1576_v38 }
 0x191   : > { %v1639_v49 = vadd.f32 %v1638_v45, %v1586_v39  ;;  %v1630_v53 = vpop.f32.mrf.mxu0 }
 0x192   : > { %v1640_v55 = vpop.f32.mrf.mxu1  ;;  %v1647_v56 = vadd.f32 %v1629_v48, %v398_v42  ;;  %v1631_v58 = vadd.f32 %v1630_v53, %v1578_v46 }
 0x193   : > { %v1651_v57 = vadd.f32 %v1639_v49, %v402_v44  ;;  %v1641_v59 = vadd.f32 %v1640_v55, %v1588_v47  ;;  %v1632_v63 = vpop.f32.mrf.mxu0 }
 0x194   : > { %v1642_v1 = vpop.f32.mrf.mxu1  ;;  %1655 = vst [vmem:[#allocation2 + $0x30] sm:$0xff] %v1647_v56  ;;  %v1648_v2 = vadd.f32 %v1631_v58, %v399_v52  ;;  %v1633_v4 = vadd.f32 %v1632_v63, %v1580_v50 }
 0x195   : > { %1659 = vst [vmem:[#allocation2 + $0x8] sm:$0xff] %v1651_v57  ;;  %v1652_v3 = vadd.f32 %v1641_v59, %v403_v54  ;;  %v1643_v5 = vadd.f32 %v1642_v1, %v1590_v51  ;;  %v1634_v7 = vpop.f32.mrf.mxu0 }
 0x196   : > { %v1644_v9 = vpop.f32.mrf.mxu1  ;;  %1656 = vst [vmem:[#allocation2] sm:$0xff] %v1648_v2  ;;  %v1649_v10 = vadd.f32 %v1633_v4, %v400_v62  ;;  %v1635_v12 = vadd.f32 %v1634_v7, %v1582_v60 }
 0x197   : > { %1660 = vst [vmem:[#allocation2 + $0x20] sm:$0xff] %v1652_v3  ;;  %v1653_v11 = vadd.f32 %v1643_v5, %v404_v0  ;;  %v1645_v13 = vadd.f32 %v1644_v9, %v1592_v61  ;;  %1666 = sbr.rel (%p2070_p11) target bundleno = 430 (0x1ae), region = 70 }
 0x198   : > { %1657 = vst [vmem:[#allocation2 + $0x18] sm:$0xff] %v1649_v10  ;;  %v1650_v14 = vadd.f32 %v1635_v12, %v401_v6 }
 0x199   : > { %1661 = vst [vmem:[#allocation2 + $0x28] sm:$0xff] %v1653_v11  ;;  %v1654_v15 = vadd.f32 %v1645_v13, %v405_v8 }
 0x19a   : > { %1658 = vst [vmem:[#allocation2 + $0x10] sm:$0xff] %v1650_v14 }
 0x19b   : > { %1662 = vst [vmem:[#allocation2 + $0x38] sm:$0xff] %v1654_v15 }
 0x19c   : > { %v1677_v16 = vlaneseq  ;;  %v1675_v18 = vld [vmem:[%s2751_s2] sm:$0x3]  ;;  %v1667_v20 = vld [vmem:[#allocation2 + $0x30] sm:$0xff]  ;;  %v1671_v26 = vld [vmem:[#allocation2 + $0x8] sm:$0xff] }
 0x19d   : > { %v1695_v19 = vld [vmem:[%s2752_s3] sm:$0x3] }
 0x19e   : > { %v1678_v17 = vshrl.u32 %v1677_v16, 7  ;;  %v1668_v21 = vld [vmem:[#allocation2] sm:$0xff] }
 0x19f   : > { %v1669_v24 = vld [vmem:[#allocation2 + $0x18] sm:$0xff]  ;;  %v1672_v31 = vld [vmem:[#allocation2 + $0x20] sm:$0xff] }
 0x1a0   : > { %v1679_v22 = vsub.s32 0, %v1678_v17  ;;  %v1683_v23 = vsub.s32 1, %v1678_v17  ;;  %v1673_v32 = vld [vmem:[#allocation2 + $0x28] sm:$0xff] }
 0x1a1   : > { %v1670_v25 = vld [vmem:[#allocation2 + $0x10] sm:$0xff] }
 0x1a2   : > { %v1680_v27 = vrot.slane %v1675_v18, %v1679_v22  ;;  %v1684_v28 = vrot.slane %v1675_v18, %v1683_v23  ;;  %v1700_v29 = vrot.slane %v1695_v19, %v1679_v22  ;;  %v1704_v30 = vrot.slane %v1695_v19, %v1683_v23  ;;  %v1674_v33 = vld [vmem:[#allocation2 + $0x38] sm:$0xff] }
 0x1a4   : > { %v1687_v34 = vmul.f32 %v1680_v27, %v1667_v20  ;;  %v1688_v35 = vmul.f32 %v1684_v28, %v1668_v21  ;;  %v1689_v36 = vmul.f32 %v1680_v27, %v1669_v24  ;;  %v1690_v37 = vmul.f32 %v1684_v28, %v1670_v25 }
 0x1a5   : > { %v1691_v38 = vmul.f32 %v1680_v27, %v1671_v26  ;;  %v1692_v39 = vmul.f32 %v1684_v28, %v1672_v31  ;;  %v1693_v40 = vmul.f32 %v1680_v27, %v1673_v32  ;;  %v1694_v41 = vmul.f32 %v1684_v28, %v1674_v33 }
 0x1a6   : > { %v1707_v42 = vadd.f32 %v1700_v29, %v1687_v34  ;;  %v1708_v43 = vadd.f32 %v1704_v30, %v1688_v35  ;;  %v1709_v44 = vadd.f32 %v1700_v29, %v1689_v36  ;;  %v1710_v45 = vadd.f32 %v1704_v30, %v1690_v37 }
 0x1a7   : > { %v1711_v46 = vadd.f32 %v1700_v29, %v1691_v38  ;;  %v1712_v47 = vadd.f32 %v1704_v30, %v1692_v39  ;;  %v1713_v48 = vadd.f32 %v1700_v29, %v1693_v40  ;;  %v1714_v49 = vadd.f32 %v1704_v30, %v1694_v41 }
 0x1a8   : > { %v1715_v50 = vmax.f32 %v1707_v42, 0.0  ;;  %v1716_v51 = vmax.f32 %v1708_v43, 0.0  ;;  %v1717_v52 = vmax.f32 %v1709_v44, 0.0  ;;  %v1718_v53 = vmax.f32 %v1710_v45, 0.0 }
 0x1a9   : > { %v1719_v54 = vmax.f32 %v1711_v46, 0.0  ;;  %v1720_v55 = vmax.f32 %v1712_v47, 0.0  ;;  %v1721_v56 = vmax.f32 %v1713_v48, 0.0  ;;  %v1722_v57 = vmax.f32 %v1714_v49, 0.0 }
 0x1aa   : > { %v2081_v58 = vpack.c.bf16 %v1716_v51, %v1715_v50  ;;  %v2082_v59 = vpack.c.bf16 %v1718_v53, %v1717_v52 }
 0x1ab   : > { %v2083_v60 = vpack.c.bf16 %v1720_v55, %v1719_v54  ;;  %v2084_v61 = vpack.c.bf16 %v1722_v57, %v1721_v56 }
 0x1ac   : > { %1747 = vst [vmem:[%s2753_s4] sm:$0xff] %v2081_v58  ;;  %1748 = vst [vmem:[%s2753_s4 + $0x8] sm:$0xff] %v2082_v59 }
 0x1ad   : > { %1749 = vst [vmem:[%s2753_s4 + $0x10] sm:$0xff] %v2083_v60  ;;  %1750 = vst [vmem:[%s2753_s4 + $0x18] sm:$0xff] %v2084_v61 }
 0x1ae PF: > { %s14_s19 = sadd.s32 1, %s2425_s19   ;;  %s2754_s15 = smov %s2413_s16 }
 0x1af   : > { %p11_p12 = scmp.ge.s32.totalorder %s14_s19, 4   ;;  %s2755_s16 = smov %s2489_s23 }
 0x1b0   : > { %s2756_s17 = smov %s2421_s18  ;;  %s2757_s18 = smov %s2759_s20 }
 0x1b1   :  { %13 = sbr.rel (!%p11_p12) target bundleno = 3 (0x3), region = 120 }

// kernel: custom_cnn_forward.13
= control target key start
LH: loop header
LB: loop body
LE: loop exit
PB: predicated region body
PF: predicated region fallthrough
CT: control target
= control target key end

     0   :  { %s2754_s15 = smov 0   ;;  %s2756_s16 = smov 0   ;;  %s3329_s0 = inlined_call_operand.vmem [shape: bf16[8,2304], index: 0, kind: input, shape index: {}]   ;;  %s3330_s1 = inlined_call_operand.vmem [shape: bf16[2304,512], index: 1, kind: input, shape index: {}]   ;;  %s3331_s2 = inlined_call_operand.vmem [shape: f32[1,512], index: 2, kind: input, shape index: {}]   ;;  %s3332_s3 = inlined_call_operand.vmem [shape: f32[1,512], index: 3, kind: input, shape index: {}]   ;;  %s3333_s4 = inlined_call_operand.vmem [shape: bf16[8,512], index: 4, kind: output, shape index: {}]  }
   0x1   :  { %s2758_s17 = smov 0   ;;  %s2760_s18 = smov 0  }
   0x2   :  { %s2762_s19 = smov 0   ;;  %s2764_s20 = smov 0  }
   0x3   :  { %s2766_s21 = smov 0  }
   0x4 LB: > { %s26_s22 = sadd.s32 1, %s2717_s19  ;;  %s29_s23 = sadd.s32 1, %s2721_s20  ;;  %s2725_s21 = sphi %s2766_s21, %s14_s21   ;;  %s2721_s20 = sphi %s2764_s20, %s3339_s20   ;;  %s2717_s19 = sphi %s2762_s19, %s3338_s19   ;;  %s2713_s18 = sphi %s2760_s18, %s3337_s18   ;;  %s2709_s17 = sphi %s2758_s17, %s3336_s17   ;;  %s2705_s16 = sphi %s2756_s16, %s3335_s16   ;;  %s2701_s15 = sphi %s2754_s15, %s3334_s15  }
   0x5   : > { %p27_p0 = scmp.ge.s32.totalorder %s26_s22, 2  ;;  %p77_p1 = scmp.ne.s32.totalorder %s2705_s16, %s2701_s15 }
   0x6   : > { %p78_p2 = scmp.eq.s32.totalorder %s2725_s21, 0  ;;  %s70_s27 = sadd.s32 1, %s2705_s16 }
   0x7   : > { %s3341_s22 = smov (%p27_p0, %s26_s22), 0  ;;  %s3343_s23 = smov (!%p27_p0, %s29_s23), %s2721_s20 }
   0x8   : > { %p79_p3 = por %p78_p2, %p77_p1  ;;  %p31_p4 = scmp.ge.s32.totalorder %s3343_s23, 2 }
   0x9   : > { %s65_s24 = ssub.s32 %s2717_s19, %s3341_s22  ;;  %p2216_p6 = scmp.ge.s32.totalorder %s2725_s21, 4 }
   0xa   : > { %s3345_s23 = smov (%p31_p4, %s3343_s23), 0 }
   0xb   : > { %s66_s25 = ssub.s32 %s2721_s20, %s3345_s23  ;;  %183 = sbr.rel (%p2216_p6) target bundleno = 96 (0x60), region = 16 }
   0xc   : > { %s67_s26 = sor.u32 %s66_s25, %s65_s24 }
   0xd   : > { %p68_p5 = scmp.eq.s32.totalorder %s67_s26, 0 }
   0xf   : > { %s2805_s28 = scalar_select %p68_p5, %s2705_s16, %s70_s27  }
  0x10   : > { %199 = sbr.rel (!%p79_p3) target bundleno = 96 (0x60), region = 24  ;;  %s201_s29 = sand.u32 (%p79_p3), 1, %s2705_s16  }
  0x11   : > { %s2386_s30 = smul.u32 (%p79_p3), 1152, %s201_s29  ;;  %s2217_s5 = sshll.u32 (%p79_p3), %s2721_s20, 1 }
  0x12   : > { %s2384_s6 = smul.u32 (%p79_p3), 576, %s2717_s19 }
  0x13   : > { %s2819_s12 = scalar_lea.vmem (%p79_p3), [#allocation3], %s2386_s30 }
  0x14   : > { %s207_s7 = sadd.s32 (%p79_p3), %s2384_s6, %s2217_s5 }
  0x15   : > { %s2219_s8 = sshll.u32 %s207_s7, 2 }
  0x16   : > { %s2814_s11 = scalar_lea.vmem %s3330_s1, %s2219_s8 }
  0x17   : > { %v524_v0 = vld [vmem:[%s2814_s11] sm:$0xff]  ;;  %v526_v1 = vld [vmem:[%s2814_s11 + $0x10] sm:$0xff] }
  0x18   : > { %v528_v2 = vld [vmem:[%s2814_s11 + $0x20] sm:$0xff]  ;;  %525 = vst [vmem:[%s2819_s12] sm:$0xff] %v524_v0  ;;  %527 = vst [vmem:[%s2819_s12 + $0x8] sm:$0xff] %v526_v1  ;;  %v530_v3 = vld [vmem:[%s2814_s11 + $0x30] sm:$0xff] }
  0x19   : > { %529 = vst [vmem:[%s2819_s12 + $0x10] sm:$0xff] %v528_v2  ;;  %v532_v4 = vld [vmem:[%s2814_s11 + $0x40] sm:$0xff]  ;;  %v534_v5 = vld [vmem:[%s2814_s11 + $0x50] sm:$0xff]  ;;  %531 = vst [vmem:[%s2819_s12 + $0x18] sm:$0xff] %v530_v3 }
  0x1a   : > { %533 = vst [vmem:[%s2819_s12 + $0x20] sm:$0xff] %v532_v4  ;;  %535 = vst [vmem:[%s2819_s12 + $0x28] sm:$0xff] %v534_v5  ;;  %v536_v6 = vld [vmem:[%s2814_s11 + $0x60] sm:$0xff]  ;;  %v538_v7 = vld [vmem:[%s2814_s11 + $0x70] sm:$0xff] }
  0x1b   : > { %v540_v8 = vld [vmem:[%s2814_s11 + $0x80] sm:$0xff]  ;;  %537 = vst [vmem:[%s2819_s12 + $0x30] sm:$0xff] %v536_v6  ;;  %539 = vst [vmem:[%s2819_s12 + $0x38] sm:$0xff] %v538_v7  ;;  %v542_v9 = vld [vmem:[%s2814_s11 + $0x90] sm:$0xff] }
  0x1c   : > { %541 = vst [vmem:[%s2819_s12 + $0x40] sm:$0xff] %v540_v8  ;;  %v544_v10 = vld [vmem:[%s2814_s11 + $0xa0] sm:$0xff]  ;;  %v546_v11 = vld [vmem:[%s2814_s11 + $0xb0] sm:$0xff]  ;;  %543 = vst [vmem:[%s2819_s12 + $0x48] sm:$0xff] %v542_v9 }
  0x1d   : > { %545 = vst [vmem:[%s2819_s12 + $0x50] sm:$0xff] %v544_v10  ;;  %547 = vst [vmem:[%s2819_s12 + $0x58] sm:$0xff] %v546_v11  ;;  %v548_v12 = vld [vmem:[%s2814_s11 + $0xc0] sm:$0xff]  ;;  %v550_v13 = vld [vmem:[%s2814_s11 + $0xd0] sm:$0xff] }
  0x1e   : > { %v552_v14 = vld [vmem:[%s2814_s11 + $0xe0] sm:$0xff]  ;;  %549 = vst [vmem:[%s2819_s12 + $0x60] sm:$0xff] %v548_v12  ;;  %551 = vst [vmem:[%s2819_s12 + $0x68] sm:$0xff] %v550_v13  ;;  %v554_v15 = vld [vmem:[%s2814_s11 + $0xf0] sm:$0xff] }
  0x1f   : > { %553 = vst [vmem:[%s2819_s12 + $0x70] sm:$0xff] %v552_v14  ;;  %v556_v16 = vld [vmem:[%s2814_s11 + $0x100] sm:$0xff]  ;;  %v558_v17 = vld [vmem:[%s2814_s11 + $0x110] sm:$0xff]  ;;  %555 = vst [vmem:[%s2819_s12 + $0x78] sm:$0xff] %v554_v15 }
  0x20   : > { %557 = vst [vmem:[%s2819_s12 + $0x80] sm:$0xff] %v556_v16  ;;  %559 = vst [vmem:[%s2819_s12 + $0x88] sm:$0xff] %v558_v17  ;;  %v560_v18 = vld [vmem:[%s2814_s11 + $0x120] sm:$0xff]  ;;  %v562_v19 = vld [vmem:[%s2814_s11 + $0x130] sm:$0xff] }
  0x21   : > { %v564_v20 = vld [vmem:[%s2814_s11 + $0x140] sm:$0xff]  ;;  %561 = vst [vmem:[%s2819_s12 + $0x90] sm:$0xff] %v560_v18  ;;  %563 = vst [vmem:[%s2819_s12 + $0x98] sm:$0xff] %v562_v19  ;;  %v566_v21 = vld [vmem:[%s2814_s11 + $0x150] sm:$0xff] }
  0x22   : > { %565 = vst [vmem:[%s2819_s12 + $0xa0] sm:$0xff] %v564_v20  ;;  %v568_v22 = vld [vmem:[%s2814_s11 + $0x160] sm:$0xff]  ;;  %v570_v23 = vld [vmem:[%s2814_s11 + $0x170] sm:$0xff]  ;;  %567 = vst [vmem:[%s2819_s12 + $0xa8] sm:$0xff] %v566_v21 }
  0x23   : > { %569 = vst [vmem:[%s2819_s12 + $0xb0] sm:$0xff] %v568_v22  ;;  %571 = vst [vmem:[%s2819_s12 + $0xb8] sm:$0xff] %v570_v23  ;;  %v572_v24 = vld [vmem:[%s2814_s11 + $0x180] sm:$0xff]  ;;  %v574_v25 = vld [vmem:[%s2814_s11 + $0x190] sm:$0xff] }
  0x24   : > { %v576_v26 = vld [vmem:[%s2814_s11 + $0x1a0] sm:$0xff]  ;;  %573 = vst [vmem:[%s2819_s12 + $0xc0] sm:$0xff] %v572_v24  ;;  %575 = vst [vmem:[%s2819_s12 + $0xc8] sm:$0xff] %v574_v25  ;;  %v578_v27 = vld [vmem:[%s2814_s11 + $0x1b0] sm:$0xff] }
  0x25   : > { %577 = vst [vmem:[%s2819_s12 + $0xd0] sm:$0xff] %v576_v26  ;;  %v580_v28 = vld [vmem:[%s2814_s11 + $0x1c0] sm:$0xff]  ;;  %v582_v29 = vld [vmem:[%s2814_s11 + $0x1d0] sm:$0xff]  ;;  %579 = vst [vmem:[%s2819_s12 + $0xd8] sm:$0xff] %v578_v27 }
  0x26   : > { %581 = vst [vmem:[%s2819_s12 + $0xe0] sm:$0xff] %v580_v28  ;;  %583 = vst [vmem:[%s2819_s12 + $0xe8] sm:$0xff] %v582_v29  ;;  %v584_v30 = vld [vmem:[%s2814_s11 + $0x1e0] sm:$0xff]  ;;  %v586_v31 = vld [vmem:[%s2814_s11 + $0x1f0] sm:$0xff] }
  0x27   : > { %v588_v32 = vld [vmem:[%s2814_s11 + $0x200] sm:$0xff]  ;;  %585 = vst [vmem:[%s2819_s12 + $0xf0] sm:$0xff] %v584_v30  ;;  %587 = vst [vmem:[%s2819_s12 + $0xf8] sm:$0xff] %v586_v31  ;;  %v590_v33 = vld [vmem:[%s2814_s11 + $0x210] sm:$0xff] }
  0x28   : > { %589 = vst [vmem:[%s2819_s12 + $0x100] sm:$0xff] %v588_v32  ;;  %v592_v34 = vld [vmem:[%s2814_s11 + $0x220] sm:$0xff]  ;;  %v594_v35 = vld [vmem:[%s2814_s11 + $0x230] sm:$0xff]  ;;  %591 = vst [vmem:[%s2819_s12 + $0x108] sm:$0xff] %v590_v33 }
  0x29   : > { %593 = vst [vmem:[%s2819_s12 + $0x110] sm:$0xff] %v592_v34  ;;  %595 = vst [vmem:[%s2819_s12 + $0x118] sm:$0xff] %v594_v35  ;;  %v596_v36 = vld [vmem:[%s2814_s11 + $0x240] sm:$0xff]  ;;  %v598_v37 = vld [vmem:[%s2814_s11 + $0x250] sm:$0xff] }
  0x2a   : > { %v600_v38 = vld [vmem:[%s2814_s11 + $0x260] sm:$0xff]  ;;  %597 = vst [vmem:[%s2819_s12 + $0x120] sm:$0xff] %v596_v36  ;;  %599 = vst [vmem:[%s2819_s12 + $0x128] sm:$0xff] %v598_v37  ;;  %v602_v39 = vld [vmem:[%s2814_s11 + $0x270] sm:$0xff] }
  0x2b   : > { %601 = vst [vmem:[%s2819_s12 + $0x130] sm:$0xff] %v600_v38  ;;  %v604_v40 = vld [vmem:[%s2814_s11 + $0x280] sm:$0xff]  ;;  %v606_v41 = vld [vmem:[%s2814_s11 + $0x290] sm:$0xff]  ;;  %603 = vst [vmem:[%s2819_s12 + $0x138] sm:$0xff] %v602_v39 }
  0x2c   : > { %605 = vst [vmem:[%s2819_s12 + $0x140] sm:$0xff] %v604_v40  ;;  %607 = vst [vmem:[%s2819_s12 + $0x148] sm:$0xff] %v606_v41  ;;  %v608_v42 = vld [vmem:[%s2814_s11 + $0x2a0] sm:$0xff]  ;;  %v610_v43 = vld [vmem:[%s2814_s11 + $0x2b0] sm:$0xff] }
  0x2d   : > { %v612_v44 = vld [vmem:[%s2814_s11 + $0x2c0] sm:$0xff]  ;;  %609 = vst [vmem:[%s2819_s12 + $0x150] sm:$0xff] %v608_v42  ;;  %611 = vst [vmem:[%s2819_s12 + $0x158] sm:$0xff] %v610_v43  ;;  %v614_v45 = vld [vmem:[%s2814_s11 + $0x2d0] sm:$0xff] }
  0x2e   : > { %613 = vst [vmem:[%s2819_s12 + $0x160] sm:$0xff] %v612_v44  ;;  %v616_v46 = vld [vmem:[%s2814_s11 + $0x2e0] sm:$0xff]  ;;  %v618_v47 = vld [vmem:[%s2814_s11 + $0x2f0] sm:$0xff]  ;;  %615 = vst [vmem:[%s2819_s12 + $0x168] sm:$0xff] %v614_v45 }
  0x2f   : > { %617 = vst [vmem:[%s2819_s12 + $0x170] sm:$0xff] %v616_v46  ;;  %619 = vst [vmem:[%s2819_s12 + $0x178] sm:$0xff] %v618_v47  ;;  %v620_v48 = vld [vmem:[%s2814_s11 + $0x300] sm:$0xff]  ;;  %v622_v49 = vld [vmem:[%s2814_s11 + $0x310] sm:$0xff] }
  0x30   : > { %v624_v50 = vld [vmem:[%s2814_s11 + $0x320] sm:$0xff]  ;;  %621 = vst [vmem:[%s2819_s12 + $0x180] sm:$0xff] %v620_v48  ;;  %623 = vst [vmem:[%s2819_s12 + $0x188] sm:$0xff] %v622_v49  ;;  %v626_v51 = vld [vmem:[%s2814_s11 + $0x330] sm:$0xff] }
  0x31   : > { %625 = vst [vmem:[%s2819_s12 + $0x190] sm:$0xff] %v624_v50  ;;  %v628_v52 = vld [vmem:[%s2814_s11 + $0x340] sm:$0xff]  ;;  %v630_v53 = vld [vmem:[%s2814_s11 + $0x350] sm:$0xff]  ;;  %627 = vst [vmem:[%s2819_s12 + $0x198] sm:$0xff] %v626_v51 }
  0x32   : > { %629 = vst [vmem:[%s2819_s12 + $0x1a0] sm:$0xff] %v628_v52  ;;  %631 = vst [vmem:[%s2819_s12 + $0x1a8] sm:$0xff] %v630_v53  ;;  %v632_v54 = vld [vmem:[%s2814_s11 + $0x360] sm:$0xff]  ;;  %v634_v55 = vld [vmem:[%s2814_s11 + $0x370] sm:$0xff] }
  0x33   : > { %v636_v56 = vld [vmem:[%s2814_s11 + $0x380] sm:$0xff]  ;;  %633 = vst [vmem:[%s2819_s12 + $0x1b0] sm:$0xff] %v632_v54  ;;  %635 = vst [vmem:[%s2819_s12 + $0x1b8] sm:$0xff] %v634_v55  ;;  %v638_v57 = vld [vmem:[%s2814_s11 + $0x390] sm:$0xff] }
  0x34   : > { %637 = vst [vmem:[%s2819_s12 + $0x1c0] sm:$0xff] %v636_v56  ;;  %v640_v58 = vld [vmem:[%s2814_s11 + $0x3a0] sm:$0xff]  ;;  %v642_v59 = vld [vmem:[%s2814_s11 + $0x3b0] sm:$0xff]  ;;  %639 = vst [vmem:[%s2819_s12 + $0x1c8] sm:$0xff] %v638_v57 }
  0x35   : > { %641 = vst [vmem:[%s2819_s12 + $0x1d0] sm:$0xff] %v640_v58  ;;  %643 = vst [vmem:[%s2819_s12 + $0x1d8] sm:$0xff] %v642_v59  ;;  %v644_v60 = vld [vmem:[%s2814_s11 + $0x3c0] sm:$0xff]  ;;  %v646_v61 = vld [vmem:[%s2814_s11 + $0x3d0] sm:$0xff] }
  0x36   : > { %v648_v62 = vld [vmem:[%s2814_s11 + $0x3e0] sm:$0xff]  ;;  %645 = vst [vmem:[%s2819_s12 + $0x1e0] sm:$0xff] %v644_v60  ;;  %647 = vst [vmem:[%s2819_s12 + $0x1e8] sm:$0xff] %v646_v61  ;;  %v650_v63 = vld [vmem:[%s2814_s11 + $0x3f0] sm:$0xff] }
  0x37   : > { %649 = vst [vmem:[%s2819_s12 + $0x1f0] sm:$0xff] %v648_v62  ;;  %v652_v0 = vld [vmem:[%s2814_s11 + $0x400] sm:$0xff]  ;;  %v654_v1 = vld [vmem:[%s2814_s11 + $0x410] sm:$0xff]  ;;  %651 = vst [vmem:[%s2819_s12 + $0x1f8] sm:$0xff] %v650_v63 }
  0x38   : > { %653 = vst [vmem:[%s2819_s12 + $0x200] sm:$0xff] %v652_v0  ;;  %655 = vst [vmem:[%s2819_s12 + $0x208] sm:$0xff] %v654_v1  ;;  %v656_v2 = vld [vmem:[%s2814_s11 + $0x420] sm:$0xff]  ;;  %v658_v3 = vld [vmem:[%s2814_s11 + $0x430] sm:$0xff] }
  0x39   : > { %v660_v4 = vld [vmem:[%s2814_s11 + $0x440] sm:$0xff]  ;;  %657 = vst [vmem:[%s2819_s12 + $0x210] sm:$0xff] %v656_v2  ;;  %659 = vst [vmem:[%s2819_s12 + $0x218] sm:$0xff] %v658_v3  ;;  %v662_v5 = vld [vmem:[%s2814_s11 + $0x450] sm:$0xff] }
  0x3a   : > { %661 = vst [vmem:[%s2819_s12 + $0x220] sm:$0xff] %v660_v4  ;;  %v664_v6 = vld [vmem:[%s2814_s11 + $0x460] sm:$0xff]  ;;  %v666_v7 = vld [vmem:[%s2814_s11 + $0x470] sm:$0xff]  ;;  %663 = vst [vmem:[%s2819_s12 + $0x228] sm:$0xff] %v662_v5 }
  0x3b   : > { %665 = vst [vmem:[%s2819_s12 + $0x230] sm:$0xff] %v664_v6  ;;  %667 = vst [vmem:[%s2819_s12 + $0x238] sm:$0xff] %v666_v7  ;;  %v668_v8 = vld [vmem:[%s2814_s11 + $0x480] sm:$0xff]  ;;  %v670_v9 = vld [vmem:[%s2814_s11 + $0x490] sm:$0xff] }
  0x3c   : > { %v672_v10 = vld [vmem:[%s2814_s11 + $0x4a0] sm:$0xff]  ;;  %669 = vst [vmem:[%s2819_s12 + $0x240] sm:$0xff] %v668_v8  ;;  %671 = vst [vmem:[%s2819_s12 + $0x248] sm:$0xff] %v670_v9  ;;  %v674_v11 = vld [vmem:[%s2814_s11 + $0x4b0] sm:$0xff] }
  0x3d   : > { %673 = vst [vmem:[%s2819_s12 + $0x250] sm:$0xff] %v672_v10  ;;  %v676_v12 = vld [vmem:[%s2814_s11 + $0x4c0] sm:$0xff]  ;;  %v678_v13 = vld [vmem:[%s2814_s11 + $0x4d0] sm:$0xff]  ;;  %675 = vst [vmem:[%s2819_s12 + $0x258] sm:$0xff] %v674_v11 }
  0x3e   : > { %677 = vst [vmem:[%s2819_s12 + $0x260] sm:$0xff] %v676_v12  ;;  %679 = vst [vmem:[%s2819_s12 + $0x268] sm:$0xff] %v678_v13  ;;  %v680_v14 = vld [vmem:[%s2814_s11 + $0x4e0] sm:$0xff]  ;;  %v682_v15 = vld [vmem:[%s2814_s11 + $0x4f0] sm:$0xff] }
  0x3f   : > { %v684_v16 = vld [vmem:[%s2814_s11 + $0x500] sm:$0xff]  ;;  %681 = vst [vmem:[%s2819_s12 + $0x270] sm:$0xff] %v680_v14  ;;  %683 = vst [vmem:[%s2819_s12 + $0x278] sm:$0xff] %v682_v15  ;;  %v686_v17 = vld [vmem:[%s2814_s11 + $0x510] sm:$0xff] }
  0x40   : > { %685 = vst [vmem:[%s2819_s12 + $0x280] sm:$0xff] %v684_v16  ;;  %v688_v18 = vld [vmem:[%s2814_s11 + $0x520] sm:$0xff]  ;;  %v690_v19 = vld [vmem:[%s2814_s11 + $0x530] sm:$0xff]  ;;  %687 = vst [vmem:[%s2819_s12 + $0x288] sm:$0xff] %v686_v17 }
  0x41   : > { %689 = vst [vmem:[%s2819_s12 + $0x290] sm:$0xff] %v688_v18  ;;  %691 = vst [vmem:[%s2819_s12 + $0x298] sm:$0xff] %v690_v19  ;;  %v692_v20 = vld [vmem:[%s2814_s11 + $0x540] sm:$0xff]  ;;  %v694_v21 = vld [vmem:[%s2814_s11 + $0x550] sm:$0xff] }
  0x42   : > { %v696_v22 = vld [vmem:[%s2814_s11 + $0x560] sm:$0xff]  ;;  %693 = vst [vmem:[%s2819_s12 + $0x2a0] sm:$0xff] %v692_v20  ;;  %695 = vst [vmem:[%s2819_s12 + $0x2a8] sm:$0xff] %v694_v21  ;;  %v698_v23 = vld [vmem:[%s2814_s11 + $0x570] sm:$0xff] }
  0x43   : > { %697 = vst [vmem:[%s2819_s12 + $0x2b0] sm:$0xff] %v696_v22  ;;  %v700_v24 = vld [vmem:[%s2814_s11 + $0x580] sm:$0xff]  ;;  %v702_v25 = vld [vmem:[%s2814_s11 + $0x590] sm:$0xff]  ;;  %699 = vst [vmem:[%s2819_s12 + $0x2b8] sm:$0xff] %v698_v23 }
  0x44   : > { %701 = vst [vmem:[%s2819_s12 + $0x2c0] sm:$0xff] %v700_v24  ;;  %703 = vst [vmem:[%s2819_s12 + $0x2c8] sm:$0xff] %v702_v25  ;;  %v704_v26 = vld [vmem:[%s2814_s11 + $0x5a0] sm:$0xff]  ;;  %v706_v27 = vld [vmem:[%s2814_s11 + $0x5b0] sm:$0xff] }
  0x45   : > { %v708_v28 = vld [vmem:[%s2814_s11 + $0x5c0] sm:$0xff]  ;;  %705 = vst [vmem:[%s2819_s12 + $0x2d0] sm:$0xff] %v704_v26  ;;  %707 = vst [vmem:[%s2819_s12 + $0x2d8] sm:$0xff] %v706_v27  ;;  %v710_v29 = vld [vmem:[%s2814_s11 + $0x5d0] sm:$0xff] }
  0x46   : > { %709 = vst [vmem:[%s2819_s12 + $0x2e0] sm:$0xff] %v708_v28  ;;  %v712_v30 = vld [vmem:[%s2814_s11 + $0x5e0] sm:$0xff]  ;;  %v714_v31 = vld [vmem:[%s2814_s11 + $0x5f0] sm:$0xff]  ;;  %711 = vst [vmem:[%s2819_s12 + $0x2e8] sm:$0xff] %v710_v29 }
  0x47   : > { %713 = vst [vmem:[%s2819_s12 + $0x2f0] sm:$0xff] %v712_v30  ;;  %715 = vst [vmem:[%s2819_s12 + $0x2f8] sm:$0xff] %v714_v31  ;;  %v716_v32 = vld [vmem:[%s2814_s11 + $0x600] sm:$0xff]  ;;  %v718_v33 = vld [vmem:[%s2814_s11 + $0x610] sm:$0xff] }
  0x48   : > { %v720_v34 = vld [vmem:[%s2814_s11 + $0x620] sm:$0xff]  ;;  %717 = vst [vmem:[%s2819_s12 + $0x300] sm:$0xff] %v716_v32  ;;  %719 = vst [vmem:[%s2819_s12 + $0x308] sm:$0xff] %v718_v33  ;;  %v722_v35 = vld [vmem:[%s2814_s11 + $0x630] sm:$0xff] }
  0x49   : > { %721 = vst [vmem:[%s2819_s12 + $0x310] sm:$0xff] %v720_v34  ;;  %v724_v36 = vld [vmem:[%s2814_s11 + $0x640] sm:$0xff]  ;;  %v726_v37 = vld [vmem:[%s2814_s11 + $0x650] sm:$0xff]  ;;  %723 = vst [vmem:[%s2819_s12 + $0x318] sm:$0xff] %v722_v35 }
  0x4a   : > { %725 = vst [vmem:[%s2819_s12 + $0x320] sm:$0xff] %v724_v36  ;;  %727 = vst [vmem:[%s2819_s12 + $0x328] sm:$0xff] %v726_v37  ;;  %v728_v38 = vld [vmem:[%s2814_s11 + $0x660] sm:$0xff]  ;;  %v730_v39 = vld [vmem:[%s2814_s11 + $0x670] sm:$0xff] }
  0x4b   : > { %v732_v40 = vld [vmem:[%s2814_s11 + $0x680] sm:$0xff]  ;;  %729 = vst [vmem:[%s2819_s12 + $0x330] sm:$0xff] %v728_v38  ;;  %731 = vst [vmem:[%s2819_s12 + $0x338] sm:$0xff] %v730_v39  ;;  %v734_v41 = vld [vmem:[%s2814_s11 + $0x690] sm:$0xff] }
  0x4c   : > { %733 = vst [vmem:[%s2819_s12 + $0x340] sm:$0xff] %v732_v40  ;;  %v736_v42 = vld [vmem:[%s2814_s11 + $0x6a0] sm:$0xff]  ;;  %v738_v43 = vld [vmem:[%s2814_s11 + $0x6b0] sm:$0xff]  ;;  %735 = vst [vmem:[%s2819_s12 + $0x348] sm:$0xff] %v734_v41 }
  0x4d   : > { %737 = vst [vmem:[%s2819_s12 + $0x350] sm:$0xff] %v736_v42  ;;  %739 = vst [vmem:[%s2819_s12 + $0x358] sm:$0xff] %v738_v43  ;;  %v740_v44 = vld [vmem:[%s2814_s11 + $0x6c0] sm:$0xff]  ;;  %v742_v45 = vld [vmem:[%s2814_s11 + $0x6d0] sm:$0xff] }
  0x4e   : > { %v744_v46 = vld [vmem:[%s2814_s11 + $0x6e0] sm:$0xff]  ;;  %741 = vst [vmem:[%s2819_s12 + $0x360] sm:$0xff] %v740_v44  ;;  %743 = vst [vmem:[%s2819_s12 + $0x368] sm:$0xff] %v742_v45  ;;  %v746_v47 = vld [vmem:[%s2814_s11 + $0x6f0] sm:$0xff] }
  0x4f   : > { %745 = vst [vmem:[%s2819_s12 + $0x370] sm:$0xff] %v744_v46  ;;  %v748_v48 = vld [vmem:[%s2814_s11 + $0x700] sm:$0xff]  ;;  %v750_v49 = vld [vmem:[%s2814_s11 + $0x710] sm:$0xff]  ;;  %747 = vst [vmem:[%s2819_s12 + $0x378] sm:$0xff] %v746_v47 }
  0x50   : > { %749 = vst [vmem:[%s2819_s12 + $0x380] sm:$0xff] %v748_v48  ;;  %751 = vst [vmem:[%s2819_s12 + $0x388] sm:$0xff] %v750_v49  ;;  %v752_v50 = vld [vmem:[%s2814_s11 + $0x720] sm:$0xff]  ;;  %v754_v51 = vld [vmem:[%s2814_s11 + $0x730] sm:$0xff] }
  0x51   : > { %v756_v52 = vld [vmem:[%s2814_s11 + $0x740] sm:$0xff]  ;;  %753 = vst [vmem:[%s2819_s12 + $0x390] sm:$0xff] %v752_v50  ;;  %755 = vst [vmem:[%s2819_s12 + $0x398] sm:$0xff] %v754_v51  ;;  %v758_v53 = vld [vmem:[%s2814_s11 + $0x750] sm:$0xff] }
  0x52   : > { %757 = vst [vmem:[%s2819_s12 + $0x3a0] sm:$0xff] %v756_v52  ;;  %v760_v54 = vld [vmem:[%s2814_s11 + $0x760] sm:$0xff]  ;;  %v762_v55 = vld [vmem:[%s2814_s11 + $0x770] sm:$0xff]  ;;  %759 = vst [vmem:[%s2819_s12 + $0x3a8] sm:$0xff] %v758_v53 }
  0x53   : > { %761 = vst [vmem:[%s2819_s12 + $0x3b0] sm:$0xff] %v760_v54  ;;  %763 = vst [vmem:[%s2819_s12 + $0x3b8] sm:$0xff] %v762_v55  ;;  %v764_v56 = vld [vmem:[%s2814_s11 + $0x780] sm:$0xff]  ;;  %v766_v57 = vld [vmem:[%s2814_s11 + $0x790] sm:$0xff] }
  0x54   : > { %v768_v58 = vld [vmem:[%s2814_s11 + $0x7a0] sm:$0xff]  ;;  %765 = vst [vmem:[%s2819_s12 + $0x3c0] sm:$0xff] %v764_v56  ;;  %767 = vst [vmem:[%s2819_s12 + $0x3c8] sm:$0xff] %v766_v57  ;;  %v770_v59 = vld [vmem:[%s2814_s11 + $0x7b0] sm:$0xff] }
  0x55   : > { %769 = vst [vmem:[%s2819_s12 + $0x3d0] sm:$0xff] %v768_v58  ;;  %v772_v60 = vld [vmem:[%s2814_s11 + $0x7c0] sm:$0xff]  ;;  %v774_v61 = vld [vmem:[%s2814_s11 + $0x7d0] sm:$0xff]  ;;  %771 = vst [vmem:[%s2819_s12 + $0x3d8] sm:$0xff] %v770_v59 }
  0x56   : > { %773 = vst [vmem:[%s2819_s12 + $0x3e0] sm:$0xff] %v772_v60  ;;  %775 = vst [vmem:[%s2819_s12 + $0x3e8] sm:$0xff] %v774_v61  ;;  %v776_v62 = vld [vmem:[%s2814_s11 + $0x7e0] sm:$0xff]  ;;  %v778_v63 = vld [vmem:[%s2814_s11 + $0x7f0] sm:$0xff] }
  0x57   : > { %v780_v0 = vld [vmem:[%s2814_s11 + $0x800] sm:$0xff]  ;;  %777 = vst [vmem:[%s2819_s12 + $0x3f0] sm:$0xff] %v776_v62  ;;  %779 = vst [vmem:[%s2819_s12 + $0x3f8] sm:$0xff] %v778_v63  ;;  %v782_v1 = vld [vmem:[%s2814_s11 + $0x810] sm:$0xff] }
  0x58   : > { %781 = vst [vmem:[%s2819_s12 + $0x400] sm:$0xff] %v780_v0  ;;  %v784_v2 = vld [vmem:[%s2814_s11 + $0x820] sm:$0xff]  ;;  %v786_v3 = vld [vmem:[%s2814_s11 + $0x830] sm:$0xff]  ;;  %783 = vst [vmem:[%s2819_s12 + $0x408] sm:$0xff] %v782_v1 }
  0x59   : > { %785 = vst [vmem:[%s2819_s12 + $0x410] sm:$0xff] %v784_v2  ;;  %787 = vst [vmem:[%s2819_s12 + $0x418] sm:$0xff] %v786_v3  ;;  %v788_v4 = vld [vmem:[%s2814_s11 + $0x840] sm:$0xff]  ;;  %v790_v5 = vld [vmem:[%s2814_s11 + $0x850] sm:$0xff] }
  0x5a   : > { %v792_v6 = vld [vmem:[%s2814_s11 + $0x860] sm:$0xff]  ;;  %789 = vst [vmem:[%s2819_s12 + $0x420] sm:$0xff] %v788_v4  ;;  %791 = vst [vmem:[%s2819_s12 + $0x428] sm:$0xff] %v790_v5  ;;  %v794_v7 = vld [vmem:[%s2814_s11 + $0x870] sm:$0xff] }
  0x5b   : > { %793 = vst [vmem:[%s2819_s12 + $0x430] sm:$0xff] %v792_v6  ;;  %v796_v8 = vld [vmem:[%s2814_s11 + $0x880] sm:$0xff]  ;;  %v798_v9 = vld [vmem:[%s2814_s11 + $0x890] sm:$0xff]  ;;  %795 = vst [vmem:[%s2819_s12 + $0x438] sm:$0xff] %v794_v7 }
  0x5c   : > { %797 = vst [vmem:[%s2819_s12 + $0x440] sm:$0xff] %v796_v8  ;;  %799 = vst [vmem:[%s2819_s12 + $0x448] sm:$0xff] %v798_v9  ;;  %v800_v10 = vld [vmem:[%s2814_s11 + $0x8a0] sm:$0xff]  ;;  %v802_v11 = vld [vmem:[%s2814_s11 + $0x8b0] sm:$0xff] }
  0x5d   : > { %v804_v12 = vld [vmem:[%s2814_s11 + $0x8c0] sm:$0xff]  ;;  %801 = vst [vmem:[%s2819_s12 + $0x450] sm:$0xff] %v800_v10  ;;  %803 = vst [vmem:[%s2819_s12 + $0x458] sm:$0xff] %v802_v11  ;;  %v806_v13 = vld [vmem:[%s2814_s11 + $0x8d0] sm:$0xff] }
  0x5e   : > { %805 = vst [vmem:[%s2819_s12 + $0x460] sm:$0xff] %v804_v12  ;;  %v808_v14 = vld [vmem:[%s2814_s11 + $0x8e0] sm:$0xff]  ;;  %v810_v15 = vld [vmem:[%s2814_s11 + $0x8f0] sm:$0xff]  ;;  %807 = vst [vmem:[%s2819_s12 + $0x468] sm:$0xff] %v806_v13 }
  0x5f   : > { %809 = vst [vmem:[%s2819_s12 + $0x470] sm:$0xff] %v808_v14  ;;  %811 = vst [vmem:[%s2819_s12 + $0x478] sm:$0xff] %v810_v15 }
  0x60 PF: > { %p2220_p7 = scmp.ge.s32.totalorder %s2725_s21, 1  ;;  %p832_p8 = scmp.lt.s32.totalorder %s2725_s21, 5 }
  0x62   : > { %p833_p9 = pnand %p2220_p7, %p832_p8 }
  0x63   : > { %s839_s13 = sand.u32 (!%p833_p9), 1, %s2701_s15   ;;  %s885_s14 = smul.u32 (!%p833_p9), 9, %s2709_s17 }
  0x64   : > { %836 = sbr.rel (%p833_p9) target bundleno = 493 (0x1ed), region = 70  ;;  %s2222_s25 = sshll.u32 (!%p833_p9), %s2713_s18, 1 }
  0x65   : > { %s2387_s24 = smul.u32 (!%p833_p9), 1152, %s839_s13  ;;  %p888_p10 = scmp.lt.s32.totalorder (!%p833_p9), %s885_s14, 17 }
  0x66   : > { %p898_p11 = scmp.lt.s32.totalorder (!%p833_p9), %s2222_s25, 3  ;;  %p2226_p12 = scmp.ne.s32.totalorder (!%p833_p9), %s2709_s17, 0 }
  0x67   : > { %s3132_s13 = scalar_lea.vmem (!%p833_p9), [#allocation3], %s2387_s24 }
  0x69   : > { %s3347_s14 = smov (!%p888_p10, %s885_s14), 17  ;;  %s3349_s25 = smov (!%p898_p11, %s2222_s25), 3 }
  0x6a   : > { %s2221_s26 = sshll.u32 %s3347_s14, 2  ;;  %s900_s15 = scalar_lea.vmem %s3331_s2, %s3349_s25 }
  0x6b   : > { %s3116_s30 = scalar_lea.vmem %s3329_s0, %s2221_s26  ;;  %s905_s8 = scalar_lea.vmem %s3332_s3, %s3349_s25 }
  0x6c   : > { %s2225_s9 = sshll.u32 %s3349_s25, 2  ;;  %921 = sbr.rel (%p2226_p12) target bundleno = 115 (0x73), region = 78 }
  0x6d   : > { %s3130_s12 = scalar_lea.vmem %s3333_s4, %s2225_s9 }
  0x71   : > { %v2727_v16 = vmov 0.0  }
  0x72   : > { %922 = vst [vmem:[#allocation2] sm:$0xff] %v2727_v16  ;;  %923 = vst [vmem:[#allocation2 + $0x8] sm:$0xff] %v2727_v16 }
  0x73 PF: > { %v2446_v17 = vld [vmem:[%s3132_s13 + $0x74] ss:$8 sps:$4 sm:$0xff]   ;;  %v2450_v19 = vld [vmem:[%s3132_s13 + $0x70] ss:$8 sps:$4 sm:$0xff]   ;;  %v2452_v21 = vld [vmem:[%s3132_s13 + $0x64] ss:$8 sps:$4 sm:$0xff]  }
  0x74   : > { %v2448_v18 = vld [vmem:[%s3132_s13 + $0x174] ss:$8 sps:$4 sm:$0xff]   ;;  %1827 = vmatprep.subr.bf16.mxu0 %v2446_v17  ;;  %v2451_v20 = vld [vmem:[%s3132_s13 + $0x170] ss:$8 sps:$4 sm:$0xff]   ;;  %v2454_v22 = vld [vmem:[%s3132_s13 + $0x164] ss:$8 sps:$4 sm:$0xff]  }
  0x75   : > { %1868 = vmatprep.subr.bf16.mxu1 %v2448_v18  ;;  %1828 = vmatpush1.bf16.msra.mxu0 %v2450_v19  ;;  %v2456_v23 = vld [vmem:[%s3132_s13 + $0x60] ss:$8 sps:$4 sm:$0xff]   ;;  %v2458_v25 = vld [vmem:[%s3132_s13 + $0x54] ss:$8 sps:$4 sm:$0xff]   ;;  %v2462_v27 = vld [vmem:[%s3132_s13 + $0x50] ss:$8 sps:$4 sm:$0xff]  }
  0x76   : > { %1869 = vmatpush1.bf16.msra.mxu1 %v2451_v20  ;;  %1829 = vmatprep.subr.bf16.mxu0 %v2452_v21  ;;  %v2457_v24 = vld [vmem:[%s3132_s13 + $0x160] ss:$8 sps:$4 sm:$0xff]   ;;  %v2460_v26 = vld [vmem:[%s3132_s13 + $0x154] ss:$8 sps:$4 sm:$0xff]   ;;  %v2463_v28 = vld [vmem:[%s3132_s13 + $0x150] ss:$8 sps:$4 sm:$0xff]  }
  0x77   : > { %1870 = vmatprep.subr.bf16.mxu1 %v2454_v22  ;;  %v2464_v29 = vld [vmem:[%s3132_s13 + $0x44] ss:$8 sps:$4 sm:$0xff]   ;;  %v2468_v31 = vld [vmem:[%s3132_s13 + $0x40] ss:$8 sps:$4 sm:$0xff]   ;;  %v2470_v33 = vld [vmem:[%s3132_s13 + $0x34] ss:$8 sps:$4 sm:$0xff]  }
  0x78   : > { %v2466_v30 = vld [vmem:[%s3132_s13 + $0x144] ss:$8 sps:$4 sm:$0xff]   ;;  %v2469_v32 = vld [vmem:[%s3132_s13 + $0x140] ss:$8 sps:$4 sm:$0xff]   ;;  %v2472_v34 = vld [vmem:[%s3132_s13 + $0x134] ss:$8 sps:$4 sm:$0xff]  }
  0x79   : > { %1830 = vmatpush1.bf16.msra.mxu0 %v2456_v23  ;;  %v2474_v35 = vld [vmem:[%s3132_s13 + $0x30] ss:$8 sps:$4 sm:$0xff]   ;;  %v2476_v37 = vld [vmem:[%s3132_s13 + $0x24] ss:$8 sps:$4 sm:$0xff]   ;;  %v2480_v39 = vld [vmem:[%s3132_s13 + $0x20] ss:$8 sps:$4 sm:$0xff]  }
  0x7a   : > { %1871 = vmatpush1.bf16.msra.mxu1 %v2457_v24  ;;  %1831 = vmatprep.subr.bf16.mxu0 %v2458_v25  ;;  %v2475_v36 = vld [vmem:[%s3132_s13 + $0x130] ss:$8 sps:$4 sm:$0xff]   ;;  %v2478_v38 = vld [vmem:[%s3132_s13 + $0x124] ss:$8 sps:$4 sm:$0xff]   ;;  %v2481_v40 = vld [vmem:[%s3132_s13 + $0x120] ss:$8 sps:$4 sm:$0xff]  }
  0x7b   : > { %1872 = vmatprep.subr.bf16.mxu1 %v2460_v26  ;;  %v2482_v41 = vld [vmem:[%s3132_s13 + $0x14] ss:$8 sps:$4 sm:$0xff]   ;;  %v2486_v43 = vld [vmem:[%s3132_s13 + $0x10] ss:$8 sps:$4 sm:$0xff]   ;;  %v2488_v45 = vld [vmem:[%s3132_s13 + $0x4] ss:$8 sps:$4 sm:$0xff]  }
  0x7c   : > { %v2484_v42 = vld [vmem:[%s3132_s13 + $0x114] ss:$8 sps:$4 sm:$0xff]   ;;  %v2487_v44 = vld [vmem:[%s3132_s13 + $0x110] ss:$8 sps:$4 sm:$0xff]   ;;  %v2490_v46 = vld [vmem:[%s3132_s13 + $0x104] ss:$8 sps:$4 sm:$0xff]  }
  0x7d   : > { %1832 = vmatpush1.bf16.msra.mxu0 %v2462_v27  ;;  %v2492_v47 = vld [vmem:[%s3132_s13] ss:$8 sps:$4 sm:$0xff]   ;;  %v2494_v49 = vld [vmem:[%s3132_s13 + $0xf4] ss:$8 sps:$4 sm:$0xff]   ;;  %v2498_v51 = vld [vmem:[%s3132_s13 + $0xf0] ss:$8 sps:$4 sm:$0xff]  }
  0x7e   : > { %1873 = vmatpush1.bf16.msra.mxu1 %v2463_v28  ;;  %1833 = vmatprep.subr.bf16.mxu0 %v2464_v29  ;;  %v2493_v48 = vld [vmem:[%s3132_s13 + $0x100] ss:$8 sps:$4 sm:$0xff]   ;;  %v2496_v50 = vld [vmem:[%s3132_s13 + $0x1f4] ss:$8 sps:$4 sm:$0xff]   ;;  %v2499_v52 = vld [vmem:[%s3132_s13 + $0x1f0] ss:$8 sps:$4 sm:$0xff]  }
  0x7f   : > { %1874 = vmatprep.subr.bf16.mxu1 %v2466_v30  ;;  %v2500_v53 = vld [vmem:[%s3132_s13 + $0xe4] ss:$8 sps:$4 sm:$0xff]   ;;  %v2504_v55 = vld [vmem:[%s3132_s13 + $0xe0] ss:$8 sps:$4 sm:$0xff]   ;;  %v2506_v57 = vld [vmem:[%s3132_s13 + $0xd4] ss:$8 sps:$4 sm:$0xff]  }
  0x80   : > { %v2502_v54 = vld [vmem:[%s3132_s13 + $0x1e4] ss:$8 sps:$4 sm:$0xff]   ;;  %v2505_v56 = vld [vmem:[%s3132_s13 + $0x1e0] ss:$8 sps:$4 sm:$0xff]   ;;  %v2508_v58 = vld [vmem:[%s3132_s13 + $0x1d4] ss:$8 sps:$4 sm:$0xff]  }
  0x81   : > { %1834 = vmatpush1.bf16.msra.mxu0 %v2468_v31  ;;  %v2510_v59 = vld [vmem:[%s3132_s13 + $0xd0] ss:$8 sps:$4 sm:$0xff]   ;;  %v2512_v61 = vld [vmem:[%s3132_s13 + $0xc4] ss:$8 sps:$4 sm:$0xff]   ;;  %v2516_v2 = vld [vmem:[%s3132_s13 + $0xc0] ss:$8 sps:$4 sm:$0xff]  }
  0x82   : > { %1875 = vmatpush1.bf16.msra.mxu1 %v2469_v32  ;;  %1835 = vmatprep.subr.bf16.mxu0 %v2470_v33  ;;  %v2511_v60 = vld [vmem:[%s3132_s13 + $0x1d0] ss:$8 sps:$4 sm:$0xff]   ;;  %v2514_v62 = vld [vmem:[%s3132_s13 + $0x1c4] ss:$8 sps:$4 sm:$0xff]   ;;  %v2517_v3 = vld [vmem:[%s3132_s13 + $0x1c0] ss:$8 sps:$4 sm:$0xff]  }
  0x83   : > { %1876 = vmatprep.subr.bf16.mxu1 %v2472_v34  ;;  %v926_v63 = vld [vmem:[%s3116_s30] sm:$0xff]  ;;  %v927_v1 = vld [vmem:[%s3116_s30 + $0x8] sm:$0xff]  ;;  %v2524_v9 = vld [vmem:[%s3132_s13 + $0xa4] ss:$8 sps:$4 sm:$0xff]   ;;  %p2380_p13 = scmp.ne.s32.totalorder %s2709_s17, 1 }
  0x84   : > { %v2228_v0 = vcombine.high %v926_v63, %v926_v63  ;;  %v2230_v4 = vcombine.high %v927_v1, %v927_v1  ;;  %v2518_v5 = vld [vmem:[%s3132_s13 + $0xb4] ss:$8 sps:$4 sm:$0xff]   ;;  %v2522_v7 = vld [vmem:[%s3132_s13 + $0xb0] ss:$8 sps:$4 sm:$0xff]   ;;  %v2526_v10 = vld [vmem:[%s3132_s13 + $0x1a4] ss:$8 sps:$4 sm:$0xff]   ;;  %v2227_v23 = vcombine.low %v926_v63, %v926_v63  ;;  %v2229_v24 = vcombine.low %v927_v1, %v927_v1 }
  0x85   : > { %1836 = vmatpush1.bf16.msra.mxu0 %v2474_v35  ;;  %v2520_v6 = vld [vmem:[%s3132_s13 + $0x1b4] ss:$8 sps:$4 sm:$0xff]   ;;  %v2523_v8 = vld [vmem:[%s3132_s13 + $0x1b0] ss:$8 sps:$4 sm:$0xff]   ;;  %v2528_v11 = vld [vmem:[%s3132_s13 + $0xa0] ss:$8 sps:$4 sm:$0xff]  }
  0x86   : > { %1877 = vmatpush1.bf16.msra.mxu1 %v2475_v36  ;;  %1837 = vmatprep.subr.bf16.mxu0 %v2476_v37  ;;  %v2529_v12 = vld [vmem:[%s3132_s13 + $0x1a0] ss:$8 sps:$4 sm:$0xff]   ;;  %v2530_v13 = vld [vmem:[%s3132_s13 + $0x94] ss:$8 sps:$4 sm:$0xff]   ;;  %v2534_v15 = vld [vmem:[%s3132_s13 + $0x90] ss:$8 sps:$4 sm:$0xff]  }
  0x87   : > { %1878 = vmatprep.subr.bf16.mxu1 %v2478_v38  ;;  %1859 = vmatprep.mubr.bf16.mxu0 %v2228_v0  ;;  %v2532_v14 = vld [vmem:[%s3132_s13 + $0x194] ss:$8 sps:$4 sm:$0xff]   ;;  %v2535_v16 = vld [vmem:[%s3132_s13 + $0x190] ss:$8 sps:$4 sm:$0xff]   ;;  %v2536_v17 = vld [vmem:[%s3132_s13 + $0x84] ss:$8 sps:$4 sm:$0xff]  }
  0x88   : > { %1900 = vmatprep.mubr.bf16.mxu1 %v2230_v4  ;;  %v2538_v18 = vld [vmem:[%s3132_s13 + $0x184] ss:$8 sps:$4 sm:$0xff]   ;;  %v2540_v19 = vld [vmem:[%s3132_s13 + $0x80] ss:$8 sps:$4 sm:$0xff]   ;;  %v2548_v21 = vld [vmem:[%s3132_s13 + $0x274] ss:$8 sps:$4 sm:$0xff]  }
  0x89   : > { %1838 = vmatpush1.bf16.msra.mxu0 %v2480_v39  ;;  %v2541_v20 = vld [vmem:[%s3132_s13 + $0x180] ss:$8 sps:$4 sm:$0xff]   ;;  %v2551_v22 = vld [vmem:[%s3132_s13 + $0x374] ss:$8 sps:$4 sm:$0xff]   ;;  %v2546_v25 = vld [vmem:[%s3132_s13 + $0x270] ss:$8 sps:$4 sm:$0xff]  }
  0x8a   : > { %1879 = vmatpush1.bf16.msra.mxu1 %v2481_v40  ;;  %1839 = vmatprep.subr.bf16.mxu0 %v2482_v41  ;;  %v2549_v26 = vld [vmem:[%s3132_s13 + $0x370] ss:$8 sps:$4 sm:$0xff]   ;;  %v2554_v27 = vld [vmem:[%s3132_s13 + $0x264] ss:$8 sps:$4 sm:$0xff]   ;;  %v2552_v29 = vld [vmem:[%s3132_s13 + $0x260] ss:$8 sps:$4 sm:$0xff]  }
  0x8b   : > { %1880 = vmatprep.subr.bf16.mxu1 %v2484_v42  ;;  %v2557_v28 = vld [vmem:[%s3132_s13 + $0x364] ss:$8 sps:$4 sm:$0xff]   ;;  %v2555_v30 = vld [vmem:[%s3132_s13 + $0x360] ss:$8 sps:$4 sm:$0xff]   ;;  %v2560_v31 = vld [vmem:[%s3132_s13 + $0x254] ss:$8 sps:$4 sm:$0xff]  }
  0x8c   : > { %v2563_v32 = vld [vmem:[%s3132_s13 + $0x354] ss:$8 sps:$4 sm:$0xff]   ;;  %v2558_v33 = vld [vmem:[%s3132_s13 + $0x250] ss:$8 sps:$4 sm:$0xff]   ;;  %v2566_v35 = vld [vmem:[%s3132_s13 + $0x244] ss:$8 sps:$4 sm:$0xff]  }
  0x8d   : > { %1840 = vmatpush1.bf16.msra.mxu0 %v2486_v43  ;;  %v2561_v34 = vld [vmem:[%s3132_s13 + $0x350] ss:$8 sps:$4 sm:$0xff]   ;;  %v2569_v36 = vld [vmem:[%s3132_s13 + $0x344] ss:$8 sps:$4 sm:$0xff]   ;;  %v2564_v37 = vld [vmem:[%s3132_s13 + $0x240] ss:$8 sps:$4 sm:$0xff]  }
  0x8e   : > { %1881 = vmatpush1.bf16.msra.mxu1 %v2487_v44  ;;  %1841 = vmatprep.subr.bf16.mxu0 %v2488_v45  ;;  %v2567_v38 = vld [vmem:[%s3132_s13 + $0x340] ss:$8 sps:$4 sm:$0xff]   ;;  %v2572_v39 = vld [vmem:[%s3132_s13 + $0x234] ss:$8 sps:$4 sm:$0xff]   ;;  %v2570_v41 = vld [vmem:[%s3132_s13 + $0x230] ss:$8 sps:$4 sm:$0xff]  }
  0x8f   : > { %1882 = vmatprep.subr.bf16.mxu1 %v2490_v46  ;;  %v2575_v40 = vld [vmem:[%s3132_s13 + $0x334] ss:$8 sps:$4 sm:$0xff]   ;;  %v2573_v42 = vld [vmem:[%s3132_s13 + $0x330] ss:$8 sps:$4 sm:$0xff]   ;;  %v2578_v43 = vld [vmem:[%s3132_s13 + $0x224] ss:$8 sps:$4 sm:$0xff]  }
  0x90   : > { %v2581_v44 = vld [vmem:[%s3132_s13 + $0x324] ss:$8 sps:$4 sm:$0xff]   ;;  %v2576_v45 = vld [vmem:[%s3132_s13 + $0x220] ss:$8 sps:$4 sm:$0xff]   ;;  %v2611_v4 = vld [vmem:[%s3132_s13 + $0x3d4] ss:$8 sps:$4 sm:$0xff]  }
  0x91   : > { %1842 = vmatpush1.bf16.msra.mxu0 %v2492_v47  ;;  %v2579_v46 = vld [vmem:[%s3132_s13 + $0x320] ss:$8 sps:$4 sm:$0xff]   ;;  %v2584_v47 = vld [vmem:[%s3132_s13 + $0x214] ss:$8 sps:$4 sm:$0xff]   ;;  %v2602_v63 = vld [vmem:[%s3132_s13 + $0x2e4] ss:$8 sps:$4 sm:$0xff]  }
  0x92   : > { %1883 = vmatpush1.bf16.msra.mxu1 %v2493_v48  ;;  %1843 = vmatprep.subr.bf16.mxu0 %v2494_v49  ;;  %v2587_v48 = vld [vmem:[%s3132_s13 + $0x314] ss:$8 sps:$4 sm:$0xff]   ;;  %v3228_v49 = vld [vmem:[%s3116_s30 + $0x10] sm:$0xff] }
  0x93   : > { %1884 = vmatprep.subr.bf16.mxu1 %v2496_v50  ;;  %v2582_v50 = vld [vmem:[%s3132_s13 + $0x210] ss:$8 sps:$4 sm:$0xff]   ;;  %v2605_v0 = vld [vmem:[%s3132_s13 + $0x3e4] ss:$8 sps:$4 sm:$0xff]   ;;  %v2600_v1 = vld [vmem:[%s3132_s13 + $0x2e0] ss:$8 sps:$4 sm:$0xff]  }
  0x95   : > { %1844 = vmatpush2.bf16.msra.mxu0 %v2498_v51  ;;  %v2585_v51 = vld [vmem:[%s3132_s13 + $0x310] ss:$8 sps:$4 sm:$0xff]  }
  0x96   : > { %1885 = vmatpush2.bf16.msra.mxu1 %v2499_v52  ;;  %1845 = vmatprep.subr.bf16.mxu0 %v2500_v53  ;;  %v2232_v52 = vcombine.high %v3228_v49, %v3228_v49  ;;  %v3235_v53 = vld [vmem:[%s3116_s30 + $0x18] sm:$0xff] }
  0x97   : > { %1886 = vmatprep.subr.bf16.mxu1 %v2502_v54  ;;  %v2590_v54 = vld [vmem:[%s3132_s13 + $0x204] ss:$8 sps:$4 sm:$0xff]  }
  0x99   : > { %1846 = vmatpush2.bf16.msra.mxu0 %v2504_v55  ;;  %v2234_v55 = vcombine.high %v3235_v53, %v3235_v53 }
  0x9a   : > { %1887 = vmatpush2.bf16.msra.mxu1 %v2505_v56  ;;  %1847 = vmatprep.subr.bf16.mxu0 %v2506_v57  ;;  %v2593_v56 = vld [vmem:[%s3132_s13 + $0x304] ss:$8 sps:$4 sm:$0xff]   ;;  %v2588_v57 = vld [vmem:[%s3132_s13 + $0x200] ss:$8 sps:$4 sm:$0xff]  }
  0x9b   : > { %1888 = vmatprep.subr.bf16.mxu1 %v2508_v58  ;;  %v2591_v58 = vld [vmem:[%s3132_s13 + $0x300] ss:$8 sps:$4 sm:$0xff]  }
  0x9d   : > { %1848 = vmatpush2.bf16.msra.mxu0 %v2510_v59  ;;  %v2596_v59 = vld [vmem:[%s3132_s13 + $0x2f4] ss:$8 sps:$4 sm:$0xff]  }
  0x9e   : > { %1889 = vmatpush2.bf16.msra.mxu1 %v2511_v60  ;;  %1849 = vmatprep.subr.bf16.mxu0 %v2512_v61  ;;  %v2599_v60 = vld [vmem:[%s3132_s13 + $0x3f4] ss:$8 sps:$4 sm:$0xff]   ;;  %v2594_v61 = vld [vmem:[%s3132_s13 + $0x2f0] ss:$8 sps:$4 sm:$0xff]  }
  0x9f   : > { %1890 = vmatprep.subr.bf16.mxu1 %v2514_v62  ;;  %v2597_v62 = vld [vmem:[%s3132_s13 + $0x3f0] ss:$8 sps:$4 sm:$0xff]  }
  0xa1   : > { %1850 = vmatpush2.bf16.msra.mxu0 %v2516_v2  ;;  %v2603_v2 = vld [vmem:[%s3132_s13 + $0x3e0] ss:$8 sps:$4 sm:$0xff]  }
  0xa2   : > { %1891 = vmatpush2.bf16.msra.mxu1 %v2517_v3  ;;  %1851 = vmatprep.subr.bf16.mxu0 %v2518_v5  ;;  %v2608_v3 = vld [vmem:[%s3132_s13 + $0x2d4] ss:$8 sps:$4 sm:$0xff]   ;;  %v2606_v5 = vld [vmem:[%s3132_s13 + $0x2d0] ss:$8 sps:$4 sm:$0xff]  }
  0xa3   : > { %1892 = vmatprep.subr.bf16.mxu1 %v2520_v6  ;;  %v2609_v6 = vld [vmem:[%s3132_s13 + $0x3d0] ss:$8 sps:$4 sm:$0xff]  }
  0xa5   : > { %1852 = vmatpush2.bf16.msra.mxu0 %v2522_v7  ;;  %v2614_v7 = vld [vmem:[%s3132_s13 + $0x2c4] ss:$8 sps:$4 sm:$0xff]  }
  0xa6   : > { %1893 = vmatpush2.bf16.msra.mxu1 %v2523_v8  ;;  %1853 = vmatprep.subr.bf16.mxu0 %v2524_v9  ;;  %v2617_v8 = vld [vmem:[%s3132_s13 + $0x3c4] ss:$8 sps:$4 sm:$0xff]   ;;  %v2612_v9 = vld [vmem:[%s3132_s13 + $0x2c0] ss:$8 sps:$4 sm:$0xff]  }
  0xa7   : > { %1894 = vmatprep.subr.bf16.mxu1 %v2526_v10  ;;  %v2615_v10 = vld [vmem:[%s3132_s13 + $0x3c0] ss:$8 sps:$4 sm:$0xff]  }
  0xa9   : > { %1854 = vmatpush2.bf16.msra.mxu0 %v2528_v11  ;;  %v2620_v11 = vld [vmem:[%s3132_s13 + $0x2b4] ss:$8 sps:$4 sm:$0xff]  }
  0xaa   : > { %1895 = vmatpush2.bf16.msra.mxu1 %v2529_v12  ;;  %1855 = vmatprep.subr.bf16.mxu0 %v2530_v13  ;;  %v2623_v12 = vld [vmem:[%s3132_s13 + $0x3b4] ss:$8 sps:$4 sm:$0xff]   ;;  %v2618_v13 = vld [vmem:[%s3132_s13 + $0x2b0] ss:$8 sps:$4 sm:$0xff]  }
  0xab   : > { %1896 = vmatprep.subr.bf16.mxu1 %v2532_v14  ;;  %v2621_v14 = vld [vmem:[%s3132_s13 + $0x3b0] ss:$8 sps:$4 sm:$0xff]  }
  0xad   : > { %1856 = vmatpush2.bf16.msra.mxu0 %v2534_v15  ;;  %v2626_v15 = vld [vmem:[%s3132_s13 + $0x2a4] ss:$8 sps:$4 sm:$0xff]  }
  0xae   : > { %1897 = vmatpush2.bf16.msra.mxu1 %v2535_v16  ;;  %1857 = vmatprep.subr.bf16.mxu0 %v2536_v17  ;;  %v2629_v16 = vld [vmem:[%s3132_s13 + $0x3a4] ss:$8 sps:$4 sm:$0xff]   ;;  %v2624_v17 = vld [vmem:[%s3132_s13 + $0x2a0] ss:$8 sps:$4 sm:$0xff]  }
  0xaf   : > { %1898 = vmatprep.subr.bf16.mxu1 %v2538_v18  ;;  %v2627_v18 = vld [vmem:[%s3132_s13 + $0x3a0] ss:$8 sps:$4 sm:$0xff]  }
  0xb1   : > { %1858 = vmatpush2.bf16.msra.mxu0 %v2540_v19  ;;  %v2632_v19 = vld [vmem:[%s3132_s13 + $0x294] ss:$8 sps:$4 sm:$0xff]  }
  0xb2   : > { %1899 = vmatpush2.bf16.msra.mxu1 %v2541_v20  ;;  %1909 = vmatprep.subr.bf16.mxu0 %v2548_v21  ;;  %v2635_v20 = vld [vmem:[%s3132_s13 + $0x394] ss:$8 sps:$4 sm:$0xff]   ;;  %v2630_v21 = vld [vmem:[%s3132_s13 + $0x290] ss:$8 sps:$4 sm:$0xff]  }
  0xb3   : > { %1950 = vmatprep.subr.bf16.mxu1 %v2551_v22  ;;  %v2633_v22 = vld [vmem:[%s3132_s13 + $0x390] ss:$8 sps:$4 sm:$0xff]  }
  0xb4   : > { %1860 = vmatmul.mubr.bf16.vlgmr.msra.gmra.mxu0 %v2227_v23  ;;  %v2638_v23 = vld [vmem:[%s3132_s13 + $0x284] ss:$8 sps:$4 sm:$0xff]  }
  0xb5   : > { %1901 = vmatmul.mubr.bf16.vlgmr.msra.gmra.mxu1 %v2229_v24  ;;  %1910 = vmatpush1.bf16.msra.mxu0 %v2546_v25  ;;  %v2641_v24 = vld [vmem:[%s3132_s13 + $0x384] ss:$8 sps:$4 sm:$0xff]   ;;  %v2636_v25 = vld [vmem:[%s3132_s13 + $0x280] ss:$8 sps:$4 sm:$0xff]  }
  0xb6   : > { %1951 = vmatpush1.bf16.msra.mxu1 %v2549_v26  ;;  %1911 = vmatprep.subr.bf16.mxu0 %v2554_v27  ;;  %v2639_v26 = vld [vmem:[%s3132_s13 + $0x380] ss:$8 sps:$4 sm:$0xff]   ;;  %v2646_v27 = vld [vmem:[%s3132_s13 + $0x474] ss:$8 sps:$4 sm:$0xff]  }
  0xb7   : > { %1952 = vmatprep.subr.bf16.mxu1 %v2557_v28  ;;  %1941 = vmatprep.mubr.bf16.mxu0 %v2232_v52  ;;  %v2231_v28 = vcombine.low %v3228_v49, %v3228_v49 }
  0xb8   : > { %1982 = vmatprep.mubr.bf16.mxu1 %v2234_v55 }
  0xb9   : > { %1912 = vmatpush1.bf16.msra.mxu0 %v2552_v29  ;;  %v2233_v29 = vcombine.low %v3235_v53, %v3235_v53 }
  0xba   : > { %1953 = vmatpush1.bf16.msra.mxu1 %v2555_v30  ;;  %1913 = vmatprep.subr.bf16.mxu0 %v2560_v31  ;;  %v2644_v30 = vld [vmem:[%s3132_s13 + $0x470] ss:$8 sps:$4 sm:$0xff]   ;;  %v2651_v31 = vld [vmem:[%s3132_s13 + $0x464] ss:$8 sps:$4 sm:$0xff]  }
  0xbb   : > { %1954 = vmatprep.subr.bf16.mxu1 %v2563_v32  ;;  %v2649_v32 = vld [vmem:[%s3132_s13 + $0x460] ss:$8 sps:$4 sm:$0xff]  }
  0xbd   : > { %1914 = vmatpush1.bf16.msra.mxu0 %v2558_v33  ;;  %v2728_v33 = vmov 0  }
  0xbe   : > { %1955 = vmatpush1.bf16.msra.mxu1 %v2561_v34  ;;  %1915 = vmatprep.subr.bf16.mxu0 %v2566_v35  ;;  %v2654_v34 = vld [vmem:[%s3132_s13 + $0x454] ss:$8 sps:$4 sm:$0xff]   ;;  %v2652_v35 = vld [vmem:[%s3132_s13 + $0x450] ss:$8 sps:$4 sm:$0xff]  }
  0xbf   : > { %1956 = vmatprep.subr.bf16.mxu1 %v2569_v36  ;;  %v2657_v36 = vld [vmem:[%s3132_s13 + $0x444] ss:$8 sps:$4 sm:$0xff]  }
  0xc1   : > { %1916 = vmatpush1.bf16.msra.mxu0 %v2564_v37  ;;  %v2655_v37 = vld [vmem:[%s3132_s13 + $0x440] ss:$8 sps:$4 sm:$0xff]  }
  0xc2   : > { %1957 = vmatpush1.bf16.msra.mxu1 %v2567_v38  ;;  %1917 = vmatprep.subr.bf16.mxu0 %v2572_v39  ;;  %v2660_v38 = vld [vmem:[%s3132_s13 + $0x434] ss:$8 sps:$4 sm:$0xff]   ;;  %v2658_v39 = vld [vmem:[%s3132_s13 + $0x430] ss:$8 sps:$4 sm:$0xff]  }
  0xc3   : > { %1958 = vmatprep.subr.bf16.mxu1 %v2575_v40  ;;  %v2663_v40 = vld [vmem:[%s3132_s13 + $0x424] ss:$8 sps:$4 sm:$0xff]  }
  0xc5   : > { %1918 = vmatpush1.bf16.msra.mxu0 %v2570_v41  ;;  %v2661_v41 = vld [vmem:[%s3132_s13 + $0x420] ss:$8 sps:$4 sm:$0xff]  }
  0xc6   : > { %1959 = vmatpush1.bf16.msra.mxu1 %v2573_v42  ;;  %1919 = vmatprep.subr.bf16.mxu0 %v2578_v43  ;;  %v2666_v42 = vld [vmem:[%s3132_s13 + $0x414] ss:$8 sps:$4 sm:$0xff]   ;;  %v2664_v43 = vld [vmem:[%s3132_s13 + $0x410] ss:$8 sps:$4 sm:$0xff]  }
  0xc7   : > { %1960 = vmatprep.subr.bf16.mxu1 %v2581_v44  ;;  %v2669_v44 = vld [vmem:[%s3132_s13 + $0x404] ss:$8 sps:$4 sm:$0xff]  }
  0xc9   : > { %1920 = vmatpush1.bf16.msra.mxu0 %v2576_v45  ;;  %v2667_v45 = vld [vmem:[%s3132_s13 + $0x400] ss:$8 sps:$4 sm:$0xff]  }
  0xca   : > { %1961 = vmatpush1.bf16.msra.mxu1 %v2579_v46  ;;  %1921 = vmatprep.subr.bf16.mxu0 %v2584_v47  ;;  %v2670_v46 = vld [vmem:[%s3116_s30 + $0x20] ss:$0 sps:$4 sm:$0xff]  }
  0xcb   : > { %1962 = vmatprep.subr.bf16.mxu1 %v2587_v48 }
  0xcd   : > { %1922 = vmatpush1.bf16.msra.mxu0 %v2582_v50 }
  0xce   : > { %1963 = vmatpush1.bf16.msra.mxu1 %v2585_v51  ;;  %1923 = vmatprep.subr.bf16.mxu0 %v2590_v54 }
  0xcf   : > { %1964 = vmatprep.subr.bf16.mxu1 %v2593_v56 }
  0xd1   : > { %1924 = vmatpush1.bf16.msra.mxu0 %v2588_v57 }
  0xd2   : > { %1965 = vmatpush1.bf16.msra.mxu1 %v2591_v58  ;;  %1925 = vmatprep.subr.bf16.mxu0 %v2596_v59 }
  0xd3   : > { %1966 = vmatprep.subr.bf16.mxu1 %v2599_v60 }
  0xd5   : > { %1926 = vmatpush2.bf16.msra.mxu0 %v2594_v61 }
  0xd6   : > { %1967 = vmatpush2.bf16.msra.mxu1 %v2597_v62  ;;  %1927 = vmatprep.subr.bf16.mxu0 %v2602_v63 }
  0xd7   : > { %1968 = vmatprep.subr.bf16.mxu1 %v2605_v0 }
  0xd9   : > { %1928 = vmatpush2.bf16.msra.mxu0 %v2600_v1 }
  0xda   : > { %1969 = vmatpush2.bf16.msra.mxu1 %v2603_v2  ;;  %1929 = vmatprep.subr.bf16.mxu0 %v2608_v3 }
  0xdb   : > { %1970 = vmatprep.subr.bf16.mxu1 %v2611_v4  ;;  %v924_v4 = vld [vmem:[#allocation2] sm:$0xff] }
  0xdd   : > { %1930 = vmatpush2.bf16.msra.mxu0 %v2606_v5 }
  0xde   : > { %1971 = vmatpush2.bf16.msra.mxu1 %v2609_v6  ;;  %1931 = vmatprep.subr.bf16.mxu0 %v2614_v7 }
  0xdf   : > { %1972 = vmatprep.subr.bf16.mxu1 %v2617_v8  ;;  %v925_v8 = vld [vmem:[#allocation2 + $0x8] sm:$0xff] }
  0xe1   : > { %1932 = vmatpush2.bf16.msra.mxu0 %v2612_v9 }
  0xe2   : > { %1973 = vmatpush2.bf16.msra.mxu1 %v2615_v10  ;;  %1933 = vmatprep.subr.bf16.mxu0 %v2620_v11 }
  0xe3   : > { %1974 = vmatprep.subr.bf16.mxu1 %v2623_v12 }
  0xe5   : > { %1934 = vmatpush2.bf16.msra.mxu0 %v2618_v13 }
  0xe6   : > { %1975 = vmatpush2.bf16.msra.mxu1 %v2621_v14  ;;  %1935 = vmatprep.subr.bf16.mxu0 %v2626_v15 }
  0xe7   : > { %1976 = vmatprep.subr.bf16.mxu1 %v2629_v16 }
  0xe9   : > { %1936 = vmatpush2.bf16.msra.mxu0 %v2624_v17 }
  0xea   : > { %1977 = vmatpush2.bf16.msra.mxu1 %v2627_v18  ;;  %1937 = vmatprep.subr.bf16.mxu0 %v2632_v19 }
  0xeb   : > { %1978 = vmatprep.subr.bf16.mxu1 %v2635_v20 }
  0xed   : > { %1938 = vmatpush2.bf16.msra.mxu0 %v2630_v21 }
  0xee   : > { %1979 = vmatpush2.bf16.msra.mxu1 %v2633_v22  ;;  %1939 = vmatprep.subr.bf16.mxu0 %v2638_v23 }
  0xef   : > { %1980 = vmatprep.subr.bf16.mxu1 %v2641_v24 }
  0xf1   : > { %1940 = vmatpush2.bf16.msra.mxu0 %v2636_v25 }
  0xf2   : > { %1981 = vmatpush2.bf16.msra.mxu1 %v2639_v26  ;;  %1991 = vmatprep.subr.bf16.mxu0 %v2646_v27 }
  0xf4   : > { %1942 = vmatmul.mubr.bf16.vlgmr.msra.gmra.mxu0 %v2231_v28 }
  0xf5   : > { %1983 = vmatmul.mubr.bf16.vlgmr.msra.gmra.mxu1 %v2233_v29  ;;  %1992 = vmatpush1.bf16.msra.mxu0 %v2644_v30 }
  0xf6   : > { %2023 = vmatprep.mubr.bf16.mxu0 %v2728_v33  ;;  %1993 = vmatprep.subr.bf16.mxu0 %v2651_v31 }
  0xf9   : > { %1994 = vmatpush1.bf16.msra.mxu0 %v2649_v32 }
  0xfa   : > { %1995 = vmatprep.subr.bf16.mxu0 %v2654_v34 }
  0xfd   : > { %1996 = vmatpush1.bf16.msra.mxu0 %v2652_v35 }
  0xfe   : > { %1997 = vmatprep.subr.bf16.mxu0 %v2657_v36 }
 0x101   : > { %1998 = vmatpush1.bf16.msra.mxu0 %v2655_v37 }
 0x102   : > { %1999 = vmatprep.subr.bf16.mxu0 %v2660_v38 }
 0x105   : > { %2000 = vmatpush1.bf16.msra.mxu0 %v2658_v39 }
 0x106   : > { %2001 = vmatprep.subr.bf16.mxu0 %v2663_v40 }
 0x109   : > { %2002 = vmatpush1.bf16.msra.mxu0 %v2661_v41 }
 0x10a   : > { %2003 = vmatprep.subr.bf16.mxu0 %v2666_v42 }
 0x10d   : > { %2004 = vmatpush1.bf16.msra.mxu0 %v2664_v43 }
 0x10e   : > { %2005 = vmatprep.subr.bf16.mxu0 %v2669_v44 }
 0x111   : > { %2006 = vmatpush1.bf16.msra.mxu0 %v2667_v45 }
 0x114   : > { %2024 = vmatmul.mubr.bf16.vlgmr.msra.gmra.mxu0 %v2670_v46 }
 0x174   : > { %v1861_v47 = vpop.f32.mrf.mxu0 }
 0x175   : > { %v1902_v48 = vpop.f32.mrf.mxu1 }
 0x176   : > { %v1903_v49 = vadd.f32 %v1902_v48, %v1861_v47  ;;  %v1863_v50 = vpop.f32.mrf.mxu0 }
 0x177   : > { %v1904_v51 = vpop.f32.mrf.mxu1 }
 0x178   : > { %v1905_v52 = vadd.f32 %v1904_v51, %v1863_v50  ;;  %v1865_v53 = vpop.f32.mrf.mxu0 }
 0x179   : > { %v1906_v54 = vpop.f32.mrf.mxu1 }
 0x17a   : > { %v1866_v55 = vpop.f32.mrf.mxu0 }
 0x17b   : > { %v1907_v56 = vpop.f32.mrf.mxu1 }
 0x1b4   : > { %v1943_v57 = vpop.f32.mrf.mxu0 }
 0x1b5   : > { %v1984_v58 = vpop.f32.mrf.mxu1  ;;  %v1944_v1 = vadd.f32 %v1943_v57, %v1903_v49 }
 0x1b6   : > { %v1945_v59 = vpop.f32.mrf.mxu0 }
 0x1b7   : > { %v1986_v60 = vpop.f32.mrf.mxu1  ;;  %v1946_v2 = vadd.f32 %v1945_v59, %v1905_v52  ;;  %v1985_v3 = vadd.f32 %v1984_v58, %v1944_v1 }
 0x1b8   : > { %v1947_v61 = vpop.f32.mrf.mxu0 }
 0x1b9   : > { %v1988_v62 = vpop.f32.mrf.mxu1  ;;  %v1987_v6 = vadd.f32 %v1986_v60, %v1946_v2 }
 0x1ba   : > { %v1948_v63 = vpop.f32.mrf.mxu0 }
 0x1bb   : > { %v1989_v0 = vpop.f32.mrf.mxu1 }
 0x1d4   : > { %v2025_v5 = vpop.f32.mrf.mxu0 }
 0x1d5   : > { %v2026_v7 = vadd.f32 %v2025_v5, %v1985_v3 }
 0x1d6   : > { %v2027_v9 = vpop.f32.mrf.mxu0 }
 0x1d7   : > { %v2032_v10 = vadd.f32 %v2026_v7, %v924_v4  ;;  %v2028_v11 = vadd.f32 %v2027_v9, %v1987_v6  ;;  %2039 = sbr.rel (%p2380_p13) target bundleno = 493 (0x1ed), region = 82 }
 0x1d8   : > { %v2029_v12 = vpop.f32.mrf.mxu0 }
 0x1d9   : > { %2034 = vst [vmem:[#allocation2] sm:$0xff] %v2032_v10  ;;  %v2033_v13 = vadd.f32 %v2028_v11, %v925_v8 }
 0x1da   : > { %v2030_v14 = vpop.f32.mrf.mxu0 }
 0x1db   : > { %2035 = vst [vmem:[#allocation2 + $0x8] sm:$0xff] %v2033_v13 }
 0x1dc   : > { %v2044_v15 = vlaneseq  ;;  %v2042_v17 = vld [vmem:[%s900_s15] sm:$0x3] }
 0x1dd   : > { %v2056_v18 = vld [vmem:[%s905_s8] sm:$0x3] }
 0x1de   : > { %v2045_v16 = vshrl.u32 %v2044_v15, 7 }
 0x1e0   : > { %v2046_v19 = vsub.s32 0, %v2045_v16  ;;  %v2050_v20 = vsub.s32 1, %v2045_v16  ;;  %v2040_v21 = vld [vmem:[#allocation2] sm:$0xff] }
 0x1e2   : > { %v2041_v22 = vld [vmem:[#allocation2 + $0x8] sm:$0xff]  ;;  %v2047_v23 = vrot.slane %v2042_v17, %v2046_v19  ;;  %v2051_v24 = vrot.slane %v2042_v17, %v2050_v20  ;;  %v2061_v25 = vrot.slane %v2056_v18, %v2046_v19  ;;  %v2065_v26 = vrot.slane %v2056_v18, %v2050_v20 }
 0x1e4   : > { %v2054_v27 = vmul.f32 %v2047_v23, %v2040_v21  ;;  %v2055_v28 = vmul.f32 %v2051_v24, %v2041_v22 }
 0x1e6   : > { %v2068_v29 = vadd.f32 %v2061_v25, %v2054_v27  ;;  %v2069_v30 = vadd.f32 %v2065_v26, %v2055_v28 }
 0x1e8   : > { %v2070_v31 = vmax.f32 %v2068_v29, 0.0  ;;  %v2071_v32 = vmax.f32 %v2069_v30, 0.0 }
 0x1ea   : > { %v2385_v33 = vpack.c.bf16 %v2071_v32, %v2070_v31 }
 0x1ec   : > { %2080 = vst [vmem:[%s3130_s12] sm:$0xff] %v2385_v33 }
 0x1ed PF: > { %s14_s21 = sadd.s32 1, %s2725_s21   ;;  %s3334_s15 = smov %s2705_s16 }
 0x1ee   : > { %p11_p0 = scmp.ge.s32.totalorder %s14_s21, 6   ;;  %s3335_s16 = smov %s2805_s28 }
 0x1ef   : > { %s3336_s17 = smov %s2717_s19  ;;  %s3337_s18 = smov %s2721_s20 }
 0x1f0   : > { %s3338_s19 = smov %s3341_s22  ;;  %s3339_s20 = smov %s3345_s23 }
 0x1f1   :  { %13 = sbr.rel (!%p11_p0) target bundleno = 4 (0x4), region = 126 }

</bundles_post_ra>
